<compile_context>
chip_gen: v7x
topology: tpu7x:2x2x1
jax: 0.10.0
libtpu: 0.0.40
codegen_flags: <defaults>
</compile_context>

<pallas_src>
import functools
import math

import jax
import jax.numpy as jnp
from jax import lax
from jax.experimental import pallas as pl
from jax.experimental.pallas import tpu as pltpu


GROWTH = 32            # densenet121 growth_rate
BN_SIZE = 4            # bottleneck width multiplier (4 * 32 = 128)
BLOCK_CONFIG = (6, 12, 24, 16)
INIT_FEATURES = 64
BN_EPS = 1e-5

_VMEM_LIMIT = 32 * 1024 * 1024      # safe on v5e/v6e/v7x, above the v5e default


def _round_up(x, m):
    return (x + m - 1) // m * m


def _cparams():
    return pltpu.CompilerParams(dimension_semantics=("parallel",),
                                vmem_limit_bytes=_VMEM_LIMIT)


def _row_tile(n_rows, row_bytes, budget=2 * 1024 * 1024):
    """Largest row tile (multiple of 8) keeping the per-buffer footprint bounded."""
    t = max(1, budget // max(int(row_bytes), 1))
    t = max(8, min(4096, t - (t % 8)))
    return n_rows if n_rows <= t else t


# ------------------------------ Pallas kernels ------------------------------

def _affine_matmul_kernel(x_ref, sin_ref, bin_ref, w_ref, sout_ref, bout_ref,
                          o_ref, *, relu_in, relu_out, bf16_mxu):
    """o = post_affine[relu]( pre_affine[relu](x) @ w )   (fused eval-BN + 1x1 conv)."""
    h = x_ref[...].astype(jnp.float32) * sin_ref[...] + bin_ref[...]
    if relu_in:
        h = jnp.maximum(h, 0.0)
    w = w_ref[...]
    if bf16_mxu:
        h = h.astype(jnp.bfloat16)
    else:
        w = w.astype(jnp.float32)
    acc = jnp.dot(h, w, preferred_element_type=jnp.float32)
    acc = acc * sout_ref[...] + bout_ref[...]
    if relu_out:
        acc = jnp.maximum(acc, 0.0)
    o_ref[...] = acc.astype(o_ref.dtype)


def _conv3x3_kernel(x_ref, w_ref, o_ref, *, wp, out_rows):
    """3x3 / pad-1 conv of one image: 9 shifted dots over the flattened padded plane.

    x_ref: (Lp, C)  zero-padded plane flattened row-major (row pitch wp)
    w_ref: (9, C, G) taps in (ky, kx) order;  o_ref: (out_rows, G)
    """
    acc = jnp.zeros((out_rows, o_ref.shape[-1]), jnp.float32)
    for t in range(9):
        off = (t // 3) * wp + (t % 3)
        slab = x_ref[pl.ds(off, out_rows), :]
        acc = acc + jnp.dot(slab, w_ref[t], preferred_element_type=jnp.float32)
    o_ref[...] = acc.astype(o_ref.dtype)


def _pool_reduce_kernel(*refs, n_taps, op):
    """Elementwise max / mean of n_taps row-aligned window taps."""
    o_ref = refs[-1]
    if op == "max":
        acc = refs[0][...]
        for t in range(1, n_taps):
            acc = jnp.maximum(acc, refs[t][...])
    else:
        acc = refs[0][...].astype(jnp.float32)
        for t in range(1, n_taps):
            acc = acc + refs[t][...].astype(jnp.float32)
        acc = acc * (1.0 / n_taps)
    o_ref[...] = acc.astype(o_ref.dtype)


# ---------------------------- pallas_call plumbing ---------------------------

def _affine_matmul(x2d, s_in, b_in, w, s_out, b_out, *, relu_in, relu_out,
                   out_dtype, k_cols=None):
    """Row-tiled fused (affine -> relu -> matmul -> affine -> relu).

    If k_cols is given (multiple of 128), only the first k_cols columns of x2d are
    read (BlockSpec prefix read -- no HBM slice copy)."""
    rows = x2d.shape[0]
    k = x2d.shape[1] if k_cols is None else k_cols
    n = w.shape[1]
    bf16_mxu = (w.dtype == jnp.bfloat16)
    row_bytes = k * x2d.dtype.itemsize + n * 4 + n * jnp.dtype(out_dtype).itemsize
    tr = _row_tile(rows, row_bytes)
    grid = (pl.cdiv(rows, tr),)
    kern = functools.partial(_affine_matmul_kernel, relu_in=relu_in,
                             relu_out=relu_out, bf16_mxu=bf16_mxu)
    flops = 2 * rows * k * n
    bytes_accessed = (rows * k * x2d.dtype.itemsize + k * n * w.dtype.itemsize
                      + rows * n * jnp.dtype(out_dtype).itemsize + 2 * (k + n) * 4)
    return pl.pallas_call(
        kern,
        out_shape=jax.ShapeDtypeStruct((rows, n), out_dtype),
        grid=grid,
        in_specs=[
            pl.BlockSpec((tr, k), lambda i: (i, 0)),
            pl.BlockSpec((1, k), lambda i: (0, 0)),
            pl.BlockSpec((1, k), lambda i: (0, 0)),
            pl.BlockSpec((k, n), lambda i: (0, 0)),
            pl.BlockSpec((1, n), lambda i: (0, 0)),
            pl.BlockSpec((1, n), lambda i: (0, 0)),
        ],
        out_specs=pl.BlockSpec((tr, n), lambda i: (i, 0)),
        compiler_params=_cparams(),
        cost_estimate=pl.CostEstimate(flops=int(flops), transcendentals=0,
                                      bytes_accessed=int(bytes_accessed)),
    )(x2d, s_in.reshape(1, k), b_in.reshape(1, k), w,
      s_out.reshape(1, n), b_out.reshape(1, n))


def _matmul_f32(a, b):
    """Plain f32 (rows, K) @ (K, N) for the bilinear-interp matrices (tiny K)."""
    rows, k = a.shape
    n = b.shape[1]
    padk = (-k) % 8
    if padk:
        a = jnp.pad(a, ((0, 0), (0, padk)))
        b = jnp.pad(b, ((0, padk), (0, 0)))
        k += padk
    return _affine_matmul(a, jnp.ones((k,), jnp.float32), jnp.zeros((k,), jnp.float32),
                          b, jnp.ones((n,), jnp.float32), jnp.zeros((n,), jnp.float32),
                          relu_in=False, relu_out=False, out_dtype=jnp.float32)


def _conv3x3(x_nhwc, w2):
    """3x3 / stride-1 / pad-1 conv (no bias).  x already BN+ReLU'd, bf16."""
    n, h, w, c = x_nhwc.shape
    g = w2.shape[-1]
    wp = w + 2
    # pad H by (1,2) so every shifted slab stays inside the flattened plane
    xflat = jnp.pad(x_nhwc, ((0, 0), (1, 2), (1, 1), (0, 0))).reshape(n, (h + 3) * wp, c)
    out_rows = h * wp
    kern = functools.partial(_conv3x3_kernel, wp=wp, out_rows=out_rows)
    flops = 2 * n * out_rows * 9 * c * g
    bytes_accessed = xflat.size * 2 + w2.size * 2 + n * out_rows * g * 2
    out = pl.pallas_call(
        kern,
        out_shape=jax.ShapeDtypeStruct((n, out_rows, g), jnp.bfloat16),
        grid=(n,),
        in_specs=[
            pl.BlockSpec((None, (h + 3) * wp, c), lambda b: (b, 0, 0)),
            pl.BlockSpec((9, c, g), lambda b: (0, 0, 0)),
        ],
        out_specs=pl.BlockSpec((None, out_rows, g), lambda b: (b, 0, 0)),
        compiler_params=_cparams(),
        cost_estimate=pl.CostEstimate(flops=int(flops), transcendentals=0,
                                      bytes_accessed=int(bytes_accessed)),
    )(xflat, w2)
    # valid conv outputs are the first `w` columns of each padded-pitch row
    return out.reshape(n, h, wp, g)[:, :, :w, :]


def _pool2d(x_nhwc, *, window, stride, pad, op):
    """Max / avg pool: window taps gathered once, reduced in one row-tiled kernel."""
    n, h, w, c = x_nhwc.shape
    kh, kw = window
    if pad:
        pad_val = -jnp.inf if op == "max" else 0.0
        x_nhwc = jnp.pad(x_nhwc, ((0, 0), (pad, pad), (pad, pad), (0, 0)),
                         constant_values=pad_val)
        h += 2 * pad
        w += 2 * pad
    ho = (h - kh) // stride + 1
    wo = (w - kw) // stride + 1
    rows = n * ho * wo
    taps = []
    for dy in range(kh):
        for dx in range(kw):
            v = x_nhwc[:, dy:dy + stride * (ho - 1) + 1:stride,
                          dx:dx + stride * (wo - 1) + 1:stride, :]
            taps.append(v.reshape(rows, c))
    tr = _row_tile(rows, (kh * kw + 1) * c * x_nhwc.dtype.itemsize)
    kern = functools.partial(_pool_reduce_kernel, n_taps=kh * kw, op=op)
    bytes_accessed = (kh * kw + 1) * rows * c * x_nhwc.dtype.itemsize
    out = pl.pallas_call(
        kern,
        out_shape=jax.ShapeDtypeStruct((rows, c), x_nhwc.dtype),
        grid=(pl.cdiv(rows, tr),),
        in_specs=[pl.BlockSpec((tr, c), lambda i: (i, 0)) for _ in taps],
        out_specs=pl.BlockSpec((tr, c), lambda i: (i, 0)),
        compiler_params=_cparams(),
        cost_estimate=pl.CostEstimate(flops=int(kh * kw * rows * c), transcendentals=0,
                                      bytes_accessed=int(bytes_accessed)),
    )(*taps)
    return out.reshape(n, ho, wo, c)


# ------------------------------- parameters ---------------------------------

def _bn_scale_shift(c):
    """Eval-mode BatchNorm folded to per-channel scale/shift (untrained buffers:
    gamma=1, beta=0, running_mean=0, running_var=1)."""
    scale = jnp.full((c,), 1.0 / math.sqrt(1.0 + BN_EPS), jnp.float32)
    shift = jnp.zeros((c,), jnp.float32)
    return scale, shift


def _he(key, shape, fan_in):
    return jax.random.normal(key, shape, dtype=jnp.float32) * math.sqrt(2.0 / fan_in)


def init_params(key, n_input, n_dim):
    keys = iter(jax.random.split(key, 160))
    nk = lambda: next(keys)
    p = {}
    # conv0: the module's replacement Conv2d(nInput, 64, 1, 2, 3), bias=True.
    p["conv0_w"] = _he(nk(), (n_input, INIT_FEATURES), n_input).astype(jnp.bfloat16)
    p["conv0_b"] = 0.01 * jax.random.normal(nk(), (INIT_FEATURES,), jnp.float32)

    c = INIT_FEATURES
    for bi, n_layers in enumerate(BLOCK_CONFIG):
        layers = []
        for li in range(n_layers):
            c_in = c + li * GROWTH
            c_rd = _round_up(c_in, 128)
            # 1x1 bottleneck weight padded to the 128-rounded contraction width;
            # the extra rows are ZERO, so the result is exact for any BN params.
            w1 = _he(nk(), (c_in, BN_SIZE * GROWTH), c_in)
            w1 = jnp.pad(w1, ((0, c_rd - c_in), (0, 0))).astype(jnp.bfloat16)
            w2 = _he(nk(), (3, 3, BN_SIZE * GROWTH, GROWTH), 9 * BN_SIZE * GROWTH)
            w2 = w2.reshape(9, BN_SIZE * GROWTH, GROWTH).astype(jnp.bfloat16)
            layers.append((c_in, c_rd, w1, w2))
        p[f"block{bi}"] = layers
        c += n_layers * GROWTH
        if bi != len(BLOCK_CONFIG) - 1:
            p[f"trans{bi}_w"] = _he(nk(), (c, c // 2), c).astype(jnp.bfloat16)
            c //= 2
    # classifier: the module's Conv2d(1024, nDimension, 1), bias=True.
    p["cls_w"] = _he(nk(), (c, n_dim), c).astype(jnp.bfloat16)
    p["cls_b"] = 0.01 * jax.random.normal(nk(), (n_dim,), jnp.float32)
    return p


# ------------------------------ network pieces ------------------------------

@jax.jit
def _stem(x_nchw, w0, b0):
    """conv0 (1x1, stride 2, pad 3, bias) + norm0 + relu0 + maxpool 3x3/2/1."""
    x = jnp.transpose(x_nchw, (0, 2, 3, 1)).astype(jnp.bfloat16)      # NHWC, lane-dense
    xp = jnp.pad(x, ((0, 0), (3, 3), (3, 3), (0, 0)))[:, ::2, ::2, :]
    n, h, w, k = xp.shape
    x2d = xp.reshape(n * h * w, k)
    padk = (-k) % 8
    if padk:
        x2d = jnp.pad(x2d, ((0, 0), (0, padk)))
        w0 = jnp.pad(w0, ((0, padk), (0, 0)))
        k += padk
    s0, sh0 = _bn_scale_shift(INIT_FEATURES)
    bout = b0 * s0 + sh0                       # fold conv bias into the BN epilogue
    feat = _affine_matmul(x2d, jnp.ones((k,), jnp.float32), jnp.zeros((k,), jnp.float32),
                          w0, s0, bout, relu_in=False, relu_out=True,
                          out_dtype=jnp.bfloat16)
    feat = feat.reshape(n, h, w, INIT_FEATURES)
    return _pool2d(feat, window=(3, 3), stride=2, pad=1, op="max")


@functools.partial(jax.jit, static_argnames=("n", "h", "w", "c_rd"),
                   donate_argnums=(0,))
def _dense_layer(buf, w1, w2, c_off, *, n, h, w, c_rd):
    """One dense layer: BN1+ReLU+1x1conv+BN2+ReLU (1 kernel) -> 3x3 conv (1 kernel),
    new 32 channels written in place at channel offset c_off (donated buffer)."""
    rows = buf.shape[0]
    s1, b1 = _bn_scale_shift(c_rd)
    s2, b2 = _bn_scale_shift(BN_SIZE * GROWTH)
    hmid = _affine_matmul(buf, s1, b1, w1, s2, b2, relu_in=True, relu_out=True,
                          out_dtype=jnp.bfloat16, k_cols=c_rd)
    new = _conv3x3(hmid.reshape(n, h, w, BN_SIZE * GROWTH), w2)
    return lax.dynamic_update_slice_in_dim(buf, new.reshape(rows, GROWTH), c_off, axis=1)


@functools.partial(jax.jit, static_argnames=("n", "h", "w"))
def _transition(feat2d, wt, *, n, h, w):
    """BN + ReLU + 1x1 conv (fused) + AvgPool 2x2 / 2."""
    c = feat2d.shape[1]
    c2 = wt.shape[1]
    s, b = _bn_scale_shift(c)
    t = _affine_matmul(feat2d, s, b, wt,
                       jnp.ones((c2,), jnp.float32), jnp.zeros((c2,), jnp.float32),
                       relu_in=True, relu_out=False, out_dtype=jnp.bfloat16)
    return _pool2d(t.reshape(n, h, w, c2), window=(2, 2), stride=2, pad=0, op="avg")


def _interp_matrix(out_size, in_size):
    """Bilinear interpolation matrix, align_corners=True (upsample_bilinear)."""
    if in_size == 1:
        return jnp.ones((out_size, 1), jnp.float32)
    src = jnp.arange(out_size, dtype=jnp.float32) * (in_size - 1) / (out_size - 1)
    i0 = jnp.clip(jnp.floor(src).astype(jnp.int32), 0, in_size - 2)
    frac = src - i0.astype(jnp.float32)
    return (jax.nn.one_hot(i0, in_size, dtype=jnp.float32) * (1.0 - frac)[:, None]
            + jax.nn.one_hot(i0 + 1, in_size, dtype=jnp.float32) * frac[:, None])


def _bilinear_upsample(x_nhwc, out_hw):
    """Separable bilinear resize as two small Pallas matmuls (f32)."""
    n, h, w, c = x_nhwc.shape
    ho, wo = out_hw
    ah = _interp_matrix(ho, h)
    aw = _interp_matrix(wo, w)
    t = jnp.transpose(x_nhwc, (1, 0, 2, 3)).reshape(h, n * w * c)
    t = _matmul_f32(ah, t).reshape(ho, n, w, c)
    t = jnp.transpose(t, (2, 1, 0, 3)).reshape(w, n * ho * c)
    t = _matmul_f32(aw, t).reshape(wo, n, ho, c)
    return jnp.transpose(t, (1, 2, 0, 3))


@functools.partial(jax.jit, static_argnames=("n", "h", "w", "out_hw"))
def _head(feat2d, cls_w, cls_b, *, n, h, w, out_hw):
    """norm5 + classifier (1x1 conv, bias) fused, then bilinear upsample, NCHW out."""
    c = feat2d.shape[1]
    nd = cls_w.shape[1]
    s5, b5 = _bn_scale_shift(c)
    out = _affine_matmul(feat2d, s5, b5, cls_w,
                         jnp.ones((nd,), jnp.float32), cls_b.astype(jnp.float32),
                         relu_in=False, relu_out=False, out_dtype=jnp.float32)
    out = _bilinear_upsample(out.reshape(n, h, w, nd), out_hw)
    return jnp.transpose(out, (0, 3, 1, 2))


# -------------------------------- forward -----------------------------------

def densenet_forward(params, x_nchw):
    n, _, h0, w0 = x_nchw.shape
    feat = _stem(x_nchw, params["conv0_w"], params["conv0_b"])        # (n,h,w,64) bf16

    for bi, n_layers in enumerate(BLOCK_CONFIG):
        nb, h, w, c = feat.shape
        rows = nb * h * w
        c_max = c + n_layers * GROWTH
        # Block-wide feature buffer; each layer appends its 32 channels in place.
        buf = jnp.pad(feat.reshape(rows, c), ((0, 0), (0, c_max - c)))
        for (c_in, c_rd, w1, w2) in params[f"block{bi}"]:
            buf = _dense_layer(buf, w1, w2, c_in, n=nb, h=h, w=w, c_rd=c_rd)
        if bi != len(BLOCK_CONFIG) - 1:
            feat = _transition(buf, params[f"trans{bi}_w"], n=nb, h=h, w=w)
        else:
            feat = buf.reshape(nb, h, w, c_max)

    nb, h, w, c = feat.shape
    return _head(feat.reshape(nb * h * w, c), params["cls_w"], params["cls_b"],
                 n=nb, h=h, w=w, out_hw=(h0, w0))


if __name__ == "__main__":
    # DenseNet-121's stride-2 conv0, maxpool and 3 transitions need spatial >= 32;
    # 64 keeps the final bilinear upsample non-trivial (2x2 -> 64x64).
    N, N_INPUT, SPATIAL, N_DIM = 2, 4, 64, 8
    key = jax.random.PRNGKey(0)
    k_x, k_p = jax.random.split(key)
    x = jax.random.normal(k_x, (N, N_INPUT, SPATIAL, SPATIAL), dtype=jnp.float32)
    params = init_params(k_p, N_INPUT, N_DIM)

    y = densenet_forward(params, x)
    jax.block_until_ready(y)

    assert y.shape == (N, N_DIM, SPATIAL, SPATIAL), y.shape
    assert bool(jnp.all(jnp.isfinite(y)))
    print("KERNEL_OK")
</pallas_src>

<mosaic_0001>
module attributes {stable_mosaic.version = 11 : i64} {
  func.func @_affine_matmul_kernel(%arg0: i32, %arg1: memref<2450x8xbf16, #tpu.memory_space<vmem>>, %arg2: memref<1x8xf32, #tpu.memory_space<vmem>>, %arg3: memref<1x8xf32, #tpu.memory_space<vmem>>, %arg4: memref<8x64xbf16, #tpu.memory_space<vmem>>, %arg5: memref<1x64xf32, #tpu.memory_space<vmem>>, %arg6: memref<1x64xf32, #tpu.memory_space<vmem>>, %arg7: memref<2450x64xbf16, #tpu.memory_space<vmem>>) attributes {dimension_semantics = [#tpu.dimension_semantics<parallel>], iteration_bounds = array<i64: 1>, scalar_prefetch = 0 : i64, scratch_operands = 0 : i64, tpu.core_type = #tpu.core_type<tc>, window_params = [{transform_indices = @transform_0, window_bounds = array<i64: 2450, 8>}, {pipeline_mode = #tpu.pipeline_mode<synchronous>, transform_indices = @transform_1, window_bounds = array<i64: 1, 8>}, {pipeline_mode = #tpu.pipeline_mode<synchronous>, transform_indices = @transform_2, window_bounds = array<i64: 1, 8>}, {pipeline_mode = #tpu.pipeline_mode<synchronous>, transform_indices = @transform_3, window_bounds = array<i64: 8, 64>}, {pipeline_mode = #tpu.pipeline_mode<synchronous>, transform_indices = @transform_4, window_bounds = array<i64: 1, 64>}, {pipeline_mode = #tpu.pipeline_mode<synchronous>, transform_indices = @transform_5, window_bounds = array<i64: 1, 64>}, {transform_indices = @transform_6, window_bounds = array<i64: 2450, 64>}]} {
    %c0 = arith.constant 0 : index
    %c0_0 = arith.constant 0 : index
    %0 = vector.load %arg1[%c0, %c0_0] : memref<2450x8xbf16, #tpu.memory_space<vmem>>, vector<2450x8xbf16>
    %1 = arith.extf %0 : vector<2450x8xbf16> to vector<2450x8xf32>
    %c0_1 = arith.constant 0 : index
    %c0_2 = arith.constant 0 : index
    %2 = vector.load %arg2[%c0_1, %c0_2] : memref<1x8xf32, #tpu.memory_space<vmem>>, vector<1x8xf32>
    %3 = vector.broadcast %2 : vector<1x8xf32> to vector<2450x8xf32>
    %4 = arith.mulf %1, %3 : vector<2450x8xf32>
    %c0_3 = arith.constant 0 : index
    %c0_4 = arith.constant 0 : index
    %5 = vector.load %arg3[%c0_3, %c0_4] : memref<1x8xf32, #tpu.memory_space<vmem>>, vector<1x8xf32>
    %6 = vector.broadcast %5 : vector<1x8xf32> to vector<2450x8xf32>
    %7 = arith.addf %4, %6 : vector<2450x8xf32>
    %c0_5 = arith.constant 0 : index
    %c0_6 = arith.constant 0 : index
    %8 = vector.load %arg4[%c0_5, %c0_6] : memref<8x64xbf16, #tpu.memory_space<vmem>>, vector<8x64xbf16>
    %9 = arith.truncf %7 : vector<2450x8xf32> to vector<2450x8xbf16>
    %cst = arith.constant dense<0.000000e+00> : vector<2450x64xf32>
    %10 = tpu.matmul %9, %8, %cst {dimension_numbers = #tpu.dot_dimension_numbers<[1], [0], [0], [1], [0, 0, 1, 1], [], []>} : vector<2450x8xbf16>, vector<8x64xbf16>, vector<2450x64xf32> -> vector<2450x64xf32>
    %c0_7 = arith.constant 0 : index
    %c0_8 = arith.constant 0 : index
    %11 = vector.load %arg5[%c0_7, %c0_8] : memref<1x64xf32, #tpu.memory_space<vmem>>, vector<1x64xf32>
    %12 = vector.broadcast %11 : vector<1x64xf32> to vector<2450x64xf32>
    %13 = arith.mulf %10, %12 : vector<2450x64xf32>
    %c0_9 = arith.constant 0 : index
    %c0_10 = arith.constant 0 : index
    %14 = vector.load %arg6[%c0_9, %c0_10] : memref<1x64xf32, #tpu.memory_space<vmem>>, vector<1x64xf32>
    %15 = vector.broadcast %14 : vector<1x64xf32> to vector<2450x64xf32>
    %16 = arith.addf %13, %15 : vector<2450x64xf32>
    %cst_11 = arith.constant 0.000000e+00 : f32
    %17 = vector.broadcast %cst_11 : f32 to vector<2450x64xf32>
    %18 = arith.maximumf %16, %17 : vector<2450x64xf32>
    %19 = arith.truncf %18 : vector<2450x64xf32> to vector<2450x64xbf16>
    %c0_12 = arith.constant 0 : index
    %c0_13 = arith.constant 0 : index
    %20 = vector.load %arg7[%c0_12, %c0_13] : memref<2450x64xbf16, #tpu.memory_space<vmem>>, vector<2450x64xbf16>
    tpu.vector_store %arg7[%c0_12, %c0_13], %19 {strides = array<i32>} : memref<2450x64xbf16, #tpu.memory_space<vmem>>, vector<2450x64xbf16>,
    return
  }
  func.func @transform_0(%arg0: i32) -> (i32, i32) {
    %c0_i32 = arith.constant 0 : i32
    %c0_i32_0 = arith.constant 0 : i32
    return %arg0, %c0_i32 : i32, i32
  }
  func.func @transform_1(%arg0: i32) -> (i32, i32) {
    %c0_i32 = arith.constant 0 : i32
    %c0_i32_0 = arith.constant 0 : i32
    %c0_i32_1 = arith.constant 0 : i32
    return %c0_i32, %c0_i32_0 : i32, i32
  }
  func.func @transform_2(%arg0: i32) -> (i32, i32) {
    %c0_i32 = arith.constant 0 : i32
    %c0_i32_0 = arith.constant 0 : i32
    %c0_i32_1 = arith.constant 0 : i32
    return %c0_i32, %c0_i32_0 : i32, i32
  }
  func.func @transform_3(%arg0: i32) -> (i32, i32) {
    %c0_i32 = arith.constant 0 : i32
    %c0_i32_0 = arith.constant 0 : i32
    %c0_i32_1 = arith.constant 0 : i32
    return %c0_i32, %c0_i32_0 : i32, i32
  }
  func.func @transform_4(%arg0: i32) -> (i32, i32) {
    %c0_i32 = arith.constant 0 : i32
    %c0_i32_0 = arith.constant 0 : i32
    %c0_i32_1 = arith.constant 0 : i32
    return %c0_i32, %c0_i32_0 : i32, i32
  }
  func.func @transform_5(%arg0: i32) -> (i32, i32) {
    %c0_i32 = arith.constant 0 : i32
    %c0_i32_0 = arith.constant 0 : i32
    %c0_i32_1 = arith.constant 0 : i32
    return %c0_i32, %c0_i32_0 : i32, i32
  }
  func.func @transform_6(%arg0: i32) -> (i32, i32) {
    %c0_i32 = arith.constant 0 : i32
    %c0_i32_0 = arith.constant 0 : i32
    return %arg0, %c0_i32 : i32, i32
  }
}

module attributes {stable_mosaic.version = 11 : i64} {
  func.func @_pool_reduce_kernel(%arg0: i32, %arg1: memref<648x64xbf16, #tpu.memory_space<vmem>>, %arg2: memref<648x64xbf16, #tpu.memory_space<vmem>>, %arg3: memref<648x64xbf16, #tpu.memory_space<vmem>>, %arg4: memref<648x64xbf16, #tpu.memory_space<vmem>>, %arg5: memref<648x64xbf16, #tpu.memory_space<vmem>>, %arg6: memref<648x64xbf16, #tpu.memory_space<vmem>>, %arg7: memref<648x64xbf16, #tpu.memory_space<vmem>>, %arg8: memref<648x64xbf16, #tpu.memory_space<vmem>>, %arg9: memref<648x64xbf16, #tpu.memory_space<vmem>>, %arg10: memref<648x64xbf16, #tpu.memory_space<vmem>>) attributes {dimension_semantics = [#tpu.dimension_semantics<parallel>], iteration_bounds = array<i64: 1>, scalar_prefetch = 0 : i64, scratch_operands = 0 : i64, tpu.core_type = #tpu.core_type<tc>, window_params = [{transform_indices = @transform_0, window_bounds = array<i64: 648, 64>}, {transform_indices = @transform_1, window_bounds = array<i64: 648, 64>}, {transform_indices = @transform_2, window_bounds = array<i64: 648, 64>}, {transform_indices = @transform_3, window_bounds = array<i64: 648, 64>}, {transform_indices = @transform_4, window_bounds = array<i64: 648, 64>}, {transform_indices = @transform_5, window_bounds = array<i64: 648, 64>}, {transform_indices = @transform_6, window_bounds = array<i64: 648, 64>}, {transform_indices = @transform_7, window_bounds = array<i64: 648, 64>}, {transform_indices = @transform_8, window_bounds = array<i64: 648, 64>}, {transform_indices = @transform_9, window_bounds = array<i64: 648, 64>}]} {
    %c0 = arith.constant 0 : index
    %c0_0 = arith.constant 0 : index
    %0 = vector.load %arg1[%c0, %c0_0] : memref<648x64xbf16, #tpu.memory_space<vmem>>, vector<648x64xbf16>
    %c0_1 = arith.constant 0 : index
    %c0_2 = arith.constant 0 : index
    %1 = vector.load %arg2[%c0_1, %c0_2] : memref<648x64xbf16, #tpu.memory_space<vmem>>, vector<648x64xbf16>
    %2 = arith.maximumf %0, %1 : vector<648x64xbf16>
    %c0_3 = arith.constant 0 : index
    %c0_4 = arith.constant 0 : index
    %3 = vector.load %arg3[%c0_3, %c0_4] : memref<648x64xbf16, #tpu.memory_space<vmem>>, vector<648x64xbf16>
    %4 = arith.maximumf %2, %3 : vector<648x64xbf16>
    %c0_5 = arith.constant 0 : index
    %c0_6 = arith.constant 0 : index
    %5 = vector.load %arg4[%c0_5, %c0_6] : memref<648x64xbf16, #tpu.memory_space<vmem>>, vector<648x64xbf16>
    %6 = arith.maximumf %4, %5 : vector<648x64xbf16>
    %c0_7 = arith.constant 0 : index
    %c0_8 = arith.constant 0 : index
    %7 = vector.load %arg5[%c0_7, %c0_8] : memref<648x64xbf16, #tpu.memory_space<vmem>>, vector<648x64xbf16>
    %8 = arith.maximumf %6, %7 : vector<648x64xbf16>
    %c0_9 = arith.constant 0 : index
    %c0_10 = arith.constant 0 : index
    %9 = vector.load %arg6[%c0_9, %c0_10] : memref<648x64xbf16, #tpu.memory_space<vmem>>, vector<648x64xbf16>
    %10 = arith.maximumf %8, %9 : vector<648x64xbf16>
    %c0_11 = arith.constant 0 : index
    %c0_12 = arith.constant 0 : index
    %11 = vector.load %arg7[%c0_11, %c0_12] : memref<648x64xbf16, #tpu.memory_space<vmem>>, vector<648x64xbf16>
    %12 = arith.maximumf %10, %11 : vector<648x64xbf16>
    %c0_13 = arith.constant 0 : index
    %c0_14 = arith.constant 0 : index
    %13 = vector.load %arg8[%c0_13, %c0_14] : memref<648x64xbf16, #tpu.memory_space<vmem>>, vector<648x64xbf16>
    %14 = arith.maximumf %12, %13 : vector<648x64xbf16>
    %c0_15 = arith.constant 0 : index
    %c0_16 = arith.constant 0 : index
    %15 = vector.load %arg9[%c0_15, %c0_16] : memref<648x64xbf16, #tpu.memory_space<vmem>>, vector<648x64xbf16>
    %16 = arith.maximumf %14, %15 : vector<648x64xbf16>
    %c0_17 = arith.constant 0 : index
    %c0_18 = arith.constant 0 : index
    %17 = vector.load %arg10[%c0_17, %c0_18] : memref<648x64xbf16, #tpu.memory_space<vmem>>, vector<648x64xbf16>
    tpu.vector_store %arg10[%c0_17, %c0_18], %16 {strides = array<i32>} : memref<648x64xbf16, #tpu.memory_space<vmem>>, vector<648x64xbf16>,
    return
  }
  func.func @transform_0(%arg0: i32) -> (i32, i32) {
    %c0_i32 = arith.constant 0 : i32
    %c0_i32_0 = arith.constant 0 : i32
    return %arg0, %c0_i32 : i32, i32
  }
  func.func @transform_1(%arg0: i32) -> (i32, i32) {
    %c0_i32 = arith.constant 0 : i32
    %c0_i32_0 = arith.constant 0 : i32
    return %arg0, %c0_i32 : i32, i32
  }
  func.func @transform_2(%arg0: i32) -> (i32, i32) {
    %c0_i32 = arith.constant 0 : i32
    %c0_i32_0 = arith.constant 0 : i32
    return %arg0, %c0_i32 : i32, i32
  }
  func.func @transform_3(%arg0: i32) -> (i32, i32) {
    %c0_i32 = arith.constant 0 : i32
    %c0_i32_0 = arith.constant 0 : i32
    return %arg0, %c0_i32 : i32, i32
  }
  func.func @transform_4(%arg0: i32) -> (i32, i32) {
    %c0_i32 = arith.constant 0 : i32
    %c0_i32_0 = arith.constant 0 : i32
    return %arg0, %c0_i32 : i32, i32
  }
  func.func @transform_5(%arg0: i32) -> (i32, i32) {
    %c0_i32 = arith.constant 0 : i32
    %c0_i32_0 = arith.constant 0 : i32
    return %arg0, %c0_i32 : i32, i32
  }
  func.func @transform_6(%arg0: i32) -> (i32, i32) {
    %c0_i32 = arith.constant 0 : i32
    %c0_i32_0 = arith.constant 0 : i32
    return %arg0, %c0_i32 : i32, i32
  }
  func.func @transform_7(%arg0: i32) -> (i32, i32) {
    %c0_i32 = arith.constant 0 : i32
    %c0_i32_0 = arith.constant 0 : i32
    return %arg0, %c0_i32 : i32, i32
  }
  func.func @transform_8(%arg0: i32) -> (i32, i32) {
    %c0_i32 = arith.constant 0 : i32
    %c0_i32_0 = arith.constant 0 : i32
    return %arg0, %c0_i32 : i32, i32
  }
  func.func @transform_9(%arg0: i32) -> (i32, i32) {
    %c0_i32 = arith.constant 0 : i32
    %c0_i32_0 = arith.constant 0 : i32
    return %arg0, %c0_i32 : i32, i32
  }
}

</mosaic_0001>

<bundles_post_ra>
// kernel: _stem.2
= control target key start
LH: loop header
LB: loop body
LE: loop exit
PB: predicated region body
PF: predicated region fallthrough
CT: control target
= control target key end

     0   :  { %vm1884_vm0 = vcmask 1043456   ;;  %vm1421_vm1 = vcmask 64512   ;;  %vm5316_vm2 = vcmask 519168   ;;  %vm5623_vm3 = vcmask 516096   ;;  %s12192_s3 = inlined_call_operand.vmem [shape: bf16[8,64], index: 3, kind: input, shape index: {}]   ;;  %s12193_s0 = inlined_call_operand.vmem [shape: bf16[2450,8], index: 0, kind: input, shape index: {}]   ;;  %s12194_s1 = inlined_call_operand.vmem [shape: f32[1,8], index: 1, kind: input, shape index: {}]   ;;  %s12195_s2 = inlined_call_operand.vmem [shape: f32[1,8], index: 2, kind: input, shape index: {}]   ;;  %s12196_s4 = inlined_call_operand.vmem [shape: f32[1,64], index: 4, kind: input, shape index: {}]   ;;  %s12197_s5 = inlined_call_operand.vmem [shape: f32[1,64], index: 5, kind: input, shape index: {}]   ;;  %s12198_s6 = inlined_call_operand.vmem [shape: bf16[2450,64], index: 6, kind: output, shape index: {}]  }
   0x1   :  { %v1266_v0 = vld [vmem:[%s12192_s3] sm:$0xf]  ;;  %v7013_v6 = vld [vmem:[%s12193_s0 + $0x8] sm:$0xff]   ;;  %v7090_v7 = vld [vmem:[%s12193_s0 + $0x270] sm:$0xff]  }
   0x2   :  { %v6402_v1 = vld [vmem:[%s12193_s0] sm:$0xff]   ;;  %7632 = vmatprep.subr.msk.bf16.mxu0 %vm1884_vm0, %v1266_v0  ;;  %v1886_v3 = vsel %vm1884_vm0, %v1266_v0, 0  ;;  %7633 = vmatprep.subr.msk.bf16.mxu1 %vm1884_vm0, %v1266_v0  ;;  %v6407_v9 = vunpack.c.l.bf16 %v7013_v6  ;;  %v6408_v10 = vunpack.c.h.bf16 %v7013_v6  ;;  %v6715_v11 = vunpack.c.l.bf16 %v7090_v7  ;;  %v7091_v13 = vld [vmem:[%s12193_s0 + $0x278] sm:$0xff]   ;;  %v7014_v22 = vld [vmem:[%s12193_s0 + $0x10] sm:$0xff]  }
   0x3   :  { %v7692_v2 = vld [vmem:[%s12194_s1] ss:$0 sm:$0xff]  ;;  %v6403_v4 = vunpack.c.l.bf16 %v6402_v1  ;;  %v6404_v5 = vunpack.c.h.bf16 %v6402_v1  ;;  %7321 = vmatpush3.bf16.msra.mxu0 %v1886_v3  ;;  %7631 = vmatpush3.bf16.msra.mxu1 %v1886_v3  ;;  %v6716_v12 = vunpack.c.h.bf16 %v7090_v7  ;;  %v6719_v16 = vunpack.c.l.bf16 %v7091_v13  ;;  %v7015_v27 = vld [vmem:[%s12193_s0 + $0x18] sm:$0xff]   ;;  %v7093_v37 = vld [vmem:[%s12193_s0 + $0x288] sm:$0xff]  }
   0x4   :  { %v7703_v8 = vld [vmem:[%s12195_s2] ss:$0 sm:$0xff]  ;;  %v6720_v17 = vunpack.c.h.bf16 %v7091_v13  ;;  %v647_v18 = vmul.f32 %v6407_v9, %v7692_v2  ;;  %v648_v19 = vmul.f32 %v6408_v10, %v7692_v2  ;;  %v801_v20 = vmul.f32 %v6715_v11, %v7692_v2  ;;  %v7017_v59 = vld [vmem:[%s12193_s0 + $0x28] sm:$0xff]   ;;  %v7094_v0 = vld [vmem:[%s12193_s0 + $0x290] sm:$0xff]  }
   0x5   :  { %v645_v14 = vmul.f32 %v6403_v4, %v7692_v2  ;;  %v646_v15 = vmul.f32 %v6404_v5, %v7692_v2  ;;  %v802_v21 = vmul.f32 %v6716_v12, %v7692_v2  ;;  %v803_v25 = vmul.f32 %v6719_v16, %v7692_v2  ;;  %v7092_v32 = vld [vmem:[%s12193_s0 + $0x280] sm:$0xff]   ;;  %v7095_v11 = vld [vmem:[%s12193_s0 + $0x298] sm:$0xff]   ;;  %v7018_v16 = vld [vmem:[%s12193_s0 + $0x30] sm:$0xff]  }
   0x6   :  { %v804_v26 = vmul.f32 %v6720_v17, %v7692_v2  ;;  %v961_v28 = vadd.f32 %v7703_v8, %v647_v18  ;;  %v962_v29 = vadd.f32 %v7703_v8, %v648_v19  ;;  %v1115_v30 = vadd.f32 %v7703_v8, %v801_v20  ;;  %v7016_v50 = vld [vmem:[%s12193_s0 + $0x20] sm:$0xff]  }
   0x7   :  { %v959_v23 = vadd.f32 %v7703_v8, %v645_v14  ;;  %v960_v24 = vadd.f32 %v7703_v8, %v646_v15  ;;  %v1116_v31 = vadd.f32 %v7703_v8, %v802_v21  ;;  %v1117_v34 = vadd.f32 %v7703_v8, %v803_v25 }
   0x8   :  { %v1118_v35 = vadd.f32 %v7703_v8, %v804_v26  ;;  %v6411_v36 = vunpack.c.l.bf16 %v7014_v22  ;;  %v1268_v38 = vpack.c.bf16 %v962_v29, %v961_v28  ;;  %v6412_v40 = vunpack.c.h.bf16 %v7014_v22  ;;  %v7019_v29 = vld [vmem:[%s12193_s0 + $0x38] sm:$0xff]  }
   0x9   :  { %v1267_v33 = vpack.c.bf16 %v960_v24, %v959_v23  ;;  %v1345_v39 = vpack.c.bf16 %v1116_v31, %v1115_v30  ;;  %v6415_v41 = vunpack.c.l.bf16 %v7015_v27  ;;  %v6416_v44 = vunpack.c.h.bf16 %v7015_v27 }
   0xa   :  { %v1346_v42 = vpack.c.bf16 %v1118_v35, %v1117_v34  ;;  %v649_v43 = vmul.f32 %v6411_v36, %v7692_v2  ;;  %v6723_v45 = vunpack.c.l.bf16 %v7092_v32  ;;  %v650_v46 = vmul.f32 %v6412_v40, %v7692_v2 }
   0xb   :  { %7322 = vmatprep.mubr.msk.bf16.mxu0 %vm1421_vm1, %v1267_v33  ;;  %7478 = vmatprep.mubr.msk.bf16.mxu1 %vm1421_vm1, %v1345_v39  ;;  %v651_v47 = vmul.f32 %v6415_v41, %v7692_v2  ;;  %v6724_v48 = vunpack.c.h.bf16 %v7092_v32  ;;  %v6727_v49 = vunpack.c.l.bf16 %v7093_v37  ;;  %v652_v52 = vmul.f32 %v6416_v44, %v7692_v2 }
   0xc   :  { %7323 = vmatmul.mubr.msk.bf16.vlgmr.msra.gmra.mrb[0].mxu0 %vm1421_vm1, %v1268_v38  ;;  %7479 = vmatmul.mubr.msk.bf16.vlgmr.msra.gmra.mrb[0].mxu1 %vm1421_vm1, %v1346_v42  ;;  %v963_v51 = vadd.f32 %v7703_v8, %v649_v43  ;;  %v805_v53 = vmul.f32 %v6723_v45, %v7692_v2  ;;  %v6728_v54 = vunpack.c.h.bf16 %v7093_v37  ;;  %v964_v55 = vadd.f32 %v7703_v8, %v650_v46  ;;  %v7096_v38 = vld [vmem:[%s12193_s0 + $0x2a0] sm:$0xff]   ;;  %v7097_v43 = vld [vmem:[%s12193_s0 + $0x2a8] sm:$0xff]  }
   0xd   :  { %v965_v56 = vadd.f32 %v7703_v8, %v651_v47  ;;  %v806_v57 = vmul.f32 %v6724_v48, %v7692_v2  ;;  %v807_v58 = vmul.f32 %v6727_v49, %v7692_v2  ;;  %v966_v60 = vadd.f32 %v7703_v8, %v652_v52  ;;  %v7020_v52 = vld [vmem:[%s12193_s0 + $0x40] sm:$0xff]  }
   0xe   :  { %v1119_v61 = vadd.f32 %v7703_v8, %v805_v53  ;;  %v808_v62 = vmul.f32 %v6728_v54, %v7692_v2  ;;  %v6419_v63 = vunpack.c.l.bf16 %v7016_v50  ;;  %v1269_v1 = vpack.c.bf16 %v964_v55, %v963_v51 }
   0xf   :  { %v1120_v3 = vadd.f32 %v7703_v8, %v806_v57  ;;  %v1121_v4 = vadd.f32 %v7703_v8, %v807_v58  ;;  %v6420_v5 = vunpack.c.h.bf16 %v7016_v50  ;;  %v1270_v6 = vpack.c.bf16 %v966_v60, %v965_v56 }
  0x10   :  { %v1122_v7 = vadd.f32 %v7703_v8, %v808_v62  ;;  %v653_v9 = vmul.f32 %v6419_v63, %v7692_v2  ;;  %v6423_v10 = vunpack.c.l.bf16 %v7017_v59  ;;  %7326 = vmatprep.mubr.msk.bf16.mxu0 %vm1421_vm1, %v1269_v1  ;;  %v6424_v14 = vunpack.c.h.bf16 %v7017_v59 }
  0x11   :  { %v1347_v12 = vpack.c.bf16 %v1120_v3, %v1119_v61  ;;  %v654_v13 = vmul.f32 %v6420_v5, %v7692_v2  ;;  %v6731_v15 = vunpack.c.l.bf16 %v7094_v0  ;;  %v6732_v20 = vunpack.c.h.bf16 %v7094_v0  ;;  %v7021_v61 = vld [vmem:[%s12193_s0 + $0x48] sm:$0xff]   ;;  %v7098_v3 = vld [vmem:[%s12193_s0 + $0x2b0] sm:$0xff]  }
  0x12   :  { %v1348_v17 = vpack.c.bf16 %v1122_v7, %v1121_v4  ;;  %v967_v18 = vadd.f32 %v7703_v8, %v653_v9  ;;  %v655_v19 = vmul.f32 %v6423_v10, %v7692_v2  ;;  %v656_v22 = vmul.f32 %v6424_v14, %v7692_v2 }
  0x13   :  { %7482 = vmatprep.mubr.msk.bf16.mxu1 %vm1421_vm1, %v1347_v12  ;;  %v968_v21 = vadd.f32 %v7703_v8, %v654_v13  ;;  %v809_v23 = vmul.f32 %v6731_v15, %v7692_v2  ;;  %v6735_v24 = vunpack.c.l.bf16 %v7095_v11  ;;  %v810_v26 = vmul.f32 %v6732_v20, %v7692_v2  ;;  %v7099_v13 = vld [vmem:[%s12193_s0 + $0x2b8] sm:$0xff]  }
  0x14   :  { %7327 = vmatmul.mubr.msk.bf16.gmra.mrb[4].mxu0 %vm1421_vm1, %v1270_v6  ;;  %7483 = vmatmul.mubr.msk.bf16.gmra.mrb[4].mxu1 %vm1421_vm1, %v1348_v17  ;;  %v969_v25 = vadd.f32 %v7703_v8, %v655_v19  ;;  %v6736_v27 = vunpack.c.h.bf16 %v7095_v11  ;;  %v6427_v28 = vunpack.c.l.bf16 %v7018_v16  ;;  %v970_v31 = vadd.f32 %v7703_v8, %v656_v22 }
  0x15   :  { %v1271_v30 = vpack.c.bf16 %v968_v21, %v967_v18  ;;  %v1123_v32 = vadd.f32 %v7703_v8, %v809_v23  ;;  %v811_v33 = vmul.f32 %v6735_v24, %v7692_v2  ;;  %v1124_v34 = vadd.f32 %v7703_v8, %v810_v26  ;;  %v7022_v18 = vld [vmem:[%s12193_s0 + $0x50] sm:$0xff]  }
  0x16   :  { %v812_v35 = vmul.f32 %v6736_v27, %v7692_v2  ;;  %v6428_v36 = vunpack.c.h.bf16 %v7018_v16  ;;  %v657_v37 = vmul.f32 %v6427_v28, %v7692_v2  ;;  %v1272_v39 = vpack.c.bf16 %v970_v31, %v969_v25  ;;  %v7023_v31 = vld [vmem:[%s12193_s0 + $0x58] sm:$0xff]  }
  0x17   :  { %7330 = vmatprep.mubr.msk.bf16.mxu0 %vm1421_vm1, %v1271_v30  ;;  %v1125_v40 = vadd.f32 %v7703_v8, %v811_v33  ;;  %v6431_v41 = vunpack.c.l.bf16 %v7019_v29  ;;  %v6432_v42 = vunpack.c.h.bf16 %v7019_v29  ;;  %v1349_v44 = vpack.c.bf16 %v1124_v34, %v1123_v32 }
  0x18   :  { %v1126_v45 = vadd.f32 %v7703_v8, %v812_v35  ;;  %v658_v46 = vmul.f32 %v6428_v36, %v7692_v2  ;;  %v971_v47 = vadd.f32 %v7703_v8, %v657_v37  ;;  %v6739_v50 = vunpack.c.l.bf16 %v7096_v38 }
  0x19   :  { %v659_v48 = vmul.f32 %v6431_v41, %v7692_v2  ;;  %v660_v49 = vmul.f32 %v6432_v42, %v7692_v2  ;;  %v6740_v51 = vunpack.c.h.bf16 %v7096_v38  ;;  %7486 = vmatprep.mubr.msk.bf16.mxu1 %vm1421_vm1, %v1349_v44  ;;  %v6743_v55 = vunpack.c.l.bf16 %v7097_v43 }
  0x1a   :  { %v1350_v53 = vpack.c.bf16 %v1126_v45, %v1125_v40  ;;  %v972_v54 = vadd.f32 %v7703_v8, %v658_v46  ;;  %v6744_v56 = vunpack.c.h.bf16 %v7097_v43  ;;  %v813_v59 = vmul.f32 %v6739_v50, %v7692_v2  ;;  %v7100_v40 = vld [vmem:[%s12193_s0 + $0x2c0] sm:$0xff]   ;;  %v7101_v45 = vld [vmem:[%s12193_s0 + $0x2c8] sm:$0xff]  }
  0x1b   :  { %v973_v57 = vadd.f32 %v7703_v8, %v659_v48  ;;  %v974_v58 = vadd.f32 %v7703_v8, %v660_v49  ;;  %v814_v60 = vmul.f32 %v6740_v51, %v7692_v2  ;;  %v815_v63 = vmul.f32 %v6743_v55, %v7692_v2 }
  0x1c   :  { %7331 = vmatmul.mubr.msk.bf16.gmra.mrb[8].mxu0 %vm1421_vm1, %v1272_v39  ;;  %7487 = vmatmul.mubr.msk.bf16.gmra.mrb[8].mxu1 %vm1421_vm1, %v1350_v53  ;;  %v1273_v62 = vpack.c.bf16 %v972_v54, %v971_v47  ;;  %v816_v0 = vmul.f32 %v6744_v56, %v7692_v2  ;;  %v6435_v1 = vunpack.c.l.bf16 %v7020_v52  ;;  %v1127_v5 = vadd.f32 %v7703_v8, %v813_v59  ;;  %v7024_v54 = vld [vmem:[%s12193_s0 + $0x60] sm:$0xff]  }
  0x1d   :  { %v1274_v4 = vpack.c.bf16 %v974_v58, %v973_v57  ;;  %v1128_v6 = vadd.f32 %v7703_v8, %v814_v60  ;;  %v6436_v7 = vunpack.c.h.bf16 %v7020_v52  ;;  %v1129_v9 = vadd.f32 %v7703_v8, %v815_v63  ;;  %v7025_v63 = vld [vmem:[%s12193_s0 + $0x68] sm:$0xff]  }
  0x1e   :  { %7334 = vmatprep.mubr.msk.bf16.mxu0 %vm1421_vm1, %v1273_v62  ;;  %v1130_v10 = vadd.f32 %v7703_v8, %v816_v0  ;;  %v661_v11 = vmul.f32 %v6435_v1, %v7692_v2  ;;  %v6439_v12 = vunpack.c.l.bf16 %v7021_v61  ;;  %v6440_v16 = vunpack.c.h.bf16 %v7021_v61 }
  0x1f   :  { %v1351_v14 = vpack.c.bf16 %v1128_v6, %v1127_v5  ;;  %v662_v15 = vmul.f32 %v6436_v7, %v7692_v2  ;;  %v6747_v17 = vunpack.c.l.bf16 %v7098_v3  ;;  %v6748_v22 = vunpack.c.h.bf16 %v7098_v3  ;;  %v7102_v5 = vld [vmem:[%s12193_s0 + $0x2d0] sm:$0xff]  }
  0x20   :  { %v1352_v19 = vpack.c.bf16 %v1130_v10, %v1129_v9  ;;  %v975_v20 = vadd.f32 %v7703_v8, %v661_v11  ;;  %v663_v21 = vmul.f32 %v6439_v12, %v7692_v2  ;;  %v664_v24 = vmul.f32 %v6440_v16, %v7692_v2 }
  0x21   :  { %7490 = vmatprep.mubr.msk.bf16.mxu1 %vm1421_vm1, %v1351_v14  ;;  %v976_v23 = vadd.f32 %v7703_v8, %v662_v15  ;;  %v817_v25 = vmul.f32 %v6747_v17, %v7692_v2  ;;  %v6751_v26 = vunpack.c.l.bf16 %v7099_v13  ;;  %v818_v28 = vmul.f32 %v6748_v22, %v7692_v2  ;;  %v7103_v15 = vld [vmem:[%s12193_s0 + $0x2d8] sm:$0xff]  }
  0x22   :  { %v977_v27 = vadd.f32 %v7703_v8, %v663_v21  ;;  %v6752_v29 = vunpack.c.h.bf16 %v7099_v13  ;;  %v6443_v30 = vunpack.c.l.bf16 %v7022_v18  ;;  %v978_v33 = vadd.f32 %v7703_v8, %v664_v24 }
  0x23   :  { %v1275_v32 = vpack.c.bf16 %v976_v23, %v975_v20  ;;  %v1131_v34 = vadd.f32 %v7703_v8, %v817_v25  ;;  %v819_v35 = vmul.f32 %v6751_v26, %v7692_v2  ;;  %v1132_v36 = vadd.f32 %v7703_v8, %v818_v28  ;;  %v7026_v20 = vld [vmem:[%s12193_s0 + $0x70] sm:$0xff]  }
  0x24   :  { %7335 = vmatmul.mubr.msk.bf16.gmra.mrb[12].mxu0 %vm1421_vm1, %v1274_v4  ;;  %7491 = vmatmul.mubr.msk.bf16.gmra.mrb[12].mxu1 %vm1421_vm1, %v1352_v19  ;;  %v820_v37 = vmul.f32 %v6752_v29, %v7692_v2  ;;  %v6444_v38 = vunpack.c.h.bf16 %v7022_v18  ;;  %v665_v39 = vmul.f32 %v6443_v30, %v7692_v2  ;;  %v1276_v41 = vpack.c.bf16 %v978_v33, %v977_v27  ;;  %v7027_v33 = vld [vmem:[%s12193_s0 + $0x78] sm:$0xff]  }
  0x25   :  { %7338 = vmatprep.mubr.msk.bf16.mxu0 %vm1421_vm1, %v1275_v32  ;;  %v1133_v42 = vadd.f32 %v7703_v8, %v819_v35  ;;  %v6447_v43 = vunpack.c.l.bf16 %v7023_v31  ;;  %v6448_v44 = vunpack.c.h.bf16 %v7023_v31  ;;  %v1353_v46 = vpack.c.bf16 %v1132_v36, %v1131_v34 }
  0x26   :  { %v1134_v47 = vadd.f32 %v7703_v8, %v820_v37  ;;  %v666_v48 = vmul.f32 %v6444_v38, %v7692_v2  ;;  %v979_v49 = vadd.f32 %v7703_v8, %v665_v39  ;;  %v6755_v52 = vunpack.c.l.bf16 %v7100_v40  ;;  %v7104_v38 = vld [vmem:[%s12193_s0 + $0x2e0] sm:$0xff]  }
  0x27   :  { %v667_v50 = vmul.f32 %v6447_v43, %v7692_v2  ;;  %v668_v51 = vmul.f32 %v6448_v44, %v7692_v2  ;;  %v6756_v53 = vunpack.c.h.bf16 %v7100_v40  ;;  %7494 = vmatprep.mubr.msk.bf16.mxu1 %vm1421_vm1, %v1353_v46  ;;  %v6759_v57 = vunpack.c.l.bf16 %v7101_v45  ;;  %v7105_v46 = vld [vmem:[%s12193_s0 + $0x2e8] sm:$0xff]  }
  0x28   :  { %v1354_v55 = vpack.c.bf16 %v1134_v47, %v1133_v42  ;;  %v980_v56 = vadd.f32 %v7703_v8, %v666_v48  ;;  %v6760_v58 = vunpack.c.h.bf16 %v7101_v45  ;;  %v821_v61 = vmul.f32 %v6755_v52, %v7692_v2 }
  0x29   :  { %v981_v59 = vadd.f32 %v7703_v8, %v667_v50  ;;  %v982_v60 = vadd.f32 %v7703_v8, %v668_v51  ;;  %v822_v62 = vmul.f32 %v6756_v53, %v7692_v2  ;;  %v823_v1 = vmul.f32 %v6759_v57, %v7692_v2 }
  0x2a   :  { %v1277_v0 = vpack.c.bf16 %v980_v56, %v979_v49  ;;  %v824_v3 = vmul.f32 %v6760_v58, %v7692_v2  ;;  %v6451_v4 = vunpack.c.l.bf16 %v7024_v54  ;;  %v1135_v7 = vadd.f32 %v7703_v8, %v821_v61 }
  0x2b   :  { %v1278_v6 = vpack.c.bf16 %v982_v60, %v981_v59  ;;  %v1136_v9 = vadd.f32 %v7703_v8, %v822_v62  ;;  %v6452_v10 = vunpack.c.h.bf16 %v7024_v54  ;;  %v1137_v11 = vadd.f32 %v7703_v8, %v823_v1 }
  0x2c   :  { %7339 = vmatmul.mubr.msk.bf16.gmra.mrb[16].mxu0 %vm1421_vm1, %v1276_v41  ;;  %7495 = vmatmul.mubr.msk.bf16.gmra.mrb[16].mxu1 %vm1421_vm1, %v1354_v55  ;;  %v1138_v12 = vadd.f32 %v7703_v8, %v824_v3  ;;  %v669_v13 = vmul.f32 %v6451_v4, %v7692_v2  ;;  %v6455_v14 = vunpack.c.l.bf16 %v7025_v63  ;;  %v6456_v18 = vunpack.c.h.bf16 %v7025_v63  ;;  %v7028_v55 = vld [vmem:[%s12193_s0 + $0x80] sm:$0xff]  }
  0x2d   :  { %7342 = vmatprep.mubr.msk.bf16.mxu0 %vm1421_vm1, %v1277_v0  ;;  %v1355_v16 = vpack.c.bf16 %v1136_v9, %v1135_v7  ;;  %v670_v17 = vmul.f32 %v6452_v10, %v7692_v2  ;;  %v6763_v19 = vunpack.c.l.bf16 %v7102_v5  ;;  %v6764_v24 = vunpack.c.h.bf16 %v7102_v5  ;;  %v7029_v0 = vld [vmem:[%s12193_s0 + $0x88] sm:$0xff]  }
  0x2e   :  { %v1356_v21 = vpack.c.bf16 %v1138_v12, %v1137_v11  ;;  %v983_v22 = vadd.f32 %v7703_v8, %v669_v13  ;;  %v671_v23 = vmul.f32 %v6455_v14, %v7692_v2  ;;  %v672_v26 = vmul.f32 %v6456_v18, %v7692_v2 }
  0x2f   :  { %7498 = vmatprep.mubr.msk.bf16.mxu1 %vm1421_vm1, %v1355_v16  ;;  %v984_v25 = vadd.f32 %v7703_v8, %v670_v17  ;;  %v825_v27 = vmul.f32 %v6763_v19, %v7692_v2  ;;  %v6767_v28 = vunpack.c.l.bf16 %v7103_v15  ;;  %v826_v30 = vmul.f32 %v6764_v24, %v7692_v2  ;;  %v7107_v16 = vld [vmem:[%s12193_s0 + $0x2f8] sm:$0xff]  }
  0x30   :  { %v985_v29 = vadd.f32 %v7703_v8, %v671_v23  ;;  %v6768_v31 = vunpack.c.h.bf16 %v7103_v15  ;;  %v6459_v32 = vunpack.c.l.bf16 %v7026_v20  ;;  %v986_v35 = vadd.f32 %v7703_v8, %v672_v26 }
  0x31   :  { %v1279_v34 = vpack.c.bf16 %v984_v25, %v983_v22  ;;  %v1139_v36 = vadd.f32 %v7703_v8, %v825_v27  ;;  %v827_v37 = vmul.f32 %v6767_v28, %v7692_v2  ;;  %v1140_v39 = vadd.f32 %v7703_v8, %v826_v30  ;;  %v7030_v25 = vld [vmem:[%s12193_s0 + $0x90] sm:$0xff]  }
  0x32   :  { %v828_v40 = vmul.f32 %v6768_v31, %v7692_v2  ;;  %v6460_v41 = vunpack.c.h.bf16 %v7026_v20  ;;  %v673_v42 = vmul.f32 %v6459_v32, %v7692_v2  ;;  %v6463_v44 = vunpack.c.l.bf16 %v7027_v33 }
  0x33   :  { %v1141_v43 = vadd.f32 %v7703_v8, %v827_v37  ;;  %v6464_v45 = vunpack.c.h.bf16 %v7027_v33  ;;  %v1357_v47 = vpack.c.bf16 %v1140_v39, %v1139_v36  ;;  %v6771_v50 = vunpack.c.l.bf16 %v7104_v38  ;;  %v7108_v39 = vld [vmem:[%s12193_s0 + $0x300] sm:$0xff]  }
  0x34   :  { %7343 = vmatmul.mubr.msk.bf16.gmra.mrb[20].mxu0 %vm1421_vm1, %v1278_v6  ;;  %7499 = vmatmul.mubr.msk.bf16.gmra.mrb[20].mxu1 %vm1421_vm1, %v1356_v21  ;;  %v1142_v48 = vadd.f32 %v7703_v8, %v828_v40  ;;  %v674_v49 = vmul.f32 %v6460_v41, %v7692_v2  ;;  %v987_v51 = vadd.f32 %v7703_v8, %v673_v42  ;;  %v6772_v54 = vunpack.c.h.bf16 %v7104_v38  ;;  %v7106_v6 = vld [vmem:[%s12193_s0 + $0x2f0] sm:$0xff]  }
  0x35   :  { %7346 = vmatprep.mubr.msk.bf16.mxu0 %vm1421_vm1, %v1279_v34  ;;  %v675_v52 = vmul.f32 %v6463_v44, %v7692_v2  ;;  %v676_v53 = vmul.f32 %v6464_v45, %v7692_v2  ;;  %v1280_v56 = vpack.c.bf16 %v986_v35, %v985_v29  ;;  %7502 = vmatprep.mubr.msk.bf16.mxu1 %vm1421_vm1, %v1357_v47  ;;  %v6775_v59 = vunpack.c.l.bf16 %v7105_v46  ;;  %v7031_v34 = vld [vmem:[%s12193_s0 + $0x98] sm:$0xff]  }
  0x36   :  { %v988_v57 = vadd.f32 %v7703_v8, %v674_v49  ;;  %v829_v58 = vmul.f32 %v6771_v50, %v7692_v2  ;;  %v1358_v60 = vpack.c.bf16 %v1142_v48, %v1141_v43  ;;  %v830_v62 = vmul.f32 %v6772_v54, %v7692_v2  ;;  %v7109_v48 = vld [vmem:[%s12193_s0 + $0x308] sm:$0xff]  }
  0x37   :  { %v989_v61 = vadd.f32 %v7703_v8, %v675_v52  ;;  %v6776_v63 = vunpack.c.h.bf16 %v7105_v46  ;;  %v831_v4 = vmul.f32 %v6775_v59, %v7692_v2  ;;  %v6467_v5 = vunpack.c.l.bf16 %v7028_v55 }
  0x38   :  { %v1281_v1 = vpack.c.bf16 %v988_v57, %v987_v51  ;;  %v1143_v3 = vadd.f32 %v7703_v8, %v829_v58  ;;  %v990_v7 = vadd.f32 %v7703_v8, %v676_v53  ;;  %v1144_v9 = vadd.f32 %v7703_v8, %v830_v62  ;;  %v7032_v57 = vld [vmem:[%s12193_s0 + $0xa0] sm:$0xff]  }
  0x39   :  { %v832_v10 = vmul.f32 %v6776_v63, %v7692_v2  ;;  %v6468_v11 = vunpack.c.h.bf16 %v7028_v55  ;;  %v1145_v12 = vadd.f32 %v7703_v8, %v831_v4  ;;  %v677_v13 = vmul.f32 %v6467_v5, %v7692_v2 }
  0x3a   :  { %v6471_v14 = vunpack.c.l.bf16 %v7029_v0  ;;  %v6472_v15 = vunpack.c.h.bf16 %v7029_v0  ;;  %v1359_v17 = vpack.c.bf16 %v1144_v9, %v1143_v3  ;;  %v6779_v20 = vunpack.c.l.bf16 %v7106_v6  ;;  %v7033_v3 = vld [vmem:[%s12193_s0 + $0xa8] sm:$0xff]   ;;  %v7110_v9 = vld [vmem:[%s12193_s0 + $0x310] sm:$0xff]  }
  0x3b   :  { %v1146_v18 = vadd.f32 %v7703_v8, %v832_v10  ;;  %v678_v19 = vmul.f32 %v6468_v11, %v7692_v2  ;;  %v991_v21 = vadd.f32 %v7703_v8, %v677_v13  ;;  %v6780_v24 = vunpack.c.h.bf16 %v7106_v6 }
  0x3c   :  { %7347 = vmatmul.mubr.msk.bf16.gmra.mrb[24].mxu0 %vm1421_vm1, %v1280_v56  ;;  %7503 = vmatmul.mubr.msk.bf16.gmra.mrb[24].mxu1 %vm1421_vm1, %v1358_v60  ;;  %v679_v22 = vmul.f32 %v6471_v14, %v7692_v2  ;;  %v680_v23 = vmul.f32 %v6472_v15, %v7692_v2  ;;  %v1282_v26 = vpack.c.bf16 %v990_v7, %v989_v61  ;;  %v6783_v29 = vunpack.c.l.bf16 %v7107_v16 }
  0x3d   :  { %7350 = vmatprep.mubr.msk.bf16.mxu0 %vm1421_vm1, %v1281_v1  ;;  %7506 = vmatprep.mubr.msk.bf16.mxu1 %vm1421_vm1, %v1359_v17  ;;  %v992_v27 = vadd.f32 %v7703_v8, %v678_v19  ;;  %v833_v28 = vmul.f32 %v6779_v20, %v7692_v2  ;;  %v1360_v30 = vpack.c.bf16 %v1146_v18, %v1145_v12  ;;  %v6784_v33 = vunpack.c.h.bf16 %v7107_v16  ;;  %v7111_v18 = vld [vmem:[%s12193_s0 + $0x318] sm:$0xff]  }
  0x3e   :  { %v7973_v31 = vadd.f32 %v7703_v8, %v679_v22  ;;  %v834_v32 = vmul.f32 %v6780_v24, %v7692_v2  ;;  %v994_v35 = vadd.f32 %v7703_v8, %v680_v23  ;;  %v835_v37 = vmul.f32 %v6783_v29, %v7692_v2 }
  0x3f   :  { %v1147_v36 = vadd.f32 %v7703_v8, %v833_v28  ;;  %v6475_v38 = vunpack.c.l.bf16 %v7030_v25  ;;  %v1283_v40 = vpack.c.bf16 %v992_v27, %v991_v21  ;;  %v836_v42 = vmul.f32 %v6784_v33, %v7692_v2  ;;  %v7034_v27 = vld [vmem:[%s12193_s0 + $0xb0] sm:$0xff]  }
  0x40   :  { %v1148_v41 = vadd.f32 %v7703_v8, %v834_v32  ;;  %v6476_v43 = vunpack.c.h.bf16 %v7030_v25  ;;  %v1149_v44 = vadd.f32 %v7703_v8, %v835_v37  ;;  %v6479_v46 = vunpack.c.l.bf16 %v7031_v34 }
  0x41   :  { %v681_v45 = vmul.f32 %v6475_v38, %v7692_v2  ;;  %v6480_v47 = vunpack.c.h.bf16 %v7031_v34  ;;  %v1150_v50 = vadd.f32 %v7703_v8, %v836_v42  ;;  %v6787_v52 = vunpack.c.l.bf16 %v7108_v39 }
  0x42   :  { %v1361_v49 = vpack.c.bf16 %v1148_v41, %v1147_v36  ;;  %v682_v51 = vmul.f32 %v6476_v43, %v7692_v2  ;;  %v683_v54 = vmul.f32 %v6479_v46, %v7692_v2  ;;  %v6788_v56 = vunpack.c.h.bf16 %v7108_v39  ;;  %v7035_v36 = vld [vmem:[%s12193_s0 + $0xb8] sm:$0xff]   ;;  %v7112_v41 = vld [vmem:[%s12193_s0 + $0x320] sm:$0xff]  }
  0x43   :  { %v995_v53 = vadd.f32 %v7703_v8, %v681_v45  ;;  %v684_v55 = vmul.f32 %v6480_v47, %v7692_v2  ;;  %v1284_v58 = vpack.c.bf16 %v994_v35, %v7973_v31  ;;  %v837_v60 = vmul.f32 %v6787_v52, %v7692_v2 }
  0x44   :  { %7351 = vmatmul.mubr.msk.bf16.gmra.mrb[28].mxu0 %vm1421_vm1, %v1282_v26  ;;  %7507 = vmatmul.mubr.msk.bf16.gmra.mrb[28].mxu1 %vm1421_vm1, %v1360_v30  ;;  %v996_v59 = vadd.f32 %v7703_v8, %v682_v51  ;;  %v6791_v61 = vunpack.c.l.bf16 %v7109_v48  ;;  %v1362_v62 = vpack.c.bf16 %v1150_v50, %v1149_v44  ;;  %v8008_v63 = vadd.f32 %v7703_v8, %v683_v54  ;;  %v7113_v50 = vld [vmem:[%s12193_s0 + $0x328] sm:$0xff]  }
  0x45   :  { %7354 = vmatprep.mubr.msk.bf16.mxu0 %vm1421_vm1, %v1283_v40  ;;  %7510 = vmatprep.mubr.msk.bf16.mxu1 %vm1421_vm1, %v1361_v49  ;;  %v838_v0 = vmul.f32 %v6788_v56, %v7692_v2  ;;  %v6792_v1 = vunpack.c.h.bf16 %v7109_v48  ;;  %v8015_v4 = vadd.f32 %v7703_v8, %v684_v55  ;;  %v1151_v5 = vadd.f32 %v7703_v8, %v837_v60 }
  0x46   :  { %v839_v6 = vmul.f32 %v6791_v61, %v7692_v2  ;;  %v6483_v7 = vunpack.c.l.bf16 %v7032_v57  ;;  %v1285_v10 = vpack.c.bf16 %v996_v59, %v995_v53  ;;  %v6484_v13 = vunpack.c.h.bf16 %v7032_v57  ;;  %v7036_v59 = vld [vmem:[%s12193_s0 + $0xc0] sm:$0xff]  }
  0x47   :  { %v1152_v11 = vadd.f32 %v7703_v8, %v838_v0  ;;  %v840_v12 = vmul.f32 %v6792_v1, %v7692_v2  ;;  %v6487_v16 = vunpack.c.l.bf16 %v7033_v3  ;;  %v6488_v17 = vunpack.c.h.bf16 %v7033_v3 }
  0x48   :  { %v1153_v14 = vadd.f32 %v7703_v8, %v839_v6  ;;  %v685_v15 = vmul.f32 %v6483_v7, %v7692_v2  ;;  %v686_v21 = vmul.f32 %v6484_v13, %v7692_v2  ;;  %v6795_v22 = vunpack.c.l.bf16 %v7110_v9 }
  0x49   :  { %v1363_v19 = vpack.c.bf16 %v1152_v11, %v1151_v5  ;;  %v1154_v20 = vadd.f32 %v7703_v8, %v840_v12  ;;  %v687_v24 = vmul.f32 %v6487_v16, %v7692_v2  ;;  %v688_v25 = vmul.f32 %v6488_v17, %v7692_v2  ;;  %v7037_v5 = vld [vmem:[%s12193_s0 + $0xc8] sm:$0xff]   ;;  %v7114_v11 = vld [vmem:[%s12193_s0 + $0x330] sm:$0xff]  }
  0x4a   :  { %v999_v23 = vadd.f32 %v7703_v8, %v685_v15  ;;  %v6796_v26 = vunpack.c.h.bf16 %v7110_v9  ;;  %v1286_v28 = vpack.c.bf16 %v8015_v4, %v8008_v63  ;;  %v1000_v29 = vadd.f32 %v7703_v8, %v686_v21 }
  0x4b   :  { %v841_v30 = vmul.f32 %v6795_v22, %v7692_v2  ;;  %v6799_v31 = vunpack.c.l.bf16 %v7111_v18  ;;  %v1364_v32 = vpack.c.bf16 %v1154_v20, %v1153_v14  ;;  %v8045_v33 = vadd.f32 %v7703_v8, %v687_v24  ;;  %v7115_v20 = vld [vmem:[%s12193_s0 + $0x338] sm:$0xff]  }
  0x4c   :  { %7355 = vmatmul.mubr.msk.bf16.gmra.mrb[32].mxu0 %vm1421_vm1, %v1284_v58  ;;  %7511 = vmatmul.mubr.msk.bf16.gmra.mrb[32].mxu1 %vm1421_vm1, %v1362_v62  ;;  %v842_v34 = vmul.f32 %v6796_v26, %v7692_v2  ;;  %v6800_v35 = vunpack.c.h.bf16 %v7111_v18  ;;  %v8053_v37 = vadd.f32 %v7703_v8, %v688_v25  ;;  %v6491_v40 = vunpack.c.l.bf16 %v7034_v27 }
  0x4d   :  { %7358 = vmatprep.mubr.msk.bf16.mxu0 %vm1421_vm1, %v1285_v10  ;;  %7514 = vmatprep.mubr.msk.bf16.mxu1 %vm1421_vm1, %v1363_v19  ;;  %v1155_v38 = vadd.f32 %v7703_v8, %v841_v30  ;;  %v843_v39 = vmul.f32 %v6799_v31, %v7692_v2  ;;  %v1287_v42 = vpack.c.bf16 %v1000_v29, %v999_v23  ;;  %v6492_v45 = vunpack.c.h.bf16 %v7034_v27  ;;  %v7038_v29 = vld [vmem:[%s12193_s0 + $0xd0] sm:$0xff]  }
  0x4e   :  { %v1156_v43 = vadd.f32 %v7703_v8, %v842_v34  ;;  %v844_v44 = vmul.f32 %v6800_v35, %v7692_v2  ;;  %v689_v47 = vmul.f32 %v6491_v40, %v7692_v2  ;;  %v6495_v48 = vunpack.c.l.bf16 %v7035_v36 }
  0x4f   :  { %v8063_v46 = vadd.f32 %v7703_v8, %v843_v39  ;;  %v6496_v49 = vunpack.c.h.bf16 %v7035_v36  ;;  %v690_v53 = vmul.f32 %v6492_v45, %v7692_v2  ;;  %v6803_v54 = vunpack.c.l.bf16 %v7112_v41 }
  0x50   :  { %v1365_v51 = vpack.c.bf16 %v1156_v43, %v1155_v38  ;;  %v1158_v52 = vadd.f32 %v7703_v8, %v844_v44  ;;  %v1003_v55 = vadd.f32 %v7703_v8, %v689_v47  ;;  %v691_v56 = vmul.f32 %v6495_v48, %v7692_v2  ;;  %v7039_v38 = vld [vmem:[%s12193_s0 + $0xd8] sm:$0xff]   ;;  %v7116_v43 = vld [vmem:[%s12193_s0 + $0x340] sm:$0xff]  }
  0x51   :  { %v692_v57 = vmul.f32 %v6496_v49, %v7692_v2  ;;  %v6804_v58 = vunpack.c.h.bf16 %v7112_v41  ;;  %v1288_v60 = vpack.c.bf16 %v8053_v37, %v8045_v33  ;;  %v1004_v61 = vadd.f32 %v7703_v8, %v690_v53 }
  0x52   :  { %v845_v62 = vmul.f32 %v6803_v54, %v7692_v2  ;;  %v6807_v63 = vunpack.c.l.bf16 %v7113_v50  ;;  %v8083_v0 = vadd.f32 %v7703_v8, %v691_v56  ;;  %v6808_v4 = vunpack.c.h.bf16 %v7113_v50 }
  0x53   :  { %v8086_v1 = vadd.f32 %v7703_v8, %v692_v57  ;;  %v846_v3 = vmul.f32 %v6804_v58, %v7692_v2  ;;  %v1366_v6 = vpack.c.bf16 %v1158_v52, %v8063_v46  ;;  %v1289_v7 = vpack.c.bf16 %v1004_v61, %v1003_v55  ;;  %v7117_v52 = vld [vmem:[%s12193_s0 + $0x348] sm:$0xff]   ;;  %v7040_v61 = vld [vmem:[%s12193_s0 + $0xe0] sm:$0xff]  }
  0x54   :  { %7359 = vmatmul.mubr.msk.bf16.gmra.mrb[36].mxu0 %vm1421_vm1, %v1286_v28  ;;  %7515 = vmatmul.mubr.msk.bf16.gmra.mrb[36].mxu1 %vm1421_vm1, %v1364_v32  ;;  %v847_v9 = vmul.f32 %v6807_v63, %v7692_v2  ;;  %v6499_v10 = vunpack.c.l.bf16 %v7036_v59  ;;  %v1159_v12 = vadd.f32 %v7703_v8, %v845_v62  ;;  %v848_v14 = vmul.f32 %v6808_v4, %v7692_v2 }
  0x55   :  { %7362 = vmatprep.mubr.msk.bf16.mxu0 %vm1421_vm1, %v1287_v42  ;;  %7518 = vmatprep.mubr.msk.bf16.mxu1 %vm1421_vm1, %v1365_v51  ;;  %v1160_v13 = vadd.f32 %v7703_v8, %v846_v3  ;;  %v6500_v15 = vunpack.c.h.bf16 %v7036_v59  ;;  %v1290_v16 = vpack.c.bf16 %v8086_v1, %v8083_v0  ;;  %v6503_v18 = vunpack.c.l.bf16 %v7037_v5  ;;  %v7119_v1 = vld [vmem:[%s12193_s0 + $0x358] sm:$0xff]  }
  0x56   :  { %v693_v17 = vmul.f32 %v6499_v10, %v7692_v2  ;;  %v6504_v19 = vunpack.c.h.bf16 %v7037_v5  ;;  %v8110_v21 = vadd.f32 %v7703_v8, %v847_v9  ;;  %v8113_v22 = vadd.f32 %v7703_v8, %v848_v14  ;;  %v7041_v10 = vld [vmem:[%s12193_s0 + $0xe8] sm:$0xff]  }
  0x57   :  { %v694_v23 = vmul.f32 %v6500_v15, %v7692_v2  ;;  %v6811_v24 = vunpack.c.l.bf16 %v7114_v11  ;;  %v695_v26 = vmul.f32 %v6503_v18, %v7692_v2  ;;  %v6812_v28 = vunpack.c.h.bf16 %v7114_v11  ;;  %v7118_v15 = vld [vmem:[%s12193_s0 + $0x350] sm:$0xff]  }
  0x58   :  { %v1007_v25 = vadd.f32 %v7703_v8, %v693_v17  ;;  %v696_v27 = vmul.f32 %v6504_v19, %v7692_v2  ;;  %v1367_v30 = vpack.c.bf16 %v1160_v13, %v1159_v12  ;;  %v6815_v33 = vunpack.c.l.bf16 %v7115_v20 }
  0x59   :  { %v1008_v31 = vadd.f32 %v7703_v8, %v694_v23  ;;  %v849_v32 = vmul.f32 %v6811_v24, %v7692_v2  ;;  %v8125_v34 = vadd.f32 %v7703_v8, %v695_v26  ;;  %v850_v36 = vmul.f32 %v6812_v28, %v7692_v2 }
  0x5a   :  { %v8128_v35 = vadd.f32 %v7703_v8, %v696_v27  ;;  %v6816_v37 = vunpack.c.h.bf16 %v7115_v20  ;;  %v1368_v39 = vpack.c.bf16 %v8113_v22, %v8110_v21  ;;  %v851_v41 = vmul.f32 %v6815_v33, %v7692_v2 }
  0x5b   :  { %v1291_v40 = vpack.c.bf16 %v1008_v31, %v1007_v25  ;;  %v6507_v42 = vunpack.c.l.bf16 %v7038_v29  ;;  %v1163_v44 = vadd.f32 %v7703_v8, %v849_v32  ;;  %v1164_v45 = vadd.f32 %v7703_v8, %v850_v36  ;;  %v8215_v25 = vld [vmem:[%s12194_s1] ss:$0 sm:$0xff]  ;;  %v7042_v31 = vld [vmem:[%s12193_s0 + $0xf0] sm:$0xff]  }
  0x5c   :  { %7363 = vmatmul.mubr.msk.bf16.gmra.mrb[40].mxu0 %vm1421_vm1, %v1288_v60  ;;  %7519 = vmatmul.mubr.msk.bf16.gmra.mrb[40].mxu1 %vm1421_vm1, %v1366_v6  ;;  %v852_v46 = vmul.f32 %v6816_v37, %v7692_v2  ;;  %v6508_v47 = vunpack.c.h.bf16 %v7038_v29  ;;  %v1292_v48 = vpack.c.bf16 %v8128_v35, %v8125_v34  ;;  %v6511_v50 = vunpack.c.l.bf16 %v7039_v38 }
  0x5d   :  { %7366 = vmatprep.mubr.msk.bf16.mxu0 %vm1421_vm1, %v1289_v7  ;;  %7522 = vmatprep.mubr.msk.bf16.mxu1 %vm1421_vm1, %v1367_v30  ;;  %v697_v49 = vmul.f32 %v6507_v42, %v7692_v2  ;;  %v6512_v51 = vunpack.c.h.bf16 %v7039_v38  ;;  %v8154_v53 = vadd.f32 %v7703_v8, %v851_v41  ;;  %v6819_v56 = vunpack.c.l.bf16 %v7116_v43  ;;  %v8233_v38 = vld [vmem:[%s12195_s2] ss:$0 sm:$0xff] }
  0x5e   :  { %v8157_v54 = vadd.f32 %v7703_v8, %v852_v46  ;;  %v698_v55 = vmul.f32 %v6508_v47, %v7692_v2  ;;  %v699_v58 = vmul.f32 %v6511_v50, %v7692_v2  ;;  %v6820_v60 = vunpack.c.h.bf16 %v7116_v43  ;;  %v7120_v47 = vld [vmem:[%s12193_s0 + $0x360] sm:$0xff]  }
  0x5f   :  { %v8161_v57 = vadd.f32 %v7703_v8, %v697_v49  ;;  %v700_v59 = vmul.f32 %v6512_v51, %v7692_v2  ;;  %v1369_v62 = vpack.c.bf16 %v1164_v45, %v1163_v44  ;;  %v853_v3 = vmul.f32 %v6819_v56, %v7692_v2 }
  0x60   :  { %v8169_v63 = vadd.f32 %v7703_v8, %v698_v55  ;;  %v6823_v4 = vunpack.c.l.bf16 %v7117_v52  ;;  %v8173_v5 = vadd.f32 %v7703_v8, %v699_v58  ;;  %v854_v7 = vmul.f32 %v6820_v60, %v7692_v2 }
  0x61   :  { %v8176_v6 = vadd.f32 %v7703_v8, %v700_v59  ;;  %v6824_v9 = vunpack.c.h.bf16 %v7117_v52  ;;  %v1370_v11 = vpack.c.bf16 %v8157_v54, %v8154_v53  ;;  %v6515_v14 = vunpack.c.l.bf16 %v7040_v61 }
  0x62   :  { %v1293_v12 = vpack.c.bf16 %v8169_v63, %v8161_v57  ;;  %v855_v13 = vmul.f32 %v6823_v4, %v7692_v2  ;;  %v1167_v17 = vadd.f32 %v7703_v8, %v853_v3  ;;  %v1168_v18 = vadd.f32 %v7703_v8, %v854_v7  ;;  %v7121_v57 = vld [vmem:[%s12193_s0 + $0x368] sm:$0xff]   ;;  %v7044_v63 = vld [vmem:[%s12193_s0 + $0x100] sm:$0xff]  }
  0x63   :  { %v856_v19 = vmul.f32 %v6824_v9, %v7692_v2  ;;  %v6516_v20 = vunpack.c.h.bf16 %v7040_v61  ;;  %v1294_v21 = vpack.c.bf16 %v8176_v6, %v8173_v5  ;;  %v701_v22 = vmul.f32 %v6515_v14, %v7692_v2  ;;  %v7045_v14 = vld [vmem:[%s12193_s0 + $0x108] sm:$0xff]  }
  0x64   :  { %7367 = vmatmul.mubr.msk.bf16.gmra.mrb[44].mxu0 %vm1421_vm1, %v1290_v16  ;;  %7523 = vmatmul.mubr.msk.bf16.gmra.mrb[44].mxu1 %vm1421_vm1, %v1368_v39  ;;  %v6519_v23 = vunpack.c.l.bf16 %v7041_v10  ;;  %v6520_v0 = vunpack.c.h.bf16 %v7041_v10  ;;  %v8207_v16 = vadd.f32 %v7703_v8, %v855_v13  ;;  %v6827_v26 = vunpack.c.l.bf16 %v7118_v15 }
  0x65   :  { %7370 = vmatprep.mubr.msk.bf16.mxu0 %vm1421_vm1, %v1291_v40  ;;  %7526 = vmatprep.mubr.msk.bf16.mxu1 %vm1421_vm1, %v1369_v62  ;;  %v8210_v24 = vadd.f32 %v7703_v8, %v856_v19  ;;  %v702_v2 = vmul.f32 %v8215_v25, %v6516_v20  ;;  %v8219_v27 = vadd.f32 %v7703_v8, %v701_v22  ;;  %v6828_v30 = vunpack.c.h.bf16 %v7118_v15  ;;  %v7122_v20 = vld [vmem:[%s12193_s0 + $0x370] sm:$0xff]  }
  0x66   :  { %v703_v28 = vmul.f32 %v8215_v25, %v6519_v23  ;;  %v704_v29 = vmul.f32 %v8215_v25, %v6520_v0  ;;  %v1371_v32 = vpack.c.bf16 %v1168_v18, %v1167_v17  ;;  %v857_v36 = vmul.f32 %v8215_v25, %v6827_v26 }
  0x67   :  { %v8227_v33 = vadd.f32 %v7703_v8, %v702_v2  ;;  %v6831_v37 = vunpack.c.l.bf16 %v7119_v1  ;;  %v858_v41 = vmul.f32 %v8215_v25, %v6828_v30  ;;  %v6832_v42 = vunpack.c.h.bf16 %v7119_v1  ;;  %v7043_v8 = vld [vmem:[%s12193_s0 + $0xf8] sm:$0xff]  }
  0x68   :  { %v8236_v39 = vadd.f32 %v8233_v38, %v703_v28  ;;  %v8239_v40 = vadd.f32 %v8233_v38, %v704_v29  ;;  %v1372_v43 = vpack.c.bf16 %v8210_v24, %v8207_v16  ;;  %v6523_v46 = vunpack.c.l.bf16 %v7042_v31 }
  0x69   :  { %v1295_v44 = vpack.c.bf16 %v8227_v33, %v8219_v27  ;;  %v859_v45 = vmul.f32 %v8215_v25, %v6831_v37  ;;  %v1171_v49 = vadd.f32 %v8233_v38, %v857_v36  ;;  %v1172_v50 = vadd.f32 %v8233_v38, %v858_v41  ;;  %v7123_v27 = vld [vmem:[%s12193_s0 + $0x378] sm:$0xff]   ;;  %v7046_v33 = vld [vmem:[%s12193_s0 + $0x110] sm:$0xff]  }
  0x6a   :  { %v860_v51 = vmul.f32 %v8215_v25, %v6832_v42  ;;  %v6524_v52 = vunpack.c.h.bf16 %v7042_v31  ;;  %v1296_v53 = vpack.c.bf16 %v8239_v40, %v8236_v39  ;;  %v705_v54 = vmul.f32 %v8215_v25, %v6523_v46  ;;  %v7047_v46 = vld [vmem:[%s12193_s0 + $0x118] sm:$0xff]  }
  0x6b   :  { %v6527_v55 = vunpack.c.l.bf16 %v7043_v8  ;;  %v6528_v56 = vunpack.c.h.bf16 %v7043_v8  ;;  %v8269_v58 = vadd.f32 %v8233_v38, %v859_v45  ;;  %v6836_v62 = vunpack.c.h.bf16 %v7120_v47 }
  0x6c   :  { %7371 = vmatmul.mubr.msk.bf16.gmra.mrb[48].mxu0 %vm1421_vm1, %v1292_v48  ;;  %7527 = vmatmul.mubr.msk.bf16.gmra.mrb[48].mxu1 %vm1421_vm1, %v1370_v11  ;;  %v8272_v34 = vadd.f32 %v8233_v38, %v860_v51  ;;  %v706_v35 = vmul.f32 %v8215_v25, %v6524_v52  ;;  %v6835_v48 = vunpack.c.l.bf16 %v7120_v47  ;;  %v8277_v59 = vadd.f32 %v8233_v38, %v705_v54  ;;  %v7124_v52 = vld [vmem:[%s12193_s0 + $0x380] sm:$0xff]  }
  0x6d   :  { %7374 = vmatprep.mubr.msk.bf16.mxu0 %vm1421_vm1, %v1293_v12  ;;  %7530 = vmatprep.mubr.msk.bf16.mxu1 %vm1421_vm1, %v1371_v32  ;;  %v707_v60 = vmul.f32 %v8215_v25, %v6527_v55  ;;  %v708_v61 = vmul.f32 %v8215_v25, %v6528_v56  ;;  %v1373_v3 = vpack.c.bf16 %v1172_v50, %v1171_v49  ;;  %v6839_v9 = vunpack.c.l.bf16 %v7121_v57 }
  0x6e   :  { %v8285_v4 = vadd.f32 %v8233_v38, %v706_v35  ;;  %v861_v7 = vmul.f32 %v8215_v25, %v6835_v48  ;;  %v862_v12 = vmul.f32 %v8215_v25, %v6836_v62  ;;  %v6840_v13 = vunpack.c.h.bf16 %v7121_v57 }
  0x6f   :  { %v8289_v10 = vadd.f32 %v8233_v38, %v707_v60  ;;  %v8292_v11 = vadd.f32 %v8233_v38, %v708_v61  ;;  %v1374_v15 = vpack.c.bf16 %v8272_v34, %v8269_v58  ;;  %v863_v18 = vmul.f32 %v8215_v25, %v6839_v9 }
  0x70   :  { %v1297_v17 = vpack.c.bf16 %v8285_v4, %v8277_v59  ;;  %v6531_v19 = vunpack.c.l.bf16 %v7044_v63  ;;  %v1175_v22 = vadd.f32 %v8233_v38, %v861_v7  ;;  %v1176_v23 = vadd.f32 %v8233_v38, %v862_v12  ;;  %v7125_v59 = vld [vmem:[%s12193_s0 + $0x388] sm:$0xff]   ;;  %v7048_v12 = vld [vmem:[%s12193_s0 + $0x120] sm:$0xff]  }
  0x71   :  { %v864_v0 = vmul.f32 %v8215_v25, %v6840_v13  ;;  %v6532_v1 = vunpack.c.h.bf16 %v7044_v63  ;;  %v1298_v16 = vpack.c.bf16 %v8292_v11, %v8289_v10  ;;  %v6535_v2 = vunpack.c.l.bf16 %v7045_v14 }
  0x72   :  { %v709_v24 = vmul.f32 %v8215_v25, %v6531_v19  ;;  %v6536_v26 = vunpack.c.h.bf16 %v7045_v14  ;;  %v8320_v28 = vadd.f32 %v8233_v38, %v863_v18  ;;  %v6843_v31 = vunpack.c.l.bf16 %v7122_v20  ;;  %v7049_v19 = vld [vmem:[%s12193_s0 + $0x128] sm:$0xff]  }
  0x73   :  { %v8323_v29 = vadd.f32 %v8233_v38, %v864_v0  ;;  %v710_v30 = vmul.f32 %v8215_v25, %v6532_v1  ;;  %v711_v5 = vmul.f32 %v8215_v25, %v6535_v2  ;;  %v1375_v36 = vpack.c.bf16 %v1176_v23, %v1175_v22  ;;  %v7126_v1 = vld [vmem:[%s12193_s0 + $0x390] sm:$0xff]  }
  0x74   :  { %7375 = vmatmul.mubr.msk.bf16.gmra.mrb[52].mxu0 %vm1421_vm1, %v1294_v21  ;;  %7531 = vmatmul.mubr.msk.bf16.gmra.mrb[52].mxu1 %vm1421_vm1, %v1372_v43  ;;  %v8329_v32 = vadd.f32 %v8233_v38, %v709_v24  ;;  %v712_v6 = vmul.f32 %v8215_v25, %v6536_v26  ;;  %v6844_v21 = vunpack.c.h.bf16 %v7122_v20  ;;  %v865_v41 = vmul.f32 %v8215_v25, %v6843_v31 }
  0x75   :  { %7378 = vmatprep.mubr.msk.bf16.mxu0 %vm1421_vm1, %v1295_v44  ;;  %7534 = vmatprep.mubr.msk.bf16.mxu1 %vm1421_vm1, %v1373_v3  ;;  %v8338_v37 = vadd.f32 %v8233_v38, %v710_v30  ;;  %v6847_v42 = vunpack.c.l.bf16 %v7123_v27  ;;  %v8342_v8 = vadd.f32 %v8233_v38, %v711_v5  ;;  %v6848_v45 = vunpack.c.h.bf16 %v7123_v27 }
  0x76   :  { %v8345_v43 = vadd.f32 %v8233_v38, %v712_v6  ;;  %v866_v44 = vmul.f32 %v8215_v25, %v6844_v21  ;;  %v1376_v47 = vpack.c.bf16 %v8323_v29, %v8320_v28  ;;  %v6539_v51 = vunpack.c.l.bf16 %v7046_v33  ;;  %v7127_v21 = vld [vmem:[%s12193_s0 + $0x398] sm:$0xff]  }
  0x77   :  { %v1299_v49 = vpack.c.bf16 %v8338_v37, %v8329_v32  ;;  %v867_v50 = vmul.f32 %v8215_v25, %v6847_v42  ;;  %v8360_v54 = vadd.f32 %v8233_v38, %v865_v41  ;;  %v868_v56 = vmul.f32 %v8215_v25, %v6848_v45  ;;  %v7051_v28 = vld [vmem:[%s12193_s0 + $0x138] sm:$0xff]  }
  0x78   :  { %v8363_v55 = vadd.f32 %v8233_v38, %v866_v44  ;;  %v6540_v57 = vunpack.c.h.bf16 %v7046_v33  ;;  %v1300_v58 = vpack.c.bf16 %v8345_v43, %v8342_v8  ;;  %v713_v34 = vmul.f32 %v8215_v25, %v6539_v51  ;;  %v7050_v51 = vld [vmem:[%s12193_s0 + $0x130] sm:$0xff]  }
  0x79   :  { %v6543_v35 = vunpack.c.l.bf16 %v7047_v46  ;;  %v6544_v48 = vunpack.c.h.bf16 %v7047_v46  ;;  %v8373_v60 = vadd.f32 %v8233_v38, %v867_v50  ;;  %v8376_v61 = vadd.f32 %v8233_v38, %v868_v56 }
  0x7a   :  { %v714_v62 = vmul.f32 %v8215_v25, %v6540_v57  ;;  %v6851_v63 = vunpack.c.l.bf16 %v7124_v52  ;;  %v8384_v3 = vadd.f32 %v8233_v38, %v713_v34  ;;  %v6852_v9 = vunpack.c.h.bf16 %v7124_v52 }
  0x7b   :  { %v715_v4 = vmul.f32 %v8215_v25, %v6543_v35  ;;  %v716_v7 = vmul.f32 %v8215_v25, %v6544_v48  ;;  %v1377_v39 = vpack.c.bf16 %v8363_v55, %v8360_v54  ;;  %v6855_v13 = vunpack.c.l.bf16 %v7125_v59 }
  0x7c   :  { %7379 = vmatmul.mubr.msk.bf16.gmra.mrb[56].mxu0 %vm1421_vm1, %v1296_v53  ;;  %7535 = vmatmul.mubr.msk.bf16.gmra.mrb[56].mxu1 %vm1421_vm1, %v1374_v15  ;;  %v8396_v40 = vadd.f32 %v8233_v38, %v714_v62  ;;  %v869_v53 = vmul.f32 %v8215_v25, %v6851_v63  ;;  %v870_v15 = vmul.f32 %v8215_v25, %v6852_v9  ;;  %v6547_v0 = vunpack.c.l.bf16 %v7048_v12  ;;  %v7129_v9 = vld [vmem:[%s12193_s0 + $0x3a8] sm:$0xff]  }
  0x7d   :  { %7382 = vmatprep.mubr.msk.bf16.mxu0 %vm1421_vm1, %v1297_v17  ;;  %7538 = vmatprep.mubr.msk.bf16.mxu1 %vm1421_vm1, %v1375_v36  ;;  %v8401_v14 = vadd.f32 %v8233_v38, %v715_v4  ;;  %v8404_v18 = vadd.f32 %v8233_v38, %v716_v7  ;;  %v6856_v17 = vunpack.c.h.bf16 %v7125_v59  ;;  %v1378_v20 = vpack.c.bf16 %v8376_v61, %v8373_v60  ;;  %v7130_v60 = vld [vmem:[%s12193_s0 + $0x3b0] sm:$0xff]  }
  0x7e   :  { %v1301_v22 = vpack.c.bf16 %v8396_v40, %v8384_v3  ;;  %v871_v23 = vmul.f32 %v8215_v25, %v6855_v13  ;;  %v8419_v24 = vadd.f32 %v8233_v38, %v869_v53  ;;  %v8422_v2 = vadd.f32 %v8233_v38, %v870_v15 }
  0x7f   :  { %v872_v26 = vmul.f32 %v8215_v25, %v6856_v17  ;;  %v6548_v27 = vunpack.c.h.bf16 %v7048_v12  ;;  %v1302_v30 = vpack.c.bf16 %v8404_v18, %v8401_v14  ;;  %v717_v31 = vmul.f32 %v8215_v25, %v6547_v0  ;;  %v7052_v0 = vld [vmem:[%s12193_s0 + $0x140] sm:$0xff]  }
  0x80   :  { %v6551_v5 = vunpack.c.l.bf16 %v7049_v19  ;;  %v6552_v6 = vunpack.c.h.bf16 %v7049_v19  ;;  %v8432_v33 = vadd.f32 %v8233_v38, %v871_v23  ;;  %v6859_v42 = vunpack.c.l.bf16 %v7126_v1 }
  0x81   :  { %v8435_v36 = vadd.f32 %v8233_v38, %v872_v26  ;;  %v718_v41 = vmul.f32 %v8215_v25, %v6548_v27  ;;  %v8439_v44 = vadd.f32 %v8233_v38, %v717_v31  ;;  %v6860_v50 = vunpack.c.h.bf16 %v7126_v1 }
  0x82   :  { %v719_v45 = vmul.f32 %v8215_v25, %v6551_v5  ;;  %v720_v46 = vmul.f32 %v8215_v25, %v6552_v6  ;;  %v1379_v52 = vpack.c.bf16 %v8422_v2, %v8419_v24  ;;  %v873_v55 = vmul.f32 %v8215_v25, %v6859_v42 }
  0x83   :  { %v8453_v54 = vadd.f32 %v8233_v38, %v718_v41  ;;  %v6863_v56 = vunpack.c.l.bf16 %v7127_v21  ;;  %v6864_v57 = vunpack.c.h.bf16 %v7127_v21  ;;  %v1380_v29 = vpack.c.bf16 %v8435_v36, %v8432_v33  ;;  %v7053_v21 = vld [vmem:[%s12193_s0 + $0x148] sm:$0xff]  }
  0x84   :  { %7383 = vmatmul.mubr.msk.bf16.gmra.mrb[60].mxu0 %vm1421_vm1, %v1298_v16  ;;  %7539 = vmatmul.mubr.msk.bf16.gmra.mrb[60].mxu1 %vm1421_vm1, %v1376_v47  ;;  %v8465_v10 = vadd.f32 %v8233_v38, %v719_v45  ;;  %v8468_v11 = vadd.f32 %v8233_v38, %v720_v46  ;;  %v874_v16 = vmul.f32 %v8215_v25, %v6860_v50  ;;  %v6555_v47 = vunpack.c.l.bf16 %v7050_v51  ;;  %v7131_v50 = vld [vmem:[%s12193_s0 + $0x3b8] sm:$0xff]  }
  0x85   :  { %7386 = vmatprep.mubr.msk.bf16.mxu0 %vm1421_vm1, %v1299_v49  ;;  %7542 = vmatprep.mubr.msk.bf16.mxu1 %vm1421_vm1, %v1377_v39  ;;  %v1303_v32 = vpack.c.bf16 %v8453_v54, %v8439_v44  ;;  %v875_v37 = vmul.f32 %v8215_v25, %v6863_v56  ;;  %v7128_v49 = vld [vmem:[%s12193_s0 + $0x3a0] sm:$0xff]   ;;  %v8484_v34 = vadd.f32 %v8233_v38, %v873_v55  ;;  %v6556_v59 = vunpack.c.h.bf16 %v7050_v51  ;;  %v7133_v54 = vld [vmem:[%s12193_s0 + $0x3c8] sm:$0xff]  }
  0x86   :  { %v8487_v35 = vadd.f32 %v8233_v38, %v874_v16  ;;  %v876_v48 = vmul.f32 %v8215_v25, %v6864_v57  ;;  %v1304_v62 = vpack.c.bf16 %v8468_v11, %v8465_v10  ;;  %v721_v63 = vmul.f32 %v8215_v25, %v6555_v47  ;;  %v7054_v47 = vld [vmem:[%s12193_s0 + $0x150] sm:$0xff]  }
  0x87   :  { %v6559_v4 = vunpack.c.l.bf16 %v7051_v28  ;;  %v6560_v7 = vunpack.c.h.bf16 %v7051_v28  ;;  %v8497_v12 = vadd.f32 %v8233_v38, %v875_v37  ;;  %v722_v53 = vmul.f32 %v8215_v25, %v6556_v59 }
  0x88   :  { %v8500_v39 = vadd.f32 %v8233_v38, %v876_v48  ;;  %v6867_v13 = vunpack.c.l.bf16 %v7128_v49  ;;  %v8504_v15 = vadd.f32 %v8233_v38, %v721_v63  ;;  %v6868_v23 = vunpack.c.h.bf16 %v7128_v49 }
  0x89   :  { %v723_v17 = vmul.f32 %v8215_v25, %v6559_v4  ;;  %v724_v19 = vmul.f32 %v8215_v25, %v6560_v7  ;;  %v1381_v1 = vpack.c.bf16 %v8487_v35, %v8484_v34  ;;  %v8514_v24 = vadd.f32 %v8233_v38, %v722_v53 }
  0x8a   :  { %v877_v2 = vmul.f32 %v8215_v25, %v6867_v13  ;;  %v6871_v26 = vunpack.c.l.bf16 %v7129_v9  ;;  %v878_v5 = vmul.f32 %v8215_v25, %v6868_v23  ;;  %v6872_v6 = vunpack.c.h.bf16 %v7129_v9  ;;  %v7055_v9 = vld [vmem:[%s12193_s0 + $0x158] sm:$0xff]   ;;  %v7132_v23 = vld [vmem:[%s12193_s0 + $0x3c0] sm:$0xff]  }
  0x8b   :  { %v8522_v27 = vadd.f32 %v8233_v38, %v723_v17  ;;  %v8525_v31 = vadd.f32 %v8233_v38, %v724_v19  ;;  %v1382_v8 = vpack.c.bf16 %v8500_v39, %v8497_v12  ;;  %v1305_v43 = vpack.c.bf16 %v8514_v24, %v8504_v15 }
  0x8c   :  { %7387 = vmatmul.mubr.msk.bf16.gmra.mrb[64].mxu0 %vm1421_vm1, %v1300_v58  ;;  %7543 = vmatmul.mubr.msk.bf16.gmra.mrb[64].mxu1 %vm1421_vm1, %v1378_v20  ;;  %v879_v58 = vmul.f32 %v8215_v25, %v6871_v26  ;;  %v6563_v41 = vunpack.c.l.bf16 %v7052_v0  ;;  %v8549_v61 = vadd.f32 %v8233_v38, %v877_v2  ;;  %v8552_v3 = vadd.f32 %v8233_v38, %v878_v5 }
  0x8d   :  { %7390 = vmatprep.mubr.msk.bf16.mxu0 %vm1421_vm1, %v1301_v22  ;;  %7546 = vmatprep.mubr.msk.bf16.mxu1 %vm1421_vm1, %v1379_v52  ;;  %v880_v40 = vmul.f32 %v8215_v25, %v6872_v6  ;;  %v6564_v20 = vunpack.c.h.bf16 %v7052_v0  ;;  %v1306_v22 = vpack.c.bf16 %v8525_v31, %v8522_v27  ;;  %v6567_v45 = vunpack.c.l.bf16 %v7053_v21 }
  0x8e   :  { %v725_v42 = vmul.f32 %v8215_v25, %v6563_v41  ;;  %v6568_v46 = vunpack.c.h.bf16 %v7053_v21  ;;  %v8562_v51 = vadd.f32 %v8233_v38, %v879_v58  ;;  %v6875_v56 = vunpack.c.l.bf16 %v7130_v60  ;;  %v7056_v41 = vld [vmem:[%s12193_s0 + $0x160] sm:$0xff]  }
  0x8f   :  { %v8565_v52 = vadd.f32 %v8233_v38, %v880_v40  ;;  %v726_v55 = vmul.f32 %v8215_v25, %v6564_v20  ;;  %v727_v57 = vmul.f32 %v8215_v25, %v6567_v45  ;;  %v6876_v37 = vunpack.c.h.bf16 %v7130_v60 }
  0x90   :  { %v8569_v16 = vadd.f32 %v8233_v38, %v725_v42  ;;  %v728_v28 = vmul.f32 %v8215_v25, %v6568_v46  ;;  %v1383_v49 = vpack.c.bf16 %v8552_v3, %v8549_v61  ;;  %v881_v35 = vmul.f32 %v8215_v25, %v6875_v56 }
  0x91   :  { %v8579_v34 = vadd.f32 %v8233_v38, %v726_v55  ;;  %v6879_v48 = vunpack.c.l.bf16 %v7131_v50  ;;  %v8583_v59 = vadd.f32 %v8233_v38, %v727_v57  ;;  %v882_v4 = vmul.f32 %v8215_v25, %v6876_v37  ;;  %v7134_v37 = vld [vmem:[%s12193_s0 + $0x3d0] sm:$0xff]  }
  0x92   :  { %v8586_v63 = vadd.f32 %v8233_v38, %v728_v28  ;;  %v6880_v7 = vunpack.c.h.bf16 %v7131_v50  ;;  %v1384_v53 = vpack.c.bf16 %v8565_v52, %v8562_v51  ;;  %v6571_v19 = vunpack.c.l.bf16 %v7054_v47  ;;  %v7057_v50 = vld [vmem:[%s12193_s0 + $0x168] sm:$0xff]  }
  0x93   :  { %v1307_v13 = vpack.c.bf16 %v8579_v34, %v8569_v16  ;;  %v883_v17 = vmul.f32 %v8215_v25, %v6879_v48  ;;  %v8613_v14 = vadd.f32 %v8233_v38, %v881_v35  ;;  %v8616_v18 = vadd.f32 %v8233_v38, %v882_v4 }
  0x94   :  { %7391 = vmatmul.mubr.msk.bf16.gmra.mrb[68].mxu0 %vm1421_vm1, %v1302_v30  ;;  %7547 = vmatmul.mubr.msk.bf16.gmra.mrb[68].mxu1 %vm1421_vm1, %v1380_v29  ;;  %v884_v30 = vmul.f32 %v8215_v25, %v6880_v7  ;;  %v6572_v0 = vunpack.c.h.bf16 %v7054_v47  ;;  %v1308_v33 = vpack.c.bf16 %v8586_v63, %v8583_v59  ;;  %v729_v36 = vmul.f32 %v8215_v25, %v6571_v19 }
  0x95   :  { %7394 = vmatprep.mubr.msk.bf16.mxu0 %vm1421_vm1, %v1303_v32  ;;  %7550 = vmatprep.mubr.msk.bf16.mxu1 %vm1421_vm1, %v1381_v1  ;;  %v6575_v29 = vunpack.c.l.bf16 %v7055_v9  ;;  %v6576_v44 = vunpack.c.h.bf16 %v7055_v9  ;;  %v8627_v32 = vadd.f32 %v8233_v38, %v883_v17  ;;  %v6883_v1 = vunpack.c.l.bf16 %v7132_v23  ;;  %v7135_v9 = vld [vmem:[%s12193_s0 + $0x3d8] sm:$0xff]  }
  0x96   :  { %v8630_v2 = vadd.f32 %v8233_v38, %v884_v30  ;;  %v730_v26 = vmul.f32 %v8215_v25, %v6572_v0  ;;  %v8634_v5 = vadd.f32 %v8233_v38, %v729_v36  ;;  %v6884_v58 = vunpack.c.h.bf16 %v7132_v23 }
  0x97   :  { %v731_v6 = vmul.f32 %v8215_v25, %v6575_v29  ;;  %v732_v21 = vmul.f32 %v8215_v25, %v6576_v44  ;;  %v1385_v60 = vpack.c.bf16 %v8616_v18, %v8613_v14  ;;  %v885_v3 = vmul.f32 %v8215_v25, %v6883_v1  ;;  %v7059_v1 = vld [vmem:[%s12193_s0 + $0x178] sm:$0xff]  }
  0x98   :  { %v8644_v61 = vadd.f32 %v8233_v38, %v730_v26  ;;  %v6887_v40 = vunpack.c.l.bf16 %v7133_v54  ;;  %v886_v45 = vmul.f32 %v8215_v25, %v6884_v58  ;;  %v6888_v46 = vunpack.c.h.bf16 %v7133_v54 }
  0x99   :  { %v8648_v20 = vadd.f32 %v8233_v38, %v731_v6  ;;  %v8651_v42 = vadd.f32 %v8233_v38, %v732_v21  ;;  %v1386_v55 = vpack.c.bf16 %v8630_v2, %v8627_v32  ;;  %v6579_v28 = vunpack.c.l.bf16 %v7056_v41 }
  0x9a   :  { %v1309_v56 = vpack.c.bf16 %v8644_v61, %v8634_v5  ;;  %v887_v57 = vmul.f32 %v8215_v25, %v6887_v40  ;;  %v8670_v47 = vadd.f32 %v8233_v38, %v885_v3  ;;  %v8673_v35 = vadd.f32 %v8233_v38, %v886_v45  ;;  %v7136_v3 = vld [vmem:[%s12193_s0 + $0x3e0] sm:$0xff]  }
  0x9b   :  { %v888_v48 = vmul.f32 %v8215_v25, %v6888_v46  ;;  %v6580_v4 = vunpack.c.h.bf16 %v7056_v41  ;;  %v1310_v10 = vpack.c.bf16 %v8651_v42, %v8648_v20  ;;  %v733_v11 = vmul.f32 %v8215_v25, %v6579_v28 }
  0x9c   :  { %7395 = vmatmul.mubr.msk.bf16.gmra.mrb[72].mxu0 %vm1421_vm1, %v1304_v62  ;;  %7551 = vmatmul.mubr.msk.bf16.gmra.mrb[72].mxu1 %vm1421_vm1, %v1382_v8  ;;  %v6583_v62 = vunpack.c.l.bf16 %v7057_v50  ;;  %v6584_v7 = vunpack.c.h.bf16 %v7057_v50  ;;  %v8692_v12 = vadd.f32 %v8233_v38, %v887_v57  ;;  %v6891_v24 = vunpack.c.l.bf16 %v7134_v37 }
  0x9d   :  { %7398 = vmatprep.mubr.msk.bf16.mxu0 %vm1421_vm1, %v1305_v43  ;;  %7554 = vmatprep.mubr.msk.bf16.mxu1 %vm1421_vm1, %v1383_v49  ;;  %v8695_v39 = vadd.f32 %v8233_v38, %v888_v48  ;;  %v734_v15 = vmul.f32 %v8215_v25, %v6580_v4  ;;  %v8699_v8 = vadd.f32 %v8233_v38, %v733_v11  ;;  %v6892_v19 = vunpack.c.h.bf16 %v7134_v37  ;;  %v7058_v49 = vld [vmem:[%s12193_s0 + $0x170] sm:$0xff]   ;;  %v7137_v4 = vld [vmem:[%s12193_s0 + $0x3e8] sm:$0xff]  }
  0x9e   :  { %v735_v43 = vmul.f32 %v8215_v25, %v6583_v62  ;;  %v736_v17 = vmul.f32 %v8215_v25, %v6584_v7  ;;  %v1387_v23 = vpack.c.bf16 %v8673_v35, %v8670_v47  ;;  %v889_v0 = vmul.f32 %v8215_v25, %v6891_v24  ;;  %v7061_v24 = vld [vmem:[%s12193_s0 + $0x188] sm:$0xff]   ;;  %v7063_v35 = vld [vmem:[%s12193_s0 + $0x198] sm:$0xff]  }
  0x9f   :  { %v8709_v30 = vadd.f32 %v8233_v38, %v734_v15  ;;  %v6895_v36 = vunpack.c.l.bf16 %v7135_v9  ;;  %v890_v54 = vmul.f32 %v8215_v25, %v6892_v19  ;;  %v6896_v26 = vunpack.c.h.bf16 %v7135_v9 }
  0xa0   :  { %v8713_v29 = vadd.f32 %v8233_v38, %v735_v43  ;;  %v8716_v44 = vadd.f32 %v8233_v38, %v736_v17  ;;  %v1388_v6 = vpack.c.bf16 %v8695_v39, %v8692_v12  ;;  %v6587_v41 = vunpack.c.l.bf16 %v7058_v49 }
  0xa1   :  { %v1311_v21 = vpack.c.bf16 %v8709_v30, %v8699_v8  ;;  %v891_v58 = vmul.f32 %v8215_v25, %v6895_v36  ;;  %v8731_v40 = vadd.f32 %v8233_v38, %v889_v0  ;;  %v8734_v45 = vadd.f32 %v8233_v38, %v890_v54  ;;  %v7138_v0 = vld [vmem:[%s12193_s0 + $0x3f0] sm:$0xff]  }
  0xa2   :  { %v892_v46 = vmul.f32 %v8215_v25, %v6896_v26  ;;  %v6588_v50 = vunpack.c.h.bf16 %v7058_v49  ;;  %v1312_v57 = vpack.c.bf16 %v8716_v44, %v8713_v29  ;;  %v737_v28 = vmul.f32 %v8215_v25, %v6587_v41 }
  0xa3   :  { %v6591_v37 = vunpack.c.l.bf16 %v7059_v1  ;;  %v6592_v48 = vunpack.c.h.bf16 %v7059_v1  ;;  %v8756_v27 = vadd.f32 %v8233_v38, %v891_v58  ;;  %v6899_v11 = vunpack.c.l.bf16 %v7136_v3 }
  0xa4   :  { %7399 = vmatmul.mubr.msk.bf16.gmra.mrb[76].mxu0 %vm1421_vm1, %v1306_v22  ;;  %7555 = vmatmul.mubr.msk.bf16.gmra.mrb[76].mxu1 %vm1421_vm1, %v1384_v53  ;;  %v8759_v31 = vadd.f32 %v8233_v38, %v892_v46  ;;  %v738_v22 = vmul.f32 %v8215_v25, %v6588_v50  ;;  %v8767_v51 = vadd.f32 %v8233_v38, %v737_v28  ;;  %v6900_v34 = vunpack.c.h.bf16 %v7136_v3  ;;  %v7060_v53 = vld [vmem:[%s12193_s0 + $0x180] sm:$0xff]   ;;  %v7139_v50 = vld [vmem:[%s12193_s0 + $0x3f8] sm:$0xff]  }
  0xa5   :  { %7402 = vmatprep.mubr.msk.bf16.mxu0 %vm1421_vm1, %v1307_v13  ;;  %7558 = vmatprep.mubr.msk.bf16.mxu1 %vm1421_vm1, %v1385_v60  ;;  %v739_v52 = vmul.f32 %v8215_v25, %v6591_v37  ;;  %v740_v16 = vmul.f32 %v8215_v25, %v6592_v48  ;;  %v1389_v13 = vpack.c.bf16 %v8734_v45, %v8731_v40  ;;  %v6903_v18 = vunpack.c.l.bf16 %v7137_v4 }
  0xa6   :  { %v8777_v62 = vadd.f32 %v8233_v38, %v738_v22  ;;  %v893_v14 = vmul.f32 %v8215_v25, %v6899_v11  ;;  %v894_v9 = vmul.f32 %v8215_v25, %v6900_v34  ;;  %v6904_v15 = vunpack.c.h.bf16 %v7137_v4  ;;  %v7062_v11 = vld [vmem:[%s12193_s0 + $0x190] sm:$0xff]  }
  0xa7   :  { %v8781_v60 = vadd.f32 %v8233_v38, %v739_v52  ;;  %v8784_v7 = vadd.f32 %v8233_v38, %v740_v16  ;;  %v1390_v43 = vpack.c.bf16 %v8759_v31, %v8756_v27  ;;  %v895_v19 = vmul.f32 %v8215_v25, %v6903_v18  ;;  %v7067_v27 = vld [vmem:[%s12193_s0 + $0x1b8] sm:$0xff]  }
  0xa8   :  { %v1313_v17 = vpack.c.bf16 %v8777_v62, %v8767_v51  ;;  %v6595_v49 = vunpack.c.l.bf16 %v7060_v53  ;;  %v8799_v36 = vadd.f32 %v8233_v38, %v893_v14  ;;  %v8802_v54 = vadd.f32 %v8233_v38, %v894_v9  ;;  %v7140_v14 = vld [vmem:[%s12193_s0 + $0x400] sm:$0xff]  }
  0xa9   :  { %v896_v26 = vmul.f32 %v8215_v25, %v6904_v15  ;;  %v6596_v1 = vunpack.c.h.bf16 %v7060_v53  ;;  %v1314_v58 = vpack.c.bf16 %v8784_v7, %v8781_v60  ;;  %v6599_v3 = vunpack.c.l.bf16 %v7061_v24 }
  0xaa   :  { %v741_v41 = vmul.f32 %v8215_v25, %v6595_v49  ;;  %v6600_v46 = vunpack.c.h.bf16 %v7061_v24  ;;  %v8816_v28 = vadd.f32 %v8233_v38, %v895_v19  ;;  %v6907_v4 = vunpack.c.l.bf16 %v7138_v0 }
  0xab   :  { %v8819_v37 = vadd.f32 %v8233_v38, %v896_v26  ;;  %v742_v48 = vmul.f32 %v8215_v25, %v6596_v1  ;;  %v743_v63 = vmul.f32 %v8215_v25, %v6599_v3  ;;  %v6908_v22 = vunpack.c.h.bf16 %v7138_v0  ;;  %v7141_v1 = vld [vmem:[%s12193_s0 + $0x408] sm:$0xff]  }
  0xac   :  { %7403 = vmatmul.mubr.msk.bf16.gmra.mrb[80].mxu0 %vm1421_vm1, %v1308_v33  ;;  %7559 = vmatmul.mubr.msk.bf16.gmra.mrb[80].mxu1 %vm1421_vm1, %v1386_v55  ;;  %v8831_v59 = vadd.f32 %v8233_v38, %v741_v41  ;;  %v744_v33 = vmul.f32 %v8215_v25, %v6600_v46  ;;  %v1391_v32 = vpack.c.bf16 %v8802_v54, %v8799_v36  ;;  %v6911_v61 = vunpack.c.l.bf16 %v7139_v50 }
  0xad   :  { %7406 = vmatprep.mubr.msk.bf16.mxu0 %vm1421_vm1, %v1309_v56  ;;  %7562 = vmatprep.mubr.msk.bf16.mxu1 %vm1421_vm1, %v1387_v23  ;;  %v8845_v2 = vadd.f32 %v8233_v38, %v742_v48  ;;  %v897_v5 = vmul.f32 %v8215_v25, %v6907_v4  ;;  %v8849_v55 = vadd.f32 %v8233_v38, %v743_v63  ;;  %v6912_v47 = vunpack.c.h.bf16 %v7139_v50 }
  0xae   :  { %v8852_v56 = vadd.f32 %v8233_v38, %v744_v33  ;;  %v898_v52 = vmul.f32 %v8215_v25, %v6908_v22  ;;  %v1392_v23 = vpack.c.bf16 %v8819_v37, %v8816_v28  ;;  %v899_v34 = vmul.f32 %v8215_v25, %v6911_v61  ;;  %v7064_v22 = vld [vmem:[%s12193_s0 + $0x1a0] sm:$0xff]  }
  0xaf   :  { %v1315_v16 = vpack.c.bf16 %v8845_v2, %v8831_v59  ;;  %v6603_v53 = vunpack.c.l.bf16 %v7062_v11  ;;  %v8867_v18 = vadd.f32 %v8233_v38, %v897_v5  ;;  %v900_v15 = vmul.f32 %v8215_v25, %v6912_v47 }
  0xb0   :  { %v8870_v9 = vadd.f32 %v8233_v38, %v898_v52  ;;  %v6604_v24 = vunpack.c.h.bf16 %v7062_v11  ;;  %v1316_v19 = vpack.c.bf16 %v8852_v56, %v8849_v55  ;;  %v6607_v0 = vunpack.c.l.bf16 %v7063_v35 }
  0xb1   :  { %v745_v49 = vmul.f32 %v8215_v25, %v6603_v53  ;;  %v6608_v26 = vunpack.c.h.bf16 %v7063_v35  ;;  %v8880_v41 = vadd.f32 %v8233_v38, %v899_v34  ;;  %v8883_v3 = vadd.f32 %v8233_v38, %v900_v15  ;;  %v7142_v35 = vld [vmem:[%s12193_s0 + $0x410] sm:$0xff]  }
  0xb2   :  { %v746_v46 = vmul.f32 %v8215_v25, %v6604_v24  ;;  %v6915_v50 = vunpack.c.l.bf16 %v7140_v14  ;;  %v747_v4 = vmul.f32 %v8215_v25, %v6607_v0  ;;  %v6916_v33 = vunpack.c.h.bf16 %v7140_v14  ;;  %v7143_v24 = vld [vmem:[%s12193_s0 + $0x418] sm:$0xff]  }
  0xb3   :  { %v8891_v48 = vadd.f32 %v8233_v38, %v745_v49  ;;  %v748_v63 = vmul.f32 %v8215_v25, %v6608_v26  ;;  %v1393_v20 = vpack.c.bf16 %v8870_v9, %v8867_v18  ;;  %v6919_v11 = vunpack.c.l.bf16 %v7141_v1 }
  0xb4   :  { %7407 = vmatmul.mubr.msk.bf16.gmra.mrb[84].mxu0 %vm1421_vm1, %v1310_v10  ;;  %7563 = vmatmul.mubr.msk.bf16.gmra.mrb[84].mxu1 %vm1421_vm1, %v1388_v6  ;;  %v8909_v42 = vadd.f32 %v8233_v38, %v746_v46  ;;  %v901_v10 = vmul.f32 %v8215_v25, %v6915_v50  ;;  %v8917_v12 = vadd.f32 %v8233_v38, %v747_v4  ;;  %v6920_v30 = vunpack.c.h.bf16 %v7141_v1  ;;  %v7065_v6 = vld [vmem:[%s12193_s0 + $0x1a8] sm:$0xff]  }
  0xb5   :  { %7410 = vmatprep.mubr.msk.bf16.mxu0 %vm1421_vm1, %v1311_v21  ;;  %7566 = vmatprep.mubr.msk.bf16.mxu1 %vm1421_vm1, %v1389_v13  ;;  %v8920_v39 = vadd.f32 %v8233_v38, %v748_v63  ;;  %v902_v8 = vmul.f32 %v8215_v25, %v6916_v33  ;;  %v1394_v21 = vpack.c.bf16 %v8883_v3, %v8880_v41  ;;  %v6611_v13 = vunpack.c.l.bf16 %v7064_v22  ;;  %v7066_v33 = vld [vmem:[%s12193_s0 + $0x1b0] sm:$0xff]   ;;  %v9152_v41 = vld [vmem:[%s12195_s2] ss:$0 sm:$0xff] }
  0xb6   :  { %v8929_v40 = vadd.f32 %v8233_v38, %v901_v10  ;;  %v903_v45 = vmul.f32 %v8215_v25, %v6919_v11  ;;  %v1317_v5 = vpack.c.bf16 %v8909_v42, %v8891_v48  ;;  %v904_v52 = vmul.f32 %v8215_v25, %v6920_v30 }
  0xb7   :  { %v8935_v61 = vadd.f32 %v8233_v38, %v902_v8  ;;  %v6612_v47 = vunpack.c.h.bf16 %v7064_v22  ;;  %v749_v53 = vmul.f32 %v8215_v25, %v6611_v13  ;;  %v6615_v14 = vunpack.c.l.bf16 %v7065_v6 }
  0xb8   :  { %v8942_v34 = vadd.f32 %v8233_v38, %v903_v45  ;;  %v6616_v15 = vunpack.c.h.bf16 %v7065_v6  ;;  %v1318_v49 = vpack.c.bf16 %v8920_v39, %v8917_v12  ;;  %v8953_v26 = vadd.f32 %v8233_v38, %v904_v52 }
  0xb9   :  { %v1395_v0 = vpack.c.bf16 %v8935_v61, %v8929_v40  ;;  %v750_v1 = vmul.f32 %v8215_v25, %v6612_v47  ;;  %v8957_v46 = vadd.f32 %v8233_v38, %v749_v53  ;;  %v751_v50 = vmul.f32 %v8215_v25, %v6615_v14 }
  0xba   :  { %v752_v4 = vmul.f32 %v8215_v25, %v6616_v15  ;;  %v6923_v63 = vunpack.c.l.bf16 %v7142_v35  ;;  %v1396_v22 = vpack.c.bf16 %v8953_v26, %v8942_v34  ;;  %v6924_v11 = vunpack.c.h.bf16 %v7142_v35 }
  0xbb   :  { %v8971_v10 = vadd.f32 %v8233_v38, %v750_v1  ;;  %v6927_v8 = vunpack.c.l.bf16 %v7143_v24  ;;  %v8982_v29 = vadd.f32 %v8233_v38, %v751_v50  ;;  %v6928_v30 = vunpack.c.h.bf16 %v7143_v24  ;;  %v7145_v24 = vld [vmem:[%s12193_s0 + $0x428] sm:$0xff]  }
  0xbc   :  { %7411 = vmatmul.mubr.msk.bf16.gmra.mrb[88].mxu0 %vm1421_vm1, %v1312_v57  ;;  %7567 = vmatmul.mubr.msk.bf16.gmra.mrb[88].mxu1 %vm1421_vm1, %v1390_v43  ;;  %v8985_v44 = vadd.f32 %v8233_v38, %v752_v4  ;;  %v905_v57 = vmul.f32 %v8215_v25, %v6923_v63  ;;  %v906_v51 = vmul.f32 %v8215_v25, %v6924_v11  ;;  %v6619_v43 = vunpack.c.l.bf16 %v7066_v33 }
  0xbd   :  { %7414 = vmatprep.mubr.msk.bf16.mxu0 %vm1421_vm1, %v1313_v17  ;;  %7570 = vmatprep.mubr.msk.bf16.mxu1 %vm1421_vm1, %v1391_v32  ;;  %v1319_v31 = vpack.c.bf16 %v8971_v10, %v8957_v46  ;;  %v907_v62 = vmul.f32 %v8215_v25, %v6927_v8  ;;  %v7144_v17 = vld [vmem:[%s12193_s0 + $0x420] sm:$0xff]   ;;  %v908_v36 = vmul.f32 %v8215_v25, %v6928_v30  ;;  %v6620_v54 = vunpack.c.h.bf16 %v7066_v33 }
  0xbe   :  { %v1320_v6 = vpack.c.bf16 %v8985_v44, %v8982_v29  ;;  %v9005_v45 = vadd.f32 %v8233_v38, %v905_v57  ;;  %v9009_v32 = vadd.f32 %v8233_v38, %v906_v51  ;;  %v753_v52 = vmul.f32 %v8215_v25, %v6619_v43  ;;  %v7068_v33 = vld [vmem:[%s12193_s0 + $0x1c0] sm:$0xff]  }
  0xbf   :  { %v9012_v13 = vadd.f32 %v8233_v38, %v907_v62  ;;  %v6623_v47 = vunpack.c.l.bf16 %v7067_v27  ;;  %v9016_v35 = vadd.f32 %v8233_v38, %v908_v36  ;;  %v754_v53 = vmul.f32 %v8215_v25, %v6620_v54 }
  0xc0   :  { %v6624_v14 = vunpack.c.h.bf16 %v7067_v27  ;;  %v6931_v15 = vunpack.c.l.bf16 %v7144_v17  ;;  %v1397_v1 = vpack.c.bf16 %v9009_v32, %v9005_v45  ;;  %v9025_v50 = vadd.f32 %v8233_v38, %v753_v52 }
  0xc1   :  { %v755_v4 = vmul.f32 %v8215_v25, %v6623_v47  ;;  %v6932_v63 = vunpack.c.h.bf16 %v7144_v17  ;;  %v1398_v11 = vpack.c.bf16 %v9016_v35, %v9012_v13  ;;  %v9034_v8 = vadd.f32 %v8233_v38, %v754_v53  ;;  %v7069_v17 = vld [vmem:[%s12193_s0 + $0x1c8] sm:$0xff]  }
  0xc2   :  { %v756_v57 = vmul.f32 %v8215_v25, %v6624_v14  ;;  %v909_v30 = vmul.f32 %v8215_v25, %v6931_v15  ;;  %v6935_v62 = vunpack.c.l.bf16 %v7145_v24  ;;  %v6936_v43 = vunpack.c.h.bf16 %v7145_v24 }
  0xc3   :  { %v9043_v27 = vadd.f32 %v8233_v38, %v755_v4  ;;  %v910_v51 = vmul.f32 %v8215_v25, %v6932_v63  ;;  %v1321_v60 = vpack.c.bf16 %v9034_v8, %v9025_v50  ;;  %v6627_v36 = vunpack.c.l.bf16 %v7068_v33 }
  0xc4   :  { %7415 = vmatmul.mubr.msk.bf16.gmra.mrb[92].mxu0 %vm1421_vm1, %v1314_v58  ;;  %7571 = vmatmul.mubr.msk.bf16.gmra.mrb[92].mxu1 %vm1421_vm1, %v1392_v23  ;;  %v9060_v7 = vadd.f32 %v8233_v38, %v756_v57  ;;  %v9063_v58 = vadd.f32 %v8233_v38, %v909_v30  ;;  %v911_v37 = vmul.f32 %v8215_v25, %v6935_v62  ;;  %v6628_v2 = vunpack.c.h.bf16 %v7068_v33  ;;  %v7146_v23 = vld [vmem:[%s12193_s0 + $0x430] sm:$0xff]  }
  0xc5   :  { %7418 = vmatprep.mubr.msk.bf16.mxu0 %vm1421_vm1, %v1315_v16  ;;  %7574 = vmatprep.mubr.msk.bf16.mxu1 %vm1421_vm1, %v1393_v20  ;;  %v9070_v28 = vadd.f32 %v8233_v38, %v910_v51  ;;  %v912_v59 = vmul.f32 %v8215_v25, %v6936_v43  ;;  %v757_v54 = vmul.f32 %v8215_v25, %v6627_v36  ;;  %v6631_v18 = vunpack.c.l.bf16 %v7069_v17  ;;  %v7147_v20 = vld [vmem:[%s12193_s0 + $0x438] sm:$0xff]   ;;  %v7070_v33 = vld [vmem:[%s12193_s0 + $0x1d0] sm:$0xff]  }
  0xc6   :  { %v1322_v16 = vpack.c.bf16 %v9060_v7, %v9043_v27  ;;  %v6632_v9 = vunpack.c.h.bf16 %v7069_v17  ;;  %v9086_v47 = vadd.f32 %v8233_v38, %v911_v37  ;;  %v758_v14 = vmul.f32 %v8215_v25, %v6628_v2 }
  0xc7   :  { %v1399_v52 = vpack.c.bf16 %v9070_v28, %v9063_v58  ;;  %v9089_v53 = vadd.f32 %v8233_v38, %v912_v59  ;;  %v9093_v15 = vadd.f32 %v8233_v38, %v757_v54  ;;  %v759_v24 = vmul.f32 %v8215_v25, %v6631_v18  ;;  %v7071_v59 = vld [vmem:[%s12193_s0 + $0x1d8] sm:$0xff]  }
  0xc8   :  { %v760_v4 = vmul.f32 %v8215_v25, %v6632_v9  ;;  %v6939_v63 = vunpack.c.l.bf16 %v7146_v23  ;;  %v9103_v30 = vadd.f32 %v8233_v38, %v758_v14  ;;  %v6940_v51 = vunpack.c.h.bf16 %v7146_v23  ;;  %v9124_v23 = vld [vmem:[%s12194_s1] ss:$0 sm:$0xff] }
  0xc9   :  { %v1400_v57 = vpack.c.bf16 %v9089_v53, %v9086_v47  ;;  %v6943_v62 = vunpack.c.l.bf16 %v7147_v20  ;;  %v9106_v43 = vadd.f32 %v8233_v38, %v759_v24  ;;  %v6944_v37 = vunpack.c.h.bf16 %v7147_v20  ;;  %v7148_v9 = vld [vmem:[%s12193_s0 + $0x440] sm:$0xff]  }
  0xca   :  { %v9109_v17 = vadd.f32 %v8233_v38, %v760_v4  ;;  %v913_v36 = vmul.f32 %v8215_v25, %v6939_v63  ;;  %v1323_v2 = vpack.c.bf16 %v9103_v30, %v9093_v15  ;;  %v914_v25 = vmul.f32 %v9124_v23, %v6940_v51 }
  0xcb   :  { %v915_v54 = vmul.f32 %v9124_v23, %v6943_v62  ;;  %v6635_v18 = vunpack.c.l.bf16 %v7070_v33  ;;  %v6636_v20 = vunpack.c.h.bf16 %v7070_v33  ;;  %v6639_v42 = vunpack.c.l.bf16 %v7071_v59  ;;  %v7072_v33 = vld [vmem:[%s12193_s0 + $0x1e0] sm:$0xff]  }
  0xcc   :  { %7419 = vmatmul.mubr.msk.bf16.gmra.mrb[96].mxu0 %vm1421_vm1, %v1316_v19  ;;  %7575 = vmatmul.mubr.msk.bf16.gmra.mrb[96].mxu1 %vm1421_vm1, %v1394_v21  ;;  %v1324_v55 = vpack.c.bf16 %v9109_v17, %v9106_v43  ;;  %v9142_v56 = vadd.f32 %v8233_v38, %v913_v36  ;;  %v916_v19 = vmul.f32 %v9124_v23, %v6944_v37  ;;  %v6947_v61 = vunpack.c.l.bf16 %v7148_v9 }
  0xcd   :  { %7422 = vmatprep.mubr.msk.bf16.mxu0 %vm1421_vm1, %v1317_v5  ;;  %7578 = vmatprep.mubr.msk.bf16.mxu1 %vm1421_vm1, %v1395_v0  ;;  %v9155_v3 = vadd.f32 %v9152_v41, %v914_v25  ;;  %v9158_v48 = vadd.f32 %v9152_v41, %v915_v54  ;;  %v761_v38 = vmul.f32 %v9124_v23, %v6635_v18  ;;  %v6640_v5 = vunpack.c.h.bf16 %v7071_v59  ;;  %v7149_v0 = vld [vmem:[%s12193_s0 + $0x448] sm:$0xff]  }
  0xce   :  { %v9162_v21 = vadd.f32 %v9152_v41, %v916_v19  ;;  %v762_v40 = vmul.f32 %v9124_v23, %v6636_v20  ;;  %v763_v4 = vmul.f32 %v9124_v23, %v6639_v42  ;;  %v6948_v63 = vunpack.c.h.bf16 %v7148_v9  ;;  %v7073_v9 = vld [vmem:[%s12193_s0 + $0x1e8] sm:$0xff]  }
  0xcf   :  { %v1401_v14 = vpack.c.bf16 %v9155_v3, %v9142_v56  ;;  %v9171_v24 = vadd.f32 %v9152_v41, %v761_v38  ;;  %v764_v36 = vmul.f32 %v9124_v23, %v6640_v5  ;;  %v917_v37 = vmul.f32 %v9124_v23, %v6947_v61 }
  0xd0   :  { %v1402_v51 = vpack.c.bf16 %v9162_v21, %v9158_v48  ;;  %v9180_v62 = vadd.f32 %v9152_v41, %v762_v40  ;;  %v9185_v59 = vadd.f32 %v9152_v41, %v763_v4  ;;  %v918_v25 = vmul.f32 %v9124_v23, %v6948_v63  ;;  %v7150_v4 = vld [vmem:[%s12193_s0 + $0x450] sm:$0xff]  }
  0xd1   :  { %v6951_v54 = vunpack.c.l.bf16 %v7149_v0  ;;  %v6952_v18 = vunpack.c.h.bf16 %v7149_v0  ;;  %v9194_v20 = vadd.f32 %v9152_v41, %v764_v36  ;;  %v9197_v38 = vadd.f32 %v9152_v41, %v917_v37 }
  0xd2   :  { %v1325_v19 = vpack.c.bf16 %v9180_v62, %v9171_v24  ;;  %v6643_v42 = vunpack.c.l.bf16 %v7072_v33  ;;  %v9204_v40 = vadd.f32 %v9152_v41, %v918_v25  ;;  %v6644_v0 = vunpack.c.h.bf16 %v7072_v33  ;;  %v7151_v33 = vld [vmem:[%s12193_s0 + $0x458] sm:$0xff]  }
  0xd3   :  { %v919_v5 = vmul.f32 %v9124_v23, %v6951_v54  ;;  %v920_v61 = vmul.f32 %v9124_v23, %v6952_v18  ;;  %v6648_v63 = vunpack.c.h.bf16 %v7073_v9  ;;  %v6955_v32 = vunpack.c.l.bf16 %v7150_v4 }
  0xd4   :  { %7423 = vmatmul.mubr.msk.bf16.gmra.mrb[100].mxu0 %vm1421_vm1, %v1318_v49  ;;  %7579 = vmatmul.mubr.msk.bf16.gmra.mrb[100].mxu1 %vm1421_vm1, %v1396_v22  ;;  %v765_v39 = vmul.f32 %v9124_v23, %v6643_v42  ;;  %v6647_v49 = vunpack.c.l.bf16 %v7073_v9  ;;  %v1403_v34 = vpack.c.bf16 %v9204_v40, %v9197_v38  ;;  %v766_v22 = vmul.f32 %v9124_v23, %v6644_v0 }
  0xd5   :  { %7426 = vmatprep.mubr.msk.bf16.mxu0 %vm1421_vm1, %v1319_v31  ;;  %7582 = vmatprep.mubr.msk.bf16.mxu1 %vm1421_vm1, %v1397_v1  ;;  %v9232_v26 = vadd.f32 %v9152_v41, %v919_v5  ;;  %v9235_v46 = vadd.f32 %v9152_v41, %v920_v61  ;;  %v768_v45 = vmul.f32 %v9124_v23, %v6648_v63  ;;  %v7074_v1 = vld [vmem:[%s12193_s0 + $0x1f0] sm:$0xff]   ;;  %v6956_v25 = vunpack.c.h.bf16 %v7150_v4  ;;  %v7075_v61 = vld [vmem:[%s12193_s0 + $0x1f8] sm:$0xff]   ;;  %v7152_v63 = vld [vmem:[%s12193_s0 + $0x460] sm:$0xff]  }
  0xd6   :  { %v9239_v10 = vadd.f32 %v9152_v41, %v765_v39  ;;  %v767_v31 = vmul.f32 %v9124_v23, %v6647_v49  ;;  %v9249_v37 = vadd.f32 %v9152_v41, %v766_v22  ;;  %v6959_v54 = vunpack.c.l.bf16 %v7151_v33 }
  0xd7   :  { %v9255_v9 = vadd.f32 %v9152_v41, %v768_v45  ;;  %v921_v42 = vmul.f32 %v9124_v23, %v6955_v32  ;;  %v6960_v5 = vunpack.c.h.bf16 %v7151_v33  ;;  %v922_v39 = vmul.f32 %v9124_v23, %v6956_v25 }
  0xd8   :  { %v9252_v18 = vadd.f32 %v9152_v41, %v767_v31  ;;  %v923_v4 = vmul.f32 %v9124_v23, %v6959_v54  ;;  %v6651_v49 = vunpack.c.l.bf16 %v7074_v1  ;;  %v6652_v45 = vunpack.c.h.bf16 %v7074_v1 }
  0xd9   :  { %v9271_v33 = vadd.f32 %v9152_v41, %v921_v42  ;;  %v924_v31 = vmul.f32 %v9124_v23, %v6960_v5  ;;  %v9279_v32 = vadd.f32 %v9152_v41, %v922_v39  ;;  %v6655_v22 = vunpack.c.l.bf16 %v7075_v61  ;;  %v9288_v42 = vld [vmem:[%s12196_s4] ss:$0 sm:$0xff]  ;;  %v9305_v5 = vld [vmem:[%s12193_s0 + $0x468] sm:$0xff]  }
  0xda   :  { %v9282_v25 = vadd.f32 %v9152_v41, %v923_v4  ;;  %v769_v54 = vmul.f32 %v9124_v23, %v6651_v49  ;;  %v770_v44 = vmul.f32 %v9124_v23, %v6652_v45  ;;  %v6963_v1 = vunpack.c.l.bf16 %v7152_v63 }
  0xdb   :  { %v9299_v29 = vadd.f32 %v9152_v41, %v924_v31  ;;  %v771_v50 = vmul.f32 %v9124_v23, %v6655_v22 }
  0xdc   :  { %7427 = vmatmul.mubr.msk.bf16.gmra.mrb[104].mxu0 %vm1421_vm1, %v1320_v6  ;;  %7583 = vmatmul.mubr.msk.bf16.gmra.mrb[104].mxu1 %vm1421_vm1, %v1398_v11  ;;  %v6656_v6 = vunpack.c.h.bf16 %v7075_v61  ;;  %v9314_v35 = vadd.f32 %v9152_v41, %v769_v54  ;;  %v6964_v11 = vunpack.c.h.bf16 %v7152_v63  ;;  %v9325_v28 = vadd.f32 %v9152_v41, %v770_v44 }
  0xdd   :  { %7430 = vmatprep.mubr.msk.bf16.mxu0 %vm1421_vm1, %v1321_v60  ;;  %7586 = vmatprep.mubr.msk.bf16.mxu1 %vm1421_vm1, %v1399_v52  ;;  %v9320_v60 = vld [vmem:[%s12197_s5] ss:$0 sm:$0xff]  ;;  %v925_v61 = vmul.f32 %v9124_v23, %v6963_v1  ;;  %v9331_v63 = vadd.f32 %v9152_v41, %v771_v50 }
  0xde   :  { %v772_v52 = vmul.f32 %v9124_v23, %v6656_v6  ;;  %v9334_v22 = vmul.f32 %v9124_v23, %v6964_v11 }
  0xdf   :  { %v7324_v8 = vpop.f32.mrb[0].mxu0  ;;  %v7480_v49 = vpop.f32.mrb[0].mxu1 }
  0xe0   :  { %v3161_v39 = vmul.f32 %v7324_v8, %v9288_v42  ;;  %v1922_v4 = vpop.f32.mrb[1].mxu0  ;;  %v3317_v44 = vmul.f32 %v7480_v49, %v9288_v42  ;;  %v2546_v6 = vpop.f32.mrb[1].mxu1  ;;  %v9342_v8 = vadd.f32 %v9152_v41, %v772_v52 }
  0xe1   :  { %v3159_v45 = vmul.f32 %v9288_v42, %v1922_v4  ;;  %v7325_v54 = vpop.f32.mrb[2].mxu0  ;;  %v3315_v13 = vmul.f32 %v9288_v42, %v2546_v6  ;;  %v7481_v31 = vpop.f32.mrb[2].mxu1  ;;  %v9348_v4 = vadd.f32 %v9152_v41, %v925_v61 }
  0xe2   :  { %v3475_v50 = vadd.f32 %v9320_v60, %v3161_v39  ;;  %v3162_v58 = vmul.f32 %v7325_v54, %v9288_v42  ;;  %v1925_v11 = vpop.f32.mrb[3].mxu0  ;;  %v3631_v1 = vadd.f32 %v9320_v60, %v3317_v44  ;;  %v3318_v52 = vmul.f32 %v7481_v31, %v9288_v42  ;;  %v2549_v36 = vpop.f32.mrb[3].mxu1 }
  0xe3   :  { %v3473_v49 = vadd.f32 %v9320_v60, %v3159_v45  ;;  %v3160_v0 = vmul.f32 %v9288_v42, %v1925_v11  ;;  %v3629_v61 = vadd.f32 %v9320_v60, %v3315_v13  ;;  %v3316_v54 = vmul.f32 %v9288_v42, %v2549_v36 }
  0xe4   :  { %v3782_v12 = vmax.f32 %v3475_v50, 0.0  ;;  %v3476_v39 = vadd.f32 %v9320_v60, %v3162_v58  ;;  %7431 = vmatmul.mubr.msk.bf16.gmra.mrb[108].mxu0 %vm1421_vm1, %v1322_v16  ;;  %v3938_v11 = vmax.f32 %v3631_v1, 0.0  ;;  %v3632_v44 = vadd.f32 %v9320_v60, %v3318_v52  ;;  %7587 = vmatmul.mubr.msk.bf16.gmra.mrb[108].mxu1 %vm1421_vm1, %v1400_v57 }
  0xe5   :  { %v3780_v45 = vmax.f32 %v3473_v49, 0.0  ;;  %v3474_v6 = vadd.f32 %v9320_v60, %v3160_v0  ;;  %7434 = vmatprep.mubr.msk.bf16.mxu0 %vm1421_vm1, %v1323_v2  ;;  %v3936_v16 = vmax.f32 %v3629_v61, 0.0  ;;  %v3630_v36 = vadd.f32 %v9320_v60, %v3316_v54  ;;  %7590 = vmatprep.mubr.msk.bf16.mxu1 %vm1421_vm1, %v1401_v14 }
  0xe6   :  { %v6096_v27 = vpack.c.bf16 %v3782_v12, %v3782_v12  ;;  %v3783_v7 = vmax.f32 %v3476_v39, 0.0  ;;  %v6252_v47 = vpack.c.bf16 %v3938_v11, %v3938_v11  ;;  %v3939_v53 = vmax.f32 %v3632_v44, 0.0 }
  0xe7   :  { %v6094_v0 = vpack.c.bf16 %v3780_v45, %v3780_v45  ;;  %v3781_v13 = vmax.f32 %v3474_v6, 0.0  ;;  %v7328_v57 = vpop.f32.mrb[4].mxu0  ;;  %v6250_v30 = vpack.c.bf16 %v3936_v16, %v3936_v16  ;;  %v3937_v12 = vmax.f32 %v3630_v36, 0.0  ;;  %v7484_v31 = vpop.f32.mrb[4].mxu1 }
  0xe8   :  { %5319 = vst.msk [vmem:[%s12198_s6 + $0x8] sm:$0xf] %vm5316_vm2, %v6096_v27  ;;  %v6097_v15 = vpack.c.bf16 %v3783_v7, %v3783_v7  ;;  %v3165_v2 = vmul.f32 %v7328_v57, %v9288_v42  ;;  %v1938_v58 = vpop.f32.mrb[5].mxu0  ;;  %5475 = vst.msk [vmem:[%s12198_s6 + $0x278] sm:$0xf] %vm5316_vm2, %v6252_v47  ;;  %v6253_v3 = vpack.c.bf16 %v3939_v53, %v3939_v53  ;;  %v2562_v49 = vpop.f32.mrb[5].mxu1 }
  0xe9   :  { %5317 = vst.msk [vmem:[%s12198_s6] sm:$0xf] %vm5316_vm2, %v6094_v0  ;;  %v6095_v56 = vpack.c.bf16 %v3781_v13, %v3781_v13  ;;  %v3163_v14 = vmul.f32 %v9288_v42, %v1938_v58  ;;  %v7329_v1 = vpop.f32.mrb[6].mxu0  ;;  %v3321_v50 = vmul.f32 %v7484_v31, %v9288_v42  ;;  %5473 = vst.msk [vmem:[%s12198_s6 + $0x270] sm:$0xf] %vm5316_vm2, %v6250_v30  ;;  %v7485_v6 = vpop.f32.mrb[6].mxu1 }
  0xea   :  { %5320 = vst.msk [vmem:[%s12198_s6 + $0xc] sm:$0xf] %vm5316_vm2, %v6097_v15  ;;  %v3479_v52 = vadd.f32 %v9320_v60, %v3165_v2  ;;  %v6251_v39 = vpack.c.bf16 %v3937_v12, %v3937_v12  ;;  %v3166_v61 = vmul.f32 %v7329_v1, %v9288_v42  ;;  %v1941_v54 = vpop.f32.mrb[7].mxu0  ;;  %v3319_v45 = vmul.f32 %v9288_v42, %v2562_v49  ;;  %v2565_v16 = vpop.f32.mrb[7].mxu1 }
  0xeb   :  { %5318 = vst.msk [vmem:[%s12198_s6 + $0x4] sm:$0xf] %vm5316_vm2, %v6095_v56  ;;  %5476 = vst.msk [vmem:[%s12198_s6 + $0x27c] sm:$0xf] %vm5316_vm2, %v6253_v3  ;;  %v3477_v11 = vadd.f32 %v9320_v60, %v3163_v14  ;;  %v3164_v44 = vmul.f32 %v9288_v42, %v1941_v54  ;;  %v3635_v27 = vadd.f32 %v9320_v60, %v3321_v50 }
  0xec   :  { %v3322_v7 = vmul.f32 %v7485_v6, %v9288_v42  ;;  %v3786_v36 = vmax.f32 %v3479_v52, 0.0  ;;  %5474 = vst.msk [vmem:[%s12198_s6 + $0x274] sm:$0xf] %vm5316_vm2, %v6251_v39  ;;  %v3480_v0 = vadd.f32 %v9320_v60, %v3166_v61  ;;  %7435 = vmatmul.mubr.msk.bf16.gmra.mrb[112].mxu0 %vm1421_vm1, %v1324_v55  ;;  %v3633_v13 = vadd.f32 %v9320_v60, %v3319_v45 }
  0xed   :  { %v3320_v47 = vmul.f32 %v9288_v42, %v2565_v16  ;;  %v3784_v53 = vmax.f32 %v3477_v11, 0.0  ;;  %v3478_v57 = vadd.f32 %v9320_v60, %v3164_v44  ;;  %v3942_v15 = vmax.f32 %v3635_v27, 0.0  ;;  %7591 = vmatmul.mubr.msk.bf16.gmra.mrb[112].mxu1 %vm1421_vm1, %v1402_v51  ;;  %7438 = vmatprep.mubr.msk.bf16.mxu0 %vm1421_vm1, %v1325_v19 }
  0xee   :  { %v3636_v30 = vadd.f32 %v9320_v60, %v3322_v7  ;;  %v6100_v43 = vpack.c.bf16 %v3786_v36, %v3786_v36  ;;  %v3787_v17 = vmax.f32 %v3480_v0, 0.0  ;;  %v3940_v55 = vmax.f32 %v3633_v13, 0.0  ;;  %7594 = vmatprep.mubr.msk.bf16.mxu1 %vm1421_vm1, %v1403_v34 }
  0xef   :  { %v3634_v2 = vadd.f32 %v9320_v60, %v3320_v47  ;;  %v6098_v12 = vpack.c.bf16 %v3784_v53, %v3784_v53  ;;  %v3785_v58 = vmax.f32 %v3478_v57, 0.0  ;;  %v6256_v48 = vpack.c.bf16 %v3942_v15, %v3942_v15  ;;  %v7332_v51 = vpop.f32.mrb[8].mxu0  ;;  %v7488_v3 = vpop.f32.mrb[8].mxu1 }
  0xf0   :  { %v3943_v21 = vmax.f32 %v3636_v30, 0.0  ;;  %5323 = vst.msk [vmem:[%s12198_s6 + $0x18] sm:$0xf] %vm5316_vm2, %v6100_v43  ;;  %v6101_v24 = vpack.c.bf16 %v3787_v17, %v3787_v17  ;;  %v6254_v62 = vpack.c.bf16 %v3940_v55, %v3940_v55  ;;  %v3169_v19 = vmul.f32 %v7332_v51, %v9288_v42  ;;  %v1954_v56 = vpop.f32.mrb[9].mxu0  ;;  %v2578_v50 = vpop.f32.mrb[9].mxu1 }
  0xf1   :  { %v3941_v31 = vmax.f32 %v3634_v2, 0.0  ;;  %5321 = vst.msk [vmem:[%s12198_s6 + $0x10] sm:$0xf] %vm5316_vm2, %v6098_v12  ;;  %v6099_v38 = vpack.c.bf16 %v3785_v58, %v3785_v58  ;;  %5479 = vst.msk [vmem:[%s12198_s6 + $0x288] sm:$0xf] %vm5316_vm2, %v6256_v48  ;;  %v3167_v34 = vmul.f32 %v9288_v42, %v1954_v56  ;;  %v7333_v14 = vpop.f32.mrb[10].mxu0  ;;  %v3325_v1 = vmul.f32 %v7488_v3, %v9288_v42 }
  0xf2   :  { %v6257_v40 = vpack.c.bf16 %v3943_v21, %v3943_v21  ;;  %5324 = vst.msk [vmem:[%s12198_s6 + $0x1c] sm:$0xf] %vm5316_vm2, %v6101_v24  ;;  %5477 = vst.msk [vmem:[%s12198_s6 + $0x280] sm:$0xf] %vm5316_vm2, %v6254_v62  ;;  %v3483_v49 = vadd.f32 %v9320_v60, %v3169_v19  ;;  %v3170_v39 = vmul.f32 %v7333_v14, %v9288_v42  ;;  %v1957_v61 = vpop.f32.mrb[11].mxu0  ;;  %v7489_v45 = vpop.f32.mrb[10].mxu1 }
  0xf3   :  { %v6255_v52 = vpack.c.bf16 %v3941_v31, %v3941_v31  ;;  %v3323_v54 = vmul.f32 %v9288_v42, %v2578_v50  ;;  %5322 = vst.msk [vmem:[%s12198_s6 + $0x14] sm:$0xf] %vm5316_vm2, %v6099_v38  ;;  %v3481_v6 = vadd.f32 %v9320_v60, %v3167_v34  ;;  %v3168_v11 = vmul.f32 %v9288_v42, %v1957_v61  ;;  %v2581_v7 = vpop.f32.mrb[11].mxu1 }
  0xf4   :  { %5480 = vst.msk [vmem:[%s12198_s6 + $0x28c] sm:$0xf] %vm5316_vm2, %v6257_v40  ;;  %v3639_v44 = vadd.f32 %v9320_v60, %v3325_v1  ;;  %v3326_v27 = vmul.f32 %v7489_v45, %v9288_v42  ;;  %v3790_v16 = vmax.f32 %v3483_v49, 0.0  ;;  %v3484_v36 = vadd.f32 %v9320_v60, %v3170_v39 }
  0xf5   :  { %5478 = vst.msk [vmem:[%s12198_s6 + $0x284] sm:$0xf] %vm5316_vm2, %v6255_v52  ;;  %v12199_v0 = vpack.c.bf16 %v9194_v20, %v9185_v59  ;;  %v3637_v13 = vadd.f32 %v9320_v60, %v3323_v54  ;;  %v3324_v47 = vmul.f32 %v9288_v42, %v2581_v7  ;;  %v3788_v53 = vmax.f32 %v3481_v6, 0.0 }
  0xf6   :  { %v3482_v57 = vadd.f32 %v9320_v60, %v3168_v11  ;;  %v3946_v15 = vmax.f32 %v3639_v44, 0.0  ;;  %v3640_v30 = vadd.f32 %v9320_v60, %v3326_v27  ;;  %v12200_v43 = vpack.c.bf16 %v9235_v46, %v9232_v26 }
  0xf7   :  { %7439 = vmatmul.mubr.msk.bf16.gmra.mrb[116].mxu0 %vm1421_vm1, %v12199_v0  ;;  %v12201_v59 = vpack.c.bf16 %v9249_v37, %v9239_v10  ;;  %v6104_v20 = vpack.c.bf16 %v3790_v16, %v3790_v16  ;;  %v3791_v17 = vmax.f32 %v3484_v36, 0.0  ;;  %v3944_v55 = vmax.f32 %v3637_v13, 0.0  ;;  %v7336_v21 = vpop.f32.mrb[12].mxu0  ;;  %v7492_v19 = vpop.f32.mrb[12].mxu1 }
  0xf8   :  { %7595 = vmatmul.mubr.msk.bf16.gmra.mrb[116].mxu1 %vm1421_vm1, %v12200_v43  ;;  %v3638_v2 = vadd.f32 %v9320_v60, %v3324_v47  ;;  %v12202_v12 = vpack.c.bf16 %v9279_v32, %v9271_v33  ;;  %v6102_v58 = vpack.c.bf16 %v3788_v53, %v3788_v53  ;;  %v3789_v48 = vmax.f32 %v3482_v57, 0.0  ;;  %v1970_v62 = vpop.f32.mrb[13].mxu0  ;;  %v2594_v38 = vpop.f32.mrb[13].mxu1 }
  0xf9   :  { %7442 = vmatprep.mubr.msk.bf16.mxu0 %vm1421_vm1, %v12201_v59  ;;  %v6260_v26 = vpack.c.bf16 %v3946_v15, %v3946_v15  ;;  %v3947_v46 = vmax.f32 %v3640_v30, 0.0  ;;  %5327 = vst.msk [vmem:[%s12198_s6 + $0x28] sm:$0xf] %vm5316_vm2, %v6104_v20  ;;  %v6105_v10 = vpack.c.bf16 %v3791_v17, %v3791_v17  ;;  %v6258_v37 = vpack.c.bf16 %v3944_v55, %v3944_v55  ;;  %v7337_v56 = vpop.f32.mrb[14].mxu0  ;;  %v7493_v49 = vpop.f32.mrb[14].mxu1 }
  0xfa   :  { %7598 = vmatprep.mubr.msk.bf16.mxu1 %vm1421_vm1, %v12202_v12  ;;  %v3173_v51 = vmul.f32 %v7336_v21, %v9288_v42  ;;  %v3945_v24 = vmax.f32 %v3638_v2, 0.0  ;;  %5325 = vst.msk [vmem:[%s12198_s6 + $0x20] sm:$0xf] %vm5316_vm2, %v6102_v58  ;;  %v6103_v33 = vpack.c.bf16 %v3789_v48, %v3789_v48  ;;  %v3171_v31 = vmul.f32 %v9288_v42, %v1970_v62  ;;  %v1973_v1 = vpop.f32.mrb[15].mxu0  ;;  %v2597_v45 = vpop.f32.mrb[15].mxu1 }
  0xfb   :  { %5483 = vst.msk [vmem:[%s12198_s6 + $0x298] sm:$0xf] %vm5316_vm2, %v6260_v26  ;;  %v6261_v32 = vpack.c.bf16 %v3947_v46, %v3947_v46  ;;  %v3329_v3 = vmul.f32 %v7492_v19, %v9288_v42  ;;  %5328 = vst.msk [vmem:[%s12198_s6 + $0x2c] sm:$0xf] %vm5316_vm2, %v6105_v10  ;;  %v3174_v14 = vmul.f32 %v7337_v56, %v9288_v42 }
  0xfc   :  { %5481 = vst.msk [vmem:[%s12198_s6 + $0x290] sm:$0xf] %vm5316_vm2, %v6258_v37  ;;  %v3487_v40 = vadd.f32 %v9320_v60, %v3173_v51  ;;  %v6259_v34 = vpack.c.bf16 %v3945_v24, %v3945_v24  ;;  %v3327_v50 = vmul.f32 %v9288_v42, %v2594_v38  ;;  %5326 = vst.msk [vmem:[%s12198_s6 + $0x24] sm:$0xf] %vm5316_vm2, %v6103_v33 }
  0xfd   :  { %5484 = vst.msk [vmem:[%s12198_s6 + $0x29c] sm:$0xf] %vm5316_vm2, %v6261_v32  ;;  %v3485_v52 = vadd.f32 %v9320_v60, %v3171_v31  ;;  %v3172_v39 = vmul.f32 %v9288_v42, %v1973_v1  ;;  %v3643_v61 = vadd.f32 %v9320_v60, %v3329_v3  ;;  %v3330_v54 = vmul.f32 %v7493_v49, %v9288_v42 }
  0xfe   :  { %v3794_v6 = vmax.f32 %v3487_v40, 0.0  ;;  %5482 = vst.msk [vmem:[%s12198_s6 + $0x294] sm:$0xf] %vm5316_vm2, %v6259_v34  ;;  %v3488_v11 = vadd.f32 %v9320_v60, %v3174_v14  ;;  %v12203_v44 = vpack.c.bf16 %v9255_v9, %v9252_v18  ;;  %v3641_v27 = vadd.f32 %v9320_v60, %v3327_v50 }
  0xff   :  { %v3328_v7 = vmul.f32 %v9288_v42, %v2597_v45  ;;  %v3792_v16 = vmax.f32 %v3485_v52, 0.0  ;;  %v3486_v36 = vadd.f32 %v9320_v60, %v3172_v39  ;;  %v3950_v0 = vmax.f32 %v3643_v61, 0.0  ;;  %v7340_v17 = vpop.f32.mrb[16].mxu0  ;;  %v7496_v2 = vpop.f32.mrb[16].mxu1 }
 0x100   :  { %7443 = vmatmul.mubr.msk.bf16.gmra.mrb[120].mxu0 %vm1421_vm1, %v12203_v44  ;;  %v3644_v13 = vadd.f32 %v9320_v60, %v3330_v54  ;;  %v12204_v47 = vpack.c.bf16 %v9299_v29, %v9282_v25  ;;  %v12205_v18 = vpack.c.bf16 %v9325_v28, %v9314_v35  ;;  %v6108_v9 = vpack.c.bf16 %v3794_v6, %v3794_v6  ;;  %v1986_v55 = vpop.f32.mrb[17].mxu0  ;;  %v2610_v21 = vpop.f32.mrb[17].mxu1 }
 0x101   :  { %v3795_v53 = vmax.f32 %v3488_v11, 0.0  ;;  %v3948_v57 = vmax.f32 %v3641_v27, 0.0  ;;  %v3642_v15 = vadd.f32 %v9320_v60, %v3328_v7  ;;  %v6106_v30 = vpack.c.bf16 %v3792_v16, %v3792_v16  ;;  %v7341_v26 = vpop.f32.mrb[18].mxu0 }
 0x102   :  { %7599 = vmatmul.mubr.msk.bf16.gmra.mrb[120].mxu1 %vm1421_vm1, %v12204_v47  ;;  %7446 = vmatprep.mubr.msk.bf16.mxu0 %vm1421_vm1, %v12205_v18  ;;  %v3793_v43 = vmax.f32 %v3486_v36, 0.0  ;;  %v6264_v59 = vpack.c.bf16 %v3950_v0, %v3950_v0  ;;  %v3951_v20 = vmax.f32 %v3644_v13, 0.0  ;;  %5331 = vst.msk [vmem:[%s12198_s6 + $0x38] sm:$0xf] %vm5316_vm2, %v6108_v9  ;;  %v3177_v35 = vmul.f32 %v7340_v17, %v9288_v42  ;;  %v1989_v24 = vpop.f32.mrb[19].mxu0 }
 0x103   :  { %v6109_v25 = vpack.c.bf16 %v3795_v53, %v3795_v53  ;;  %v6262_v29 = vpack.c.bf16 %v3948_v57, %v3948_v57  ;;  %v3949_v28 = vmax.f32 %v3642_v15, 0.0  ;;  %5329 = vst.msk [vmem:[%s12198_s6 + $0x30] sm:$0xf] %vm5316_vm2, %v6106_v30  ;;  %v3175_v48 = vmul.f32 %v9288_v42, %v1986_v55  ;;  %v7076_v15 = vld [vmem:[%s12193_s0 + $0x200] sm:$0xff]  }
 0x104   :  { %v6107_v12 = vpack.c.bf16 %v3793_v43, %v3793_v43  ;;  %5487 = vst.msk [vmem:[%s12198_s6 + $0x2a8] sm:$0xf] %vm5316_vm2, %v6264_v59  ;;  %v6265_v58 = vpack.c.bf16 %v3951_v20, %v3951_v20  ;;  %v1330_v46 = vpack.c.bf16 %v9342_v8, %v9331_v63  ;;  %v3491_v10 = vadd.f32 %v9320_v60, %v3177_v35  ;;  %v7497_v63 = vpop.f32.mrb[18].mxu1 }
 0x105   :  { %5332 = vst.msk [vmem:[%s12198_s6 + $0x3c] sm:$0xf] %vm5316_vm2, %v6109_v25  ;;  %5485 = vst.msk [vmem:[%s12198_s6 + $0x2a0] sm:$0xf] %vm5316_vm2, %v6262_v29  ;;  %v6263_v37 = vpack.c.bf16 %v3949_v28, %v3949_v28  ;;  %v3178_v51 = vmul.f32 %v7341_v26, %v9288_v42  ;;  %v3333_v62 = vmul.f32 %v7496_v2, %v9288_v42  ;;  %v2613_v31 = vpop.f32.mrb[19].mxu1  ;;  %v6968_v35 = vunpack.c.h.bf16 %v9305_v5 }
 0x106   :  { %5330 = vst.msk [vmem:[%s12198_s6 + $0x34] sm:$0xf] %vm5316_vm2, %v6107_v12  ;;  %5488 = vst.msk [vmem:[%s12198_s6 + $0x2ac] sm:$0xf] %vm5316_vm2, %v6265_v58  ;;  %v3489_v8 = vadd.f32 %v9320_v60, %v3175_v48  ;;  %v3176_v19 = vmul.f32 %v9288_v42, %v1989_v24  ;;  %v3331_v33 = vmul.f32 %v9288_v42, %v2610_v21  ;;  %v3798_v56 = vmax.f32 %v3491_v10, 0.0 }
 0x107   :  { %v3334_v32 = vmul.f32 %v7497_v63, %v9288_v42  ;;  %5486 = vst.msk [vmem:[%s12198_s6 + $0x2a4] sm:$0xf] %vm5316_vm2, %v6263_v37  ;;  %v3492_v3 = vadd.f32 %v9320_v60, %v3178_v51  ;;  %v3647_v38 = vadd.f32 %v9320_v60, %v3333_v62  ;;  %v3332_v40 = vmul.f32 %v9288_v42, %v2613_v31  ;;  %v7344_v44 = vpop.f32.mrb[20].mxu0  ;;  %v7500_v13 = vpop.f32.mrb[20].mxu1 }
 0x108   :  { %7447 = vmatmul.mubr.msk.bf16.gmra.mrb[124].mxu0 %vm1421_vm1, %v1330_v46  ;;  %v3796_v34 = vmax.f32 %v3489_v8, 0.0  ;;  %v3490_v14 = vadd.f32 %v9320_v60, %v3176_v19  ;;  %v3645_v1 = vadd.f32 %v9320_v60, %v3331_v33  ;;  %v6112_v49 = vpack.c.bf16 %v3798_v56, %v3798_v56  ;;  %v2002_v0 = vpop.f32.mrb[21].mxu0  ;;  %v2626_v30 = vpop.f32.mrb[21].mxu1 }
 0x109   :  { %v3648_v50 = vadd.f32 %v9320_v60, %v3334_v32  ;;  %v3799_v52 = vmax.f32 %v3492_v3, 0.0  ;;  %v3954_v39 = vmax.f32 %v3647_v38, 0.0  ;;  %v3646_v61 = vadd.f32 %v9320_v60, %v3332_v40  ;;  %v7345_v57 = vpop.f32.mrb[22].mxu0  ;;  %v7501_v29 = vpop.f32.mrb[22].mxu1 }
 0x10a   :  { %v6110_v54 = vpack.c.bf16 %v3796_v34, %v3796_v34  ;;  %v3797_v45 = vmax.f32 %v3490_v14, 0.0  ;;  %v3952_v6 = vmax.f32 %v3645_v1, 0.0  ;;  %5335 = vst.msk [vmem:[%s12198_s6 + $0x48] sm:$0xf] %vm5316_vm2, %v6112_v49  ;;  %v3181_v16 = vmul.f32 %v7344_v44, %v9288_v42  ;;  %v2005_v25 = vpop.f32.mrb[23].mxu0  ;;  %v2629_v12 = vpop.f32.mrb[23].mxu1 }
 0x10b   :  { %v3955_v11 = vmax.f32 %v3648_v50, 0.0  ;;  %v6113_v27 = vpack.c.bf16 %v3799_v52, %v3799_v52  ;;  %v6268_v7 = vpack.c.bf16 %v3954_v39, %v3954_v39  ;;  %v3953_v36 = vmax.f32 %v3646_v61, 0.0 }
 0x10c   :  { %5333 = vst.msk [vmem:[%s12198_s6 + $0x40] sm:$0xf] %vm5316_vm2, %v6110_v54  ;;  %v6111_v47 = vpack.c.bf16 %v3797_v45, %v3797_v45  ;;  %v6266_v18 = vpack.c.bf16 %v3952_v6, %v3952_v6  ;;  %v3179_v53 = vmul.f32 %v9288_v42, %v2002_v0  ;;  %v3495_v43 = vadd.f32 %v9320_v60, %v3181_v16 }
 0x10d   :  { %v6269_v9 = vpack.c.bf16 %v3955_v11, %v3955_v11  ;;  %5336 = vst.msk [vmem:[%s12198_s6 + $0x4c] sm:$0xf] %vm5316_vm2, %v6113_v27  ;;  %5491 = vst.msk [vmem:[%s12198_s6 + $0x2b8] sm:$0xf] %vm5316_vm2, %v6268_v7  ;;  %v6267_v59 = vpack.c.bf16 %v3953_v36, %v3953_v36  ;;  %v1240_v20 = vadd.f32 %v9152_v41, %v9334_v22  ;;  %v12206_v28 = vunpack.c.l.bf16 %v9305_v5  ;;  %v7077_v5 = vld [vmem:[%s12193_s0 + $0x208] sm:$0xff]  }
 0x10e   :  { %v3182_v17 = vmul.f32 %v7345_v57, %v9288_v42  ;;  %5334 = vst.msk [vmem:[%s12198_s6 + $0x44] sm:$0xf] %vm5316_vm2, %v6111_v47  ;;  %5489 = vst.msk [vmem:[%s12198_s6 + $0x2b0] sm:$0xf] %vm5316_vm2, %v6266_v18  ;;  %v3493_v22 = vadd.f32 %v9320_v60, %v3179_v53  ;;  %v3180_v2 = vmul.f32 %v9288_v42, %v2005_v25  ;;  %v3802_v58 = vmax.f32 %v3495_v43, 0.0 }
 0x10f   :  { %5492 = vst.msk [vmem:[%s12198_s6 + $0x2bc] sm:$0xf] %vm5316_vm2, %v6269_v9  ;;  %v927_v55 = vmul.f32 %v9124_v23, %v12206_v28  ;;  %5490 = vst.msk [vmem:[%s12198_s6 + $0x2b4] sm:$0xf] %vm5316_vm2, %v6267_v59  ;;  %v1407_v48 = vpack.c.bf16 %v1240_v20, %v9348_v4  ;;  %v6659_v46 = vunpack.c.l.bf16 %v7076_v15  ;;  %v928_v10 = vmul.f32 %v9124_v23, %v6968_v35  ;;  %v7348_v31 = vpop.f32.mrb[24].mxu0  ;;  %v9679_v14 = vpop.f32.mrb[24].mxu1 }
 0x110   :  { %v3496_v26 = vadd.f32 %v9320_v60, %v3182_v17  ;;  %v3800_v21 = vmax.f32 %v3493_v22, 0.0  ;;  %v3494_v51 = vadd.f32 %v9320_v60, %v3180_v2  ;;  %v6116_v24 = vpack.c.bf16 %v3802_v58, %v3802_v58  ;;  %v2018_v34 = vpop.f32.mrb[25].mxu0  ;;  %v9687_v61 = vpop.f32.mrb[25].mxu1  ;;  %v7155_v2 = vld [vmem:[%s12193_s0 + $0x478] sm:$0xff]  }
 0x111   :  { %v1241_v37 = vadd.f32 %v9152_v41, %v927_v55  ;;  %7602 = vmatprep.mubr.msk.bf16.mxu1 %vm1421_vm1, %v1407_v48  ;;  %v6660_v63 = vunpack.c.h.bf16 %v7076_v15  ;;  %v773_v4 = vmul.f32 %v9124_v23, %v6659_v46  ;;  %v1242_v19 = vadd.f32 %v9152_v41, %v928_v10  ;;  %v7349_v39 = vpop.f32.mrb[26].mxu0  ;;  %v9697_v27 = vpop.f32.mrb[26].mxu1 }
 0x112   :  { %v3803_v62 = vmax.f32 %v3496_v26, 0.0  ;;  %v6114_v8 = vpack.c.bf16 %v3800_v21, %v3800_v21  ;;  %v3801_v33 = vmax.f32 %v3494_v51, 0.0  ;;  %v6663_v32 = vunpack.c.l.bf16 %v7077_v5  ;;  %5339 = vst.msk [vmem:[%s12198_s6 + $0x58] sm:$0xf] %vm5316_vm2, %v6116_v24  ;;  %v2021_v44 = vpop.f32.mrb[27].mxu0  ;;  %v9711_v47 = vpop.f32.mrb[27].mxu1 }
 0x113   :  { %v774_v3 = vmul.f32 %v9124_v23, %v6660_v63  ;;  %v1087_v38 = vadd.f32 %v9152_v41, %v773_v4  ;;  %v6664_v40 = vunpack.c.h.bf16 %v7077_v5  ;;  %v1408_v1 = vpack.c.bf16 %v1242_v19, %v1241_v37  ;;  %v7078_v5 = vld [vmem:[%s12193_s0 + $0x210] sm:$0xff]  }
 0x114   :  { %v6117_v56 = vpack.c.bf16 %v3803_v62, %v3803_v62  ;;  %5337 = vst.msk [vmem:[%s12198_s6 + $0x50] sm:$0xf] %vm5316_vm2, %v6114_v8  ;;  %v6115_v50 = vpack.c.bf16 %v3801_v33, %v3801_v33  ;;  %v775_v49 = vmul.f32 %v9124_v23, %v6663_v32  ;;  %v3337_v52 = vmul.f32 %v7500_v13, %v9288_v42  ;;  %v7154_v13 = vld [vmem:[%s12193_s0 + $0x470] sm:$0xff]  }
 0x115   :  { %v1088_v54 = vadd.f32 %v9152_v41, %v774_v3  ;;  %v776_v45 = vmul.f32 %v9124_v23, %v6664_v40  ;;  %v3335_v6 = vmul.f32 %v9288_v42, %v2626_v30  ;;  %v3338_v11 = vmul.f32 %v7501_v29, %v9288_v42  ;;  %7603 = vmatmul.mubr.msk.bf16.gmra.mrb[124].mxu1 %vm1421_vm1, %v1408_v1 }
 0x116   :  { %5340 = vst.msk [vmem:[%s12198_s6 + $0x5c] sm:$0xf] %vm5316_vm2, %v6117_v56  ;;  %5338 = vst.msk [vmem:[%s12198_s6 + $0x54] sm:$0xf] %vm5316_vm2, %v6115_v50  ;;  %v1089_v7 = vadd.f32 %v9152_v41, %v775_v49  ;;  %v3651_v16 = vadd.f32 %v9320_v60, %v3337_v52  ;;  %v3185_v36 = vmul.f32 %v7348_v31, %v9288_v42  ;;  %v6971_v29 = vunpack.c.l.bf16 %v7154_v13  ;;  %v7079_v31 = vld [vmem:[%s12193_s0 + $0x218] sm:$0xff]  }
 0x117   :  { %v3336_v0 = vmul.f32 %v9288_v42, %v2629_v12  ;;  %v1331_v18 = vpack.c.bf16 %v1088_v54, %v1087_v38  ;;  %v1090_v9 = vadd.f32 %v9152_v41, %v776_v45  ;;  %v3649_v53 = vadd.f32 %v9320_v60, %v3335_v6  ;;  %v9724_v12 = vpop.f32.mrb[28].mxu0  ;;  %v9733_v10 = vpop.f32.mrb[28].mxu1 }
 0x118   :  { %v3652_v57 = vadd.f32 %v9320_v60, %v3338_v11  ;;  %v3958_v15 = vmax.f32 %v3651_v16, 0.0  ;;  %v3499_v30 = vadd.f32 %v9320_v60, %v3185_v36  ;;  %v3183_v59 = vmul.f32 %v9288_v42, %v2018_v34  ;;  %v9731_v21 = vpop.f32.mrb[29].mxu0  ;;  %v9742_v4 = vpop.f32.mrb[29].mxu1 }
 0x119   :  { %v3650_v43 = vadd.f32 %v9320_v60, %v3336_v0  ;;  %7450 = vmatprep.mubr.msk.bf16.mxu0 %vm1421_vm1, %v1331_v18  ;;  %v1332_v20 = vpack.c.bf16 %v1090_v9, %v1089_v7  ;;  %v3956_v17 = vmax.f32 %v3649_v53, 0.0  ;;  %v6972_v26 = vunpack.c.h.bf16 %v7154_v13  ;;  %v9740_v63 = vpop.f32.mrb[30].mxu0  ;;  %v9759_v3 = vpop.f32.mrb[30].mxu1 }
 0x11a   :  { %v3959_v25 = vmax.f32 %v3652_v57, 0.0  ;;  %v6272_v22 = vpack.c.bf16 %v3958_v15, %v3958_v15  ;;  %v3806_v35 = vmax.f32 %v3499_v30, 0.0  ;;  %v3497_v55 = vadd.f32 %v9320_v60, %v3183_v59  ;;  %v9757_v56 = vpop.f32.mrb[31].mxu0  ;;  %v9771_v50 = vpop.f32.mrb[31].mxu1 }
 0x11b   :  { %v3957_v28 = vmax.f32 %v3650_v43, 0.0  ;;  %7451 = vmatmul.mubr.msk.bf16.gmra.mrb[128].mxu0 %vm1421_vm1, %v1332_v20  ;;  %v6270_v58 = vpack.c.bf16 %v3956_v17, %v3956_v17  ;;  %v929_v46 = vmul.f32 %v9124_v23, %v6971_v29  ;;  %v3186_v62 = vmul.f32 %v7349_v39, %v9288_v42  ;;  %v9804_v29 = vld [vmem:[%s12194_s1] ss:$0 sm:$0xff] }
 0x11c   :  { %v6273_v48 = vpack.c.bf16 %v3959_v25, %v3959_v25  ;;  %5495 = vst.msk [vmem:[%s12198_s6 + $0x2c8] sm:$0xf] %vm5316_vm2, %v6272_v22  ;;  %v6120_v37 = vpack.c.bf16 %v3806_v35, %v3806_v35  ;;  %v3804_v24 = vmax.f32 %v3497_v55, 0.0  ;;  %v930_v8 = vmul.f32 %v9124_v23, %v6972_v26  ;;  %v7156_v35 = vld [vmem:[%s12193_s0 + $0x480] sm:$0xff]  }
 0x11d   :  { %v6271_v51 = vpack.c.bf16 %v3957_v28, %v3957_v28  ;;  %5493 = vst.msk [vmem:[%s12198_s6 + $0x2c0] sm:$0xf] %vm5316_vm2, %v6270_v58  ;;  %v1243_v19 = vadd.f32 %v9152_v41, %v929_v46  ;;  %v6975_v33 = vunpack.c.l.bf16 %v7155_v2  ;;  %v6976_v32 = vunpack.c.h.bf16 %v7155_v2  ;;  %v9834_v46 = vld [vmem:[%s12195_s2] ss:$0 sm:$0xff] }
 0x11e   :  { %5496 = vst.msk [vmem:[%s12198_s6 + $0x2cc] sm:$0xf] %vm5316_vm2, %v6273_v48  ;;  %5343 = vst.msk [vmem:[%s12198_s6 + $0x68] sm:$0xf] %vm5316_vm2, %v6120_v37  ;;  %v6118_v38 = vpack.c.bf16 %v3804_v24, %v3804_v24  ;;  %v3500_v40 = vadd.f32 %v9320_v60, %v3186_v62  ;;  %v3184_v34 = vmul.f32 %v9288_v42, %v2021_v44  ;;  %v6667_v1 = vunpack.c.l.bf16 %v7078_v5 }
 0x11f   :  { %5494 = vst.msk [vmem:[%s12198_s6 + $0x2c4] sm:$0xf] %vm5316_vm2, %v6271_v51  ;;  %v1244_v49 = vadd.f32 %v9152_v41, %v930_v8  ;;  %v931_v52 = vmul.f32 %v9124_v23, %v6975_v33  ;;  %v932_v39 = vmul.f32 %v9124_v23, %v6976_v32  ;;  %v6668_v54 = vunpack.c.h.bf16 %v7078_v5  ;;  %v9786_v57 = vpop.f32.mrb[32].mxu0  ;;  %v9795_v17 = vpop.f32.mrb[32].mxu1 }
 0x120   :  { %5341 = vst.msk [vmem:[%s12198_s6 + $0x60] sm:$0xf] %vm5316_vm2, %v6118_v38  ;;  %v3807_v45 = vmax.f32 %v3500_v40, 0.0  ;;  %v3498_v6 = vadd.f32 %v9320_v60, %v3184_v34  ;;  %v777_v11 = vmul.f32 %v9124_v23, %v6667_v1  ;;  %v6671_v44 = vunpack.c.l.bf16 %v7079_v31  ;;  %v9793_v20 = vpop.f32.mrb[33].mxu0  ;;  %v9816_v55 = vpop.f32.mrb[33].mxu1 }
 0x121   :  { %v1409_v7 = vpack.c.bf16 %v1244_v49, %v1243_v19  ;;  %v1245_v16 = vadd.f32 %v9152_v41, %v931_v52  ;;  %v1246_v36 = vadd.f32 %v9152_v41, %v932_v39  ;;  %v778_v0 = vmul.f32 %v9124_v23, %v6668_v54  ;;  %v9814_v28 = vpop.f32.mrb[34].mxu0  ;;  %v7157_v49 = vld [vmem:[%s12193_s0 + $0x488] sm:$0xff]  }
 0x122   :  { %v6121_v13 = vpack.c.bf16 %v3807_v45, %v3807_v45  ;;  %v3805_v18 = vmax.f32 %v3498_v6, 0.0  ;;  %v1091_v9 = vadd.f32 %v9152_v41, %v777_v11  ;;  %v6672_v53 = vunpack.c.h.bf16 %v7079_v31  ;;  %v9823_v26 = vpop.f32.mrb[35].mxu0 }
 0x123   :  { %7606 = vmatprep.mubr.msk.bf16.mxu1 %vm1421_vm1, %v1409_v7  ;;  %v1410_v15 = vpack.c.bf16 %v1246_v36, %v1245_v16  ;;  %v1092_v30 = vadd.f32 %v9152_v41, %v778_v0  ;;  %v779_v43 = vmul.f32 %v9124_v23, %v6671_v44  ;;  %v3341_v59 = vmul.f32 %v9679_v14, %v9288_v42  ;;  %v7080_v16 = vld [vmem:[%s12193_s0 + $0x220] sm:$0xff]  }
 0x124   :  { %5344 = vst.msk [vmem:[%s12198_s6 + $0x6c] sm:$0xf] %vm5316_vm2, %v6121_v13  ;;  %v6119_v25 = vpack.c.bf16 %v3805_v18, %v3805_v18  ;;  %v780_v23 = vmul.f32 %v9804_v29, %v6672_v53  ;;  %v3339_v14 = vmul.f32 %v9288_v42, %v9687_v61  ;;  %v3342_v22 = vmul.f32 %v9697_v27, %v9288_v42  ;;  %v9825_v27 = vpop.f32.mrb[34].mxu1  ;;  %v7081_v53 = vld [vmem:[%s12193_s0 + $0x228] sm:$0xff]  }
 0x125   :  { %7607 = vmatmul.mubr.msk.bf16.gmra.mrb[128].mxu1 %vm1421_vm1, %v1410_v15  ;;  %v1333_v2 = vpack.c.bf16 %v1092_v30, %v1091_v9  ;;  %v1093_v58 = vadd.f32 %v9152_v41, %v779_v43  ;;  %v3655_v48 = vadd.f32 %v9320_v60, %v3341_v59  ;;  %v3189_v61 = vmul.f32 %v9724_v12, %v9288_v42  ;;  %v9841_v51 = vpop.f32.mrb[35].mxu1 }
 0x126   :  { %5342 = vst.msk [vmem:[%s12198_s6 + $0x64] sm:$0xf] %vm5316_vm2, %v6119_v25  ;;  %v1094_v41 = vadd.f32 %v9834_v46, %v780_v23  ;;  %v3653_v5 = vadd.f32 %v9320_v60, %v3339_v14  ;;  %v3656_v12 = vadd.f32 %v9320_v60, %v3342_v22  ;;  %v3340_v37 = vmul.f32 %v9288_v42, %v9711_v47 }
 0x127   :  { %7454 = vmatprep.mubr.msk.bf16.mxu0 %vm1421_vm1, %v1333_v2  ;;  %v3962_v24 = vmax.f32 %v3655_v48, 0.0  ;;  %v3503_v62 = vadd.f32 %v9320_v60, %v3189_v61  ;;  %v3187_v8 = vmul.f32 %v9288_v42, %v9731_v21  ;;  %v6979_v19 = vunpack.c.l.bf16 %v7156_v35  ;;  %v9854_v45 = vpop.f32.mrb[36].mxu0  ;;  %v9868_v0 = vpop.f32.mrb[36].mxu1 }
 0x128   :  { %v1334_v33 = vpack.c.bf16 %v1094_v41, %v1093_v58  ;;  %v3960_v32 = vmax.f32 %v3653_v5, 0.0  ;;  %v3963_v31 = vmax.f32 %v3656_v12, 0.0  ;;  %v3654_v38 = vadd.f32 %v9320_v60, %v3340_v37  ;;  %v9866_v36 = vpop.f32.mrb[37].mxu0  ;;  %v9884_v30 = vpop.f32.mrb[37].mxu1 }
 0x129   :  { %v6276_v40 = vpack.c.bf16 %v3962_v24, %v3962_v24  ;;  %v3810_v34 = vmax.f32 %v3503_v62, 0.0  ;;  %v3501_v47 = vadd.f32 %v9320_v60, %v3187_v8  ;;  %v6980_v1 = vunpack.c.h.bf16 %v7156_v35  ;;  %v9882_v15 = vpop.f32.mrb[38].mxu0  ;;  %v9896_v22 = vpop.f32.mrb[38].mxu1 }
 0x12a   :  { %7455 = vmatmul.mubr.msk.bf16.gmra.mrb[132].mxu0 %vm1421_vm1, %v1334_v33  ;;  %v6274_v52 = vpack.c.bf16 %v3960_v32, %v3960_v32  ;;  %v6277_v39 = vpack.c.bf16 %v3963_v31, %v3963_v31  ;;  %v3961_v21 = vmax.f32 %v3654_v38, 0.0  ;;  %v933_v54 = vmul.f32 %v9804_v29, %v6979_v19  ;;  %v9894_v14 = vpop.f32.mrb[39].mxu0  ;;  %v9904_v61 = vpop.f32.mrb[39].mxu1 }
 0x12b   :  { %5499 = vst.msk [vmem:[%s12198_s6 + $0x2d8] sm:$0xf] %vm5316_vm2, %v6276_v40  ;;  %v6124_v6 = vpack.c.bf16 %v3810_v34, %v3810_v34  ;;  %v3808_v11 = vmax.f32 %v3501_v47, 0.0  ;;  %v934_v44 = vmul.f32 %v9804_v29, %v6980_v1  ;;  %v3190_v7 = vmul.f32 %v9740_v63, %v9288_v42  ;;  %v9922_v34 = vld [vmem:[%s12196_s4] ss:$0 sm:$0xff] }
 0x12c   :  { %5497 = vst.msk [vmem:[%s12198_s6 + $0x2d0] sm:$0xf] %vm5316_vm2, %v6274_v52  ;;  %5500 = vst.msk [vmem:[%s12198_s6 + $0x2dc] sm:$0xf] %vm5316_vm2, %v6277_v39  ;;  %v6275_v13 = vpack.c.bf16 %v3961_v21, %v3961_v21  ;;  %v1247_v63 = vadd.f32 %v9834_v46, %v933_v54  ;;  %v6983_v18 = vunpack.c.l.bf16 %v7157_v49  ;;  %v6984_v9 = vunpack.c.h.bf16 %v7157_v49  ;;  %v7158_v54 = vld [vmem:[%s12193_s0 + $0x490] sm:$0xff]  }
 0x12d   :  { %5347 = vst.msk [vmem:[%s12198_s6 + $0x78] sm:$0xf] %vm5316_vm2, %v6124_v6  ;;  %v6122_v43 = vpack.c.bf16 %v3808_v11, %v3808_v11  ;;  %v1248_v59 = vadd.f32 %v9834_v46, %v934_v44  ;;  %v3504_v25 = vadd.f32 %v9320_v60, %v3190_v7  ;;  %v3188_v23 = vmul.f32 %v9288_v42, %v9757_v56 }
 0x12e   :  { %5498 = vst.msk [vmem:[%s12198_s6 + $0x2d4] sm:$0xf] %vm5316_vm2, %v6275_v13  ;;  %v935_v35 = vmul.f32 %v9804_v29, %v6983_v18  ;;  %v936_v2 = vmul.f32 %v9804_v29, %v6984_v9  ;;  %v6675_v58 = vunpack.c.l.bf16 %v7080_v16  ;;  %v6676_v48 = vunpack.c.h.bf16 %v7080_v16 }
 0x12f   :  { %5345 = vst.msk [vmem:[%s12198_s6 + $0x70] sm:$0xf] %vm5316_vm2, %v6122_v43  ;;  %v1411_v42 = vpack.c.bf16 %v1248_v59, %v1247_v63  ;;  %v3811_v56 = vmax.f32 %v3504_v25, 0.0  ;;  %v3502_v41 = vadd.f32 %v9320_v60, %v3188_v23  ;;  %v6679_v5 = vunpack.c.l.bf16 %v7081_v53  ;;  %v9926_v1 = vpop.f32.mrb[40].mxu0  ;;  %v9941_v6 = vpop.f32.mrb[40].mxu1 }
 0x130   :  { %v1249_v12 = vadd.f32 %v9834_v46, %v935_v35  ;;  %v1250_v37 = vadd.f32 %v9834_v46, %v936_v2  ;;  %v781_v24 = vmul.f32 %v9804_v29, %v6675_v58  ;;  %v782_v62 = vmul.f32 %v9804_v29, %v6676_v48  ;;  %v9951_v13 = vpop.f32.mrb[41].mxu1 }
 0x131   :  { %7610 = vmatprep.mubr.msk.bf16.mxu1 %vm1421_vm1, %v1411_v42  ;;  %v6125_v8 = vpack.c.bf16 %v3811_v56, %v3811_v56  ;;  %v3809_v19 = vmax.f32 %v3502_v41, 0.0  ;;  %v6680_v33 = vunpack.c.h.bf16 %v7081_v53  ;;  %v783_v32 = vmul.f32 %v9804_v29, %v6679_v5  ;;  %v9970_v53 = vpop.f32.mrb[42].mxu1  ;;  %v7159_v5 = vld [vmem:[%s12193_s0 + $0x498] sm:$0xff]  }
 0x132   :  { %v1412_v31 = vpack.c.bf16 %v1250_v37, %v1249_v12  ;;  %v1095_v38 = vadd.f32 %v9834_v46, %v781_v24  ;;  %v1096_v40 = vadd.f32 %v9834_v46, %v782_v62  ;;  %v3345_v47 = vmul.f32 %v9922_v34, %v9733_v10  ;;  %v9939_v10 = vpop.f32.mrb[41].mxu0  ;;  %v9975_v35 = vpop.f32.mrb[43].mxu1 }
 0x133   :  { %5348 = vst.msk [vmem:[%s12198_s6 + $0x7c] sm:$0xf] %vm5316_vm2, %v6125_v8  ;;  %v6123_v49 = vpack.c.bf16 %v3809_v19, %v3809_v19  ;;  %v784_v52 = vmul.f32 %v9804_v29, %v6680_v33  ;;  %v1097_v39 = vadd.f32 %v9834_v46, %v783_v32  ;;  %v3343_v21 = vmul.f32 %v9922_v34, %v9742_v4  ;;  %v9949_v4 = vpop.f32.mrb[42].mxu0 }
 0x134   :  { %7611 = vmatmul.mubr.msk.bf16.gmra.mrb[132].mxu1 %vm1421_vm1, %v1412_v31  ;;  %v1335_v11 = vpack.c.bf16 %v1096_v40, %v1095_v38  ;;  %v3659_v44 = vadd.f32 %v9320_v60, %v3345_v47  ;;  %v3346_v7 = vmul.f32 %v9922_v34, %v9759_v3  ;;  %v3193_v16 = vmul.f32 %v9922_v34, %v9786_v57  ;;  %v9961_v60 = vld [vmem:[%s12197_s5] ss:$0 sm:$0xff]  ;;  %v9968_v9 = vpop.f32.mrb[43].mxu0  ;;  %v7082_v31 = vld [vmem:[%s12193_s0 + $0x230] sm:$0xff]   ;;  %v7083_v38 = vld [vmem:[%s12193_s0 + $0x238] sm:$0xff]  }
 0x135   :  { %5346 = vst.msk [vmem:[%s12198_s6 + $0x74] sm:$0xf] %vm5316_vm2, %v6123_v49  ;;  %v1098_v63 = vadd.f32 %v9834_v46, %v784_v52  ;;  %v3657_v3 = vadd.f32 %v9961_v60, %v3343_v21  ;;  %v3344_v57 = vmul.f32 %v9922_v34, %v9771_v50  ;;  %v3191_v18 = vmul.f32 %v9922_v34, %v9793_v20 }
 0x136   :  { %7458 = vmatprep.mubr.msk.bf16.mxu0 %vm1421_vm1, %v1335_v11  ;;  %v3966_v43 = vmax.f32 %v3659_v44, 0.0  ;;  %v3660_v59 = vadd.f32 %v9961_v60, %v3346_v7  ;;  %v3507_v25 = vadd.f32 %v9961_v60, %v3193_v16  ;;  %v6987_v23 = vunpack.c.l.bf16 %v7158_v54 }
 0x137   :  { %v1336_v2 = vpack.c.bf16 %v1098_v63, %v1097_v39  ;;  %v3964_v58 = vmax.f32 %v3657_v3, 0.0  ;;  %v3658_v50 = vadd.f32 %v9961_v60, %v3344_v57  ;;  %v3505_v20 = vadd.f32 %v9961_v60, %v3191_v18  ;;  %v9997_v40 = vpop.f32.mrb[44].mxu0  ;;  %v10006_v21 = vpop.f32.mrb[44].mxu1 }
 0x138   :  { %v6280_v48 = vpack.c.bf16 %v3966_v43, %v3966_v43  ;;  %v3967_v42 = vmax.f32 %v3660_v59, 0.0  ;;  %v3814_v56 = vmax.f32 %v3507_v25, 0.0  ;;  %v6988_v41 = vunpack.c.h.bf16 %v7158_v54  ;;  %v10004_v39 = vpop.f32.mrb[45].mxu0  ;;  %v10022_v63 = vpop.f32.mrb[45].mxu1 }
 0x139   :  { %7459 = vmatmul.mubr.msk.bf16.gmra.mrb[136].mxu0 %vm1421_vm1, %v1336_v2  ;;  %v6278_v12 = vpack.c.bf16 %v3964_v58, %v3964_v58  ;;  %v3965_v37 = vmax.f32 %v3658_v50, 0.0  ;;  %v3812_v24 = vmax.f32 %v3505_v20, 0.0  ;;  %v937_v62 = vmul.f32 %v9804_v29, %v6987_v23  ;;  %v10020_v16 = vpop.f32.mrb[46].mxu0  ;;  %v10035_v59 = vpop.f32.mrb[46].mxu1 }
 0x13a   :  { %5503 = vst.msk [vmem:[%s12198_s6 + $0x2e8] sm:$0xf] %vm5316_vm2, %v6280_v48  ;;  %v6281_v8 = vpack.c.bf16 %v3967_v42, %v3967_v42  ;;  %v6128_v19 = vpack.c.bf16 %v3814_v56, %v3814_v56  ;;  %v938_v33 = vmul.f32 %v9804_v29, %v6988_v41  ;;  %v3194_v32 = vmul.f32 %v9922_v34, %v9814_v28  ;;  %v10039_v50 = vpop.f32.mrb[47].mxu1 }
 0x13b   :  { %5501 = vst.msk [vmem:[%s12198_s6 + $0x2e0] sm:$0xf] %vm5316_vm2, %v6278_v12  ;;  %v6279_v47 = vpack.c.bf16 %v3965_v37, %v3965_v37  ;;  %v6126_v49 = vpack.c.bf16 %v3812_v24, %v3812_v24  ;;  %v1251_v52 = vadd.f32 %v9834_v46, %v937_v62  ;;  %v6991_v28 = vunpack.c.l.bf16 %v7159_v5 }
 0x13c   :  { %5504 = vst.msk [vmem:[%s12198_s6 + $0x2ec] sm:$0xf] %vm5316_vm2, %v6281_v8  ;;  %5351 = vst.msk [vmem:[%s12198_s6 + $0x88] sm:$0xf] %vm5316_vm2, %v6128_v19  ;;  %v1252_v54 = vadd.f32 %v9834_v46, %v938_v33  ;;  %v3508_v11 = vadd.f32 %v9961_v60, %v3194_v32  ;;  %v6992_v44 = vunpack.c.h.bf16 %v7159_v5  ;;  %v3192_v7 = vmul.f32 %v9922_v34, %v9823_v26  ;;  %v10033_v26 = vpop.f32.mrb[47].mxu0 }
 0x13d   :  { %5502 = vst.msk [vmem:[%s12198_s6 + $0x2e4] sm:$0xf] %vm5316_vm2, %v6279_v47  ;;  %5349 = vst.msk [vmem:[%s12198_s6 + $0x80] sm:$0xf] %vm5316_vm2, %v6126_v49  ;;  %v939_v3 = vmul.f32 %v9804_v29, %v6991_v28  ;;  %v6683_v57 = vunpack.c.l.bf16 %v7082_v31  ;;  %v6684_v18 = vunpack.c.h.bf16 %v7082_v31  ;;  %v6687_v43 = vunpack.c.l.bf16 %v7083_v38  ;;  %v7160_v47 = vld [vmem:[%s12193_s0 + $0x4a0] sm:$0xff]  }
 0x13e   :  { %v1413_v25 = vpack.c.bf16 %v1252_v54, %v1251_v52  ;;  %v3815_v23 = vmax.f32 %v3508_v11, 0.0  ;;  %v940_v2 = vmul.f32 %v9804_v29, %v6992_v44  ;;  %v3506_v58 = vadd.f32 %v9961_v60, %v3192_v7 }
 0x13f   :  { %v1253_v20 = vadd.f32 %v9834_v46, %v939_v3  ;;  %v785_v48 = vmul.f32 %v9804_v29, %v6683_v57  ;;  %v786_v42 = vmul.f32 %v9804_v29, %v6684_v18  ;;  %v6688_v56 = vunpack.c.h.bf16 %v7083_v38  ;;  %v10062_v49 = vpop.f32.mrb[48].mxu0  ;;  %v10070_v44 = vpop.f32.mrb[48].mxu1 }
 0x140   :  { %7614 = vmatprep.mubr.msk.bf16.mxu1 %vm1421_vm1, %v1413_v25  ;;  %v6129_v41 = vpack.c.bf16 %v3815_v23, %v3815_v23  ;;  %v1254_v5 = vadd.f32 %v9834_v46, %v940_v2  ;;  %v3813_v12 = vmax.f32 %v3506_v58, 0.0  ;;  %v787_v37 = vmul.f32 %v9804_v29, %v6687_v43  ;;  %v10068_v11 = vpop.f32.mrb[49].mxu0  ;;  %v10086_v18 = vpop.f32.mrb[49].mxu1 }
 0x141   :  { %v1099_v24 = vadd.f32 %v9834_v46, %v785_v48  ;;  %v1100_v62 = vadd.f32 %v9834_v46, %v786_v42  ;;  %v788_v8 = vmul.f32 %v9804_v29, %v6688_v56  ;;  %v3349_v19 = vmul.f32 %v9922_v34, %v9795_v17  ;;  %v10084_v57 = vpop.f32.mrb[50].mxu0 }
 0x142   :  { %5352 = vst.msk [vmem:[%s12198_s6 + $0x8c] sm:$0xf] %vm5316_vm2, %v6129_v41  ;;  %v1414_v33 = vpack.c.bf16 %v1254_v5, %v1253_v20  ;;  %v6127_v32 = vpack.c.bf16 %v3813_v12, %v3813_v12  ;;  %v1101_v31 = vadd.f32 %v9834_v46, %v787_v37  ;;  %v3347_v38 = vmul.f32 %v9922_v34, %v9816_v55  ;;  %v10090_v58 = vpop.f32.mrb[51].mxu0  ;;  %v7161_v37 = vld [vmem:[%s12193_s0 + $0x4a8] sm:$0xff]  }
 0x143   :  { %v1337_v52 = vpack.c.bf16 %v1100_v62, %v1099_v24  ;;  %v1102_v17 = vadd.f32 %v9834_v46, %v788_v8  ;;  %v3663_v28 = vadd.f32 %v9961_v60, %v3349_v19  ;;  %v3350_v54 = vmul.f32 %v9922_v34, %v9825_v27 }
 0x144   :  { %7615 = vmatmul.mubr.msk.bf16.gmra.mrb[136].mxu1 %vm1421_vm1, %v1414_v33  ;;  %5350 = vst.msk [vmem:[%s12198_s6 + $0x84] sm:$0xf] %vm5316_vm2, %v6127_v32  ;;  %v3661_v55 = vadd.f32 %v9961_v60, %v3347_v38  ;;  %v3197_v7 = vmul.f32 %v9922_v34, %v9854_v45  ;;  %v3348_v3 = vmul.f32 %v9922_v34, %v9841_v51  ;;  %v6995_v2 = vunpack.c.l.bf16 %v7160_v47  ;;  %v10092_v45 = vpop.f32.mrb[50].mxu1 }
 0x145   :  { %v3195_v27 = vmul.f32 %v9922_v34, %v9866_v36  ;;  %7462 = vmatprep.mubr.msk.bf16.mxu0 %vm1421_vm1, %v1337_v52  ;;  %v1338_v43 = vpack.c.bf16 %v1102_v17, %v1101_v31  ;;  %v3970_v25 = vmax.f32 %v3663_v28, 0.0  ;;  %v3664_v23 = vadd.f32 %v9961_v60, %v3350_v54  ;;  %v10097_v42 = vpop.f32.mrb[51].mxu1  ;;  %v7085_v52 = vld [vmem:[%s12193_s0 + $0x248] sm:$0xff]  }
 0x146   :  { %v3968_v20 = vmax.f32 %v3661_v55, 0.0  ;;  %v3511_v51 = vadd.f32 %v9961_v60, %v3197_v7  ;;  %v3662_v36 = vadd.f32 %v9961_v60, %v3348_v3  ;;  %v6996_v5 = vunpack.c.h.bf16 %v7160_v47  ;;  %v7084_v47 = vld [vmem:[%s12193_s0 + $0x240] sm:$0xff]  }
 0x147   :  { %v3509_v48 = vadd.f32 %v9961_v60, %v3195_v27  ;;  %7463 = vmatmul.mubr.msk.bf16.gmra.mrb[140].mxu0 %vm1421_vm1, %v1338_v43  ;;  %v6284_v56 = vpack.c.bf16 %v3970_v25, %v3970_v25  ;;  %v3971_v41 = vmax.f32 %v3664_v23, 0.0  ;;  %v941_v12 = vmul.f32 %v9804_v29, %v6995_v2  ;;  %v10122_v7 = vpop.f32.mrb[52].mxu0  ;;  %v10134_v23 = vpop.f32.mrb[52].mxu1 }
 0x148   :  { %v6282_v24 = vpack.c.bf16 %v3968_v20, %v3968_v20  ;;  %v3818_v62 = vmax.f32 %v3511_v51, 0.0  ;;  %v3969_v8 = vmax.f32 %v3662_v36, 0.0  ;;  %v942_v32 = vmul.f32 %v9804_v29, %v6996_v5  ;;  %v10132_v25 = vpop.f32.mrb[53].mxu0 }
 0x149   :  { %v3816_v19 = vmax.f32 %v3509_v48, 0.0  ;;  %5507 = vst.msk [vmem:[%s12198_s6 + $0x2f8] sm:$0xf] %vm5316_vm2, %v6284_v56  ;;  %v6285_v33 = vpack.c.bf16 %v3971_v41, %v3971_v41  ;;  %v1255_v31 = vadd.f32 %v9834_v46, %v941_v12  ;;  %v3198_v38 = vmul.f32 %v9922_v34, %v9882_v15  ;;  %v10149_v36 = vpop.f32.mrb[54].mxu0  ;;  %v10151_v48 = vpop.f32.mrb[53].mxu1 }
 0x14a   :  { %5505 = vst.msk [vmem:[%s12198_s6 + $0x2f0] sm:$0xf] %vm5316_vm2, %v6282_v24  ;;  %v6132_v17 = vpack.c.bf16 %v3818_v62, %v3818_v62  ;;  %v6283_v28 = vpack.c.bf16 %v3969_v8, %v3969_v8  ;;  %v6999_v55 = vunpack.c.l.bf16 %v7161_v37  ;;  %v1256_v15 = vadd.f32 %v9834_v46, %v942_v32  ;;  %v10157_v24 = vpop.f32.mrb[54].mxu1 }
 0x14b   :  { %v6130_v54 = vpack.c.bf16 %v3816_v19, %v3816_v19  ;;  %5508 = vst.msk [vmem:[%s12198_s6 + $0x2fc] sm:$0xf] %vm5316_vm2, %v6285_v33  ;;  %v3512_v3 = vadd.f32 %v9961_v60, %v3198_v38  ;;  %v7000_v27 = vunpack.c.h.bf16 %v7161_v37  ;;  %v3196_v43 = vmul.f32 %v9922_v34, %v9894_v14  ;;  %v10155_v37 = vpop.f32.mrb[55].mxu0  ;;  %v10162_v32 = vpop.f32.mrb[55].mxu1 }
 0x14c   :  { %5355 = vst.msk [vmem:[%s12198_s6 + $0x98] sm:$0xf] %vm5316_vm2, %v6132_v17  ;;  %5506 = vst.msk [vmem:[%s12198_s6 + $0x2f4] sm:$0xf] %vm5316_vm2, %v6283_v28  ;;  %v943_v14 = vmul.f32 %v9804_v29, %v6999_v55  ;;  %v6691_v2 = vunpack.c.l.bf16 %v7084_v47  ;;  %v6692_v20 = vunpack.c.h.bf16 %v7084_v47  ;;  %v6695_v51 = vunpack.c.l.bf16 %v7085_v52 }
 0x14d   :  { %5353 = vst.msk [vmem:[%s12198_s6 + $0x90] sm:$0xf] %vm5316_vm2, %v6130_v54  ;;  %v1415_v56 = vpack.c.bf16 %v1256_v15, %v1255_v31  ;;  %v3819_v41 = vmax.f32 %v3512_v3, 0.0  ;;  %v944_v5 = vmul.f32 %v9804_v29, %v7000_v27  ;;  %v3510_v12 = vadd.f32 %v9961_v60, %v3196_v43 }
 0x14e   :  { %v1257_v62 = vadd.f32 %v9834_v46, %v943_v14  ;;  %v789_v8 = vmul.f32 %v9804_v29, %v6691_v2  ;;  %v790_v19 = vmul.f32 %v9804_v29, %v6692_v20  ;;  %v6696_v33 = vunpack.c.h.bf16 %v7085_v52  ;;  %v7162_v14 = vld [vmem:[%s12193_s0 + $0x4b0] sm:$0xff]  }
 0x14f   :  { %7618 = vmatprep.mubr.msk.bf16.mxu1 %vm1421_vm1, %v1415_v56  ;;  %v6133_v31 = vpack.c.bf16 %v3819_v41, %v3819_v41  ;;  %v1258_v38 = vadd.f32 %v9834_v46, %v944_v5  ;;  %v3817_v47 = vmax.f32 %v3510_v12, 0.0  ;;  %v791_v17 = vmul.f32 %v9804_v29, %v6695_v51  ;;  %v10186_v56 = vpop.f32.mrb[56].mxu0 }
 0x150   :  { %v1103_v28 = vadd.f32 %v9834_v46, %v789_v8  ;;  %v1104_v54 = vadd.f32 %v9834_v46, %v790_v19  ;;  %v792_v55 = vmul.f32 %v9804_v29, %v6696_v33  ;;  %v3353_v15 = vmul.f32 %v9922_v34, %v9868_v0  ;;  %v10200_v12 = vpop.f32.mrb[57].mxu0 }
 0x151   :  { %5356 = vst.msk [vmem:[%s12198_s6 + $0x9c] sm:$0xf] %vm5316_vm2, %v6133_v31  ;;  %v1416_v52 = vpack.c.bf16 %v1258_v38, %v1257_v62  ;;  %v6131_v3 = vpack.c.bf16 %v3817_v47, %v3817_v47  ;;  %v1105_v27 = vadd.f32 %v9834_v46, %v791_v17  ;;  %v3351_v43 = vmul.f32 %v9922_v34, %v9884_v30  ;;  %v10202_v62 = vpop.f32.mrb[56].mxu1  ;;  %v10206_v38 = vpop.f32.mrb[58].mxu0 }
 0x152   :  { %v1339_v2 = vpack.c.bf16 %v1104_v54, %v1103_v28  ;;  %v1106_v20 = vadd.f32 %v9834_v46, %v792_v55  ;;  %v3667_v0 = vadd.f32 %v9961_v60, %v3353_v15  ;;  %v3354_v51 = vmul.f32 %v9922_v34, %v9896_v22  ;;  %v10213_v28 = vpop.f32.mrb[59].mxu0 }
 0x153   :  { %7619 = vmatmul.mubr.msk.bf16.gmra.mrb[140].mxu1 %vm1421_vm1, %v1416_v52  ;;  %5354 = vst.msk [vmem:[%s12198_s6 + $0x94] sm:$0xf] %vm5316_vm2, %v6131_v3  ;;  %v3665_v30 = vadd.f32 %v9961_v60, %v3351_v43  ;;  %v3201_v41 = vmul.f32 %v9922_v34, %v9926_v1  ;;  %v3352_v5 = vmul.f32 %v9922_v34, %v9904_v61  ;;  %v7003_v31 = vunpack.c.l.bf16 %v7162_v14  ;;  %v10208_v1 = vpop.f32.mrb[57].mxu1 }
 0x154   :  { %v3199_v22 = vmul.f32 %v9922_v34, %v9939_v10  ;;  %7466 = vmatprep.mubr.msk.bf16.mxu0 %vm1421_vm1, %v1339_v2  ;;  %v1340_v8 = vpack.c.bf16 %v1106_v20, %v1105_v27  ;;  %v3974_v19 = vmax.f32 %v3667_v0, 0.0  ;;  %v3668_v33 = vadd.f32 %v9961_v60, %v3354_v51  ;;  %v10215_v54 = vpop.f32.mrb[58].mxu1  ;;  %v7163_v27 = vld [vmem:[%s12193_s0 + $0x4b8] sm:$0xff]  }
 0x155   :  { %v3972_v47 = vmax.f32 %v3665_v30, 0.0  ;;  %v3515_v61 = vadd.f32 %v9961_v60, %v3201_v41  ;;  %v3666_v10 = vadd.f32 %v9961_v60, %v3352_v5  ;;  %v7004_v52 = vunpack.c.h.bf16 %v7162_v14  ;;  %v10222_v43 = vpop.f32.mrb[59].mxu1 }
 0x156   :  { %v3513_v17 = vadd.f32 %v9961_v60, %v3199_v22  ;;  %7467 = vmatmul.mubr.msk.bf16.gmra.mrb[144].mxu0 %vm1421_vm1, %v1340_v8  ;;  %v6288_v55 = vpack.c.bf16 %v3974_v19, %v3974_v19  ;;  %v3975_v15 = vmax.f32 %v3668_v33, 0.0  ;;  %v945_v3 = vmul.f32 %v9804_v29, %v7003_v31  ;;  %v7086_v22 = vld [vmem:[%s12193_s0 + $0x250] sm:$0xff]   ;;  %v7087_v8 = vld [vmem:[%s12193_s0 + $0x258] sm:$0xff]  }
 0x157   :  { %v6286_v2 = vpack.c.bf16 %v3972_v47, %v3972_v47  ;;  %v3822_v20 = vmax.f32 %v3515_v61, 0.0  ;;  %v3973_v0 = vmax.f32 %v3666_v10, 0.0  ;;  %v946_v14 = vmul.f32 %v9804_v29, %v7004_v52 }
 0x158   :  { %v3820_v51 = vmax.f32 %v3513_v17, 0.0  ;;  %5511 = vst.msk [vmem:[%s12198_s6 + $0x308] sm:$0xf] %vm5316_vm2, %v6288_v55  ;;  %v6289_v30 = vpack.c.bf16 %v3975_v15, %v3975_v15  ;;  %v1259_v41 = vadd.f32 %v9834_v46, %v945_v3  ;;  %v3202_v5 = vmul.f32 %v9922_v34, %v9949_v4  ;;  %v10250_v55 = vpop.f32.mrb[60].mxu0 }
 0x159   :  { %5509 = vst.msk [vmem:[%s12198_s6 + $0x300] sm:$0xf] %vm5316_vm2, %v6286_v2  ;;  %v6136_v19 = vpack.c.bf16 %v3822_v20, %v3822_v20  ;;  %v6287_v33 = vpack.c.bf16 %v3973_v0, %v3973_v0  ;;  %v7007_v47 = vunpack.c.l.bf16 %v7163_v27  ;;  %v1260_v4 = vadd.f32 %v9834_v46, %v946_v14  ;;  %v10267_v2 = vpop.f32.mrb[60].mxu1 }
 0x15a   :  { %v6134_v31 = vpack.c.bf16 %v3820_v51, %v3820_v51  ;;  %5512 = vst.msk [vmem:[%s12198_s6 + $0x30c] sm:$0xf] %vm5316_vm2, %v6289_v30  ;;  %v3516_v61 = vadd.f32 %v9961_v60, %v3202_v5  ;;  %v7008_v10 = vunpack.c.h.bf16 %v7163_v27  ;;  %v3200_v17 = vmul.f32 %v9922_v34, %v9968_v9  ;;  %v10265_v27 = vpop.f32.mrb[61].mxu0  ;;  %12207 = vst [vmem:[#allocation2_spill] sm:$0xff] %v10267_v2  ;;  %v10273_v5 = vpop.f32.mrb[61].mxu1 }
 0x15b   :  { %5359 = vst.msk [vmem:[%s12198_s6 + $0xa8] sm:$0xf] %vm5316_vm2, %v6136_v19  ;;  %5510 = vst.msk [vmem:[%s12198_s6 + $0x304] sm:$0xf] %vm5316_vm2, %v6287_v33  ;;  %v947_v15 = vmul.f32 %v9804_v29, %v7007_v47  ;;  %v6699_v9 = vunpack.c.l.bf16 %v7086_v22  ;;  %v6700_v52 = vunpack.c.h.bf16 %v7086_v22  ;;  %v6703_v3 = vunpack.c.l.bf16 %v7087_v8  ;;  %v10271_v14 = vpop.f32.mrb[62].mxu0  ;;  %v10280_v2 = vpop.f32.mrb[62].mxu1 }
 0x15c   :  { %5357 = vst.msk [vmem:[%s12198_s6 + $0xa0] sm:$0xf] %vm5316_vm2, %v6134_v31  ;;  %v1417_v20 = vpack.c.bf16 %v1260_v4, %v1259_v41  ;;  %v3823_v0 = vmax.f32 %v3516_v61, 0.0  ;;  %v948_v51 = vmul.f32 %v9804_v29, %v7008_v10  ;;  %v3514_v30 = vadd.f32 %v9961_v60, %v3200_v17  ;;  %v10278_v47 = vpop.f32.mrb[63].mxu0  ;;  %v10285_v17 = vpop.f32.mrb[63].mxu1 }
 0x15d   :  { %v1261_v19 = vadd.f32 %v9834_v46, %v947_v15  ;;  %v793_v33 = vmul.f32 %v9804_v29, %v6699_v9  ;;  %v794_v22 = vmul.f32 %v9804_v29, %v6700_v52  ;;  %v6704_v31 = vunpack.c.h.bf16 %v7087_v8 }
 0x15e   :  { %7622 = vmatprep.mubr.msk.bf16.mxu1 %vm1421_vm1, %v1417_v20  ;;  %v6137_v41 = vpack.c.bf16 %v3823_v0, %v3823_v0  ;;  %v1262_v4 = vadd.f32 %v9834_v46, %v948_v51  ;;  %v3821_v61 = vmax.f32 %v3514_v30, 0.0  ;;  %v795_v10 = vmul.f32 %v9804_v29, %v6703_v3  ;;  %v7164_v30 = vld [vmem:[%s12193_s0 + $0x4c0] sm:$0xff]  }
 0x15f   :  { %v1107_v15 = vadd.f32 %v9834_v46, %v793_v33  ;;  %v1108_v9 = vadd.f32 %v9834_v46, %v794_v22  ;;  %v796_v8 = vmul.f32 %v9804_v29, %v6704_v31  ;;  %v3357_v52 = vmul.f32 %v9922_v34, %v9941_v6 }
 0x160   :  { %5360 = vst.msk [vmem:[%s12198_s6 + $0xac] sm:$0xf] %vm5316_vm2, %v6137_v41  ;;  %v1418_v20 = vpack.c.bf16 %v1262_v4, %v1261_v19  ;;  %v6135_v0 = vpack.c.bf16 %v3821_v61, %v3821_v61  ;;  %v1109_v3 = vadd.f32 %v9834_v46, %v795_v10  ;;  %v3355_v51 = vmul.f32 %v9922_v34, %v9951_v13  ;;  %v10318_v61 = vpop.f32.mrb[64].mxu0 }
 0x161   :  { %v1341_v33 = vpack.c.bf16 %v1108_v9, %v1107_v15  ;;  %v1110_v22 = vadd.f32 %v9834_v46, %v796_v8  ;;  %v3671_v6 = vadd.f32 %v9961_v60, %v3357_v52  ;;  %v3358_v31 = vmul.f32 %v9922_v34, %v9970_v53  ;;  %v10322_v8 = vpop.f32.mrb[65].mxu0  ;;  %v10324_v52 = vpop.f32.mrb[64].mxu1 }
 0x162   :  { %7623 = vmatmul.mubr.msk.bf16.gmra.mrb[144].mxu1 %vm1421_vm1, %v1418_v20  ;;  %5358 = vst.msk [vmem:[%s12198_s6 + $0xa4] sm:$0xf] %vm5316_vm2, %v6135_v0  ;;  %v3669_v13 = vadd.f32 %v9961_v60, %v3355_v51  ;;  %v3205_v19 = vmul.f32 %v9922_v34, %v9997_v40  ;;  %v3356_v41 = vmul.f32 %v9922_v34, %v9975_v35  ;;  %v7011_v9 = vunpack.c.l.bf16 %v7164_v30  ;;  %v10329_v0 = vpop.f32.mrb[66].mxu0  ;;  %v10331_v51 = vpop.f32.mrb[65].mxu1 }
 0x163   :  { %v3203_v4 = vmul.f32 %v9922_v34, %v10004_v39  ;;  %7470 = vmatprep.mubr.msk.bf16.mxu0 %vm1421_vm1, %v1341_v33  ;;  %v1342_v53 = vpack.c.bf16 %v1110_v22, %v1109_v3  ;;  %v3978_v10 = vmax.f32 %v3671_v6, 0.0  ;;  %v3672_v15 = vadd.f32 %v9961_v60, %v3358_v31  ;;  %12208 = vst [vmem:[#allocation3_spill] sm:$0xff] %v10324_v52  ;;  %v330_v31 = vld [vmem:[%s12193_s0 + $0x4c8] sm:$0x1] }
 0x164   :  { %v3976_v40 = vmax.f32 %v3669_v13, 0.0  ;;  %v3519_v20 = vadd.f32 %v9961_v60, %v3205_v19  ;;  %v3670_v35 = vadd.f32 %v9961_v60, %v3356_v41  ;;  %12209 = vst [vmem:[#allocation4_spill] sm:$0xff] %v10329_v0  ;;  %v7012_v22 = vunpack.c.h.bf16 %v7164_v30  ;;  %v10338_v13 = vpop.f32.mrb[67].mxu0  ;;  %v10340_v19 = vpop.f32.mrb[66].mxu1 }
 0x165   :  { %v3517_v39 = vadd.f32 %v9961_v60, %v3203_v4  ;;  %7471 = vmatmul.mubr.msk.bf16.gmra.mrb[148].mxu0 %vm1421_vm1, %v1342_v53  ;;  %v6292_v3 = vpack.c.bf16 %v3978_v10, %v3978_v10  ;;  %v3979_v33 = vmax.f32 %v3672_v15, 0.0  ;;  %v949_v6 = vmul.f32 %v9804_v29, %v7011_v9  ;;  %12210 = vst [vmem:[#allocation5_spill] sm:$0xff] %v10340_v19  ;;  %v7088_v53 = vld [vmem:[%s12193_s0 + $0x260] sm:$0xff]   ;;  %v10345_v10 = vpop.f32.mrb[67].mxu1 }
 0x166   :  { %v6290_v41 = vpack.c.bf16 %v3976_v40, %v3976_v40  ;;  %v3826_v4 = vmax.f32 %v3519_v20, 0.0  ;;  %v3977_v52 = vmax.f32 %v3670_v35, 0.0  ;;  %12211 = vst [vmem:[#allocation6_spill] sm:$0xff] %v10345_v10  ;;  %v950_v15 = vmul.f32 %v9804_v29, %v7012_v22  ;;  %v7089_v20 = vld [vmem:[%s12193_s0 + $0x268] sm:$0xff]  }
 0x167   :  { %v3824_v0 = vmax.f32 %v3517_v39, 0.0  ;;  %5515 = vst.msk [vmem:[%s12198_s6 + $0x318] sm:$0xf] %vm5316_vm2, %v6292_v3  ;;  %v6293_v30 = vpack.c.bf16 %v3979_v33, %v3979_v33  ;;  %v1263_v9 = vadd.f32 %v9834_v46, %v949_v6  ;;  %v3206_v40 = vmul.f32 %v9922_v34, %v10020_v16 }
 0x168   :  { %5513 = vst.msk [vmem:[%s12198_s6 + $0x310] sm:$0xf] %vm5316_vm2, %v6290_v41  ;;  %v6140_v35 = vpack.c.bf16 %v3826_v4, %v3826_v4  ;;  %v6291_v39 = vpack.c.bf16 %v3977_v52, %v3977_v52  ;;  %v637_v33 = vunpack.c.l.bf16 %v330_v31  ;;  %v1264_v16 = vadd.f32 %v9834_v46, %v950_v15  ;;  %v10383_v41 = vpop.f32.mrb[68].mxu0 }
 0x169   :  { %v6138_v3 = vpack.c.bf16 %v3824_v0, %v3824_v0  ;;  %5516 = vst.msk [vmem:[%s12198_s6 + $0x31c] sm:$0xf] %vm5316_vm2, %v6293_v30  ;;  %v3520_v22 = vadd.f32 %v9961_v60, %v3206_v40  ;;  %v3204_v6 = vmul.f32 %v9922_v34, %v10033_v26  ;;  %v6707_v10 = vunpack.c.l.bf16 %v7088_v53 }
 0x16a   :  { %5363 = vst.msk [vmem:[%s12198_s6 + $0xb8] sm:$0xf] %vm5316_vm2, %v6140_v35  ;;  %5514 = vst.msk [vmem:[%s12198_s6 + $0x314] sm:$0xf] %vm5316_vm2, %v6291_v39  ;;  %v951_v52 = vmul.f32 %v9804_v29, %v637_v33  ;;  %v6708_v0 = vunpack.c.h.bf16 %v7088_v53  ;;  %v6711_v26 = vunpack.c.l.bf16 %v7089_v20  ;;  %v6712_v31 = vunpack.c.h.bf16 %v7089_v20  ;;  %v10387_v35 = vpop.f32.mrb[69].mxu0  ;;  %v10389_v39 = vpop.f32.mrb[68].mxu1 }
 0x16b   :  { %5361 = vst.msk [vmem:[%s12198_s6 + $0xb0] sm:$0xf] %vm5316_vm2, %v6138_v3  ;;  %v1419_v4 = vpack.c.bf16 %v1264_v16, %v1263_v9  ;;  %v3827_v30 = vmax.f32 %v3520_v22, 0.0  ;;  %v3518_v15 = vadd.f32 %v9961_v60, %v3204_v6  ;;  %v797_v40 = vmul.f32 %v9804_v29, %v6707_v10  ;;  %12212 = vst [vmem:[#allocation7_spill] sm:$0xff] %v10389_v39  ;;  %v10395_v33 = vpop.f32.mrb[70].mxu0  ;;  %v10397_v9 = vpop.f32.mrb[69].mxu1 }
 0x16c   :  { %v1265_v19 = vadd.f32 %v9834_v46, %v951_v52  ;;  %v798_v3 = vmul.f32 %v9804_v29, %v6708_v0  ;;  %v799_v53 = vmul.f32 %v9804_v29, %v6711_v26  ;;  %v800_v20 = vmul.f32 %v9804_v29, %v6712_v31  ;;  %12213 = vst [vmem:[#allocation8_spill] sm:$0xff] %v10397_v9  ;;  %v10403_v52 = vpop.f32.mrb[71].mxu0  ;;  %v10405_v0 = vpop.f32.mrb[70].mxu1 }
 0x16d   :  { %7626 = vmatprep.mubr.msk.bf16.mxu1 %vm1421_vm1, %v1419_v4  ;;  %v6141_v16 = vpack.c.bf16 %v3827_v30, %v3827_v30  ;;  %v3825_v10 = vmax.f32 %v3518_v15, 0.0  ;;  %v1111_v22 = vadd.f32 %v9834_v46, %v797_v40  ;;  %v3361_v6 = vmul.f32 %v9922_v34, %v10006_v21  ;;  %v10410_v39 = vpop.f32.mrb[71].mxu1 }
 0x16e   :  { %v1420_v26 = vpack.c.bf16 %v1265_v19, %v1265_v19  ;;  %v1112_v29 = vadd.f32 %v9834_v46, %v798_v3  ;;  %v1113_v31 = vadd.f32 %v9834_v46, %v799_v53  ;;  %v1114_v9 = vadd.f32 %v9834_v46, %v800_v20 }
 0x16f   :  { %5364 = vst.msk [vmem:[%s12198_s6 + $0xbc] sm:$0xf] %vm5316_vm2, %v6141_v16  ;;  %v6139_v4 = vpack.c.bf16 %v3825_v10, %v3825_v10  ;;  %v3675_v21 = vadd.f32 %v9961_v60, %v3361_v6  ;;  %v3359_v30 = vmul.f32 %v9922_v34, %v10022_v63  ;;  %v3362_v19 = vmul.f32 %v9922_v34, %v10035_v59  ;;  %v10441_v10 = vpop.f32.mrb[72].mxu0 }
 0x170   :  { %7627 = vmatmul.mubr.msk.bf16.gmra.mrb[148].mxu1 %vm1421_vm1, %v1420_v26  ;;  %v1343_v15 = vpack.c.bf16 %v1112_v29, %v1111_v22  ;;  %v1344_v46 = vpack.c.bf16 %v1114_v9, %v1113_v31  ;;  %v3209_v40 = vmul.f32 %v9922_v34, %v10062_v49  ;;  %v3360_v3 = vmul.f32 %v9922_v34, %v10039_v50  ;;  %v10445_v29 = vpop.f32.mrb[73].mxu0  ;;  %v10447_v31 = vpop.f32.mrb[72].mxu1 }
 0x171   :  { %5362 = vst.msk [vmem:[%s12198_s6 + $0xb4] sm:$0xf] %vm5316_vm2, %v6139_v4  ;;  %v3982_v53 = vmax.f32 %v3675_v21, 0.0  ;;  %v3673_v63 = vadd.f32 %v9961_v60, %v3359_v30  ;;  %v3676_v59 = vadd.f32 %v9961_v60, %v3362_v19  ;;  %v3207_v20 = vmul.f32 %v9922_v34, %v10068_v11  ;;  %v10453_v19 = vpop.f32.mrb[73].mxu1 }
 0x172   :  { %7474 = vmatprep.mubr.msk.bf16.mxu0 %vm1421_vm1, %v1343_v15  ;;  %v3523_v49 = vadd.f32 %v9961_v60, %v3209_v40  ;;  %v3674_v9 = vadd.f32 %v9961_v60, %v3360_v3  ;;  %v3210_v50 = vmul.f32 %v9922_v34, %v10084_v57  ;;  %v3208_v16 = vmul.f32 %v9922_v34, %v10090_v58  ;;  %v10451_v58 = vpop.f32.mrb[74].mxu0 }
 0x173   :  { %7475 = vmatmul.mubr.msk.bf16.gmra.mrb[152].mxu0 %vm1421_vm1, %v1344_v46  ;;  %v6296_v22 = vpack.c.bf16 %v3982_v53, %v3982_v53  ;;  %v3980_v6 = vmax.f32 %v3673_v63, 0.0  ;;  %v3983_v26 = vmax.f32 %v3676_v59, 0.0  ;;  %v3521_v11 = vadd.f32 %v9961_v60, %v3207_v20  ;;  %v10461_v53 = vpop.f32.mrb[75].mxu0  ;;  %v10463_v63 = vpop.f32.mrb[74].mxu1 }
 0x174   :  { %v3830_v4 = vmax.f32 %v3523_v49, 0.0  ;;  %v3981_v21 = vmax.f32 %v3674_v9, 0.0  ;;  %v3524_v57 = vadd.f32 %v9961_v60, %v3210_v50  ;;  %v3522_v30 = vadd.f32 %v9961_v60, %v3208_v16  ;;  %v10465_v50 = vpop.f32.mrb[75].mxu1 }
 0x175   :  { %5519 = vst.msk [vmem:[%s12198_s6 + $0x328] sm:$0xf] %vm5316_vm2, %v6296_v22  ;;  %v6294_v15 = vpack.c.bf16 %v3980_v6, %v3980_v6  ;;  %v6297_v46 = vpack.c.bf16 %v3983_v26, %v3983_v26  ;;  %v3828_v40 = vmax.f32 %v3521_v11, 0.0  ;;  %v3365_v3 = vmul.f32 %v9922_v34, %v10070_v44 }
 0x176   :  { %v6144_v59 = vpack.c.bf16 %v3830_v4, %v3830_v4  ;;  %v6295_v20 = vpack.c.bf16 %v3981_v21, %v3981_v21  ;;  %v3831_v49 = vmax.f32 %v3524_v57, 0.0  ;;  %v3829_v9 = vmax.f32 %v3522_v30, 0.0 }
 0x177   :  { %5517 = vst.msk [vmem:[%s12198_s6 + $0x320] sm:$0xf] %vm5316_vm2, %v6294_v15  ;;  %5520 = vst.msk [vmem:[%s12198_s6 + $0x32c] sm:$0xf] %vm5316_vm2, %v6297_v46  ;;  %v6142_v44 = vpack.c.bf16 %v3828_v40, %v3828_v40  ;;  %v3679_v16 = vadd.f32 %v9961_v60, %v3365_v3  ;;  %v3363_v22 = vmul.f32 %v9922_v34, %v10086_v18  ;;  %v10514_v46 = vpop.f32.mrb[76].mxu0 }
 0x178   :  { %v3366_v6 = vmul.f32 %v9922_v34, %v10092_v45  ;;  %5367 = vst.msk [vmem:[%s12198_s6 + $0xc8] sm:$0xf] %vm5316_vm2, %v6144_v59  ;;  %5518 = vst.msk [vmem:[%s12198_s6 + $0x324] sm:$0xf] %vm5316_vm2, %v6295_v20  ;;  %v6145_v26 = vpack.c.bf16 %v3831_v49, %v3831_v49  ;;  %v6143_v11 = vpack.c.bf16 %v3829_v9, %v3829_v9  ;;  %v10517_v49 = vpop.f32.mrb[77].mxu0  ;;  %v10519_v9 = vpop.f32.mrb[76].mxu1 }
 0x179   :  { %v3213_v4 = vmul.f32 %v9922_v34, %v10122_v7  ;;  %v3364_v18 = vmul.f32 %v9922_v34, %v10097_v42  ;;  %5365 = vst.msk [vmem:[%s12198_s6 + $0xc0] sm:$0xf] %vm5316_vm2, %v6142_v44  ;;  %v3986_v45 = vmax.f32 %v3679_v16, 0.0  ;;  %v3677_v21 = vadd.f32 %v9961_v60, %v3363_v22 }
 0x17a   :  { %v3680_v57 = vadd.f32 %v9961_v60, %v3366_v6  ;;  %v3211_v30 = vmul.f32 %v9922_v34, %v10132_v25  ;;  %5368 = vst.msk [vmem:[%s12198_s6 + $0xcc] sm:$0xf] %vm5316_vm2, %v6145_v26  ;;  %5366 = vst.msk [vmem:[%s12198_s6 + $0xc4] sm:$0xf] %vm5316_vm2, %v6143_v11  ;;  %v3214_v15 = vmul.f32 %v9922_v34, %v10149_v36  ;;  %v10523_v6 = vpop.f32.mrb[78].mxu0 }
 0x17b   :  { %v3527_v42 = vadd.f32 %v9961_v60, %v3213_v4  ;;  %v3678_v7 = vadd.f32 %v9961_v60, %v3364_v18  ;;  %v3212_v25 = vmul.f32 %v9922_v34, %v10155_v37  ;;  %v6300_v40 = vpack.c.bf16 %v3986_v45, %v3986_v45  ;;  %v10525_v37 = vpop.f32.mrb[77].mxu1  ;;  %v10533_v45 = vpop.f32.mrb[79].mxu0 }
 0x17c   :  { %v3984_v3 = vmax.f32 %v3677_v21, 0.0  ;;  %v3987_v59 = vmax.f32 %v3680_v57, 0.0  ;;  %v3525_v20 = vadd.f32 %v9961_v60, %v3211_v30  ;;  %v3528_v22 = vadd.f32 %v9961_v60, %v3214_v15  ;;  %v10535_v21 = vpop.f32.mrb[78].mxu1 }
 0x17d   :  { %v3834_v44 = vmax.f32 %v3527_v42, 0.0  ;;  %v3985_v16 = vmax.f32 %v3678_v7, 0.0  ;;  %v3526_v36 = vadd.f32 %v9961_v60, %v3212_v25  ;;  %5523 = vst.msk [vmem:[%s12198_s6 + $0x338] sm:$0xf] %vm5316_vm2, %v6300_v40  ;;  %v3369_v18 = vmul.f32 %v9922_v34, %v10134_v23  ;;  %v10537_v15 = vpop.f32.mrb[79].mxu1 }
 0x17e   :  { %v6298_v26 = vpack.c.bf16 %v3984_v3, %v3984_v3  ;;  %v6301_v11 = vpack.c.bf16 %v3987_v59, %v3987_v59  ;;  %v3832_v4 = vmax.f32 %v3525_v20, 0.0  ;;  %v3835_v42 = vmax.f32 %v3528_v22, 0.0 }
 0x17f   :  { %v6148_v57 = vpack.c.bf16 %v3834_v44, %v3834_v44  ;;  %v6299_v30 = vpack.c.bf16 %v3985_v16, %v3985_v16  ;;  %v3833_v7 = vmax.f32 %v3526_v36, 0.0  ;;  %v3683_v25 = vadd.f32 %v9961_v60, %v3369_v18 }
 0x180   :  { %5521 = vst.msk [vmem:[%s12198_s6 + $0x330] sm:$0xf] %vm5316_vm2, %v6298_v26  ;;  %5524 = vst.msk [vmem:[%s12198_s6 + $0x33c] sm:$0xf] %vm5316_vm2, %v6301_v11  ;;  %v6146_v23 = vpack.c.bf16 %v3832_v4, %v3832_v4  ;;  %v3367_v40 = vmul.f32 %v9922_v34, %v10151_v48  ;;  %v3370_v3 = vmul.f32 %v9922_v34, %v10157_v24  ;;  %v10586_v11 = vpop.f32.mrb[80].mxu0 }
 0x181   :  { %5371 = vst.msk [vmem:[%s12198_s6 + $0xd8] sm:$0xf] %vm5316_vm2, %v6148_v57  ;;  %5522 = vst.msk [vmem:[%s12198_s6 + $0x334] sm:$0xf] %vm5316_vm2, %v6299_v30  ;;  %v6149_v59 = vpack.c.bf16 %v3835_v42, %v3835_v42  ;;  %v6147_v20 = vpack.c.bf16 %v3833_v7, %v3833_v7  ;;  %v3217_v44 = vmul.f32 %v9922_v34, %v10186_v56  ;;  %v3990_v24 = vmax.f32 %v3683_v25, 0.0  ;;  %v10589_v42 = vpop.f32.mrb[81].mxu0 }
 0x182   :  { %v3368_v48 = vmul.f32 %v9922_v34, %v10162_v32  ;;  %5369 = vst.msk [vmem:[%s12198_s6 + $0xd0] sm:$0xf] %vm5316_vm2, %v6146_v23  ;;  %v3681_v16 = vadd.f32 %v9961_v60, %v3367_v40  ;;  %v3684_v22 = vadd.f32 %v9961_v60, %v3370_v3  ;;  %v3215_v36 = vmul.f32 %v9922_v34, %v10200_v12  ;;  %v10591_v7 = vpop.f32.mrb[80].mxu1  ;;  %v10595_v3 = vpop.f32.mrb[82].mxu0 }
 0x183   :  { %5372 = vst.msk [vmem:[%s12198_s6 + $0xdc] sm:$0xf] %vm5316_vm2, %v6149_v59  ;;  %5370 = vst.msk [vmem:[%s12198_s6 + $0xd4] sm:$0xf] %vm5316_vm2, %v6147_v20  ;;  %v3531_v32 = vadd.f32 %v9961_v60, %v3217_v44  ;;  %v3218_v26 = vmul.f32 %v9922_v34, %v10206_v38  ;;  %v3216_v12 = vmul.f32 %v9922_v34, %v10213_v28  ;;  %v10597_v28 = vpop.f32.mrb[81].mxu1 }
 0x184   :  { %v3682_v56 = vadd.f32 %v9961_v60, %v3368_v48  ;;  %v6304_v4 = vpack.c.bf16 %v3990_v24, %v3990_v24  ;;  %v3988_v18 = vmax.f32 %v3681_v16, 0.0  ;;  %v3991_v57 = vmax.f32 %v3684_v22, 0.0  ;;  %v10605_v24 = vpop.f32.mrb[83].mxu0  ;;  %v10607_v16 = vpop.f32.mrb[82].mxu1 }
 0x185   :  { %v3529_v30 = vadd.f32 %v9961_v60, %v3215_v36  ;;  %v3838_v23 = vmax.f32 %v3531_v32, 0.0  ;;  %v3532_v40 = vadd.f32 %v9961_v60, %v3218_v26  ;;  %v3530_v38 = vadd.f32 %v9961_v60, %v3216_v12  ;;  %v10609_v26 = vpop.f32.mrb[83].mxu1  ;;  %v10623_v12 = vld [vmem:[%s12196_s4] ss:$0 sm:$0xff] }
 0x186   :  { %v3989_v25 = vmax.f32 %v3682_v56, 0.0  ;;  %5527 = vst.msk [vmem:[%s12198_s6 + $0x348] sm:$0xf] %vm5316_vm2, %v6304_v4  ;;  %v6302_v59 = vpack.c.bf16 %v3988_v18, %v3988_v18  ;;  %v6305_v20 = vpack.c.bf16 %v3991_v57, %v3991_v57  ;;  %v3373_v48 = vmul.f32 %v9922_v34, %v10202_v62 }
 0x187   :  { %v3836_v44 = vmax.f32 %v3529_v30, 0.0  ;;  %v6152_v22 = vpack.c.bf16 %v3838_v23, %v3838_v23  ;;  %v3839_v32 = vmax.f32 %v3532_v40, 0.0  ;;  %v3837_v56 = vmax.f32 %v3530_v38, 0.0 }
 0x188   :  { %v6303_v36 = vpack.c.bf16 %v3989_v25, %v3989_v25  ;;  %5525 = vst.msk [vmem:[%s12198_s6 + $0x340] sm:$0xf] %vm5316_vm2, %v6302_v59  ;;  %5528 = vst.msk [vmem:[%s12198_s6 + $0x34c] sm:$0xf] %vm5316_vm2, %v6305_v20  ;;  %v3687_v62 = vadd.f32 %v9961_v60, %v3373_v48  ;;  %v3371_v4 = vmul.f32 %v10623_v12, %v10208_v1 }
 0x189   :  { %v6150_v34 = vpack.c.bf16 %v3836_v44, %v3836_v44  ;;  %v3374_v18 = vmul.f32 %v10623_v12, %v10215_v54  ;;  %5375 = vst.msk [vmem:[%s12198_s6 + $0xe8] sm:$0xf] %vm5316_vm2, %v6152_v22  ;;  %v6153_v57 = vpack.c.bf16 %v3839_v32, %v3839_v32  ;;  %v6151_v30 = vpack.c.bf16 %v3837_v56, %v3837_v56  ;;  %v10668_v44 = vpop.f32.mrb[84].mxu0  ;;  %v10673_v56 = vpop.f32.mrb[84].mxu1 }
 0x18a   :  { %5526 = vst.msk [vmem:[%s12198_s6 + $0x344] sm:$0xf] %vm5316_vm2, %v6303_v36  ;;  %v3221_v23 = vmul.f32 %v10623_v12, %v10250_v55  ;;  %v3372_v1 = vmul.f32 %v10623_v12, %v10222_v43  ;;  %v3994_v54 = vmax.f32 %v3687_v62, 0.0  ;;  %v3685_v25 = vadd.f32 %v9961_v60, %v3371_v4  ;;  %v10661_v55 = vld [vmem:[%s12197_s5] ss:$0 sm:$0xff]  ;;  %v10671_v32 = vpop.f32.mrb[85].mxu0 }
 0x18b   :  { %5373 = vst.msk [vmem:[%s12198_s6 + $0xe0] sm:$0xf] %vm5316_vm2, %v6150_v34  ;;  %v3688_v40 = vadd.f32 %v9961_v60, %v3374_v18  ;;  %v3219_v38 = vmul.f32 %v10623_v12, %v10265_v27  ;;  %5376 = vst.msk [vmem:[%s12198_s6 + $0xec] sm:$0xf] %vm5316_vm2, %v6153_v57  ;;  %v3222_v27 = vmul.f32 %v10623_v12, %v10271_v14  ;;  %v10677_v18 = vpop.f32.mrb[86].mxu0 }
 0x18c   :  { %5374 = vst.msk [vmem:[%s12198_s6 + $0xe4] sm:$0xf] %vm5316_vm2, %v6151_v30  ;;  %v3535_v43 = vadd.f32 %v9961_v60, %v3221_v23  ;;  %v3686_v59 = vadd.f32 %v10661_v55, %v3372_v1  ;;  %v3220_v20 = vmul.f32 %v10623_v12, %v10278_v47  ;;  %v6308_v48 = vpack.c.bf16 %v3994_v54, %v3994_v54  ;;  %v10679_v47 = vpop.f32.mrb[85].mxu1  ;;  %v12214_v1 = vld [vmem:[#allocation2_spill] sm:$0xff] }
 0x18d   :  { %v3992_v22 = vmax.f32 %v3685_v25, 0.0  ;;  %v3995_v36 = vmax.f32 %v3688_v40, 0.0  ;;  %v3533_v60 = vadd.f32 %v10661_v55, %v3219_v38  ;;  %v3536_v4 = vadd.f32 %v10661_v55, %v3222_v27  ;;  %v10687_v25 = vpop.f32.mrb[87].mxu0  ;;  %v10689_v40 = vpop.f32.mrb[86].mxu1 }
 0x18e   :  { %v3842_v34 = vmax.f32 %v3535_v43, 0.0  ;;  %v3993_v62 = vmax.f32 %v3686_v59, 0.0  ;;  %v3534_v14 = vadd.f32 %v10661_v55, %v3220_v20  ;;  %5531 = vst.msk [vmem:[%s12198_s6 + $0x358] sm:$0xf] %vm5316_vm2, %v6308_v48  ;;  %v3377_v54 = vmul.f32 %v10623_v12, %v12214_v1  ;;  %v10691_v20 = vpop.f32.mrb[87].mxu1 }
 0x18f   :  { %v6306_v57 = vpack.c.bf16 %v3992_v22, %v3992_v22  ;;  %v6309_v30 = vpack.c.bf16 %v3995_v36, %v3995_v36  ;;  %v3840_v23 = vmax.f32 %v3533_v60, 0.0  ;;  %v3843_v59 = vmax.f32 %v3536_v4, 0.0 }
 0x190   :  { %v6156_v38 = vpack.c.bf16 %v3842_v34, %v3842_v34  ;;  %v6307_v43 = vpack.c.bf16 %v3993_v62, %v3993_v62  ;;  %v3841_v27 = vmax.f32 %v3534_v14, 0.0  ;;  %v3691_v22 = vadd.f32 %v10661_v55, %v3377_v54  ;;  %v10740_v54 = vpop.f32.mrb[88].mxu0 }
 0x191   :  { %5529 = vst.msk [vmem:[%s12198_s6 + $0x350] sm:$0xf] %vm5316_vm2, %v6306_v57  ;;  %5532 = vst.msk [vmem:[%s12198_s6 + $0x35c] sm:$0xf] %vm5316_vm2, %v6309_v30  ;;  %v6154_v48 = vpack.c.bf16 %v3840_v23, %v3840_v23  ;;  %v3375_v36 = vmul.f32 %v10623_v12, %v10273_v5  ;;  %v3378_v60 = vmul.f32 %v10623_v12, %v10280_v2  ;;  %v12215_v23 = vld [vmem:[#allocation4_spill] sm:$0xff] }
 0x192   :  { %5379 = vst.msk [vmem:[%s12198_s6 + $0xf8] sm:$0xf] %vm5316_vm2, %v6156_v38  ;;  %5530 = vst.msk [vmem:[%s12198_s6 + $0x354] sm:$0xf] %vm5316_vm2, %v6307_v43  ;;  %v6157_v34 = vpack.c.bf16 %v3843_v59, %v3843_v59  ;;  %v6155_v62 = vpack.c.bf16 %v3841_v27, %v3841_v27  ;;  %v3225_v4 = vmul.f32 %v10623_v12, %v10318_v61  ;;  %v3998_v2 = vmax.f32 %v3691_v22, 0.0  ;;  %v10745_v22 = vpop.f32.mrb[88].mxu1 }
 0x193   :  { %v3376_v5 = vmul.f32 %v10623_v12, %v10285_v17  ;;  %5377 = vst.msk [vmem:[%s12198_s6 + $0xf0] sm:$0xf] %vm5316_vm2, %v6154_v48  ;;  %v3689_v14 = vadd.f32 %v10661_v55, %v3375_v36  ;;  %v3692_v57 = vadd.f32 %v10661_v55, %v3378_v60  ;;  %v3223_v30 = vmul.f32 %v10623_v12, %v10322_v8  ;;  %v10743_v48 = vpop.f32.mrb[89].mxu0 }
 0x194   :  { %5380 = vst.msk [vmem:[%s12198_s6 + $0xfc] sm:$0xf] %vm5316_vm2, %v6157_v34  ;;  %5378 = vst.msk [vmem:[%s12198_s6 + $0xf4] sm:$0xf] %vm5316_vm2, %v6155_v62  ;;  %v3539_v17 = vadd.f32 %v10661_v55, %v3225_v4  ;;  %v3226_v1 = vmul.f32 %v10623_v12, %v12215_v23  ;;  %v3224_v8 = vmul.f32 %v10623_v12, %v10338_v13  ;;  %v10749_v4 = vpop.f32.mrb[90].mxu0  ;;  %v10751_v13 = vpop.f32.mrb[89].mxu1 }
 0x195   :  { %v3690_v61 = vadd.f32 %v10661_v55, %v3376_v5  ;;  %v6312_v38 = vpack.c.bf16 %v3998_v2, %v3998_v2  ;;  %v3996_v43 = vmax.f32 %v3689_v14, 0.0  ;;  %v3999_v59 = vmax.f32 %v3692_v57, 0.0  ;;  %12216 = vst [vmem:[#allocation2_spill] sm:$0xff] %v10745_v22  ;;  %12217 = vst [vmem:[#allocation4_spill] sm:$0xff] %v10751_v13  ;;  %v12218_v57 = vld [vmem:[#allocation3_spill] sm:$0xff] }
 0x196   :  { %v3537_v27 = vadd.f32 %v10661_v55, %v3223_v30  ;;  %v3846_v36 = vmax.f32 %v3539_v17, 0.0  ;;  %v3540_v34 = vadd.f32 %v10661_v55, %v3226_v1  ;;  %v3538_v62 = vadd.f32 %v10661_v55, %v3224_v8  ;;  %v10759_v17 = vpop.f32.mrb[91].mxu0 }
 0x197   :  { %v3997_v60 = vmax.f32 %v3690_v61, 0.0  ;;  %5535 = vst.msk [vmem:[%s12198_s6 + $0x368] sm:$0xf] %vm5316_vm2, %v6312_v38  ;;  %v6310_v5 = vpack.c.bf16 %v3996_v43, %v3996_v43  ;;  %v6313_v2 = vpack.c.bf16 %v3999_v59, %v3999_v59  ;;  %v3381_v30 = vmul.f32 %v10623_v12, %v12218_v57  ;;  %v10761_v61 = vpop.f32.mrb[90].mxu1 }
 0x198   :  { %v3844_v14 = vmax.f32 %v3537_v27, 0.0  ;;  %v6160_v23 = vpack.c.bf16 %v3846_v36, %v3846_v36  ;;  %v3847_v8 = vmax.f32 %v3540_v34, 0.0  ;;  %v3845_v22 = vmax.f32 %v3538_v62, 0.0  ;;  %v10763_v13 = vpop.f32.mrb[91].mxu1  ;;  %v12219_v27 = vld [vmem:[#allocation5_spill] sm:$0xff] }
 0x199   :  { %v6311_v1 = vpack.c.bf16 %v3997_v60, %v3997_v60  ;;  %5533 = vst.msk [vmem:[%s12198_s6 + $0x360] sm:$0xf] %vm5316_vm2, %v6310_v5  ;;  %5536 = vst.msk [vmem:[%s12198_s6 + $0x36c] sm:$0xf] %vm5316_vm2, %v6313_v2  ;;  %v3695_v43 = vadd.f32 %v10661_v55, %v3381_v30  ;;  %v3379_v59 = vmul.f32 %v10623_v12, %v10331_v51  ;;  %v12220_v5 = vld [vmem:[#allocation6_spill] sm:$0xff] }
 0x19a   :  { %v6158_v38 = vpack.c.bf16 %v3844_v14, %v3844_v14  ;;  %v3382_v36 = vmul.f32 %v10623_v12, %v12219_v27  ;;  %5383 = vst.msk [vmem:[%s12198_s6 + $0x108] sm:$0xf] %vm5316_vm2, %v6160_v23  ;;  %v6161_v60 = vpack.c.bf16 %v3847_v8, %v3847_v8  ;;  %v6159_v34 = vpack.c.bf16 %v3845_v22, %v3845_v22 }
 0x19b   :  { %5534 = vst.msk [vmem:[%s12198_s6 + $0x364] sm:$0xf] %vm5316_vm2, %v6311_v1  ;;  %v3229_v62 = vmul.f32 %v10623_v12, %v10383_v41  ;;  %v3380_v51 = vmul.f32 %v10623_v12, %v12220_v5  ;;  %v4002_v2 = vmax.f32 %v3695_v43, 0.0  ;;  %v3693_v14 = vadd.f32 %v10661_v55, %v3379_v59  ;;  %v10812_v1 = vpop.f32.mrb[92].mxu0 }
 0x19c   :  { %5381 = vst.msk [vmem:[%s12198_s6 + $0x100] sm:$0xf] %vm5316_vm2, %v6158_v38  ;;  %v3696_v57 = vadd.f32 %v10661_v55, %v3382_v36  ;;  %v3227_v30 = vmul.f32 %v10623_v12, %v10387_v35  ;;  %5384 = vst.msk [vmem:[%s12198_s6 + $0x10c] sm:$0xf] %vm5316_vm2, %v6161_v60  ;;  %v3230_v23 = vmul.f32 %v10623_v12, %v10395_v33  ;;  %v10815_v27 = vpop.f32.mrb[93].mxu0  ;;  %v10817_v36 = vpop.f32.mrb[92].mxu1 }
 0x19d   :  { %5382 = vst.msk [vmem:[%s12198_s6 + $0x104] sm:$0xf] %vm5316_vm2, %v6159_v34  ;;  %v3543_v41 = vadd.f32 %v10661_v55, %v3229_v62  ;;  %v3694_v22 = vadd.f32 %v10661_v55, %v3380_v51  ;;  %v3228_v35 = vmul.f32 %v10623_v12, %v10403_v52  ;;  %v6316_v8 = vpack.c.bf16 %v4002_v2, %v4002_v2  ;;  %v10821_v5 = vpop.f32.mrb[94].mxu0  ;;  %v10823_v52 = vpop.f32.mrb[93].mxu1 }
 0x19e   :  { %v4000_v38 = vmax.f32 %v3693_v14, 0.0  ;;  %v4003_v43 = vmax.f32 %v3696_v57, 0.0  ;;  %v3541_v59 = vadd.f32 %v10661_v55, %v3227_v30  ;;  %12221 = vst [vmem:[#allocation3_spill] sm:$0xff] %v10817_v36  ;;  %v3544_v62 = vadd.f32 %v10661_v55, %v3230_v23  ;;  %12222 = vst [vmem:[#allocation5_spill] sm:$0xff] %v10821_v5  ;;  %v12224_v57 = vld [vmem:[#allocation7_spill] sm:$0xff] }
 0x19f   :  { %v3850_v60 = vmax.f32 %v3543_v41, 0.0  ;;  %v4001_v34 = vmax.f32 %v3694_v22, 0.0  ;;  %v3542_v33 = vadd.f32 %v10661_v55, %v3228_v35  ;;  %12223 = vst [vmem:[#allocation6_spill] sm:$0xff] %v10823_v52  ;;  %5539 = vst.msk [vmem:[%s12198_s6 + $0x378] sm:$0xf] %vm5316_vm2, %v6316_v8  ;;  %v3385_v30 = vmul.f32 %v10623_v12, %v12224_v57  ;;  %v10831_v41 = vpop.f32.mrb[95].mxu0 }
 0x1a0   :  { %v6314_v51 = vpack.c.bf16 %v4000_v38, %v4000_v38  ;;  %v6317_v2 = vpack.c.bf16 %v4003_v43, %v4003_v43  ;;  %v3848_v14 = vmax.f32 %v3541_v59, 0.0  ;;  %v10833_v22 = vpop.f32.mrb[94].mxu1  ;;  %v3851_v36 = vmax.f32 %v3544_v62, 0.0  ;;  %v12225_v43 = vld [vmem:[#allocation8_spill] sm:$0xff]  ;;  %v10884_v57 = vpop.f32.mrb[96].mxu0 }
 0x1a1   :  { %v6164_v23 = vpack.c.bf16 %v3850_v60, %v3850_v60  ;;  %v6315_v35 = vpack.c.bf16 %v4001_v34, %v4001_v34  ;;  %v3849_v5 = vmax.f32 %v3542_v33, 0.0  ;;  %v10835_v52 = vpop.f32.mrb[95].mxu1  ;;  %v3699_v38 = vadd.f32 %v10661_v55, %v3385_v30 }
 0x1a2   :  { %5537 = vst.msk [vmem:[%s12198_s6 + $0x370] sm:$0xf] %vm5316_vm2, %v6314_v51  ;;  %5540 = vst.msk [vmem:[%s12198_s6 + $0x37c] sm:$0xf] %vm5316_vm2, %v6317_v2  ;;  %v6162_v8 = vpack.c.bf16 %v3848_v14, %v3848_v14  ;;  %v3383_v59 = vmul.f32 %v10623_v12, %v12225_v43  ;;  %v3386_v60 = vmul.f32 %v10623_v12, %v10405_v0  ;;  %v10889_v43 = vpop.f32.mrb[96].mxu1 }
 0x1a3   :  { %5387 = vst.msk [vmem:[%s12198_s6 + $0x118] sm:$0xf] %vm5316_vm2, %v6164_v23  ;;  %5538 = vst.msk [vmem:[%s12198_s6 + $0x374] sm:$0xf] %vm5316_vm2, %v6315_v35  ;;  %v6165_v34 = vpack.c.bf16 %v3851_v36, %v3851_v36  ;;  %v6163_v62 = vpack.c.bf16 %v3849_v5, %v3849_v5  ;;  %v3233_v33 = vmul.f32 %v10623_v12, %v10441_v10  ;;  %v4006_v0 = vmax.f32 %v3699_v38, 0.0  ;;  %v10887_v38 = vpop.f32.mrb[97].mxu0 }
 0x1a4   :  { %v3384_v51 = vmul.f32 %v10623_v12, %v10410_v39  ;;  %5385 = vst.msk [vmem:[%s12198_s6 + $0x110] sm:$0xf] %vm5316_vm2, %v6162_v8  ;;  %v3697_v2 = vadd.f32 %v10661_v55, %v3383_v59  ;;  %v3700_v14 = vadd.f32 %v10661_v55, %v3386_v60  ;;  %v3231_v36 = vmul.f32 %v10623_v12, %v10445_v29 }
 0x1a5   :  { %5388 = vst.msk [vmem:[%s12198_s6 + $0x11c] sm:$0xf] %vm5316_vm2, %v6165_v34  ;;  %5386 = vst.msk [vmem:[%s12198_s6 + $0x114] sm:$0xf] %vm5316_vm2, %v6163_v62  ;;  %v3547_v39 = vadd.f32 %v10661_v55, %v3233_v33  ;;  %v3234_v5 = vmul.f32 %v10623_v12, %v10451_v58  ;;  %v3232_v29 = vmul.f32 %v10623_v12, %v10461_v53  ;;  %v10893_v62 = vpop.f32.mrb[98].mxu0  ;;  %v10895_v53 = vpop.f32.mrb[97].mxu1 }
 0x1a6   :  { %v3698_v10 = vadd.f32 %v10661_v55, %v3384_v51  ;;  %v6320_v30 = vpack.c.bf16 %v4006_v0, %v4006_v0  ;;  %v4004_v23 = vmax.f32 %v3697_v2, 0.0  ;;  %v4007_v35 = vmax.f32 %v3700_v14, 0.0  ;;  %12226 = vst [vmem:[#allocation7_spill] sm:$0xff] %v10895_v53  ;;  %v10903_v14 = vpop.f32.mrb[99].mxu0 }
 0x1a7   :  { %v3545_v8 = vadd.f32 %v10661_v55, %v3231_v36  ;;  %v3854_v59 = vmax.f32 %v3547_v39, 0.0  ;;  %v3548_v34 = vadd.f32 %v10661_v55, %v3234_v5  ;;  %v3546_v58 = vadd.f32 %v10661_v55, %v3232_v29  ;;  %v10905_v36 = vpop.f32.mrb[98].mxu1 }
 0x1a8   :  { %v4005_v60 = vmax.f32 %v3698_v10, 0.0  ;;  %5543 = vst.msk [vmem:[%s12198_s6 + $0x388] sm:$0xf] %vm5316_vm2, %v6320_v30  ;;  %v6318_v33 = vpack.c.bf16 %v4004_v23, %v4004_v23  ;;  %v6321_v51 = vpack.c.bf16 %v4007_v35, %v4007_v35  ;;  %v3389_v2 = vmul.f32 %v10623_v12, %v10447_v31  ;;  %v10907_v53 = vpop.f32.mrb[99].mxu1 }
 0x1a9   :  { %v3852_v0 = vmax.f32 %v3545_v8, 0.0  ;;  %v6168_v39 = vpack.c.bf16 %v3854_v59, %v3854_v59  ;;  %v3855_v5 = vmax.f32 %v3548_v34, 0.0  ;;  %v3853_v29 = vmax.f32 %v3546_v58, 0.0 }
 0x1aa   :  { %v6319_v10 = vpack.c.bf16 %v4005_v60, %v4005_v60  ;;  %5541 = vst.msk [vmem:[%s12198_s6 + $0x380] sm:$0xf] %vm5316_vm2, %v6318_v33  ;;  %5544 = vst.msk [vmem:[%s12198_s6 + $0x38c] sm:$0xf] %vm5316_vm2, %v6321_v51  ;;  %v3703_v30 = vadd.f32 %v10661_v55, %v3389_v2  ;;  %v3387_v23 = vmul.f32 %v10623_v12, %v10453_v19 }
 0x1ab   :  { %v6166_v31 = vpack.c.bf16 %v3852_v0, %v3852_v0  ;;  %v3390_v35 = vmul.f32 %v10623_v12, %v10463_v63  ;;  %5391 = vst.msk [vmem:[%s12198_s6 + $0x128] sm:$0xf] %vm5316_vm2, %v6168_v39  ;;  %v6169_v8 = vpack.c.bf16 %v3855_v5, %v3855_v5  ;;  %v6167_v59 = vpack.c.bf16 %v3853_v29, %v3853_v29  ;;  %v10956_v0 = vpop.f32.mrb[100].mxu0 }
 0x1ac   :  { %5542 = vst.msk [vmem:[%s12198_s6 + $0x384] sm:$0xf] %vm5316_vm2, %v6319_v10  ;;  %v3237_v60 = vmul.f32 %v10623_v12, %v10514_v46  ;;  %v3388_v19 = vmul.f32 %v10623_v12, %v10465_v50  ;;  %v4010_v63 = vmax.f32 %v3703_v30, 0.0  ;;  %v3701_v34 = vadd.f32 %v10661_v55, %v3387_v23  ;;  %v10959_v29 = vpop.f32.mrb[101].mxu0 }
 0x1ad   :  { %5389 = vst.msk [vmem:[%s12198_s6 + $0x120] sm:$0xf] %vm5316_vm2, %v6166_v31  ;;  %v3704_v58 = vadd.f32 %v10661_v55, %v3390_v35  ;;  %v3235_v33 = vmul.f32 %v10623_v12, %v10517_v49  ;;  %5392 = vst.msk [vmem:[%s12198_s6 + $0x12c] sm:$0xf] %vm5316_vm2, %v6169_v8  ;;  %v3238_v51 = vmul.f32 %v10623_v12, %v10523_v6  ;;  %v10961_v31 = vpop.f32.mrb[100].mxu1  ;;  %v10965_v8 = vpop.f32.mrb[102].mxu0 }
 0x1ae   :  { %5390 = vst.msk [vmem:[%s12198_s6 + $0x124] sm:$0xf] %vm5316_vm2, %v6167_v59  ;;  %v3551_v50 = vadd.f32 %v10661_v55, %v3237_v60  ;;  %v3702_v46 = vadd.f32 %v10661_v55, %v3388_v19  ;;  %v3236_v49 = vmul.f32 %v10623_v12, %v10533_v45  ;;  %v6324_v2 = vpack.c.bf16 %v4010_v63, %v4010_v63  ;;  %v10967_v45 = vpop.f32.mrb[101].mxu1 }
 0x1af   :  { %v4008_v39 = vmax.f32 %v3701_v34, 0.0  ;;  %v4011_v10 = vmax.f32 %v3704_v58, 0.0  ;;  %v3549_v5 = vadd.f32 %v10661_v55, %v3235_v33  ;;  %v3552_v35 = vadd.f32 %v10661_v55, %v3238_v51  ;;  %v10975_v34 = vpop.f32.mrb[103].mxu0  ;;  %v10977_v58 = vpop.f32.mrb[102].mxu1 }
 0x1b0   :  { %v3858_v30 = vmax.f32 %v3551_v50, 0.0  ;;  %v4009_v23 = vmax.f32 %v3702_v46, 0.0  ;;  %v3550_v6 = vadd.f32 %v10661_v55, %v3236_v49  ;;  %5547 = vst.msk [vmem:[%s12198_s6 + $0x398] sm:$0xf] %vm5316_vm2, %v6324_v2  ;;  %v3393_v63 = vmul.f32 %v10623_v12, %v10519_v9  ;;  %v10979_v49 = vpop.f32.mrb[103].mxu1 }
 0x1b1   :  { %v6322_v59 = vpack.c.bf16 %v4008_v39, %v4008_v39  ;;  %v6325_v60 = vpack.c.bf16 %v4011_v10, %v4011_v10  ;;  %v3856_v19 = vmax.f32 %v3549_v5, 0.0  ;;  %v3859_v46 = vmax.f32 %v3552_v35, 0.0 }
 0x1b2   :  { %v6172_v33 = vpack.c.bf16 %v3858_v30, %v3858_v30  ;;  %v6323_v50 = vpack.c.bf16 %v4009_v23, %v4009_v23  ;;  %v3857_v51 = vmax.f32 %v3550_v6, 0.0  ;;  %v3707_v2 = vadd.f32 %v10661_v55, %v3393_v63 }
 0x1b3   :  { %5545 = vst.msk [vmem:[%s12198_s6 + $0x390] sm:$0xf] %vm5316_vm2, %v6322_v59  ;;  %5548 = vst.msk [vmem:[%s12198_s6 + $0x39c] sm:$0xf] %vm5316_vm2, %v6325_v60  ;;  %v6170_v9 = vpack.c.bf16 %v3856_v19, %v3856_v19  ;;  %v3391_v39 = vmul.f32 %v10623_v12, %v10525_v37  ;;  %v3394_v10 = vmul.f32 %v10623_v12, %v10535_v21  ;;  %v11028_v19 = vpop.f32.mrb[104].mxu0 }
 0x1b4   :  { %5395 = vst.msk [vmem:[%s12198_s6 + $0x138] sm:$0xf] %vm5316_vm2, %v6172_v33  ;;  %5546 = vst.msk [vmem:[%s12198_s6 + $0x394] sm:$0xf] %vm5316_vm2, %v6323_v50  ;;  %v6173_v5 = vpack.c.bf16 %v3859_v46, %v3859_v46  ;;  %v6171_v30 = vpack.c.bf16 %v3857_v51, %v3857_v51  ;;  %v3241_v23 = vmul.f32 %v10623_v12, %v10586_v11  ;;  %v4014_v21 = vmax.f32 %v3707_v2, 0.0  ;;  %v11031_v51 = vpop.f32.mrb[105].mxu0 }
 0x1b5   :  { %v3392_v37 = vmul.f32 %v10623_v12, %v10537_v15  ;;  %5393 = vst.msk [vmem:[%s12198_s6 + $0x130] sm:$0xf] %vm5316_vm2, %v6170_v9  ;;  %v3705_v35 = vadd.f32 %v10661_v55, %v3391_v39  ;;  %v3708_v6 = vadd.f32 %v10661_v55, %v3394_v10  ;;  %v3239_v59 = vmul.f32 %v10623_v12, %v10589_v42  ;;  %v11033_v9 = vpop.f32.mrb[104].mxu1 }
 0x1b6   :  { %5396 = vst.msk [vmem:[%s12198_s6 + $0x13c] sm:$0xf] %vm5316_vm2, %v6173_v5  ;;  %5394 = vst.msk [vmem:[%s12198_s6 + $0x134] sm:$0xf] %vm5316_vm2, %v6171_v30  ;;  %v3555_v15 = vadd.f32 %v10661_v55, %v3241_v23  ;;  %v3242_v60 = vmul.f32 %v10623_v12, %v10595_v3  ;;  %v3240_v42 = vmul.f32 %v10623_v12, %v10605_v24  ;;  %v11037_v5 = vpop.f32.mrb[106].mxu0  ;;  %v11039_v24 = vpop.f32.mrb[105].mxu1 }
 0x1b7   :  { %v3706_v11 = vadd.f32 %v10661_v55, %v3392_v37  ;;  %v6328_v63 = vpack.c.bf16 %v4014_v21, %v4014_v21  ;;  %v4012_v33 = vmax.f32 %v3705_v35, 0.0  ;;  %v4015_v50 = vmax.f32 %v3708_v6, 0.0  ;;  %v11047_v35 = vpop.f32.mrb[107].mxu0  ;;  %v11049_v6 = vpop.f32.mrb[106].mxu1 }
 0x1b8   :  { %v3553_v46 = vadd.f32 %v10661_v55, %v3239_v59  ;;  %v3862_v2 = vmax.f32 %v3555_v15, 0.0  ;;  %v3556_v10 = vadd.f32 %v10661_v55, %v3242_v60  ;;  %v3554_v3 = vadd.f32 %v10661_v55, %v3240_v42  ;;  %v11051_v42 = vpop.f32.mrb[107].mxu1 }
 0x1b9   :  { %v4013_v39 = vmax.f32 %v3706_v11, 0.0  ;;  %5551 = vst.msk [vmem:[%s12198_s6 + $0x3a8] sm:$0xf] %vm5316_vm2, %v6328_v63  ;;  %v6326_v30 = vpack.c.bf16 %v4012_v33, %v4012_v33  ;;  %v6329_v23 = vpack.c.bf16 %v4015_v50, %v4015_v50  ;;  %v3397_v21 = vmul.f32 %v10623_v12, %v10591_v7 }
 0x1ba   :  { %v3860_v37 = vmax.f32 %v3553_v46, 0.0  ;;  %v6176_v59 = vpack.c.bf16 %v3862_v2, %v3862_v2  ;;  %v3863_v11 = vmax.f32 %v3556_v10, 0.0  ;;  %v3861_v60 = vmax.f32 %v3554_v3, 0.0 }
 0x1bb   :  { %v6327_v15 = vpack.c.bf16 %v4013_v39, %v4013_v39  ;;  %5549 = vst.msk [vmem:[%s12198_s6 + $0x3a0] sm:$0xf] %vm5316_vm2, %v6326_v30  ;;  %5552 = vst.msk [vmem:[%s12198_s6 + $0x3ac] sm:$0xf] %vm5316_vm2, %v6329_v23  ;;  %v3711_v63 = vadd.f32 %v10661_v55, %v3397_v21  ;;  %v3395_v33 = vmul.f32 %v10623_v12, %v10597_v28 }
 0x1bc   :  { %v6174_v7 = vpack.c.bf16 %v3860_v37, %v3860_v37  ;;  %v3398_v50 = vmul.f32 %v10623_v12, %v10607_v16  ;;  %5399 = vst.msk [vmem:[%s12198_s6 + $0x148] sm:$0xf] %vm5316_vm2, %v6176_v59  ;;  %v6177_v46 = vpack.c.bf16 %v3863_v11, %v3863_v11  ;;  %v6175_v2 = vpack.c.bf16 %v3861_v60, %v3861_v60  ;;  %v11100_v37 = vpop.f32.mrb[108].mxu0 }
 0x1bd   :  { %5550 = vst.msk [vmem:[%s12198_s6 + $0x3a4] sm:$0xf] %vm5316_vm2, %v6327_v15  ;;  %v3245_v39 = vmul.f32 %v10623_v12, %v10668_v44  ;;  %v3396_v28 = vmul.f32 %v10623_v12, %v10609_v26  ;;  %v4018_v16 = vmax.f32 %v3711_v63, 0.0  ;;  %v3709_v10 = vadd.f32 %v10661_v55, %v3395_v33  ;;  %v11103_v60 = vpop.f32.mrb[109].mxu0 }
 0x1be   :  { %5397 = vst.msk [vmem:[%s12198_s6 + $0x140] sm:$0xf] %vm5316_vm2, %v6174_v7  ;;  %v3712_v3 = vadd.f32 %v10661_v55, %v3398_v50  ;;  %v3243_v30 = vmul.f32 %v10623_v12, %v10671_v32  ;;  %5400 = vst.msk [vmem:[%s12198_s6 + $0x14c] sm:$0xf] %vm5316_vm2, %v6177_v46  ;;  %v3246_v23 = vmul.f32 %v10623_v12, %v10677_v18  ;;  %v11105_v7 = vpop.f32.mrb[108].mxu1  ;;  %v11109_v46 = vpop.f32.mrb[110].mxu0 }
 0x1bf   :  { %5398 = vst.msk [vmem:[%s12198_s6 + $0x144] sm:$0xf] %vm5316_vm2, %v6175_v2  ;;  %v3559_v26 = vadd.f32 %v10661_v55, %v3245_v39  ;;  %v3710_v44 = vadd.f32 %v10661_v55, %v3396_v28  ;;  %v3244_v32 = vmul.f32 %v10623_v12, %v10687_v25  ;;  %v6332_v21 = vpack.c.bf16 %v4018_v16, %v4018_v16  ;;  %v11111_v25 = vpop.f32.mrb[109].mxu1 }
 0x1c0   :  { %v4016_v59 = vmax.f32 %v3709_v10, 0.0  ;;  %v4019_v15 = vmax.f32 %v3712_v3, 0.0  ;;  %v3557_v11 = vadd.f32 %v10661_v55, %v3243_v30  ;;  %v3560_v50 = vadd.f32 %v10661_v55, %v3246_v23  ;;  %v11119_v10 = vpop.f32.mrb[111].mxu0  ;;  %v11121_v3 = vpop.f32.mrb[110].mxu1 }
 0x1c1   :  { %v3866_v63 = vmax.f32 %v3559_v26, 0.0  ;;  %v4017_v33 = vmax.f32 %v3710_v44, 0.0  ;;  %v3558_v18 = vadd.f32 %v10661_v55, %v3244_v32  ;;  %5555 = vst.msk [vmem:[%s12198_s6 + $0x3b8] sm:$0xf] %vm5316_vm2, %v6332_v21  ;;  %v3401_v16 = vmul.f32 %v10623_v12, %v10673_v56  ;;  %v11123_v32 = vpop.f32.mrb[111].mxu1 }
 0x1c2   :  { %v6330_v2 = vpack.c.bf16 %v4016_v59, %v4016_v59  ;;  %v6333_v39 = vpack.c.bf16 %v4019_v15, %v4019_v15  ;;  %v3864_v28 = vmax.f32 %v3557_v11, 0.0  ;;  %v3867_v44 = vmax.f32 %v3560_v50, 0.0 }
 0x1c3   :  { %v6180_v30 = vpack.c.bf16 %v3866_v63, %v3866_v63  ;;  %v6331_v26 = vpack.c.bf16 %v4017_v33, %v4017_v33  ;;  %v3865_v23 = vmax.f32 %v3558_v18, 0.0  ;;  %v3715_v21 = vadd.f32 %v10661_v55, %v3401_v16 }
 0x1c4   :  { %5553 = vst.msk [vmem:[%s12198_s6 + $0x3b0] sm:$0xf] %vm5316_vm2, %v6330_v2  ;;  %5556 = vst.msk [vmem:[%s12198_s6 + $0x3bc] sm:$0xf] %vm5316_vm2, %v6333_v39  ;;  %v6178_v56 = vpack.c.bf16 %v3864_v28, %v3864_v28  ;;  %v3399_v59 = vmul.f32 %v10623_v12, %v10679_v47  ;;  %v3402_v15 = vmul.f32 %v10623_v12, %v10689_v40  ;;  %v11172_v28 = vpop.f32.mrb[112].mxu0 }
 0x1c5   :  { %5403 = vst.msk [vmem:[%s12198_s6 + $0x158] sm:$0xf] %vm5316_vm2, %v6180_v30  ;;  %5554 = vst.msk [vmem:[%s12198_s6 + $0x3b4] sm:$0xf] %vm5316_vm2, %v6331_v26  ;;  %v6181_v11 = vpack.c.bf16 %v3867_v44, %v3867_v44  ;;  %v6179_v63 = vpack.c.bf16 %v3865_v23, %v3865_v23  ;;  %v3249_v33 = vmul.f32 %v10623_v12, %v10740_v54  ;;  %v4022_v40 = vmax.f32 %v3715_v21, 0.0  ;;  %v11175_v23 = vpop.f32.mrb[113].mxu0 }
 0x1c6   :  { %v3400_v47 = vmul.f32 %v10623_v12, %v10691_v20  ;;  %5401 = vst.msk [vmem:[%s12198_s6 + $0x150] sm:$0xf] %vm5316_vm2, %v6178_v56  ;;  %v3713_v50 = vadd.f32 %v10661_v55, %v3399_v59  ;;  %v3716_v18 = vadd.f32 %v10661_v55, %v3402_v15  ;;  %v3247_v2 = vmul.f32 %v10623_v12, %v10743_v48  ;;  %v11177_v56 = vpop.f32.mrb[112].mxu1 }
 0x1c7   :  { %5404 = vst.msk [vmem:[%s12198_s6 + $0x15c] sm:$0xf] %vm5316_vm2, %v6181_v11  ;;  %5402 = vst.msk [vmem:[%s12198_s6 + $0x154] sm:$0xf] %vm5316_vm2, %v6179_v63  ;;  %v3563_v20 = vadd.f32 %v10661_v55, %v3249_v33  ;;  %v3250_v39 = vmul.f32 %v10623_v12, %v10749_v4  ;;  %v3248_v48 = vmul.f32 %v10623_v12, %v10759_v17  ;;  %v11181_v11 = vpop.f32.mrb[114].mxu0  ;;  %v11183_v17 = vpop.f32.mrb[113].mxu1 }
 0x1c8   :  { %v3714_v54 = vadd.f32 %v10661_v55, %v3400_v47  ;;  %v6336_v16 = vpack.c.bf16 %v4022_v40, %v4022_v40  ;;  %v4020_v30 = vmax.f32 %v3713_v50, 0.0  ;;  %v4023_v26 = vmax.f32 %v3716_v18, 0.0  ;;  %12227 = vst [vmem:[#allocation8_spill] sm:$0xff] %v11183_v17  ;;  %v12228_v40 = vld [vmem:[#allocation2_spill] sm:$0xff]  ;;  %v11191_v18 = vpop.f32.mrb[115].mxu0 }
 0x1c9   :  { %v3561_v44 = vadd.f32 %v10661_v55, %v3247_v2  ;;  %v3870_v21 = vmax.f32 %v3563_v20, 0.0  ;;  %v3564_v15 = vadd.f32 %v10661_v55, %v3250_v39  ;;  %v3562_v4 = vadd.f32 %v10661_v55, %v3248_v48  ;;  %v11193_v2 = vpop.f32.mrb[114].mxu1 }
 0x1ca   :  { %v4021_v59 = vmax.f32 %v3714_v54, 0.0  ;;  %5559 = vst.msk [vmem:[%s12198_s6 + $0x3c8] sm:$0xf] %vm5316_vm2, %v6336_v16  ;;  %v6334_v63 = vpack.c.bf16 %v4020_v30, %v4020_v30  ;;  %v6337_v33 = vpack.c.bf16 %v4023_v26, %v4023_v26  ;;  %v3405_v50 = vmul.f32 %v10623_v12, %v12228_v40  ;;  %v11195_v17 = vpop.f32.mrb[115].mxu1  ;;  %v12229_v26 = vld [vmem:[#allocation4_spill] sm:$0xff] }
 0x1cb   :  { %v3868_v47 = vmax.f32 %v3561_v44, 0.0  ;;  %v6184_v20 = vpack.c.bf16 %v3870_v21, %v3870_v21  ;;  %v3871_v39 = vmax.f32 %v3564_v15, 0.0  ;;  %v3869_v48 = vmax.f32 %v3562_v4, 0.0 }
 0x1cc   :  { %v6335_v54 = vpack.c.bf16 %v4021_v59, %v4021_v59  ;;  %5557 = vst.msk [vmem:[%s12198_s6 + $0x3c0] sm:$0xf] %vm5316_vm2, %v6334_v63  ;;  %5560 = vst.msk [vmem:[%s12198_s6 + $0x3cc] sm:$0xf] %vm5316_vm2, %v6337_v33  ;;  %v3719_v30 = vadd.f32 %v10661_v55, %v3405_v50  ;;  %v3403_v44 = vmul.f32 %v10623_v12, %v12229_v26  ;;  %v12230_v50 = vld [vmem:[#allocation5_spill] sm:$0xff] }
 0x1cd   :  { %v6182_v16 = vpack.c.bf16 %v3868_v47, %v3868_v47  ;;  %v3406_v21 = vmul.f32 %v10623_v12, %v10761_v61  ;;  %5407 = vst.msk [vmem:[%s12198_s6 + $0x168] sm:$0xf] %vm5316_vm2, %v6184_v20  ;;  %v6185_v59 = vpack.c.bf16 %v3871_v39, %v3871_v39  ;;  %v6183_v15 = vpack.c.bf16 %v3869_v48, %v3869_v48 }
 0x1ce   :  { %5558 = vst.msk [vmem:[%s12198_s6 + $0x3c4] sm:$0xf] %vm5316_vm2, %v6335_v54  ;;  %v3253_v4 = vmul.f32 %v10623_v12, %v10812_v1  ;;  %v3404_v63 = vmul.f32 %v10623_v12, %v10763_v13  ;;  %v4026_v61 = vmax.f32 %v3719_v30, 0.0  ;;  %v3717_v33 = vadd.f32 %v10661_v55, %v3403_v44  ;;  %v11244_v54 = vpop.f32.mrb[116].mxu0  ;;  %v11249_v44 = vpop.f32.mrb[116].mxu1 }
 0x1cf   :  { %5405 = vst.msk [vmem:[%s12198_s6 + $0x160] sm:$0xf] %vm5316_vm2, %v6182_v16  ;;  %v3720_v47 = vadd.f32 %v10661_v55, %v3406_v21  ;;  %v3251_v40 = vmul.f32 %v10623_v12, %v10815_v27  ;;  %5408 = vst.msk [vmem:[%s12198_s6 + $0x16c] sm:$0xf] %vm5316_vm2, %v6185_v59  ;;  %v3254_v20 = vmul.f32 %v10623_v12, %v12230_v50  ;;  %v11247_v26 = vpop.f32.mrb[117].mxu0 }
 0x1d0   :  { %5406 = vst.msk [vmem:[%s12198_s6 + $0x164] sm:$0xf] %vm5316_vm2, %v6183_v15  ;;  %v3567_v13 = vadd.f32 %v10661_v55, %v3253_v4  ;;  %v3718_v1 = vadd.f32 %v10661_v55, %v3404_v63  ;;  %v3252_v27 = vmul.f32 %v10623_v12, %v10831_v41  ;;  %v6340_v39 = vpack.c.bf16 %v4026_v61, %v4026_v61  ;;  %v11253_v63 = vpop.f32.mrb[118].mxu0  ;;  %v11255_v41 = vpop.f32.mrb[117].mxu1 }
 0x1d1   :  { %v4024_v48 = vmax.f32 %v3717_v33, 0.0  ;;  %v4027_v16 = vmax.f32 %v3720_v47, 0.0  ;;  %v3565_v30 = vadd.f32 %v10661_v55, %v3251_v40  ;;  %12231 = vst [vmem:[#allocation2_spill] sm:$0xff] %v11249_v44  ;;  %v3568_v15 = vadd.f32 %v10661_v55, %v3254_v20  ;;  %12232 = vst [vmem:[#allocation4_spill] sm:$0xff] %v11253_v63  ;;  %v12234_v40 = vld [vmem:[#allocation3_spill] sm:$0xff]  ;;  %v11265_v50 = vpop.f32.mrb[118].mxu1 }
 0x1d2   :  { %v3874_v21 = vmax.f32 %v3567_v13, 0.0  ;;  %v4025_v59 = vmax.f32 %v3718_v1, 0.0  ;;  %v3566_v4 = vadd.f32 %v10661_v55, %v3252_v27  ;;  %12233 = vst [vmem:[#allocation5_spill] sm:$0xff] %v11255_v41  ;;  %5563 = vst.msk [vmem:[%s12198_s6 + $0x3d8] sm:$0xf] %vm5316_vm2, %v6340_v39  ;;  %v3409_v13 = vmul.f32 %v10623_v12, %v12234_v40  ;;  %v11263_v1 = vpop.f32.mrb[119].mxu0 }
 0x1d3   :  { %v6338_v61 = vpack.c.bf16 %v4024_v48, %v4024_v48  ;;  %v6341_v33 = vpack.c.bf16 %v4027_v16, %v4027_v16  ;;  %v3872_v47 = vmax.f32 %v3565_v30, 0.0  ;;  %v3875_v44 = vmax.f32 %v3568_v15, 0.0  ;;  %v11267_v41 = vpop.f32.mrb[119].mxu1  ;;  %v12235_v16 = vld [vmem:[#allocation6_spill] sm:$0xff]  ;;  %v11316_v40 = vpop.f32.mrb[120].mxu0 }
 0x1d4   :  { %v6188_v20 = vpack.c.bf16 %v3874_v21, %v3874_v21  ;;  %v6339_v27 = vpack.c.bf16 %v4025_v59, %v4025_v59  ;;  %v3873_v63 = vmax.f32 %v3566_v4, 0.0  ;;  %v3723_v48 = vadd.f32 %v10661_v55, %v3409_v13 }
 0x1d5   :  { %5561 = vst.msk [vmem:[%s12198_s6 + $0x3d0] sm:$0xf] %vm5316_vm2, %v6338_v61  ;;  %5564 = vst.msk [vmem:[%s12198_s6 + $0x3dc] sm:$0xf] %vm5316_vm2, %v6341_v33  ;;  %v6186_v39 = vpack.c.bf16 %v3872_v47, %v3872_v47  ;;  %v3407_v30 = vmul.f32 %v10623_v12, %v12235_v16  ;;  %v3410_v21 = vmul.f32 %v10623_v12, %v10833_v22  ;;  %v11321_v16 = vpop.f32.mrb[120].mxu1 }
 0x1d6   :  { %5411 = vst.msk [vmem:[%s12198_s6 + $0x178] sm:$0xf] %vm5316_vm2, %v6188_v20  ;;  %5562 = vst.msk [vmem:[%s12198_s6 + $0x3d4] sm:$0xf] %vm5316_vm2, %v6339_v27  ;;  %v6189_v59 = vpack.c.bf16 %v3875_v44, %v3875_v44  ;;  %v6187_v15 = vpack.c.bf16 %v3873_v63, %v3873_v63  ;;  %v3257_v4 = vmul.f32 %v10623_v12, %v10884_v57  ;;  %v4030_v22 = vmax.f32 %v3723_v48, 0.0  ;;  %v11319_v48 = vpop.f32.mrb[121].mxu0 }
 0x1d7   :  { %v3408_v61 = vmul.f32 %v10623_v12, %v10835_v52  ;;  %5409 = vst.msk [vmem:[%s12198_s6 + $0x170] sm:$0xf] %vm5316_vm2, %v6186_v39  ;;  %v3721_v33 = vadd.f32 %v10661_v55, %v3407_v30  ;;  %v3724_v47 = vadd.f32 %v10661_v55, %v3410_v21  ;;  %v3255_v44 = vmul.f32 %v10623_v12, %v10887_v38 }
 0x1d8   :  { %5412 = vst.msk [vmem:[%s12198_s6 + $0x17c] sm:$0xf] %vm5316_vm2, %v6189_v59  ;;  %5410 = vst.msk [vmem:[%s12198_s6 + $0x174] sm:$0xf] %vm5316_vm2, %v6187_v15  ;;  %v3571_v52 = vadd.f32 %v10661_v55, %v3257_v4  ;;  %v3258_v63 = vmul.f32 %v10623_v12, %v10893_v62  ;;  %v3256_v38 = vmul.f32 %v10623_v12, %v10903_v14  ;;  %v11325_v15 = vpop.f32.mrb[122].mxu0  ;;  %v11327_v14 = vpop.f32.mrb[121].mxu1 }
 0x1d9   :  { %v3722_v57 = vadd.f32 %v10661_v55, %v3408_v61  ;;  %v6344_v13 = vpack.c.bf16 %v4030_v22, %v4030_v22  ;;  %v4028_v20 = vmax.f32 %v3721_v33, 0.0  ;;  %v4031_v27 = vmax.f32 %v3724_v47, 0.0  ;;  %12236 = vst [vmem:[#allocation3_spill] sm:$0xff] %v11327_v14  ;;  %v11335_v47 = vpop.f32.mrb[123].mxu0 }
 0x1da   :  { %v3569_v39 = vadd.f32 %v10661_v55, %v3255_v44  ;;  %v3878_v30 = vmax.f32 %v3571_v52, 0.0  ;;  %v3572_v59 = vadd.f32 %v10661_v55, %v3258_v63  ;;  %v3570_v62 = vadd.f32 %v10661_v55, %v3256_v38  ;;  %v11337_v44 = vpop.f32.mrb[122].mxu1 }
 0x1db   :  { %v4029_v21 = vmax.f32 %v3722_v57, 0.0  ;;  %5567 = vst.msk [vmem:[%s12198_s6 + $0x3e8] sm:$0xf] %vm5316_vm2, %v6344_v13  ;;  %v6342_v4 = vpack.c.bf16 %v4028_v20, %v4028_v20  ;;  %v6345_v61 = vpack.c.bf16 %v4031_v27, %v4031_v27  ;;  %v3413_v33 = vmul.f32 %v10623_v12, %v10889_v43  ;;  %v11339_v14 = vpop.f32.mrb[123].mxu1  ;;  %v12237_v20 = vld [vmem:[#allocation7_spill] sm:$0xff] }
 0x1dc   :  { %v3876_v22 = vmax.f32 %v3569_v39, 0.0  ;;  %v6192_v52 = vpack.c.bf16 %v3878_v30, %v3878_v30  ;;  %v3879_v63 = vmax.f32 %v3572_v59, 0.0  ;;  %v3877_v38 = vmax.f32 %v3570_v62, 0.0 }
 0x1dd   :  { %v6343_v57 = vpack.c.bf16 %v4029_v21, %v4029_v21  ;;  %5565 = vst.msk [vmem:[%s12198_s6 + $0x3e0] sm:$0xf] %vm5316_vm2, %v6342_v4  ;;  %5568 = vst.msk [vmem:[%s12198_s6 + $0x3ec] sm:$0xf] %vm5316_vm2, %v6345_v61  ;;  %v3727_v13 = vadd.f32 %v10661_v55, %v3413_v33  ;;  %v3411_v27 = vmul.f32 %v10623_v12, %v12237_v20 }
 0x1de   :  { %v6190_v43 = vpack.c.bf16 %v3876_v22, %v3876_v22  ;;  %v3414_v39 = vmul.f32 %v10623_v12, %v10905_v36  ;;  %5415 = vst.msk [vmem:[%s12198_s6 + $0x188] sm:$0xf] %vm5316_vm2, %v6192_v52  ;;  %v6193_v30 = vpack.c.bf16 %v3879_v63, %v3879_v63  ;;  %v6191_v21 = vpack.c.bf16 %v3877_v38, %v3877_v38  ;;  %v11388_v52 = vpop.f32.mrb[124].mxu0 }
 0x1df   :  { %5566 = vst.msk [vmem:[%s12198_s6 + $0x3e4] sm:$0xf] %vm5316_vm2, %v6343_v57  ;;  %v3261_v59 = vmul.f32 %v10623_v12, %v10956_v0  ;;  %v3412_v62 = vmul.f32 %v10623_v12, %v10907_v53  ;;  %v4034_v36 = vmax.f32 %v3727_v13, 0.0  ;;  %v3725_v4 = vadd.f32 %v10661_v55, %v3411_v27  ;;  %v11391_v13 = vpop.f32.mrb[125].mxu0 }
 0x1e0   :  { %5413 = vst.msk [vmem:[%s12198_s6 + $0x180] sm:$0xf] %vm5316_vm2, %v6190_v43  ;;  %v3728_v61 = vadd.f32 %v10661_v55, %v3414_v39  ;;  %v3259_v22 = vmul.f32 %v10623_v12, %v10959_v29  ;;  %5416 = vst.msk [vmem:[%s12198_s6 + $0x18c] sm:$0xf] %vm5316_vm2, %v6193_v30  ;;  %v3262_v33 = vmul.f32 %v10623_v12, %v10965_v8 }
 0x1e1   :  { %5414 = vst.msk [vmem:[%s12198_s6 + $0x184] sm:$0xf] %vm5316_vm2, %v6191_v21  ;;  %v3575_v53 = vadd.f32 %v10661_v55, %v3261_v59  ;;  %v3726_v0 = vadd.f32 %v10661_v55, %v3412_v62  ;;  %v3260_v29 = vmul.f32 %v10623_v12, %v10975_v34  ;;  %v6348_v57 = vpack.c.bf16 %v4034_v36, %v4034_v36  ;;  %v11395_v21 = vpop.f32.mrb[126].mxu0  ;;  %v11404_v59 = vld [vmem:[%s12196_s4] ss:$0 sm:$0xff] }
 0x1e2   :  { %v4032_v63 = vmax.f32 %v3725_v4, 0.0  ;;  %v4035_v38 = vmax.f32 %v3728_v61, 0.0  ;;  %v3573_v43 = vadd.f32 %v10661_v55, %v3259_v22  ;;  %v3576_v39 = vadd.f32 %v10661_v55, %v3262_v33  ;;  %v11408_v36 = vpop.f32.mrb[127].mxu0 }
 0x1e3   :  { %v3882_v20 = vmax.f32 %v3575_v53, 0.0  ;;  %v4033_v27 = vmax.f32 %v3726_v0, 0.0  ;;  %v3574_v30 = vadd.f32 %v10661_v55, %v3260_v29  ;;  %5571 = vst.msk [vmem:[%s12198_s6 + $0x3f8] sm:$0xf] %vm5316_vm2, %v6348_v57  ;;  %v3417_v62 = vmul.f32 %v11404_v59, %v10961_v31 }
 0x1e4   :  { %v6346_v12 = vpack.c.bf16 %v4032_v63, %v4032_v63  ;;  %v6349_v8 = vpack.c.bf16 %v4035_v38, %v4035_v38  ;;  %v3880_v34 = vmax.f32 %v3573_v43, 0.0  ;;  %v3883_v22 = vmax.f32 %v3576_v39, 0.0  ;;  %v11442_v38 = vld [vmem:[%s12197_s5] ss:$0 sm:$0xff] }
 0x1e5   :  { %v6196_v4 = vpack.c.bf16 %v3882_v20, %v3882_v20  ;;  %v6347_v61 = vpack.c.bf16 %v4033_v27, %v4033_v27  ;;  %v3881_v53 = vmax.f32 %v3574_v30, 0.0  ;;  %v3731_v33 = vadd.f32 %v10661_v55, %v3417_v62 }
 0x1e6   :  { %5569 = vst.msk [vmem:[%s12198_s6 + $0x3f0] sm:$0xf] %vm5316_vm2, %v6346_v12  ;;  %5572 = vst.msk [vmem:[%s12198_s6 + $0x3fc] sm:$0xf] %vm5316_vm2, %v6349_v8  ;;  %v6194_v0 = vpack.c.bf16 %v3880_v34, %v3880_v34  ;;  %v3415_v31 = vmul.f32 %v11404_v59, %v10967_v45  ;;  %v3418_v29 = vmul.f32 %v11404_v59, %v10977_v58 }
 0x1e7   :  { %5419 = vst.msk [vmem:[%s12198_s6 + $0x198] sm:$0xf] %vm5316_vm2, %v6196_v4  ;;  %5570 = vst.msk [vmem:[%s12198_s6 + $0x3f4] sm:$0xf] %vm5316_vm2, %v6347_v61  ;;  %v6197_v57 = vpack.c.bf16 %v3883_v22, %v3883_v22  ;;  %v6195_v63 = vpack.c.bf16 %v3881_v53, %v3881_v53  ;;  %v3265_v55 = vmul.f32 %v11404_v59, %v11028_v19  ;;  %v4038_v58 = vmax.f32 %v3731_v33, 0.0 }
 0x1e8   :  { %v3416_v45 = vmul.f32 %v11404_v59, %v10979_v49  ;;  %5417 = vst.msk [vmem:[%s12198_s6 + $0x190] sm:$0xf] %vm5316_vm2, %v6194_v0  ;;  %v3729_v43 = vadd.f32 %v11442_v38, %v3415_v31  ;;  %v3732_v20 = vadd.f32 %v11442_v38, %v3418_v29  ;;  %v3263_v19 = vmul.f32 %v11404_v59, %v11031_v51 }
 0x1e9   :  { %5420 = vst.msk [vmem:[%s12198_s6 + $0x19c] sm:$0xf] %vm5316_vm2, %v6197_v57  ;;  %5418 = vst.msk [vmem:[%s12198_s6 + $0x194] sm:$0xf] %vm5316_vm2, %v6195_v63  ;;  %v3579_v49 = vadd.f32 %v11442_v38, %v3265_v55  ;;  %v3266_v39 = vmul.f32 %v11404_v59, %v11037_v5  ;;  %v3264_v51 = vmul.f32 %v11404_v59, %v11047_v35 }
 0x1ea   :  { %v3730_v27 = vadd.f32 %v11442_v38, %v3416_v45  ;;  %v6352_v30 = vpack.c.bf16 %v4038_v58, %v4038_v58  ;;  %v4036_v12 = vmax.f32 %v3729_v43, 0.0  ;;  %v4039_v8 = vmax.f32 %v3732_v20, 0.0 }
 0x1eb   :  { %v3577_v34 = vadd.f32 %v11442_v38, %v3263_v19  ;;  %v3886_v62 = vmax.f32 %v3579_v49, 0.0  ;;  %v3580_v61 = vadd.f32 %v11442_v38, %v3266_v39  ;;  %v3578_v22 = vadd.f32 %v11442_v38, %v3264_v51  ;;  %v11504_v39 = vpop.f32.mrb[124].mxu1 }
 0x1ec   :  { %v4037_v4 = vmax.f32 %v3730_v27, 0.0  ;;  %5575 = vst.msk [vmem:[%s12198_s6 + $0x408] sm:$0xf] %vm5316_vm2, %v6352_v30  ;;  %v6350_v5 = vpack.c.bf16 %v4036_v12, %v4036_v12  ;;  %v6353_v53 = vpack.c.bf16 %v4039_v8, %v4039_v8  ;;  %v3421_v35 = vmul.f32 %v11404_v59, %v11033_v9  ;;  %v11520_v30 = vpop.f32.mrb[125].mxu1 }
 0x1ed   :  { %v3884_v0 = vmax.f32 %v3577_v34, 0.0  ;;  %v6200_v33 = vpack.c.bf16 %v3886_v62, %v3886_v62  ;;  %v3887_v29 = vmax.f32 %v3580_v61, 0.0  ;;  %v3885_v57 = vmax.f32 %v3578_v22, 0.0 }
 0x1ee   :  { %v6351_v31 = vpack.c.bf16 %v4037_v4, %v4037_v4  ;;  %5573 = vst.msk [vmem:[%s12198_s6 + $0x400] sm:$0xf] %vm5316_vm2, %v6350_v5  ;;  %5576 = vst.msk [vmem:[%s12198_s6 + $0x40c] sm:$0xf] %vm5316_vm2, %v6353_v53  ;;  %v3735_v55 = vadd.f32 %v11442_v38, %v3421_v35  ;;  %v3419_v9 = vmul.f32 %v11404_v59, %v11039_v24  ;;  %v11523_v4 = vpop.f32.mrb[126].mxu1 }
 0x1ef   :  { %v6198_v63 = vpack.c.bf16 %v3884_v0, %v3884_v0  ;;  %v3422_v45 = vmul.f32 %v11404_v59, %v11049_v6  ;;  %5423 = vst.msk [vmem:[%s12198_s6 + $0x1a8] sm:$0xf] %vm5316_vm2, %v6200_v33  ;;  %v6201_v58 = vpack.c.bf16 %v3887_v29, %v3887_v29  ;;  %v6199_v43 = vpack.c.bf16 %v3885_v57, %v3885_v57  ;;  %v11527_v0 = vpop.f32.mrb[127].mxu1 }
 0x1f0   :  { %5574 = vst.msk [vmem:[%s12198_s6 + $0x404] sm:$0xf] %vm5316_vm2, %v6351_v31  ;;  %v3269_v20 = vmul.f32 %v11404_v59, %v11100_v37  ;;  %v3420_v24 = vmul.f32 %v11404_v59, %v11051_v42  ;;  %v4042_v6 = vmax.f32 %v3735_v55, 0.0  ;;  %v3733_v19 = vadd.f32 %v11442_v38, %v3419_v9  ;;  %v11535_v55 = vpop.f32.mrb[128].mxu0 }
 0x1f1   :  { %5421 = vst.msk [vmem:[%s12198_s6 + $0x1a0] sm:$0xf] %vm5316_vm2, %v6198_v63  ;;  %v3736_v49 = vadd.f32 %v11442_v38, %v3422_v45  ;;  %v3267_v27 = vmul.f32 %v11404_v59, %v11103_v60  ;;  %5424 = vst.msk [vmem:[%s12198_s6 + $0x1ac] sm:$0xf] %vm5316_vm2, %v6201_v58  ;;  %v3270_v51 = vmul.f32 %v11404_v59, %v11109_v46 }
 0x1f2   :  { %5422 = vst.msk [vmem:[%s12198_s6 + $0x1a4] sm:$0xf] %vm5316_vm2, %v6199_v43  ;;  %v3583_v42 = vadd.f32 %v11442_v38, %v3269_v20  ;;  %v3734_v37 = vadd.f32 %v11442_v38, %v3420_v24  ;;  %v3268_v60 = vmul.f32 %v11404_v59, %v11119_v10  ;;  %v6356_v12 = vpack.c.bf16 %v4042_v6, %v4042_v6  ;;  %v11550_v43 = vpop.f32.mrb[129].mxu0 }
 0x1f3   :  { %v4040_v8 = vmax.f32 %v3733_v19, 0.0  ;;  %v4043_v34 = vmax.f32 %v3736_v49, 0.0  ;;  %v3581_v62 = vadd.f32 %v11442_v38, %v3267_v27  ;;  %v3584_v5 = vadd.f32 %v11442_v38, %v3270_v51  ;;  %v11564_v6 = vpop.f32.mrb[130].mxu0 }
 0x1f4   :  { %v3890_v61 = vmax.f32 %v3583_v42, 0.0  ;;  %v4041_v22 = vmax.f32 %v3734_v37, 0.0  ;;  %v3582_v53 = vadd.f32 %v11442_v38, %v3268_v60  ;;  %5579 = vst.msk [vmem:[%s12198_s6 + $0x418] sm:$0xf] %vm5316_vm2, %v6356_v12  ;;  %v3425_v33 = vmul.f32 %v11404_v59, %v11105_v7  ;;  %v11574_v37 = vpop.f32.mrb[131].mxu0 }
 0x1f5   :  { %v6354_v46 = vpack.c.bf16 %v4040_v8, %v4040_v8  ;;  %v6357_v10 = vpack.c.bf16 %v4043_v34, %v4043_v34  ;;  %v3888_v35 = vmax.f32 %v3581_v62, 0.0  ;;  %v3891_v57 = vmax.f32 %v3584_v5, 0.0 }
 0x1f6   :  { %v6204_v31 = vpack.c.bf16 %v3890_v61, %v3890_v61  ;;  %v6355_v29 = vpack.c.bf16 %v4041_v22, %v4041_v22  ;;  %v3889_v63 = vmax.f32 %v3582_v53, 0.0  ;;  %v3739_v45 = vadd.f32 %v11442_v38, %v3425_v33 }
 0x1f7   :  { %5577 = vst.msk [vmem:[%s12198_s6 + $0x410] sm:$0xf] %vm5316_vm2, %v6354_v46  ;;  %5580 = vst.msk [vmem:[%s12198_s6 + $0x41c] sm:$0xf] %vm5316_vm2, %v6357_v10  ;;  %v6202_v9 = vpack.c.bf16 %v3888_v35, %v3888_v35  ;;  %v3423_v7 = vmul.f32 %v11404_v59, %v11111_v25  ;;  %v3426_v58 = vmul.f32 %v11404_v59, %v11121_v3 }
 0x1f8   :  { %5427 = vst.msk [vmem:[%s12198_s6 + $0x1b8] sm:$0xf] %vm5316_vm2, %v6204_v31  ;;  %5578 = vst.msk [vmem:[%s12198_s6 + $0x414] sm:$0xf] %vm5316_vm2, %v6355_v29  ;;  %v6205_v20 = vpack.c.bf16 %v3891_v57, %v3891_v57  ;;  %v6203_v24 = vpack.c.bf16 %v3889_v63, %v3889_v63  ;;  %v3273_v25 = vmul.f32 %v11404_v59, %v11172_v28  ;;  %v4046_v19 = vmax.f32 %v3739_v45, 0.0  ;;  %v12238_v63 = vld [vmem:[#allocation8_spill] sm:$0xff] }
 0x1f9   :  { %v3424_v3 = vmul.f32 %v11404_v59, %v11123_v32  ;;  %5425 = vst.msk [vmem:[%s12198_s6 + $0x1b0] sm:$0xf] %vm5316_vm2, %v6202_v9  ;;  %v3737_v49 = vadd.f32 %v11442_v38, %v3423_v7  ;;  %v3740_v27 = vadd.f32 %v11442_v38, %v3426_v58  ;;  %v3271_v42 = vmul.f32 %v11404_v59, %v11175_v23 }
 0x1fa   :  { %5428 = vst.msk [vmem:[%s12198_s6 + $0x1bc] sm:$0xf] %vm5316_vm2, %v6205_v20  ;;  %5426 = vst.msk [vmem:[%s12198_s6 + $0x1b4] sm:$0xf] %vm5316_vm2, %v6203_v24  ;;  %v3587_v32 = vadd.f32 %v11442_v38, %v3273_v25  ;;  %v3274_v51 = vmul.f32 %v11404_v59, %v11181_v11  ;;  %v3272_v23 = vmul.f32 %v11404_v59, %v11191_v18  ;;  %v11624_v24 = vpop.f32.mrb[128].mxu1 }
 0x1fb   :  { %v3738_v28 = vadd.f32 %v11442_v38, %v3424_v3  ;;  %v6360_v60 = vpack.c.bf16 %v4046_v19, %v4046_v19  ;;  %v4044_v12 = vmax.f32 %v3737_v49, 0.0  ;;  %v4047_v8 = vmax.f32 %v3740_v27, 0.0  ;;  %v11634_v49 = vpop.f32.mrb[129].mxu1  ;;  %v12239_v27 = vld [vmem:[#allocation4_spill] sm:$0xff] }
 0x1fc   :  { %v3585_v34 = vadd.f32 %v11442_v38, %v3271_v42  ;;  %v3894_v62 = vmax.f32 %v3587_v32, 0.0  ;;  %v3588_v22 = vadd.f32 %v11442_v38, %v3274_v51  ;;  %v3586_v5 = vadd.f32 %v11442_v38, %v3272_v23  ;;  %v11650_v32 = vpop.f32.mrb[130].mxu1 }
 0x1fd   :  { %v4045_v61 = vmax.f32 %v3738_v28, 0.0  ;;  %5583 = vst.msk [vmem:[%s12198_s6 + $0x428] sm:$0xf] %vm5316_vm2, %v6360_v60  ;;  %v6358_v11 = vpack.c.bf16 %v4044_v12, %v4044_v12  ;;  %v6361_v53 = vpack.c.bf16 %v4047_v8, %v4047_v8  ;;  %v3429_v18 = vmul.f32 %v11404_v59, %v11177_v56  ;;  %v11653_v12 = vpop.f32.mrb[131].mxu1 }
 0x1fe   :  { %v3892_v46 = vmax.f32 %v3585_v34, 0.0  ;;  %v6208_v10 = vpack.c.bf16 %v3894_v62, %v3894_v62  ;;  %v3895_v33 = vmax.f32 %v3588_v22, 0.0  ;;  %v3893_v31 = vmax.f32 %v3586_v5, 0.0 }
 0x1ff   :  { %v6359_v35 = vpack.c.bf16 %v4045_v61, %v4045_v61  ;;  %5581 = vst.msk [vmem:[%s12198_s6 + $0x420] sm:$0xf] %vm5316_vm2, %v6358_v11  ;;  %5584 = vst.msk [vmem:[%s12198_s6 + $0x42c] sm:$0xf] %vm5316_vm2, %v6361_v53  ;;  %v3743_v57 = vadd.f32 %v11442_v38, %v3429_v18  ;;  %v3427_v56 = vmul.f32 %v11404_v59, %v12238_v63  ;;  %v12240_v11 = vld [vmem:[#allocation2_spill] sm:$0xff]  ;;  %v12241_v63 = vld [vmem:[#allocation5_spill] sm:$0xff] }
 0x200   :  { %v6206_v29 = vpack.c.bf16 %v3892_v46, %v3892_v46  ;;  %v3430_v9 = vmul.f32 %v11404_v59, %v11193_v2  ;;  %5431 = vst.msk [vmem:[%s12198_s6 + $0x1c8] sm:$0xf] %vm5316_vm2, %v6208_v10  ;;  %v6209_v45 = vpack.c.bf16 %v3895_v33, %v3895_v33  ;;  %v6207_v7 = vpack.c.bf16 %v3893_v31, %v3893_v31  ;;  %v11663_v46 = vpop.f32.mrb[132].mxu0 }
 0x201   :  { %5582 = vst.msk [vmem:[%s12198_s6 + $0x424] sm:$0xf] %vm5316_vm2, %v6359_v35  ;;  %v3277_v58 = vmul.f32 %v11404_v59, %v11244_v54  ;;  %v3428_v20 = vmul.f32 %v11404_v59, %v11195_v17  ;;  %v4050_v2 = vmax.f32 %v3743_v57, 0.0  ;;  %v3741_v25 = vadd.f32 %v11442_v38, %v3427_v56  ;;  %v11665_v31 = vpop.f32.mrb[133].mxu0 }
 0x202   :  { %5429 = vst.msk [vmem:[%s12198_s6 + $0x1c0] sm:$0xf] %vm5316_vm2, %v6206_v29  ;;  %v3744_v3 = vadd.f32 %v11442_v38, %v3430_v9  ;;  %v3275_v19 = vmul.f32 %v11404_v59, %v11247_v26  ;;  %5432 = vst.msk [vmem:[%s12198_s6 + $0x1cc] sm:$0xf] %vm5316_vm2, %v6209_v45  ;;  %v3278_v42 = vmul.f32 %v11404_v59, %v12239_v27  ;;  %v11680_v45 = vpop.f32.mrb[134].mxu0 }
 0x203   :  { %5430 = vst.msk [vmem:[%s12198_s6 + $0x1c4] sm:$0xf] %vm5316_vm2, %v6207_v7  ;;  %v3591_v17 = vadd.f32 %v11442_v38, %v3277_v58  ;;  %v3742_v54 = vadd.f32 %v11442_v38, %v3428_v20  ;;  %v3276_v26 = vmul.f32 %v11404_v59, %v11263_v1  ;;  %v6364_v28 = vpack.c.bf16 %v4050_v2, %v4050_v2  ;;  %v11694_v2 = vpop.f32.mrb[135].mxu0 }
 0x204   :  { %v4048_v51 = vmax.f32 %v3741_v25, 0.0  ;;  %v4051_v23 = vmax.f32 %v3744_v3, 0.0  ;;  %v3589_v60 = vadd.f32 %v11442_v38, %v3275_v19  ;;  %v3592_v62 = vadd.f32 %v11442_v38, %v3278_v42 }
 0x205   :  { %v3898_v8 = vmax.f32 %v3591_v17, 0.0  ;;  %v4049_v34 = vmax.f32 %v3742_v54, 0.0  ;;  %v3590_v61 = vadd.f32 %v11442_v38, %v3276_v26  ;;  %5587 = vst.msk [vmem:[%s12198_s6 + $0x438] sm:$0xf] %vm5316_vm2, %v6364_v28  ;;  %v3433_v53 = vmul.f32 %v11404_v59, %v12240_v11 }
 0x206   :  { %v6362_v1 = vpack.c.bf16 %v4048_v51, %v4048_v51  ;;  %v6365_v22 = vpack.c.bf16 %v4051_v23, %v4051_v23  ;;  %v3896_v5 = vmax.f32 %v3589_v60, 0.0  ;;  %v3899_v35 = vmax.f32 %v3592_v62, 0.0 }
 0x207   :  { %v6212_v18 = vpack.c.bf16 %v3898_v8, %v3898_v8  ;;  %v6363_v10 = vpack.c.bf16 %v4049_v34, %v4049_v34  ;;  %v3897_v33 = vmax.f32 %v3590_v61, 0.0  ;;  %v3747_v57 = vadd.f32 %v11442_v38, %v3433_v53 }
 0x208   :  { %5585 = vst.msk [vmem:[%s12198_s6 + $0x430] sm:$0xf] %vm5316_vm2, %v6362_v1  ;;  %5588 = vst.msk [vmem:[%s12198_s6 + $0x43c] sm:$0xf] %vm5316_vm2, %v6365_v22  ;;  %v6210_v29 = vpack.c.bf16 %v3896_v5, %v3896_v5  ;;  %v3431_v56 = vmul.f32 %v11404_v59, %v12241_v63  ;;  %v3434_v9 = vmul.f32 %v11404_v59, %v11265_v50 }
 0x209   :  { %5435 = vst.msk [vmem:[%s12198_s6 + $0x1d8] sm:$0xf] %vm5316_vm2, %v6212_v18  ;;  %5586 = vst.msk [vmem:[%s12198_s6 + $0x434] sm:$0xf] %vm5316_vm2, %v6363_v10  ;;  %v6213_v7 = vpack.c.bf16 %v3899_v35, %v3899_v35  ;;  %v6211_v58 = vpack.c.bf16 %v3897_v33, %v3897_v33  ;;  %v3281_v20 = vmul.f32 %v11404_v59, %v11316_v40  ;;  %v4054_v25 = vmax.f32 %v3747_v57, 0.0  ;;  %v12242_v18 = vld [vmem:[#allocation3_spill] sm:$0xff] }
 0x20a   :  { %v3432_v50 = vmul.f32 %v11404_v59, %v11267_v41  ;;  %5433 = vst.msk [vmem:[%s12198_s6 + $0x1d0] sm:$0xf] %vm5316_vm2, %v6210_v29  ;;  %v3745_v3 = vadd.f32 %v11442_v38, %v3431_v56  ;;  %v3748_v19 = vadd.f32 %v11442_v38, %v3434_v9  ;;  %v3279_v17 = vmul.f32 %v11404_v59, %v11319_v48  ;;  %v11740_v35 = vpop.f32.mrb[132].mxu1 }
 0x20b   :  { %5436 = vst.msk [vmem:[%s12198_s6 + $0x1dc] sm:$0xf] %vm5316_vm2, %v6213_v7  ;;  %5434 = vst.msk [vmem:[%s12198_s6 + $0x1d4] sm:$0xf] %vm5316_vm2, %v6211_v58  ;;  %v3595_v41 = vadd.f32 %v11442_v38, %v3281_v20  ;;  %v3282_v54 = vmul.f32 %v11404_v59, %v11325_v15  ;;  %v3280_v48 = vmul.f32 %v11404_v59, %v11335_v47  ;;  %v11754_v63 = vpop.f32.mrb[133].mxu1 }
 0x20c   :  { %v3746_v40 = vadd.f32 %v11442_v38, %v3432_v50  ;;  %v6368_v27 = vpack.c.bf16 %v4054_v25, %v4054_v25  ;;  %v4052_v42 = vmax.f32 %v3745_v3, 0.0  ;;  %v4055_v26 = vmax.f32 %v3748_v19, 0.0  ;;  %v11764_v20 = vpop.f32.mrb[134].mxu1 }
 0x20d   :  { %v3593_v28 = vadd.f32 %v11442_v38, %v3279_v17  ;;  %v3902_v51 = vmax.f32 %v3595_v41, 0.0  ;;  %v3596_v60 = vadd.f32 %v11442_v38, %v3282_v54  ;;  %v3594_v8 = vadd.f32 %v11442_v38, %v3280_v48  ;;  %v11780_v25 = vpop.f32.mrb[135].mxu1 }
 0x20e   :  { %v4053_v23 = vmax.f32 %v3746_v40, 0.0  ;;  %5591 = vst.msk [vmem:[%s12198_s6 + $0x448] sm:$0xf] %vm5316_vm2, %v6368_v27  ;;  %v6366_v15 = vpack.c.bf16 %v4052_v42, %v4052_v42  ;;  %v6369_v34 = vpack.c.bf16 %v4055_v26, %v4055_v26  ;;  %v3437_v47 = vmul.f32 %v11404_v59, %v11321_v16  ;;  %v11785_v42 = vpop.f32.mrb[136].mxu0 }
 0x20f   :  { %v3900_v62 = vmax.f32 %v3593_v28, 0.0  ;;  %v6216_v61 = vpack.c.bf16 %v3902_v51, %v3902_v51  ;;  %v3903_v22 = vmax.f32 %v3596_v60, 0.0  ;;  %v3901_v5 = vmax.f32 %v3594_v8, 0.0  ;;  %v11793_v51 = vpop.f32.mrb[137].mxu0 }
 0x210   :  { %v6367_v1 = vpack.c.bf16 %v4053_v23, %v4053_v23  ;;  %5589 = vst.msk [vmem:[%s12198_s6 + $0x440] sm:$0xf] %vm5316_vm2, %v6366_v15  ;;  %5592 = vst.msk [vmem:[%s12198_s6 + $0x44c] sm:$0xf] %vm5316_vm2, %v6369_v34  ;;  %v3751_v53 = vadd.f32 %v11442_v38, %v3437_v47  ;;  %v3435_v16 = vmul.f32 %v11404_v59, %v12242_v18  ;;  %v11795_v34 = vpop.f32.mrb[138].mxu0 }
 0x211   :  { %v6214_v11 = vpack.c.bf16 %v3900_v62, %v3900_v62  ;;  %v3438_v10 = vmul.f32 %v11404_v59, %v11337_v44  ;;  %5439 = vst.msk [vmem:[%s12198_s6 + $0x1e8] sm:$0xf] %vm5316_vm2, %v6216_v61  ;;  %v6217_v33 = vpack.c.bf16 %v3903_v22, %v3903_v22  ;;  %v6215_v29 = vpack.c.bf16 %v3901_v5, %v3901_v5 }
 0x212   :  { %5590 = vst.msk [vmem:[%s12198_s6 + $0x444] sm:$0xf] %vm5316_vm2, %v6367_v1  ;;  %v3285_v57 = vmul.f32 %v11404_v59, %v11388_v52  ;;  %v3436_v44 = vmul.f32 %v11404_v59, %v11339_v14  ;;  %v4058_v56 = vmax.f32 %v3751_v53, 0.0  ;;  %v3749_v9 = vadd.f32 %v11442_v38, %v3435_v16  ;;  %v11810_v1 = vpop.f32.mrb[139].mxu0 }
 0x213   :  { %5437 = vst.msk [vmem:[%s12198_s6 + $0x1e0] sm:$0xf] %vm5316_vm2, %v6214_v11  ;;  %v3752_v7 = vadd.f32 %v11442_v38, %v3438_v10  ;;  %v3283_v58 = vmul.f32 %v11404_v59, %v11391_v13  ;;  %5440 = vst.msk [vmem:[%s12198_s6 + $0x1ec] sm:$0xf] %vm5316_vm2, %v6217_v33  ;;  %v3286_v50 = vmul.f32 %v11404_v59, %v11395_v21 }
 0x214   :  { %5438 = vst.msk [vmem:[%s12198_s6 + $0x1e4] sm:$0xf] %vm5316_vm2, %v6215_v29  ;;  %v3599_v14 = vadd.f32 %v11442_v38, %v3285_v57  ;;  %v3750_v52 = vadd.f32 %v11442_v38, %v3436_v44  ;;  %v3284_v13 = vmul.f32 %v11404_v59, %v11408_v36  ;;  %v6372_v3 = vpack.c.bf16 %v4058_v56, %v4058_v56 }
 0x215   :  { %v4056_v19 = vmax.f32 %v3749_v9, 0.0  ;;  %v4059_v17 = vmax.f32 %v3752_v7, 0.0  ;;  %v3597_v41 = vadd.f32 %v11442_v38, %v3283_v58  ;;  %v3600_v48 = vadd.f32 %v11442_v38, %v3286_v50 }
 0x216   :  { %v3906_v40 = vmax.f32 %v3599_v14, 0.0  ;;  %v4057_v54 = vmax.f32 %v3750_v52, 0.0  ;;  %v3598_v27 = vadd.f32 %v11442_v38, %v3284_v13  ;;  %5595 = vst.msk [vmem:[%s12198_s6 + $0x458] sm:$0xf] %vm5316_vm2, %v6372_v3  ;;  %v3441_v28 = vmul.f32 %v11404_v59, %v11504_v39 }
 0x217   :  { %v6370_v21 = vpack.c.bf16 %v4056_v19, %v4056_v19  ;;  %v6373_v36 = vpack.c.bf16 %v4059_v17, %v4059_v17  ;;  %v3904_v26 = vmax.f32 %v3597_v41, 0.0  ;;  %v3907_v8 = vmax.f32 %v3600_v48, 0.0 }
 0x218   :  { %v6220_v23 = vpack.c.bf16 %v3906_v40, %v3906_v40  ;;  %v6371_v60 = vpack.c.bf16 %v4057_v54, %v4057_v54  ;;  %v3905_v15 = vmax.f32 %v3598_v27, 0.0  ;;  %v3755_v39 = vadd.f32 %v11442_v38, %v3441_v28  ;;  %v11868_v54 = vpop.f32.mrb[136].mxu1 }
 0x219   :  { %5593 = vst.msk [vmem:[%s12198_s6 + $0x450] sm:$0xf] %vm5316_vm2, %v6370_v21  ;;  %5596 = vst.msk [vmem:[%s12198_s6 + $0x45c] sm:$0xf] %vm5316_vm2, %v6373_v36  ;;  %v6218_v62 = vpack.c.bf16 %v3904_v26, %v3904_v26  ;;  %v3439_v47 = vmul.f32 %v11404_v59, %v11520_v30  ;;  %v3442_v61 = vmul.f32 %v11404_v59, %v11523_v4  ;;  %v11882_v21 = vpop.f32.mrb[137].mxu1 }
 0x21a   :  { %5443 = vst.msk [vmem:[%s12198_s6 + $0x1f8] sm:$0xf] %vm5316_vm2, %v6220_v23  ;;  %5594 = vst.msk [vmem:[%s12198_s6 + $0x454] sm:$0xf] %vm5316_vm2, %v6371_v60  ;;  %v6221_v22 = vpack.c.bf16 %v3907_v8, %v3907_v8  ;;  %v6219_v5 = vpack.c.bf16 %v3905_v15, %v3905_v15  ;;  %v3289_v30 = vmul.f32 %v11404_v59, %v11535_v55  ;;  %v4062_v11 = vmax.f32 %v3755_v39, 0.0  ;;  %v11892_v60 = vpop.f32.mrb[138].mxu1 }
 0x21b   :  { %v3440_v4 = vmul.f32 %v11404_v59, %v11527_v0  ;;  %5441 = vst.msk [vmem:[%s12198_s6 + $0x1f0] sm:$0xf] %vm5316_vm2, %v6218_v62  ;;  %v3753_v53 = vadd.f32 %v11442_v38, %v3439_v47  ;;  %v3756_v18 = vadd.f32 %v11442_v38, %v3442_v61  ;;  %v3287_v16 = vmul.f32 %v11404_v59, %v11550_v43  ;;  %v11908_v15 = vpop.f32.mrb[140].mxu0  ;;  %v11910_v62 = vpop.f32.mrb[139].mxu1 }
 0x21c   :  { %5444 = vst.msk [vmem:[%s12198_s6 + $0x1fc] sm:$0xf] %vm5316_vm2, %v6221_v22  ;;  %5442 = vst.msk [vmem:[%s12198_s6 + $0x1f4] sm:$0xf] %vm5316_vm2, %v6219_v5  ;;  %v3603_v0 = vadd.f32 %v11442_v38, %v3289_v30  ;;  %v3290_v10 = vmul.f32 %v11404_v59, %v11564_v6  ;;  %v3288_v43 = vmul.f32 %v11404_v59, %v11574_v37  ;;  %v11913_v5 = vpop.f32.mrb[141].mxu0 }
 0x21d   :  { %v3754_v55 = vadd.f32 %v11442_v38, %v3440_v4  ;;  %v6376_v33 = vpack.c.bf16 %v4062_v11, %v4062_v11  ;;  %v4060_v29 = vmax.f32 %v3753_v53, 0.0  ;;  %v4063_v57 = vmax.f32 %v3756_v18, 0.0  ;;  %v11917_v53 = vpop.f32.mrb[142].mxu0 }
 0x21e   :  { %v3601_v44 = vadd.f32 %v11442_v38, %v3287_v16  ;;  %v3910_v56 = vmax.f32 %v3603_v0, 0.0  ;;  %v3604_v7 = vadd.f32 %v11442_v38, %v3290_v10  ;;  %v3602_v58 = vadd.f32 %v11442_v38, %v3288_v43 }
 0x21f   :  { %v4061_v9 = vmax.f32 %v3754_v55, 0.0  ;;  %5599 = vst.msk [vmem:[%s12198_s6 + $0x468] sm:$0xf] %vm5316_vm2, %v6376_v33  ;;  %v6374_v6 = vpack.c.bf16 %v4060_v29, %v4060_v29  ;;  %v6377_v14 = vpack.c.bf16 %v4063_v57, %v4063_v57  ;;  %v3445_v37 = vmul.f32 %v11404_v59, %v11624_v24  ;;  %v11925_v55 = vpop.f32.mrb[143].mxu0 }
 0x220   :  { %v3908_v52 = vmax.f32 %v3601_v44, 0.0  ;;  %v6224_v50 = vpack.c.bf16 %v3910_v56, %v3910_v56  ;;  %v3911_v3 = vmax.f32 %v3604_v7, 0.0  ;;  %v3909_v19 = vmax.f32 %v3602_v58, 0.0 }
 0x221   :  { %v6375_v13 = vpack.c.bf16 %v4061_v9, %v4061_v9  ;;  %5597 = vst.msk [vmem:[%s12198_s6 + $0x460] sm:$0xf] %vm5316_vm2, %v6374_v6  ;;  %5600 = vst.msk [vmem:[%s12198_s6 + $0x46c] sm:$0xf] %vm5316_vm2, %v6377_v14  ;;  %v3759_v41 = vadd.f32 %v11442_v38, %v3445_v37  ;;  %v3443_v24 = vmul.f32 %v11404_v59, %v11634_v49 }
 0x222   :  { %v6222_v17 = vpack.c.bf16 %v3908_v52, %v3908_v52  ;;  %v3446_v40 = vmul.f32 %v11404_v59, %v11650_v32  ;;  %5447 = vst.msk [vmem:[%s12198_s6 + $0x208] sm:$0xf] %vm5316_vm2, %v6224_v50  ;;  %v6225_v48 = vpack.c.bf16 %v3911_v3, %v3911_v3  ;;  %v6223_v27 = vpack.c.bf16 %v3909_v19, %v3909_v19 }
 0x223   :  { %5598 = vst.msk [vmem:[%s12198_s6 + $0x464] sm:$0xf] %vm5316_vm2, %v6375_v13  ;;  %v3293_v49 = vmul.f32 %v11404_v59, %v11663_v46  ;;  %v3444_v32 = vmul.f32 %v11404_v59, %v11653_v12  ;;  %v4066_v36 = vmax.f32 %v3759_v41, 0.0  ;;  %v3757_v26 = vadd.f32 %v11442_v38, %v3443_v24 }
 0x224   :  { %5445 = vst.msk [vmem:[%s12198_s6 + $0x200] sm:$0xf] %vm5316_vm2, %v6222_v17  ;;  %v3760_v28 = vadd.f32 %v11442_v38, %v3446_v40  ;;  %v3291_v23 = vmul.f32 %v11404_v59, %v11665_v31  ;;  %5448 = vst.msk [vmem:[%s12198_s6 + $0x20c] sm:$0xf] %vm5316_vm2, %v6225_v48  ;;  %v3294_v8 = vmul.f32 %v11404_v59, %v11680_v45 }
 0x225   :  { %5446 = vst.msk [vmem:[%s12198_s6 + $0x204] sm:$0xf] %vm5316_vm2, %v6223_v27  ;;  %v3607_v12 = vadd.f32 %v11442_v38, %v3293_v49  ;;  %v3758_v46 = vadd.f32 %v11442_v38, %v3444_v32  ;;  %v3292_v31 = vmul.f32 %v11404_v59, %v11694_v2  ;;  %v6380_v39 = vpack.c.bf16 %v4066_v36, %v4066_v36 }
 0x226   :  { %v4064_v47 = vmax.f32 %v3757_v26, 0.0  ;;  %v4067_v61 = vmax.f32 %v3760_v28, 0.0  ;;  %v3605_v22 = vadd.f32 %v11442_v38, %v3291_v23  ;;  %v3608_v11 = vadd.f32 %v11442_v38, %v3294_v8  ;;  %v7620_v28 = vpop.f32.mrb[140].mxu1 }
 0x227   :  { %v3914_v30 = vmax.f32 %v3607_v12, 0.0  ;;  %v4065_v4 = vmax.f32 %v3758_v46, 0.0  ;;  %v3606_v45 = vadd.f32 %v11442_v38, %v3292_v31  ;;  %5603 = vst.msk [vmem:[%s12198_s6 + $0x478] sm:$0xf] %vm5316_vm2, %v6380_v39  ;;  %v3449_v0 = vmul.f32 %v11404_v59, %v11740_v35  ;;  %v3106_v8 = vpop.f32.mrb[141].mxu1 }
 0x228   :  { %v6378_v2 = vpack.c.bf16 %v4064_v47, %v4064_v47  ;;  %v6381_v18 = vpack.c.bf16 %v4067_v61, %v4067_v61  ;;  %v3912_v16 = vmax.f32 %v3605_v22, 0.0  ;;  %v3915_v33 = vmax.f32 %v3608_v11, 0.0 }
 0x229   :  { %v6228_v10 = vpack.c.bf16 %v3914_v30, %v3914_v30  ;;  %v6379_v43 = vpack.c.bf16 %v4065_v4, %v4065_v4  ;;  %v3913_v29 = vmax.f32 %v3606_v45, 0.0  ;;  %v3763_v44 = vadd.f32 %v11442_v38, %v3449_v0  ;;  %v7468_v11 = vpop.f32.mrb[144].mxu0 }
 0x22a   :  { %5601 = vst.msk [vmem:[%s12198_s6 + $0x470] sm:$0xf] %vm5316_vm2, %v6378_v2  ;;  %5604 = vst.msk [vmem:[%s12198_s6 + $0x47c] sm:$0xf] %vm5316_vm2, %v6381_v18  ;;  %v6226_v57 = vpack.c.bf16 %v3912_v16, %v3912_v16  ;;  %v3447_v35 = vmul.f32 %v11404_v59, %v11754_v63  ;;  %v3450_v56 = vmul.f32 %v11404_v59, %v11764_v20  ;;  %v2498_v18 = vpop.f32.mrb[145].mxu0 }
 0x22b   :  { %5451 = vst.msk [vmem:[%s12198_s6 + $0x218] sm:$0xf] %vm5316_vm2, %v6228_v10  ;;  %5602 = vst.msk [vmem:[%s12198_s6 + $0x474] sm:$0xf] %vm5316_vm2, %v6379_v43  ;;  %v6229_v9 = vpack.c.bf16 %v3915_v33, %v3915_v33  ;;  %v6227_v7 = vpack.c.bf16 %v3913_v29, %v3913_v29  ;;  %v3297_v58 = vmul.f32 %v11404_v59, %v11785_v42  ;;  %v4070_v20 = vmax.f32 %v3763_v44, 0.0  ;;  %v7469_v33 = vpop.f32.mrb[146].mxu0 }
 0x22c   :  { %v3448_v63 = vmul.f32 %v11404_v59, %v11780_v25  ;;  %5449 = vst.msk [vmem:[%s12198_s6 + $0x210] sm:$0xf] %vm5316_vm2, %v6226_v57  ;;  %v3761_v6 = vadd.f32 %v11442_v38, %v3447_v35  ;;  %v3764_v14 = vadd.f32 %v11442_v38, %v3450_v56  ;;  %v3295_v52 = vmul.f32 %v11404_v59, %v11793_v51  ;;  %v2501_v56 = vpop.f32.mrb[147].mxu0 }
 0x22d   :  { %5452 = vst.msk [vmem:[%s12198_s6 + $0x21c] sm:$0xf] %vm5316_vm2, %v6229_v9  ;;  %5450 = vst.msk [vmem:[%s12198_s6 + $0x214] sm:$0xf] %vm5316_vm2, %v6227_v7  ;;  %v3611_v25 = vadd.f32 %v11442_v38, %v3297_v58  ;;  %v3298_v37 = vmul.f32 %v11404_v59, %v11795_v34  ;;  %v3296_v51 = vmul.f32 %v11404_v59, %v11810_v1 }
 0x22e   :  { %v3762_v42 = vadd.f32 %v11442_v38, %v3448_v63  ;;  %v6384_v50 = vpack.c.bf16 %v4070_v20, %v4070_v20  ;;  %v4068_v13 = vmax.f32 %v3761_v6, 0.0  ;;  %v4071_v3 = vmax.f32 %v3764_v14, 0.0 }
 0x22f   :  { %v3609_v19 = vadd.f32 %v11442_v38, %v3295_v52  ;;  %v3918_v17 = vmax.f32 %v3611_v25, 0.0  ;;  %v3612_v24 = vadd.f32 %v11442_v38, %v3298_v37  ;;  %v3610_v40 = vadd.f32 %v11442_v38, %v3296_v51 }
 0x230   :  { %v4069_v41 = vmax.f32 %v3762_v42, 0.0  ;;  %5607 = vst.msk [vmem:[%s12198_s6 + $0x488] sm:$0xf] %vm5316_vm2, %v6384_v50  ;;  %v6382_v34 = vpack.c.bf16 %v4068_v13, %v4068_v13  ;;  %v6385_v48 = vpack.c.bf16 %v4071_v3, %v4071_v3  ;;  %v3453_v1 = vmul.f32 %v11404_v59, %v11868_v54 }
 0x231   :  { %v3916_v27 = vmax.f32 %v3609_v19, 0.0  ;;  %v6232_v49 = vpack.c.bf16 %v3918_v17, %v3918_v17  ;;  %v3919_v36 = vmax.f32 %v3612_v24, 0.0  ;;  %v3917_v26 = vmax.f32 %v3610_v40, 0.0 }
 0x232   :  { %v6383_v32 = vpack.c.bf16 %v4069_v41, %v4069_v41  ;;  %5605 = vst.msk [vmem:[%s12198_s6 + $0x480] sm:$0xf] %vm5316_vm2, %v6382_v34  ;;  %5608 = vst.msk [vmem:[%s12198_s6 + $0x48c] sm:$0xf] %vm5316_vm2, %v6385_v48  ;;  %v3767_v12 = vadd.f32 %v11442_v38, %v3453_v1  ;;  %v3451_v54 = vmul.f32 %v11404_v59, %v11882_v21 }
 0x233   :  { %v6230_v23 = vpack.c.bf16 %v3916_v27, %v3916_v27  ;;  %v3454_v46 = vmul.f32 %v11404_v59, %v11892_v60  ;;  %5455 = vst.msk [vmem:[%s12198_s6 + $0x228] sm:$0xf] %vm5316_vm2, %v6232_v49  ;;  %v6233_v31 = vpack.c.bf16 %v3919_v36, %v3919_v36  ;;  %v6231_v39 = vpack.c.bf16 %v3917_v26, %v3917_v26  ;;  %v7621_v60 = vpop.f32.mrb[142].mxu1 }
 0x234   :  { %5606 = vst.msk [vmem:[%s12198_s6 + $0x484] sm:$0xf] %vm5316_vm2, %v6383_v32  ;;  %v3301_v47 = vmul.f32 %v11404_v59, %v11908_v15  ;;  %v3452_v21 = vmul.f32 %v11404_v59, %v11910_v62  ;;  %v4074_v61 = vmax.f32 %v3767_v12, 0.0  ;;  %v3765_v22 = vadd.f32 %v11442_v38, %v3451_v54  ;;  %v3109_v45 = vpop.f32.mrb[143].mxu1 }
 0x235   :  { %5453 = vst.msk [vmem:[%s12198_s6 + $0x220] sm:$0xf] %vm5316_vm2, %v6230_v23  ;;  %v3768_v30 = vadd.f32 %v11442_v38, %v3454_v46  ;;  %v3299_v4 = vmul.f32 %v11404_v59, %v11913_v5  ;;  %5456 = vst.msk [vmem:[%s12198_s6 + $0x22c] sm:$0xf] %vm5316_vm2, %v6233_v31  ;;  %v3302_v2 = vmul.f32 %v11404_v59, %v11917_v53 }
 0x236   :  { %5454 = vst.msk [vmem:[%s12198_s6 + $0x224] sm:$0xf] %vm5316_vm2, %v6231_v39  ;;  %v3615_v15 = vadd.f32 %v11442_v38, %v3301_v47  ;;  %v3766_v62 = vadd.f32 %v11442_v38, %v3452_v21  ;;  %v3300_v5 = vmul.f32 %v11404_v59, %v11925_v55  ;;  %v6388_v16 = vpack.c.bf16 %v4074_v61, %v4074_v61 }
 0x237   :  { %v4072_v0 = vmax.f32 %v3765_v22, 0.0  ;;  %v4075_v10 = vmax.f32 %v3768_v30, 0.0  ;;  %v3613_v43 = vadd.f32 %v11442_v38, %v3299_v4  ;;  %v3616_v44 = vadd.f32 %v11442_v38, %v3302_v2 }
 0x238   :  { %v3922_v29 = vmax.f32 %v3615_v15, 0.0  ;;  %v4073_v57 = vmax.f32 %v3766_v62, 0.0  ;;  %v3614_v35 = vadd.f32 %v11442_v38, %v3300_v5  ;;  %5611 = vst.msk [vmem:[%s12198_s6 + $0x498] sm:$0xf] %vm5316_vm2, %v6388_v16  ;;  %v3457_v7 = vmul.f32 %v11404_v59, %v7620_v28  ;;  %v7472_v62 = vpop.f32.mrb[148].mxu0 }
 0x239   :  { %v6386_v53 = vpack.c.bf16 %v4072_v0, %v4072_v0  ;;  %v6389_v55 = vpack.c.bf16 %v4075_v10, %v4075_v10  ;;  %v3920_v9 = vmax.f32 %v3613_v43, 0.0  ;;  %v3923_v20 = vmax.f32 %v3616_v44, 0.0  ;;  %v2514_v10 = vpop.f32.mrb[149].mxu0 }
 0x23a   :  { %v6236_v58 = vpack.c.bf16 %v3922_v29, %v3922_v29  ;;  %v6387_v63 = vpack.c.bf16 %v4073_v57, %v4073_v57  ;;  %v3921_v6 = vmax.f32 %v3614_v35, 0.0  ;;  %v3771_v52 = vadd.f32 %v11442_v38, %v3457_v7  ;;  %v7473_v29 = vpop.f32.mrb[150].mxu0  ;;  %v7646_v7 = vld [vmem:[%s12196_s4] ss:$0 sm:$0xff] }
 0x23b   :  { %5609 = vst.msk [vmem:[%s12198_s6 + $0x490] sm:$0xf] %vm5316_vm2, %v6386_v53  ;;  %5612 = vst.msk [vmem:[%s12198_s6 + $0x49c] sm:$0xf] %vm5316_vm2, %v6389_v55  ;;  %v6234_v14 = vpack.c.bf16 %v3920_v9, %v3920_v9  ;;  %v3455_v25 = vmul.f32 %v11404_v59, %v3106_v8  ;;  %v3458_v42 = vmul.f32 %v11404_v59, %v7621_v60  ;;  %v7624_v8 = vpop.f32.mrb[144].mxu1  ;;  %v2517_v53 = vpop.f32.mrb[151].mxu0 }
 0x23c   :  { %5459 = vst.msk [vmem:[%s12198_s6 + $0x238] sm:$0xf] %vm5316_vm2, %v6236_v58  ;;  %5610 = vst.msk [vmem:[%s12198_s6 + $0x494] sm:$0xf] %vm5316_vm2, %v6387_v63  ;;  %v6237_v37 = vpack.c.bf16 %v3923_v20, %v3923_v20  ;;  %v6235_v51 = vpack.c.bf16 %v3921_v6, %v3921_v6  ;;  %v3305_v50 = vmul.f32 %v11404_v59, %v7468_v11  ;;  %v4078_v3 = vmax.f32 %v3771_v52, 0.0  ;;  %v3122_v60 = vpop.f32.mrb[145].mxu1 }
 0x23d   :  { %v3456_v13 = vmul.f32 %v11404_v59, %v3109_v45  ;;  %5457 = vst.msk [vmem:[%s12198_s6 + $0x230] sm:$0xf] %vm5316_vm2, %v6234_v14  ;;  %v3769_v19 = vadd.f32 %v11442_v38, %v3455_v25  ;;  %v3772_v17 = vadd.f32 %v11442_v38, %v3458_v42  ;;  %v3303_v41 = vmul.f32 %v11404_v59, %v2498_v18  ;;  %v7625_v4 = vpop.f32.mrb[146].mxu1 }
 0x23e   :  { %5460 = vst.msk [vmem:[%s12198_s6 + $0x23c] sm:$0xf] %vm5316_vm2, %v6237_v37  ;;  %5458 = vst.msk [vmem:[%s12198_s6 + $0x234] sm:$0xf] %vm5316_vm2, %v6235_v51  ;;  %v3619_v24 = vadd.f32 %v11442_v38, %v3305_v50  ;;  %v3306_v34 = vmul.f32 %v11404_v59, %v7469_v33  ;;  %v3304_v48 = vmul.f32 %v11404_v59, %v2501_v56  ;;  %v3125_v2 = vpop.f32.mrb[147].mxu1 }
 0x23f   :  { %v3770_v40 = vadd.f32 %v11442_v38, %v3456_v13  ;;  %v6392_v27 = vpack.c.bf16 %v4078_v3, %v4078_v3  ;;  %v4076_v1 = vmax.f32 %v3769_v19, 0.0  ;;  %v4079_v49 = vmax.f32 %v3772_v17, 0.0 }
 0x240   :  { %v3617_v32 = vadd.f32 %v11442_v38, %v3303_v41  ;;  %v3926_v36 = vmax.f32 %v3619_v24, 0.0  ;;  %v3620_v28 = vadd.f32 %v11442_v38, %v3306_v34  ;;  %v3618_v23 = vadd.f32 %v11442_v38, %v3304_v48 }
 0x241   :  { %v4077_v26 = vmax.f32 %v3770_v40, 0.0  ;;  %5615 = vst.msk [vmem:[%s12198_s6 + $0x4a8] sm:$0xf] %vm5316_vm2, %v6392_v27  ;;  %v6390_v12 = vpack.c.bf16 %v4076_v1, %v4076_v1  ;;  %v6393_v54 = vpack.c.bf16 %v4079_v49, %v4079_v49  ;;  %v3461_v22 = vmul.f32 %v11404_v59, %v7624_v8  ;;  %v7647_v27 = vld [vmem:[%s12197_s5] ss:$0 sm:$0xff] }
 0x242   :  { %v3924_v46 = vmax.f32 %v3617_v32, 0.0  ;;  %v6240_v31 = vpack.c.bf16 %v3926_v36, %v3926_v36  ;;  %v3927_v47 = vmax.f32 %v3620_v28, 0.0  ;;  %v3925_v21 = vmax.f32 %v3618_v23, 0.0 }
 0x243   :  { %v6391_v39 = vpack.c.bf16 %v4077_v26, %v4077_v26  ;;  %5613 = vst.msk [vmem:[%s12198_s6 + $0x4a0] sm:$0xf] %vm5316_vm2, %v6390_v12  ;;  %5616 = vst.msk [vmem:[%s12198_s6 + $0x4ac] sm:$0xf] %vm5316_vm2, %v6393_v54  ;;  %v3459_v30 = vmul.f32 %v11404_v59, %v3122_v60  ;;  %v3462_v15 = vmul.f32 %v11404_v59, %v7625_v4  ;;  %v7628_v41 = vpop.f32.mrb[148].mxu1 }
 0x244   :  { %v6238_v61 = vpack.c.bf16 %v3924_v46, %v3924_v46  ;;  %5463 = vst.msk [vmem:[%s12198_s6 + $0x248] sm:$0xf] %vm5316_vm2, %v6240_v31  ;;  %v6241_v11 = vpack.c.bf16 %v3927_v47, %v3927_v47  ;;  %v6239_v45 = vpack.c.bf16 %v3925_v21, %v3925_v21  ;;  %v3775_v5 = vadd.f32 %v11442_v38, %v3461_v22  ;;  %v3138_v40 = vpop.f32.mrb[149].mxu1 }
 0x245   :  { %5614 = vst.msk [vmem:[%s12198_s6 + $0x4a4] sm:$0xf] %vm5316_vm2, %v6391_v39  ;;  %v3773_v18 = vadd.f32 %v11442_v38, %v3459_v30  ;;  %v3309_v16 = vmul.f32 %v11404_v59, %v7472_v62  ;;  %v3460_v0 = vmul.f32 %v11404_v59, %v3125_v2  ;;  %v3776_v43 = vadd.f32 %v11442_v38, %v3462_v15  ;;  %v7629_v48 = vpop.f32.mrb[150].mxu1 }
 0x246   :  { %5461 = vst.msk [vmem:[%s12198_s6 + $0x240] sm:$0xf] %vm5316_vm2, %v6238_v61  ;;  %5464 = vst.msk [vmem:[%s12198_s6 + $0x24c] sm:$0xf] %vm5316_vm2, %v6241_v11  ;;  %v3307_v33 = vmul.f32 %v11404_v59, %v2514_v10  ;;  %v4082_v57 = vmax.f32 %v3775_v5, 0.0  ;;  %v3310_v58 = vmul.f32 %v7646_v7, %v7473_v29  ;;  %v3308_v63 = vmul.f32 %v7646_v7, %v2517_v53  ;;  %v7476_v49 = vpop.f32.mrb[152].mxu0 }
 0x247   :  { %5462 = vst.msk [vmem:[%s12198_s6 + $0x244] sm:$0xf] %vm5316_vm2, %v6239_v45  ;;  %v4080_v44 = vmax.f32 %v3773_v18, 0.0  ;;  %v3623_v35 = vadd.f32 %v11442_v38, %v3309_v16  ;;  %v3774_v56 = vadd.f32 %v11442_v38, %v3460_v0  ;;  %v4083_v55 = vmax.f32 %v3776_v43, 0.0  ;;  %v3141_v32 = vpop.f32.mrb[151].mxu1  ;;  %v2530_v23 = vpop.f32.mrb[153].mxu0 }
 0x248   :  { %v3621_v9 = vadd.f32 %v11442_v38, %v3307_v33  ;;  %v6396_v20 = vpack.c.bf16 %v4082_v57, %v4082_v57  ;;  %v3624_v42 = vadd.f32 %v11442_v38, %v3310_v58  ;;  %v3622_v37 = vadd.f32 %v11442_v38, %v3308_v63  ;;  %v7477_v46 = vpop.f32.mrb[154].mxu0 }
 0x249   :  { %v6394_v6 = vpack.c.bf16 %v4080_v44, %v4080_v44  ;;  %v3930_v59 = vmax.f32 %v3623_v35, 0.0  ;;  %v4081_v14 = vmax.f32 %v3774_v56, 0.0  ;;  %v6397_v52 = vpack.c.bf16 %v4083_v55, %v4083_v55  ;;  %v2533_v21 = vpop.f32.mrb[155].mxu0 }
 0x24a   :  { %v3928_v25 = vmax.f32 %v3621_v9, 0.0  ;;  %5619 = vst.msk [vmem:[%s12198_s6 + $0x4b8] sm:$0xf] %vm5316_vm2, %v6396_v20  ;;  %v3931_v3 = vmax.f32 %v3624_v42, 0.0  ;;  %v3929_v38 = vmax.f32 %v3622_v37, 0.0  ;;  %v3465_v24 = vmul.f32 %v7646_v7, %v7628_v41 }
 0x24b   :  { %5617 = vst.msk [vmem:[%s12198_s6 + $0x4b0] sm:$0xf] %vm5316_vm2, %v6394_v6  ;;  %v6244_v51 = vpack.c.bf16 %v3930_v59, %v3930_v59  ;;  %v6395_v50 = vpack.c.bf16 %v4081_v14, %v4081_v14  ;;  %5620 = vst.msk [vmem:[%s12198_s6 + $0x4bc] sm:$0xf] %vm5316_vm2, %v6397_v52  ;;  %v3463_v34 = vmul.f32 %v7646_v7, %v3138_v40 }
 0x24c   :  { %v6242_v13 = vpack.c.bf16 %v3928_v25, %v3928_v25  ;;  %v6245_v19 = vpack.c.bf16 %v3931_v3, %v3931_v3  ;;  %v6243_v17 = vpack.c.bf16 %v3929_v38, %v3929_v38  ;;  %v3779_v1 = vadd.f32 %v7647_v27, %v3465_v24 }
 0x24d   :  { %5467 = vst.msk [vmem:[%s12198_s6 + $0x258] sm:$0xf] %vm5316_vm2, %v6244_v51  ;;  %5618 = vst.msk [vmem:[%s12198_s6 + $0x4b4] sm:$0xf] %vm5316_vm2, %v6395_v50  ;;  %v3777_v36 = vadd.f32 %v7647_v27, %v3463_v34  ;;  %v3313_v26 = vmul.f32 %v7646_v7, %v7476_v49  ;;  %v3464_v28 = vmul.f32 %v7646_v7, %v3141_v32 }
 0x24e   :  { %5465 = vst.msk [vmem:[%s12198_s6 + $0x250] sm:$0xf] %vm5316_vm2, %v6242_v13  ;;  %5468 = vst.msk [vmem:[%s12198_s6 + $0x25c] sm:$0xf] %vm5316_vm2, %v6245_v19  ;;  %v4086_v12 = vmax.f32 %v3779_v1, 0.0  ;;  %v3311_v54 = vmul.f32 %v7646_v7, %v2530_v23  ;;  %v3314_v47 = vmul.f32 %v7646_v7, %v7477_v46  ;;  %v3312_v22 = vmul.f32 %v7646_v7, %v2533_v21 }
 0x24f   :  { %5466 = vst.msk [vmem:[%s12198_s6 + $0x254] sm:$0xf] %vm5316_vm2, %v6243_v17  ;;  %v4084_v8 = vmax.f32 %v3777_v36, 0.0  ;;  %v3627_v31 = vadd.f32 %v7647_v27, %v3313_v26  ;;  %v3778_v39 = vadd.f32 %v7647_v27, %v3464_v28 }
 0x250   :  { %v6400_v60 = vpack.c.bf16 %v4086_v12, %v4086_v12  ;;  %v3625_v61 = vadd.f32 %v7647_v27, %v3311_v54  ;;  %v3628_v45 = vadd.f32 %v7647_v27, %v3314_v47  ;;  %v3626_v62 = vadd.f32 %v7647_v27, %v3312_v22 }
 0x251   :  { %v6398_v30 = vpack.c.bf16 %v4084_v8, %v4084_v8  ;;  %v3934_v4 = vmax.f32 %v3627_v31, 0.0  ;;  %v4085_v11 = vmax.f32 %v3778_v39, 0.0 }
 0x252   :  { %5624 = vst.msk [vmem:[%s12198_s6 + $0x4c8] sm:$0x1] %vm5623_vm3, %v6400_v60  ;;  %v3932_v15 = vmax.f32 %v3625_v61, 0.0  ;;  %v3935_v18 = vmax.f32 %v3628_v45, 0.0  ;;  %v3933_v0 = vmax.f32 %v3626_v62, 0.0 }
 0x253   :  { %5621 = vst.msk [vmem:[%s12198_s6 + $0x4c0] sm:$0xf] %vm5316_vm2, %v6398_v30  ;;  %v6248_v2 = vpack.c.bf16 %v3934_v4, %v3934_v4  ;;  %v6399_v5 = vpack.c.bf16 %v4085_v11, %v4085_v11 }
 0x254   :  { %v6246_v16 = vpack.c.bf16 %v3932_v15, %v3932_v15  ;;  %v6249_v10 = vpack.c.bf16 %v3935_v18, %v3935_v18  ;;  %v6247_v43 = vpack.c.bf16 %v3933_v0, %v3933_v0 }
 0x255   :  { %5471 = vst.msk [vmem:[%s12198_s6 + $0x268] sm:$0xf] %vm5316_vm2, %v6248_v2  ;;  %5622 = vst.msk [vmem:[%s12198_s6 + $0x4c4] sm:$0xf] %vm5316_vm2, %v6399_v5 }
 0x256   :  { %5469 = vst.msk [vmem:[%s12198_s6 + $0x260] sm:$0xf] %vm5316_vm2, %v6246_v16  ;;  %5472 = vst.msk [vmem:[%s12198_s6 + $0x26c] sm:$0xf] %vm5316_vm2, %v6249_v10 }
 0x257   :  { %5470 = vst.msk [vmem:[%s12198_s6 + $0x264] sm:$0xf] %vm5316_vm2, %v6247_v43 }

// kernel: _stem.3
= control target key start
LH: loop header
LB: loop body
LE: loop exit
PB: predicated region body
PF: predicated region fallthrough
CT: control target
= control target key end

     0   :  { %vm1409_vm0 = vcmask 519168   ;;  %s4056_s0 = inlined_call_operand.vmem [shape: bf16[648,64], index: 0, kind: input, shape index: {}]   ;;  %s4057_s1 = inlined_call_operand.vmem [shape: bf16[648,64], index: 1, kind: input, shape index: {}]   ;;  %s4058_s2 = inlined_call_operand.vmem [shape: bf16[648,64], index: 2, kind: input, shape index: {}]   ;;  %s4059_s3 = inlined_call_operand.vmem [shape: bf16[648,64], index: 3, kind: input, shape index: {}]   ;;  %s4060_s4 = inlined_call_operand.vmem [shape: bf16[648,64], index: 4, kind: input, shape index: {}]   ;;  %s4061_s5 = inlined_call_operand.vmem [shape: bf16[648,64], index: 5, kind: input, shape index: {}]   ;;  %s4062_s6 = inlined_call_operand.vmem [shape: bf16[648,64], index: 6, kind: input, shape index: {}]   ;;  %s4063_s7 = inlined_call_operand.vmem [shape: bf16[648,64], index: 7, kind: input, shape index: {}]   ;;  %s4064_s8 = inlined_call_operand.vmem [shape: bf16[648,64], index: 8, kind: input, shape index: {}]   ;;  %s4065_s9 = inlined_call_operand.vmem [shape: bf16[648,64], index: 9, kind: output, shape index: {}]  }
   0x1   :  { %v32_v0 = vld [vmem:[%s4056_s0] sm:$0xf]  ;;  %v33_v6 = vld [vmem:[%s4056_s0 + $0x4] sm:$0xf]  ;;  %v34_v15 = vld [vmem:[%s4056_s0 + $0x8] sm:$0xf] }
   0x2   :  { %v113_v1 = vld [vmem:[%s4057_s1] sm:$0xf]  ;;  %v114_v7 = vld [vmem:[%s4057_s1 + $0x4] sm:$0xf]  ;;  %v115_v16 = vld [vmem:[%s4057_s1 + $0x8] sm:$0xf] }
   0x3   :  { %v275_v2 = vld [vmem:[%s4058_s2] sm:$0xf]  ;;  %v194_v3 = vmax.bf16 %v113_v1, %v32_v0  ;;  %v276_v8 = vld [vmem:[%s4058_s2 + $0x4] sm:$0xf]  ;;  %v195_v10 = vmax.bf16 %v114_v7, %v33_v6  ;;  %v277_v17 = vld [vmem:[%s4058_s2 + $0x8] sm:$0xf]  ;;  %v196_v20 = vmax.bf16 %v115_v16, %v34_v15 }
   0x4   :  { %v437_v4 = vld [vmem:[%s4059_s3] sm:$0xf]  ;;  %v438_v13 = vld [vmem:[%s4059_s3 + $0x4] sm:$0xf]  ;;  %v439_v24 = vld [vmem:[%s4059_s3 + $0x8] sm:$0xf] }
   0x5   :  { %v356_v5 = vmax.bf16 %v275_v2, %v194_v3  ;;  %v599_v9 = vld [vmem:[%s4060_s4] sm:$0xf]  ;;  %v357_v14 = vmax.bf16 %v276_v8, %v195_v10  ;;  %v600_v19 = vld [vmem:[%s4060_s4 + $0x4] sm:$0xf]  ;;  %v358_v26 = vmax.bf16 %v277_v17, %v196_v20  ;;  %v35_v27 = vld [vmem:[%s4056_s0 + $0xc] sm:$0xf] }
   0x6   :  { %v761_v12 = vld [vmem:[%s4061_s5] sm:$0xf]  ;;  %v762_v23 = vld [vmem:[%s4061_s5 + $0x4] sm:$0xf]  ;;  %v116_v28 = vld [vmem:[%s4057_s1 + $0xc] sm:$0xf] }
   0x7   :  { %v518_v11 = vmax.bf16 %v437_v4, %v356_v5  ;;  %v923_v21 = vld [vmem:[%s4062_s6] sm:$0xf]  ;;  %v519_v22 = vmax.bf16 %v438_v13, %v357_v14  ;;  %v278_v29 = vld [vmem:[%s4058_s2 + $0xc] sm:$0xf]  ;;  %v601_v33 = vld [vmem:[%s4060_s4 + $0x8] sm:$0xf]  ;;  %v197_v34 = vmax.bf16 %v116_v28, %v35_v27  ;;  %v520_v37 = vmax.bf16 %v439_v24, %v358_v26 }
   0x8   :  { %v1085_v30 = vld [vmem:[%s4063_s7] sm:$0xf]  ;;  %v924_v36 = vld [vmem:[%s4062_s6 + $0x4] sm:$0xf]  ;;  %v763_v38 = vld [vmem:[%s4061_s5 + $0x8] sm:$0xf] }
   0x9   :  { %v680_v18 = vmax.bf16 %v599_v9, %v518_v11  ;;  %v1247_v31 = vld [vmem:[%s4064_s8] sm:$0xf]  ;;  %v681_v32 = vmax.bf16 %v600_v19, %v519_v22  ;;  %v440_v39 = vld [vmem:[%s4059_s3 + $0xc] sm:$0xf]  ;;  %v359_v41 = vmax.bf16 %v278_v29, %v197_v34  ;;  %v36_v42 = vld [vmem:[%s4056_s0 + $0x10] sm:$0xf]  ;;  %v682_v48 = vmax.bf16 %v601_v33, %v520_v37 }
   0xa   :  { %v117_v43 = vld [vmem:[%s4057_s1 + $0x10] sm:$0xf]  ;;  %v1086_v46 = vld [vmem:[%s4063_s7 + $0x4] sm:$0xf]  ;;  %v602_v49 = vld [vmem:[%s4060_s4 + $0xc] sm:$0xf] }
   0xb   :  { %v842_v25 = vmax.bf16 %v761_v12, %v680_v18  ;;  %v843_v40 = vmax.bf16 %v762_v23, %v681_v32  ;;  %v279_v44 = vld [vmem:[%s4058_s2 + $0x10] sm:$0xf]  ;;  %v1248_v47 = vld [vmem:[%s4064_s8 + $0x4] sm:$0xf]  ;;  %v198_v50 = vmax.bf16 %v117_v43, %v36_v42  ;;  %v925_v52 = vld [vmem:[%s4062_s6 + $0x8] sm:$0xf]  ;;  %v521_v53 = vmax.bf16 %v440_v39, %v359_v41 }
   0xc   :  { %v764_v54 = vld [vmem:[%s4061_s5 + $0xc] sm:$0xf]  ;;  %v441_v55 = vld [vmem:[%s4059_s3 + $0x10] sm:$0xf]  ;;  %v844_v57 = vmax.bf16 %v763_v38, %v682_v48  ;;  %v37_v59 = vld [vmem:[%s4056_s0 + $0x14] sm:$0xf] }
   0xd   :  { %v1004_v35 = vmax.bf16 %v923_v21, %v842_v25  ;;  %v1005_v51 = vmax.bf16 %v924_v36, %v843_v40  ;;  %v360_v58 = vmax.bf16 %v279_v44, %v198_v50  ;;  %v118_v60 = vld [vmem:[%s4057_s1 + $0x14] sm:$0xf]  ;;  %v1087_v63 = vld [vmem:[%s4063_s7 + $0x8] sm:$0xf]  ;;  %v683_v1 = vmax.bf16 %v602_v49, %v521_v53  ;;  %v603_v2 = vld [vmem:[%s4060_s4 + $0x10] sm:$0xf] }
   0xe   :  { %v280_v61 = vld [vmem:[%s4058_s2 + $0x14] sm:$0xf]  ;;  %v1249_v0 = vld [vmem:[%s4064_s8 + $0x8] sm:$0xf]  ;;  %v199_v3 = vmax.bf16 %v118_v60, %v37_v59  ;;  %v1006_v4 = vmax.bf16 %v925_v52, %v844_v57  ;;  %v926_v5 = vld [vmem:[%s4062_s6 + $0xc] sm:$0xf] }
   0xf   :  { %v1166_v45 = vmax.bf16 %v1085_v30, %v1004_v35  ;;  %v1167_v62 = vmax.bf16 %v1086_v46, %v1005_v51  ;;  %v522_v6 = vmax.bf16 %v441_v55, %v360_v58  ;;  %v765_v7 = vld [vmem:[%s4061_s5 + $0x10] sm:$0xf]  ;;  %v442_v8 = vld [vmem:[%s4059_s3 + $0x14] sm:$0xf]  ;;  %v845_v10 = vmax.bf16 %v764_v54, %v683_v1  ;;  %v38_v12 = vld [vmem:[%s4056_s0 + $0x18] sm:$0xf] }
  0x10   :  { %v361_v11 = vmax.bf16 %v280_v61, %v199_v3  ;;  %v119_v13 = vld [vmem:[%s4057_s1 + $0x18] sm:$0xf]  ;;  %v1168_v15 = vmax.bf16 %v1087_v63, %v1006_v4  ;;  %v1088_v16 = vld [vmem:[%s4063_s7 + $0xc] sm:$0xf]  ;;  %v604_v19 = vld [vmem:[%s4060_s4 + $0x14] sm:$0xf] }
  0x11   :  { %v1328_v56 = vmax.bf16 %v1247_v31, %v1166_v45  ;;  %v1329_v9 = vmax.bf16 %v1248_v47, %v1167_v62  ;;  %v281_v14 = vld [vmem:[%s4058_s2 + $0x18] sm:$0xf]  ;;  %v1250_v17 = vld [vmem:[%s4064_s8 + $0xc] sm:$0xf]  ;;  %v684_v18 = vmax.bf16 %v603_v2, %v522_v6  ;;  %v200_v20 = vmax.bf16 %v119_v13, %v38_v12  ;;  %v927_v22 = vld [vmem:[%s4062_s6 + $0x10] sm:$0xf] }
  0x12   :  { %v1007_v21 = vmax.bf16 %v926_v5, %v845_v10  ;;  %v523_v23 = vmax.bf16 %v442_v8, %v361_v11  ;;  %v766_v24 = vld [vmem:[%s4061_s5 + $0x14] sm:$0xf]  ;;  %v443_v25 = vld [vmem:[%s4059_s3 + $0x18] sm:$0xf]  ;;  %v1330_v26 = vmax.bf16 %v1249_v0, %v1168_v15  ;;  %v39_v29 = vld [vmem:[%s4056_s0 + $0x1c] sm:$0xf] }
  0x13   :  { %1410 = vst.msk [vmem:[%s4065_s9] sm:$0xf] %vm1409_vm0, %v1328_v56  ;;  %1411 = vst.msk [vmem:[%s4065_s9 + $0x4] sm:$0xf] %vm1409_vm0, %v1329_v9  ;;  %v846_v27 = vmax.bf16 %v765_v7, %v684_v18  ;;  %v362_v28 = vmax.bf16 %v281_v14, %v200_v20  ;;  %v120_v30 = vld [vmem:[%s4057_s1 + $0x1c] sm:$0xf] }
  0x14   :  { %v282_v31 = vld [vmem:[%s4058_s2 + $0x1c] sm:$0xf]  ;;  %v1169_v32 = vmax.bf16 %v1088_v16, %v1007_v21  ;;  %v1089_v33 = vld [vmem:[%s4063_s7 + $0x10] sm:$0xf]  ;;  %v685_v35 = vmax.bf16 %v604_v19, %v523_v23  ;;  %v605_v36 = vld [vmem:[%s4060_s4 + $0x18] sm:$0xf]  ;;  %v201_v37 = vmax.bf16 %v120_v30, %v39_v29 }
  0x15   :  { %v1251_v34 = vld [vmem:[%s4064_s8 + $0x10] sm:$0xf]  ;;  %1412 = vst.msk [vmem:[%s4065_s9 + $0x8] sm:$0xf] %vm1409_vm0, %v1330_v26  ;;  %v1008_v38 = vmax.bf16 %v927_v22, %v846_v27  ;;  %v928_v39 = vld [vmem:[%s4062_s6 + $0x14] sm:$0xf]  ;;  %v524_v40 = vmax.bf16 %v443_v25, %v362_v28 }
  0x16   :  { %v767_v41 = vld [vmem:[%s4061_s5 + $0x18] sm:$0xf]  ;;  %v444_v42 = vld [vmem:[%s4059_s3 + $0x1c] sm:$0xf]  ;;  %v1331_v43 = vmax.bf16 %v1250_v17, %v1169_v32  ;;  %v847_v44 = vmax.bf16 %v766_v24, %v685_v35  ;;  %v363_v45 = vmax.bf16 %v282_v31, %v201_v37  ;;  %v40_v46 = vld [vmem:[%s4056_s0 + $0x20] sm:$0xf] }
  0x17   :  { %v121_v47 = vld [vmem:[%s4057_s1 + $0x20] sm:$0xf]  ;;  %v1170_v49 = vmax.bf16 %v1089_v33, %v1008_v38  ;;  %v1090_v50 = vld [vmem:[%s4063_s7 + $0x14] sm:$0xf]  ;;  %v686_v52 = vmax.bf16 %v605_v36, %v524_v40  ;;  %v606_v53 = vld [vmem:[%s4060_s4 + $0x1c] sm:$0xf] }
  0x18   :  { %v283_v48 = vld [vmem:[%s4058_s2 + $0x20] sm:$0xf]  ;;  %v1252_v51 = vld [vmem:[%s4064_s8 + $0x14] sm:$0xf]  ;;  %v202_v54 = vmax.bf16 %v121_v47, %v40_v46  ;;  %1413 = vst.msk [vmem:[%s4065_s9 + $0xc] sm:$0xf] %vm1409_vm0, %v1331_v43  ;;  %v1009_v55 = vmax.bf16 %v928_v39, %v847_v44  ;;  %v525_v57 = vmax.bf16 %v444_v42, %v363_v45 }
  0x19   :  { %v929_v56 = vld [vmem:[%s4062_s6 + $0x18] sm:$0xf]  ;;  %v768_v58 = vld [vmem:[%s4061_s5 + $0x1c] sm:$0xf]  ;;  %v445_v59 = vld [vmem:[%s4059_s3 + $0x20] sm:$0xf]  ;;  %v1332_v60 = vmax.bf16 %v1251_v34, %v1170_v49  ;;  %v848_v61 = vmax.bf16 %v767_v41, %v686_v52 }
  0x1a   :  { %v364_v62 = vmax.bf16 %v283_v48, %v202_v54  ;;  %v41_v63 = vld [vmem:[%s4056_s0 + $0x24] sm:$0xf]  ;;  %v1171_v2 = vmax.bf16 %v1090_v50, %v1009_v55  ;;  %v1091_v3 = vld [vmem:[%s4063_s7 + $0x18] sm:$0xf]  ;;  %v687_v5 = vmax.bf16 %v606_v53, %v525_v57  ;;  %v607_v6 = vld [vmem:[%s4060_s4 + $0x20] sm:$0xf] }
  0x1b   :  { %v122_v0 = vld [vmem:[%s4057_s1 + $0x24] sm:$0xf]  ;;  %v1253_v4 = vld [vmem:[%s4064_s8 + $0x18] sm:$0xf]  ;;  %1414 = vst.msk [vmem:[%s4065_s9 + $0x10] sm:$0xf] %vm1409_vm0, %v1332_v60  ;;  %v1010_v8 = vmax.bf16 %v929_v56, %v848_v61 }
  0x1c   :  { %v284_v1 = vld [vmem:[%s4058_s2 + $0x24] sm:$0xf]  ;;  %v203_v7 = vmax.bf16 %v122_v0, %v41_v63  ;;  %v930_v9 = vld [vmem:[%s4062_s6 + $0x1c] sm:$0xf]  ;;  %v526_v10 = vmax.bf16 %v445_v59, %v364_v62  ;;  %v769_v11 = vld [vmem:[%s4061_s5 + $0x20] sm:$0xf]  ;;  %v1333_v13 = vmax.bf16 %v1252_v51, %v1171_v2  ;;  %v849_v14 = vmax.bf16 %v768_v58, %v687_v5 }
  0x1d   :  { %v446_v12 = vld [vmem:[%s4059_s3 + $0x24] sm:$0xf]  ;;  %v42_v16 = vld [vmem:[%s4056_s0 + $0x28] sm:$0xf]  ;;  %v1172_v19 = vmax.bf16 %v1091_v3, %v1010_v8  ;;  %v1092_v20 = vld [vmem:[%s4063_s7 + $0x1c] sm:$0xf] }
  0x1e   :  { %v365_v15 = vmax.bf16 %v284_v1, %v203_v7  ;;  %v123_v17 = vld [vmem:[%s4057_s1 + $0x28] sm:$0xf]  ;;  %v1254_v21 = vld [vmem:[%s4064_s8 + $0x1c] sm:$0xf]  ;;  %v688_v22 = vmax.bf16 %v607_v6, %v526_v10  ;;  %v608_v23 = vld [vmem:[%s4060_s4 + $0x24] sm:$0xf]  ;;  %v1011_v25 = vmax.bf16 %v930_v9, %v849_v14 }
  0x1f   :  { %v285_v18 = vld [vmem:[%s4058_s2 + $0x28] sm:$0xf]  ;;  %v204_v24 = vmax.bf16 %v123_v17, %v42_v16  ;;  %1415 = vst.msk [vmem:[%s4065_s9 + $0x14] sm:$0xf] %vm1409_vm0, %v1333_v13  ;;  %v931_v26 = vld [vmem:[%s4062_s6 + $0x20] sm:$0xf]  ;;  %v1334_v30 = vmax.bf16 %v1253_v4, %v1172_v19 }
  0x20   :  { %v527_v27 = vmax.bf16 %v446_v12, %v365_v15  ;;  %v770_v28 = vld [vmem:[%s4061_s5 + $0x24] sm:$0xf]  ;;  %v447_v29 = vld [vmem:[%s4059_s3 + $0x28] sm:$0xf]  ;;  %v850_v31 = vmax.bf16 %v769_v11, %v688_v22  ;;  %v43_v33 = vld [vmem:[%s4056_s0 + $0x2c] sm:$0xf]  ;;  %v1173_v36 = vmax.bf16 %v1092_v20, %v1011_v25 }
  0x21   :  { %v366_v32 = vmax.bf16 %v285_v18, %v204_v24  ;;  %v124_v34 = vld [vmem:[%s4057_s1 + $0x2c] sm:$0xf]  ;;  %v1093_v37 = vld [vmem:[%s4063_s7 + $0x20] sm:$0xf]  ;;  %v609_v40 = vld [vmem:[%s4060_s4 + $0x28] sm:$0xf] }
  0x22   :  { %v286_v35 = vld [vmem:[%s4058_s2 + $0x2c] sm:$0xf]  ;;  %v1255_v38 = vld [vmem:[%s4064_s8 + $0x20] sm:$0xf]  ;;  %v689_v39 = vmax.bf16 %v608_v23, %v527_v27  ;;  %v205_v41 = vmax.bf16 %v124_v34, %v43_v33  ;;  %1416 = vst.msk [vmem:[%s4065_s9 + $0x18] sm:$0xf] %vm1409_vm0, %v1334_v30  ;;  %v1012_v42 = vmax.bf16 %v931_v26, %v850_v31  ;;  %v1335_v47 = vmax.bf16 %v1254_v21, %v1173_v36 }
  0x23   :  { %v932_v43 = vld [vmem:[%s4062_s6 + $0x24] sm:$0xf]  ;;  %v528_v44 = vmax.bf16 %v447_v29, %v366_v32  ;;  %v771_v45 = vld [vmem:[%s4061_s5 + $0x28] sm:$0xf]  ;;  %v448_v46 = vld [vmem:[%s4059_s3 + $0x2c] sm:$0xf] }
  0x24   :  { %v851_v48 = vmax.bf16 %v770_v28, %v689_v39  ;;  %v367_v49 = vmax.bf16 %v286_v35, %v205_v41  ;;  %v44_v50 = vld [vmem:[%s4056_s0 + $0x30] sm:$0xf]  ;;  %v1174_v53 = vmax.bf16 %v1093_v37, %v1012_v42  ;;  %v1094_v54 = vld [vmem:[%s4063_s7 + $0x24] sm:$0xf]  ;;  %v610_v57 = vld [vmem:[%s4060_s4 + $0x2c] sm:$0xf] }
  0x25   :  { %v125_v51 = vld [vmem:[%s4057_s1 + $0x30] sm:$0xf]  ;;  %v1256_v55 = vld [vmem:[%s4064_s8 + $0x24] sm:$0xf]  ;;  %v690_v56 = vmax.bf16 %v609_v40, %v528_v44  ;;  %1417 = vst.msk [vmem:[%s4065_s9 + $0x1c] sm:$0xf] %vm1409_vm0, %v1335_v47 }
  0x26   :  { %v287_v52 = vld [vmem:[%s4058_s2 + $0x30] sm:$0xf]  ;;  %v206_v58 = vmax.bf16 %v125_v51, %v44_v50  ;;  %v1013_v59 = vmax.bf16 %v932_v43, %v851_v48  ;;  %v933_v60 = vld [vmem:[%s4062_s6 + $0x28] sm:$0xf]  ;;  %v529_v61 = vmax.bf16 %v448_v46, %v367_v49  ;;  %v772_v62 = vld [vmem:[%s4061_s5 + $0x2c] sm:$0xf]  ;;  %v1336_v0 = vmax.bf16 %v1255_v38, %v1174_v53 }
  0x27   :  { %v449_v63 = vld [vmem:[%s4059_s3 + $0x30] sm:$0xf]  ;;  %v852_v1 = vmax.bf16 %v771_v45, %v690_v56  ;;  %v45_v3 = vld [vmem:[%s4056_s0 + $0x34] sm:$0xf]  ;;  %v1095_v7 = vld [vmem:[%s4063_s7 + $0x28] sm:$0xf] }
  0x28   :  { %v368_v2 = vmax.bf16 %v287_v52, %v206_v58  ;;  %v126_v4 = vld [vmem:[%s4057_s1 + $0x34] sm:$0xf]  ;;  %v1175_v6 = vmax.bf16 %v1094_v54, %v1013_v59  ;;  %v1257_v8 = vld [vmem:[%s4064_s8 + $0x28] sm:$0xf]  ;;  %v691_v9 = vmax.bf16 %v610_v57, %v529_v61  ;;  %v611_v10 = vld [vmem:[%s4060_s4 + $0x30] sm:$0xf] }
  0x29   :  { %v288_v5 = vld [vmem:[%s4058_s2 + $0x34] sm:$0xf]  ;;  %v207_v11 = vmax.bf16 %v126_v4, %v45_v3  ;;  %1418 = vst.msk [vmem:[%s4065_s9 + $0x20] sm:$0xf] %vm1409_vm0, %v1336_v0  ;;  %v1014_v12 = vmax.bf16 %v933_v60, %v852_v1  ;;  %v934_v13 = vld [vmem:[%s4062_s6 + $0x2c] sm:$0xf] }
  0x2a   :  { %v530_v14 = vmax.bf16 %v449_v63, %v368_v2  ;;  %v773_v15 = vld [vmem:[%s4061_s5 + $0x30] sm:$0xf]  ;;  %v450_v16 = vld [vmem:[%s4059_s3 + $0x34] sm:$0xf]  ;;  %v1337_v17 = vmax.bf16 %v1256_v55, %v1175_v6  ;;  %v853_v18 = vmax.bf16 %v772_v62, %v691_v9  ;;  %v46_v20 = vld [vmem:[%s4056_s0 + $0x38] sm:$0xf] }
  0x2b   :  { %v369_v19 = vmax.bf16 %v288_v5, %v207_v11  ;;  %v127_v21 = vld [vmem:[%s4057_s1 + $0x38] sm:$0xf]  ;;  %v1176_v23 = vmax.bf16 %v1095_v7, %v1014_v12  ;;  %v1096_v24 = vld [vmem:[%s4063_s7 + $0x2c] sm:$0xf]  ;;  %v612_v27 = vld [vmem:[%s4060_s4 + $0x34] sm:$0xf] }
  0x2c   :  { %v289_v22 = vld [vmem:[%s4058_s2 + $0x38] sm:$0xf]  ;;  %v1258_v25 = vld [vmem:[%s4064_s8 + $0x2c] sm:$0xf]  ;;  %v692_v26 = vmax.bf16 %v611_v10, %v530_v14  ;;  %v208_v28 = vmax.bf16 %v127_v21, %v46_v20  ;;  %1419 = vst.msk [vmem:[%s4065_s9 + $0x24] sm:$0xf] %vm1409_vm0, %v1337_v17  ;;  %v1015_v29 = vmax.bf16 %v934_v13, %v853_v18 }
  0x2d   :  { %v935_v30 = vld [vmem:[%s4062_s6 + $0x30] sm:$0xf]  ;;  %v531_v31 = vmax.bf16 %v450_v16, %v369_v19  ;;  %v774_v32 = vld [vmem:[%s4061_s5 + $0x34] sm:$0xf]  ;;  %v451_v33 = vld [vmem:[%s4059_s3 + $0x38] sm:$0xf]  ;;  %v1338_v34 = vmax.bf16 %v1257_v8, %v1176_v23 }
  0x2e   :  { %v854_v35 = vmax.bf16 %v773_v15, %v692_v26  ;;  %v370_v36 = vmax.bf16 %v289_v22, %v208_v28  ;;  %v47_v37 = vld [vmem:[%s4056_s0 + $0x3c] sm:$0xf]  ;;  %v1177_v40 = vmax.bf16 %v1096_v24, %v1015_v29  ;;  %v1097_v41 = vld [vmem:[%s4063_s7 + $0x30] sm:$0xf]  ;;  %v613_v44 = vld [vmem:[%s4060_s4 + $0x38] sm:$0xf] }
  0x2f   :  { %v128_v38 = vld [vmem:[%s4057_s1 + $0x3c] sm:$0xf]  ;;  %v1259_v42 = vld [vmem:[%s4064_s8 + $0x30] sm:$0xf]  ;;  %v693_v43 = vmax.bf16 %v612_v27, %v531_v31  ;;  %1420 = vst.msk [vmem:[%s4065_s9 + $0x28] sm:$0xf] %vm1409_vm0, %v1338_v34 }
  0x30   :  { %v290_v39 = vld [vmem:[%s4058_s2 + $0x3c] sm:$0xf]  ;;  %v209_v45 = vmax.bf16 %v128_v38, %v47_v37  ;;  %v1016_v46 = vmax.bf16 %v935_v30, %v854_v35  ;;  %v936_v47 = vld [vmem:[%s4062_s6 + $0x34] sm:$0xf]  ;;  %v532_v48 = vmax.bf16 %v451_v33, %v370_v36  ;;  %v775_v49 = vld [vmem:[%s4061_s5 + $0x38] sm:$0xf]  ;;  %v1339_v51 = vmax.bf16 %v1258_v25, %v1177_v40 }
  0x31   :  { %v452_v50 = vld [vmem:[%s4059_s3 + $0x3c] sm:$0xf]  ;;  %v855_v52 = vmax.bf16 %v774_v32, %v693_v43  ;;  %v48_v54 = vld [vmem:[%s4056_s0 + $0x40] sm:$0xf]  ;;  %v1098_v58 = vld [vmem:[%s4063_s7 + $0x34] sm:$0xf] }
  0x32   :  { %v371_v53 = vmax.bf16 %v290_v39, %v209_v45  ;;  %v129_v55 = vld [vmem:[%s4057_s1 + $0x40] sm:$0xf]  ;;  %v1178_v57 = vmax.bf16 %v1097_v41, %v1016_v46  ;;  %v1260_v59 = vld [vmem:[%s4064_s8 + $0x34] sm:$0xf]  ;;  %v694_v60 = vmax.bf16 %v613_v44, %v532_v48  ;;  %v614_v61 = vld [vmem:[%s4060_s4 + $0x3c] sm:$0xf] }
  0x33   :  { %v291_v56 = vld [vmem:[%s4058_s2 + $0x40] sm:$0xf]  ;;  %v210_v62 = vmax.bf16 %v129_v55, %v48_v54  ;;  %1421 = vst.msk [vmem:[%s4065_s9 + $0x2c] sm:$0xf] %vm1409_vm0, %v1339_v51  ;;  %v1017_v63 = vmax.bf16 %v936_v47, %v855_v52  ;;  %v937_v0 = vld [vmem:[%s4062_s6 + $0x38] sm:$0xf] }
  0x34   :  { %v533_v1 = vmax.bf16 %v452_v50, %v371_v53  ;;  %v776_v2 = vld [vmem:[%s4061_s5 + $0x3c] sm:$0xf]  ;;  %v453_v3 = vld [vmem:[%s4059_s3 + $0x40] sm:$0xf]  ;;  %v1340_v4 = vmax.bf16 %v1259_v42, %v1178_v57  ;;  %v856_v5 = vmax.bf16 %v775_v49, %v694_v60  ;;  %v49_v7 = vld [vmem:[%s4056_s0 + $0x44] sm:$0xf] }
  0x35   :  { %v372_v6 = vmax.bf16 %v291_v56, %v210_v62  ;;  %v130_v8 = vld [vmem:[%s4057_s1 + $0x44] sm:$0xf]  ;;  %v1179_v10 = vmax.bf16 %v1098_v58, %v1017_v63  ;;  %v1099_v11 = vld [vmem:[%s4063_s7 + $0x38] sm:$0xf]  ;;  %v615_v14 = vld [vmem:[%s4060_s4 + $0x40] sm:$0xf] }
  0x36   :  { %v292_v9 = vld [vmem:[%s4058_s2 + $0x44] sm:$0xf]  ;;  %v1261_v12 = vld [vmem:[%s4064_s8 + $0x38] sm:$0xf]  ;;  %v695_v13 = vmax.bf16 %v614_v61, %v533_v1  ;;  %v211_v15 = vmax.bf16 %v130_v8, %v49_v7  ;;  %1422 = vst.msk [vmem:[%s4065_s9 + $0x30] sm:$0xf] %vm1409_vm0, %v1340_v4  ;;  %v1018_v16 = vmax.bf16 %v937_v0, %v856_v5 }
  0x37   :  { %v938_v17 = vld [vmem:[%s4062_s6 + $0x3c] sm:$0xf]  ;;  %v534_v18 = vmax.bf16 %v453_v3, %v372_v6  ;;  %v777_v19 = vld [vmem:[%s4061_s5 + $0x40] sm:$0xf]  ;;  %v454_v20 = vld [vmem:[%s4059_s3 + $0x44] sm:$0xf]  ;;  %v1341_v21 = vmax.bf16 %v1260_v59, %v1179_v10 }
  0x38   :  { %v857_v22 = vmax.bf16 %v776_v2, %v695_v13  ;;  %v373_v23 = vmax.bf16 %v292_v9, %v211_v15  ;;  %v50_v24 = vld [vmem:[%s4056_s0 + $0x48] sm:$0xf]  ;;  %v1180_v27 = vmax.bf16 %v1099_v11, %v1018_v16  ;;  %v1100_v28 = vld [vmem:[%s4063_s7 + $0x3c] sm:$0xf]  ;;  %v616_v31 = vld [vmem:[%s4060_s4 + $0x44] sm:$0xf] }
  0x39   :  { %v131_v25 = vld [vmem:[%s4057_s1 + $0x48] sm:$0xf]  ;;  %v1262_v29 = vld [vmem:[%s4064_s8 + $0x3c] sm:$0xf]  ;;  %v696_v30 = vmax.bf16 %v615_v14, %v534_v18  ;;  %1423 = vst.msk [vmem:[%s4065_s9 + $0x34] sm:$0xf] %vm1409_vm0, %v1341_v21 }
  0x3a   :  { %v293_v26 = vld [vmem:[%s4058_s2 + $0x48] sm:$0xf]  ;;  %v212_v32 = vmax.bf16 %v131_v25, %v50_v24  ;;  %v1019_v33 = vmax.bf16 %v938_v17, %v857_v22  ;;  %v939_v34 = vld [vmem:[%s4062_s6 + $0x40] sm:$0xf]  ;;  %v535_v35 = vmax.bf16 %v454_v20, %v373_v23  ;;  %v778_v36 = vld [vmem:[%s4061_s5 + $0x44] sm:$0xf]  ;;  %v1342_v38 = vmax.bf16 %v1261_v12, %v1180_v27 }
  0x3b   :  { %v455_v37 = vld [vmem:[%s4059_s3 + $0x48] sm:$0xf]  ;;  %v858_v39 = vmax.bf16 %v777_v19, %v696_v30  ;;  %v51_v41 = vld [vmem:[%s4056_s0 + $0x4c] sm:$0xf]  ;;  %v1101_v45 = vld [vmem:[%s4063_s7 + $0x40] sm:$0xf] }
  0x3c   :  { %v374_v40 = vmax.bf16 %v293_v26, %v212_v32  ;;  %v132_v42 = vld [vmem:[%s4057_s1 + $0x4c] sm:$0xf]  ;;  %v1181_v44 = vmax.bf16 %v1100_v28, %v1019_v33  ;;  %v1263_v46 = vld [vmem:[%s4064_s8 + $0x40] sm:$0xf]  ;;  %v697_v47 = vmax.bf16 %v616_v31, %v535_v35  ;;  %v617_v48 = vld [vmem:[%s4060_s4 + $0x48] sm:$0xf] }
  0x3d   :  { %v294_v43 = vld [vmem:[%s4058_s2 + $0x4c] sm:$0xf]  ;;  %v213_v49 = vmax.bf16 %v132_v42, %v51_v41  ;;  %1424 = vst.msk [vmem:[%s4065_s9 + $0x38] sm:$0xf] %vm1409_vm0, %v1342_v38  ;;  %v1020_v50 = vmax.bf16 %v939_v34, %v858_v39  ;;  %v940_v51 = vld [vmem:[%s4062_s6 + $0x44] sm:$0xf] }
  0x3e   :  { %v536_v52 = vmax.bf16 %v455_v37, %v374_v40  ;;  %v779_v53 = vld [vmem:[%s4061_s5 + $0x48] sm:$0xf]  ;;  %v456_v54 = vld [vmem:[%s4059_s3 + $0x4c] sm:$0xf]  ;;  %v1343_v55 = vmax.bf16 %v1262_v29, %v1181_v44  ;;  %v859_v56 = vmax.bf16 %v778_v36, %v697_v47  ;;  %v52_v58 = vld [vmem:[%s4056_s0 + $0x50] sm:$0xf] }
  0x3f   :  { %v375_v57 = vmax.bf16 %v294_v43, %v213_v49  ;;  %v133_v59 = vld [vmem:[%s4057_s1 + $0x50] sm:$0xf]  ;;  %v1182_v61 = vmax.bf16 %v1101_v45, %v1020_v50  ;;  %v1102_v62 = vld [vmem:[%s4063_s7 + $0x44] sm:$0xf]  ;;  %v618_v1 = vld [vmem:[%s4060_s4 + $0x4c] sm:$0xf] }
  0x40   :  { %v295_v60 = vld [vmem:[%s4058_s2 + $0x50] sm:$0xf]  ;;  %v1264_v63 = vld [vmem:[%s4064_s8 + $0x44] sm:$0xf]  ;;  %v698_v0 = vmax.bf16 %v617_v48, %v536_v52  ;;  %v214_v2 = vmax.bf16 %v133_v59, %v52_v58  ;;  %1425 = vst.msk [vmem:[%s4065_s9 + $0x3c] sm:$0xf] %vm1409_vm0, %v1343_v55  ;;  %v1021_v3 = vmax.bf16 %v940_v51, %v859_v56 }
  0x41   :  { %v941_v4 = vld [vmem:[%s4062_s6 + $0x48] sm:$0xf]  ;;  %v537_v5 = vmax.bf16 %v456_v54, %v375_v57  ;;  %v780_v6 = vld [vmem:[%s4061_s5 + $0x4c] sm:$0xf]  ;;  %v457_v7 = vld [vmem:[%s4059_s3 + $0x50] sm:$0xf]  ;;  %v1344_v8 = vmax.bf16 %v1263_v46, %v1182_v61 }
  0x42   :  { %v860_v9 = vmax.bf16 %v779_v53, %v698_v0  ;;  %v376_v10 = vmax.bf16 %v295_v60, %v214_v2  ;;  %v53_v11 = vld [vmem:[%s4056_s0 + $0x54] sm:$0xf]  ;;  %v1183_v14 = vmax.bf16 %v1102_v62, %v1021_v3  ;;  %v1103_v15 = vld [vmem:[%s4063_s7 + $0x48] sm:$0xf]  ;;  %v619_v18 = vld [vmem:[%s4060_s4 + $0x50] sm:$0xf] }
  0x43   :  { %v134_v12 = vld [vmem:[%s4057_s1 + $0x54] sm:$0xf]  ;;  %v1265_v16 = vld [vmem:[%s4064_s8 + $0x48] sm:$0xf]  ;;  %v699_v17 = vmax.bf16 %v618_v1, %v537_v5  ;;  %1426 = vst.msk [vmem:[%s4065_s9 + $0x40] sm:$0xf] %vm1409_vm0, %v1344_v8 }
  0x44   :  { %v296_v13 = vld [vmem:[%s4058_s2 + $0x54] sm:$0xf]  ;;  %v215_v19 = vmax.bf16 %v134_v12, %v53_v11  ;;  %v1022_v20 = vmax.bf16 %v941_v4, %v860_v9  ;;  %v942_v21 = vld [vmem:[%s4062_s6 + $0x4c] sm:$0xf]  ;;  %v538_v22 = vmax.bf16 %v457_v7, %v376_v10  ;;  %v781_v23 = vld [vmem:[%s4061_s5 + $0x50] sm:$0xf]  ;;  %v1345_v25 = vmax.bf16 %v1264_v63, %v1183_v14 }
  0x45   :  { %v458_v24 = vld [vmem:[%s4059_s3 + $0x54] sm:$0xf]  ;;  %v861_v26 = vmax.bf16 %v780_v6, %v699_v17  ;;  %v54_v28 = vld [vmem:[%s4056_s0 + $0x58] sm:$0xf]  ;;  %v1104_v32 = vld [vmem:[%s4063_s7 + $0x4c] sm:$0xf] }
  0x46   :  { %v377_v27 = vmax.bf16 %v296_v13, %v215_v19  ;;  %v135_v29 = vld [vmem:[%s4057_s1 + $0x58] sm:$0xf]  ;;  %v1184_v31 = vmax.bf16 %v1103_v15, %v1022_v20  ;;  %v1266_v33 = vld [vmem:[%s4064_s8 + $0x4c] sm:$0xf]  ;;  %v700_v34 = vmax.bf16 %v619_v18, %v538_v22  ;;  %v620_v35 = vld [vmem:[%s4060_s4 + $0x54] sm:$0xf] }
  0x47   :  { %v297_v30 = vld [vmem:[%s4058_s2 + $0x58] sm:$0xf]  ;;  %v216_v36 = vmax.bf16 %v135_v29, %v54_v28  ;;  %1427 = vst.msk [vmem:[%s4065_s9 + $0x44] sm:$0xf] %vm1409_vm0, %v1345_v25  ;;  %v1023_v37 = vmax.bf16 %v942_v21, %v861_v26  ;;  %v943_v38 = vld [vmem:[%s4062_s6 + $0x50] sm:$0xf] }
  0x48   :  { %v539_v39 = vmax.bf16 %v458_v24, %v377_v27  ;;  %v782_v40 = vld [vmem:[%s4061_s5 + $0x54] sm:$0xf]  ;;  %v459_v41 = vld [vmem:[%s4059_s3 + $0x58] sm:$0xf]  ;;  %v1346_v42 = vmax.bf16 %v1265_v16, %v1184_v31  ;;  %v862_v43 = vmax.bf16 %v781_v23, %v700_v34  ;;  %v55_v45 = vld [vmem:[%s4056_s0 + $0x5c] sm:$0xf] }
  0x49   :  { %v378_v44 = vmax.bf16 %v297_v30, %v216_v36  ;;  %v136_v46 = vld [vmem:[%s4057_s1 + $0x5c] sm:$0xf]  ;;  %v1185_v48 = vmax.bf16 %v1104_v32, %v1023_v37  ;;  %v1105_v49 = vld [vmem:[%s4063_s7 + $0x50] sm:$0xf]  ;;  %v621_v52 = vld [vmem:[%s4060_s4 + $0x58] sm:$0xf] }
  0x4a   :  { %v298_v47 = vld [vmem:[%s4058_s2 + $0x5c] sm:$0xf]  ;;  %v1267_v50 = vld [vmem:[%s4064_s8 + $0x50] sm:$0xf]  ;;  %v701_v51 = vmax.bf16 %v620_v35, %v539_v39  ;;  %v217_v53 = vmax.bf16 %v136_v46, %v55_v45  ;;  %1428 = vst.msk [vmem:[%s4065_s9 + $0x48] sm:$0xf] %vm1409_vm0, %v1346_v42  ;;  %v1024_v54 = vmax.bf16 %v943_v38, %v862_v43 }
  0x4b   :  { %v944_v55 = vld [vmem:[%s4062_s6 + $0x54] sm:$0xf]  ;;  %v540_v56 = vmax.bf16 %v459_v41, %v378_v44  ;;  %v783_v57 = vld [vmem:[%s4061_s5 + $0x58] sm:$0xf]  ;;  %v460_v58 = vld [vmem:[%s4059_s3 + $0x5c] sm:$0xf]  ;;  %v1347_v59 = vmax.bf16 %v1266_v33, %v1185_v48 }
  0x4c   :  { %v863_v60 = vmax.bf16 %v782_v40, %v701_v51  ;;  %v379_v61 = vmax.bf16 %v298_v47, %v217_v53  ;;  %v56_v62 = vld [vmem:[%s4056_s0 + $0x60] sm:$0xf]  ;;  %v1186_v1 = vmax.bf16 %v1105_v49, %v1024_v54  ;;  %v1106_v2 = vld [vmem:[%s4063_s7 + $0x54] sm:$0xf]  ;;  %v622_v5 = vld [vmem:[%s4060_s4 + $0x5c] sm:$0xf] }
  0x4d   :  { %v137_v63 = vld [vmem:[%s4057_s1 + $0x60] sm:$0xf]  ;;  %v1268_v3 = vld [vmem:[%s4064_s8 + $0x54] sm:$0xf]  ;;  %v702_v4 = vmax.bf16 %v621_v52, %v540_v56  ;;  %1429 = vst.msk [vmem:[%s4065_s9 + $0x4c] sm:$0xf] %vm1409_vm0, %v1347_v59 }
  0x4e   :  { %v299_v0 = vld [vmem:[%s4058_s2 + $0x60] sm:$0xf]  ;;  %v218_v6 = vmax.bf16 %v137_v63, %v56_v62  ;;  %v1025_v7 = vmax.bf16 %v944_v55, %v863_v60  ;;  %v945_v8 = vld [vmem:[%s4062_s6 + $0x58] sm:$0xf]  ;;  %v541_v9 = vmax.bf16 %v460_v58, %v379_v61  ;;  %v784_v10 = vld [vmem:[%s4061_s5 + $0x5c] sm:$0xf]  ;;  %v1348_v12 = vmax.bf16 %v1267_v50, %v1186_v1 }
  0x4f   :  { %v461_v11 = vld [vmem:[%s4059_s3 + $0x60] sm:$0xf]  ;;  %v864_v13 = vmax.bf16 %v783_v57, %v702_v4  ;;  %v57_v15 = vld [vmem:[%s4056_s0 + $0x64] sm:$0xf]  ;;  %v1107_v19 = vld [vmem:[%s4063_s7 + $0x58] sm:$0xf] }
  0x50   :  { %v380_v14 = vmax.bf16 %v299_v0, %v218_v6  ;;  %v138_v16 = vld [vmem:[%s4057_s1 + $0x64] sm:$0xf]  ;;  %v1187_v18 = vmax.bf16 %v1106_v2, %v1025_v7  ;;  %v1269_v20 = vld [vmem:[%s4064_s8 + $0x58] sm:$0xf]  ;;  %v703_v21 = vmax.bf16 %v622_v5, %v541_v9  ;;  %v623_v22 = vld [vmem:[%s4060_s4 + $0x60] sm:$0xf] }
  0x51   :  { %v300_v17 = vld [vmem:[%s4058_s2 + $0x64] sm:$0xf]  ;;  %v219_v23 = vmax.bf16 %v138_v16, %v57_v15  ;;  %1430 = vst.msk [vmem:[%s4065_s9 + $0x50] sm:$0xf] %vm1409_vm0, %v1348_v12  ;;  %v1026_v24 = vmax.bf16 %v945_v8, %v864_v13  ;;  %v946_v25 = vld [vmem:[%s4062_s6 + $0x5c] sm:$0xf] }
  0x52   :  { %v542_v26 = vmax.bf16 %v461_v11, %v380_v14  ;;  %v785_v27 = vld [vmem:[%s4061_s5 + $0x60] sm:$0xf]  ;;  %v462_v28 = vld [vmem:[%s4059_s3 + $0x64] sm:$0xf]  ;;  %v1349_v29 = vmax.bf16 %v1268_v3, %v1187_v18  ;;  %v865_v30 = vmax.bf16 %v784_v10, %v703_v21  ;;  %v58_v32 = vld [vmem:[%s4056_s0 + $0x68] sm:$0xf] }
  0x53   :  { %v381_v31 = vmax.bf16 %v300_v17, %v219_v23  ;;  %v139_v33 = vld [vmem:[%s4057_s1 + $0x68] sm:$0xf]  ;;  %v1188_v35 = vmax.bf16 %v1107_v19, %v1026_v24  ;;  %v1108_v36 = vld [vmem:[%s4063_s7 + $0x5c] sm:$0xf]  ;;  %v624_v39 = vld [vmem:[%s4060_s4 + $0x64] sm:$0xf] }
  0x54   :  { %v301_v34 = vld [vmem:[%s4058_s2 + $0x68] sm:$0xf]  ;;  %v1270_v37 = vld [vmem:[%s4064_s8 + $0x5c] sm:$0xf]  ;;  %v704_v38 = vmax.bf16 %v623_v22, %v542_v26  ;;  %v220_v40 = vmax.bf16 %v139_v33, %v58_v32  ;;  %1431 = vst.msk [vmem:[%s4065_s9 + $0x54] sm:$0xf] %vm1409_vm0, %v1349_v29  ;;  %v1027_v41 = vmax.bf16 %v946_v25, %v865_v30 }
  0x55   :  { %v947_v42 = vld [vmem:[%s4062_s6 + $0x60] sm:$0xf]  ;;  %v543_v43 = vmax.bf16 %v462_v28, %v381_v31  ;;  %v786_v44 = vld [vmem:[%s4061_s5 + $0x64] sm:$0xf]  ;;  %v463_v45 = vld [vmem:[%s4059_s3 + $0x68] sm:$0xf]  ;;  %v1350_v46 = vmax.bf16 %v1269_v20, %v1188_v35 }
  0x56   :  { %v866_v47 = vmax.bf16 %v785_v27, %v704_v38  ;;  %v382_v48 = vmax.bf16 %v301_v34, %v220_v40  ;;  %v59_v49 = vld [vmem:[%s4056_s0 + $0x6c] sm:$0xf]  ;;  %v1189_v52 = vmax.bf16 %v1108_v36, %v1027_v41  ;;  %v1109_v53 = vld [vmem:[%s4063_s7 + $0x60] sm:$0xf]  ;;  %v625_v56 = vld [vmem:[%s4060_s4 + $0x68] sm:$0xf] }
  0x57   :  { %v140_v50 = vld [vmem:[%s4057_s1 + $0x6c] sm:$0xf]  ;;  %v1271_v54 = vld [vmem:[%s4064_s8 + $0x60] sm:$0xf]  ;;  %v705_v55 = vmax.bf16 %v624_v39, %v543_v43  ;;  %1432 = vst.msk [vmem:[%s4065_s9 + $0x58] sm:$0xf] %vm1409_vm0, %v1350_v46 }
  0x58   :  { %v302_v51 = vld [vmem:[%s4058_s2 + $0x6c] sm:$0xf]  ;;  %v221_v57 = vmax.bf16 %v140_v50, %v59_v49  ;;  %v1028_v58 = vmax.bf16 %v947_v42, %v866_v47  ;;  %v948_v59 = vld [vmem:[%s4062_s6 + $0x64] sm:$0xf]  ;;  %v544_v60 = vmax.bf16 %v463_v45, %v382_v48  ;;  %v787_v61 = vld [vmem:[%s4061_s5 + $0x68] sm:$0xf]  ;;  %v1351_v63 = vmax.bf16 %v1270_v37, %v1189_v52 }
  0x59   :  { %v464_v62 = vld [vmem:[%s4059_s3 + $0x6c] sm:$0xf]  ;;  %v867_v0 = vmax.bf16 %v786_v44, %v705_v55  ;;  %v60_v2 = vld [vmem:[%s4056_s0 + $0x70] sm:$0xf]  ;;  %v1110_v6 = vld [vmem:[%s4063_s7 + $0x64] sm:$0xf] }
  0x5a   :  { %v383_v1 = vmax.bf16 %v302_v51, %v221_v57  ;;  %v141_v3 = vld [vmem:[%s4057_s1 + $0x70] sm:$0xf]  ;;  %v1190_v5 = vmax.bf16 %v1109_v53, %v1028_v58  ;;  %v1272_v7 = vld [vmem:[%s4064_s8 + $0x64] sm:$0xf]  ;;  %v706_v8 = vmax.bf16 %v625_v56, %v544_v60  ;;  %v626_v9 = vld [vmem:[%s4060_s4 + $0x6c] sm:$0xf] }
  0x5b   :  { %v303_v4 = vld [vmem:[%s4058_s2 + $0x70] sm:$0xf]  ;;  %v222_v10 = vmax.bf16 %v141_v3, %v60_v2  ;;  %1433 = vst.msk [vmem:[%s4065_s9 + $0x5c] sm:$0xf] %vm1409_vm0, %v1351_v63  ;;  %v1029_v11 = vmax.bf16 %v948_v59, %v867_v0  ;;  %v949_v12 = vld [vmem:[%s4062_s6 + $0x68] sm:$0xf] }
  0x5c   :  { %v545_v13 = vmax.bf16 %v464_v62, %v383_v1  ;;  %v788_v14 = vld [vmem:[%s4061_s5 + $0x6c] sm:$0xf]  ;;  %v465_v15 = vld [vmem:[%s4059_s3 + $0x70] sm:$0xf]  ;;  %v1352_v16 = vmax.bf16 %v1271_v54, %v1190_v5  ;;  %v868_v17 = vmax.bf16 %v787_v61, %v706_v8  ;;  %v61_v19 = vld [vmem:[%s4056_s0 + $0x74] sm:$0xf] }
  0x5d   :  { %v384_v18 = vmax.bf16 %v303_v4, %v222_v10  ;;  %v142_v20 = vld [vmem:[%s4057_s1 + $0x74] sm:$0xf]  ;;  %v1191_v22 = vmax.bf16 %v1110_v6, %v1029_v11  ;;  %v1111_v23 = vld [vmem:[%s4063_s7 + $0x68] sm:$0xf]  ;;  %v627_v26 = vld [vmem:[%s4060_s4 + $0x70] sm:$0xf] }
  0x5e   :  { %v304_v21 = vld [vmem:[%s4058_s2 + $0x74] sm:$0xf]  ;;  %v1273_v24 = vld [vmem:[%s4064_s8 + $0x68] sm:$0xf]  ;;  %v707_v25 = vmax.bf16 %v626_v9, %v545_v13  ;;  %v223_v27 = vmax.bf16 %v142_v20, %v61_v19  ;;  %1434 = vst.msk [vmem:[%s4065_s9 + $0x60] sm:$0xf] %vm1409_vm0, %v1352_v16  ;;  %v1030_v28 = vmax.bf16 %v949_v12, %v868_v17 }
  0x5f   :  { %v950_v29 = vld [vmem:[%s4062_s6 + $0x6c] sm:$0xf]  ;;  %v546_v30 = vmax.bf16 %v465_v15, %v384_v18  ;;  %v789_v31 = vld [vmem:[%s4061_s5 + $0x70] sm:$0xf]  ;;  %v466_v32 = vld [vmem:[%s4059_s3 + $0x74] sm:$0xf]  ;;  %v1353_v33 = vmax.bf16 %v1272_v7, %v1191_v22 }
  0x60   :  { %v869_v34 = vmax.bf16 %v788_v14, %v707_v25  ;;  %v385_v35 = vmax.bf16 %v304_v21, %v223_v27  ;;  %v62_v36 = vld [vmem:[%s4056_s0 + $0x78] sm:$0xf]  ;;  %v1192_v39 = vmax.bf16 %v1111_v23, %v1030_v28  ;;  %v1112_v40 = vld [vmem:[%s4063_s7 + $0x6c] sm:$0xf]  ;;  %v628_v43 = vld [vmem:[%s4060_s4 + $0x74] sm:$0xf] }
  0x61   :  { %v143_v37 = vld [vmem:[%s4057_s1 + $0x78] sm:$0xf]  ;;  %v1274_v41 = vld [vmem:[%s4064_s8 + $0x6c] sm:$0xf]  ;;  %v708_v42 = vmax.bf16 %v627_v26, %v546_v30  ;;  %1435 = vst.msk [vmem:[%s4065_s9 + $0x64] sm:$0xf] %vm1409_vm0, %v1353_v33 }
  0x62   :  { %v305_v38 = vld [vmem:[%s4058_s2 + $0x78] sm:$0xf]  ;;  %v224_v44 = vmax.bf16 %v143_v37, %v62_v36  ;;  %v1031_v45 = vmax.bf16 %v950_v29, %v869_v34  ;;  %v951_v46 = vld [vmem:[%s4062_s6 + $0x70] sm:$0xf]  ;;  %v547_v47 = vmax.bf16 %v466_v32, %v385_v35  ;;  %v790_v48 = vld [vmem:[%s4061_s5 + $0x74] sm:$0xf]  ;;  %v1354_v50 = vmax.bf16 %v1273_v24, %v1192_v39 }
  0x63   :  { %v467_v49 = vld [vmem:[%s4059_s3 + $0x78] sm:$0xf]  ;;  %v870_v51 = vmax.bf16 %v789_v31, %v708_v42  ;;  %v63_v53 = vld [vmem:[%s4056_s0 + $0x7c] sm:$0xf]  ;;  %v1113_v57 = vld [vmem:[%s4063_s7 + $0x70] sm:$0xf] }
  0x64   :  { %v386_v52 = vmax.bf16 %v305_v38, %v224_v44  ;;  %v144_v54 = vld [vmem:[%s4057_s1 + $0x7c] sm:$0xf]  ;;  %v1193_v56 = vmax.bf16 %v1112_v40, %v1031_v45  ;;  %v1275_v58 = vld [vmem:[%s4064_s8 + $0x70] sm:$0xf]  ;;  %v709_v59 = vmax.bf16 %v628_v43, %v547_v47  ;;  %v629_v60 = vld [vmem:[%s4060_s4 + $0x78] sm:$0xf] }
  0x65   :  { %v306_v55 = vld [vmem:[%s4058_s2 + $0x7c] sm:$0xf]  ;;  %v225_v61 = vmax.bf16 %v144_v54, %v63_v53  ;;  %1436 = vst.msk [vmem:[%s4065_s9 + $0x68] sm:$0xf] %vm1409_vm0, %v1354_v50  ;;  %v1032_v62 = vmax.bf16 %v951_v46, %v870_v51  ;;  %v952_v63 = vld [vmem:[%s4062_s6 + $0x74] sm:$0xf] }
  0x66   :  { %v548_v0 = vmax.bf16 %v467_v49, %v386_v52  ;;  %v791_v1 = vld [vmem:[%s4061_s5 + $0x78] sm:$0xf]  ;;  %v468_v2 = vld [vmem:[%s4059_s3 + $0x7c] sm:$0xf]  ;;  %v1355_v3 = vmax.bf16 %v1274_v41, %v1193_v56  ;;  %v871_v4 = vmax.bf16 %v790_v48, %v709_v59  ;;  %v64_v6 = vld [vmem:[%s4056_s0 + $0x80] sm:$0xf] }
  0x67   :  { %v387_v5 = vmax.bf16 %v306_v55, %v225_v61  ;;  %v145_v7 = vld [vmem:[%s4057_s1 + $0x80] sm:$0xf]  ;;  %v1194_v9 = vmax.bf16 %v1113_v57, %v1032_v62  ;;  %v1114_v10 = vld [vmem:[%s4063_s7 + $0x74] sm:$0xf]  ;;  %v630_v13 = vld [vmem:[%s4060_s4 + $0x7c] sm:$0xf] }
  0x68   :  { %v307_v8 = vld [vmem:[%s4058_s2 + $0x80] sm:$0xf]  ;;  %v1276_v11 = vld [vmem:[%s4064_s8 + $0x74] sm:$0xf]  ;;  %v710_v12 = vmax.bf16 %v629_v60, %v548_v0  ;;  %v226_v14 = vmax.bf16 %v145_v7, %v64_v6  ;;  %1437 = vst.msk [vmem:[%s4065_s9 + $0x6c] sm:$0xf] %vm1409_vm0, %v1355_v3  ;;  %v1033_v15 = vmax.bf16 %v952_v63, %v871_v4 }
  0x69   :  { %v953_v16 = vld [vmem:[%s4062_s6 + $0x78] sm:$0xf]  ;;  %v549_v17 = vmax.bf16 %v468_v2, %v387_v5  ;;  %v792_v18 = vld [vmem:[%s4061_s5 + $0x7c] sm:$0xf]  ;;  %v469_v19 = vld [vmem:[%s4059_s3 + $0x80] sm:$0xf]  ;;  %v1356_v20 = vmax.bf16 %v1275_v58, %v1194_v9 }
  0x6a   :  { %v872_v21 = vmax.bf16 %v791_v1, %v710_v12  ;;  %v388_v22 = vmax.bf16 %v307_v8, %v226_v14  ;;  %v65_v23 = vld [vmem:[%s4056_s0 + $0x84] sm:$0xf]  ;;  %v1195_v26 = vmax.bf16 %v1114_v10, %v1033_v15  ;;  %v1115_v27 = vld [vmem:[%s4063_s7 + $0x78] sm:$0xf]  ;;  %v631_v30 = vld [vmem:[%s4060_s4 + $0x80] sm:$0xf] }
  0x6b   :  { %v146_v24 = vld [vmem:[%s4057_s1 + $0x84] sm:$0xf]  ;;  %v1277_v28 = vld [vmem:[%s4064_s8 + $0x78] sm:$0xf]  ;;  %v711_v29 = vmax.bf16 %v630_v13, %v549_v17  ;;  %1438 = vst.msk [vmem:[%s4065_s9 + $0x70] sm:$0xf] %vm1409_vm0, %v1356_v20 }
  0x6c   :  { %v308_v25 = vld [vmem:[%s4058_s2 + $0x84] sm:$0xf]  ;;  %v227_v31 = vmax.bf16 %v146_v24, %v65_v23  ;;  %v1034_v32 = vmax.bf16 %v953_v16, %v872_v21  ;;  %v954_v33 = vld [vmem:[%s4062_s6 + $0x7c] sm:$0xf]  ;;  %v550_v34 = vmax.bf16 %v469_v19, %v388_v22  ;;  %v793_v35 = vld [vmem:[%s4061_s5 + $0x80] sm:$0xf]  ;;  %v1357_v37 = vmax.bf16 %v1276_v11, %v1195_v26 }
  0x6d   :  { %v470_v36 = vld [vmem:[%s4059_s3 + $0x84] sm:$0xf]  ;;  %v873_v38 = vmax.bf16 %v792_v18, %v711_v29  ;;  %v66_v40 = vld [vmem:[%s4056_s0 + $0x88] sm:$0xf]  ;;  %v1116_v44 = vld [vmem:[%s4063_s7 + $0x7c] sm:$0xf] }
  0x6e   :  { %v389_v39 = vmax.bf16 %v308_v25, %v227_v31  ;;  %v147_v41 = vld [vmem:[%s4057_s1 + $0x88] sm:$0xf]  ;;  %v1196_v43 = vmax.bf16 %v1115_v27, %v1034_v32  ;;  %v1278_v45 = vld [vmem:[%s4064_s8 + $0x7c] sm:$0xf]  ;;  %v712_v46 = vmax.bf16 %v631_v30, %v550_v34  ;;  %v632_v47 = vld [vmem:[%s4060_s4 + $0x84] sm:$0xf] }
  0x6f   :  { %v309_v42 = vld [vmem:[%s4058_s2 + $0x88] sm:$0xf]  ;;  %v228_v48 = vmax.bf16 %v147_v41, %v66_v40  ;;  %1439 = vst.msk [vmem:[%s4065_s9 + $0x74] sm:$0xf] %vm1409_vm0, %v1357_v37  ;;  %v1035_v49 = vmax.bf16 %v954_v33, %v873_v38  ;;  %v955_v50 = vld [vmem:[%s4062_s6 + $0x80] sm:$0xf] }
  0x70   :  { %v551_v51 = vmax.bf16 %v470_v36, %v389_v39  ;;  %v794_v52 = vld [vmem:[%s4061_s5 + $0x84] sm:$0xf]  ;;  %v471_v53 = vld [vmem:[%s4059_s3 + $0x88] sm:$0xf]  ;;  %v1358_v54 = vmax.bf16 %v1277_v28, %v1196_v43  ;;  %v874_v55 = vmax.bf16 %v793_v35, %v712_v46  ;;  %v67_v57 = vld [vmem:[%s4056_s0 + $0x8c] sm:$0xf] }
  0x71   :  { %v390_v56 = vmax.bf16 %v309_v42, %v228_v48  ;;  %v148_v58 = vld [vmem:[%s4057_s1 + $0x8c] sm:$0xf]  ;;  %v1197_v60 = vmax.bf16 %v1116_v44, %v1035_v49  ;;  %v1117_v61 = vld [vmem:[%s4063_s7 + $0x80] sm:$0xf]  ;;  %v633_v0 = vld [vmem:[%s4060_s4 + $0x88] sm:$0xf] }
  0x72   :  { %v310_v59 = vld [vmem:[%s4058_s2 + $0x8c] sm:$0xf]  ;;  %v1279_v62 = vld [vmem:[%s4064_s8 + $0x80] sm:$0xf]  ;;  %v713_v63 = vmax.bf16 %v632_v47, %v551_v51  ;;  %v229_v1 = vmax.bf16 %v148_v58, %v67_v57  ;;  %1440 = vst.msk [vmem:[%s4065_s9 + $0x78] sm:$0xf] %vm1409_vm0, %v1358_v54  ;;  %v1036_v2 = vmax.bf16 %v955_v50, %v874_v55 }
  0x73   :  { %v956_v3 = vld [vmem:[%s4062_s6 + $0x84] sm:$0xf]  ;;  %v552_v4 = vmax.bf16 %v471_v53, %v390_v56  ;;  %v795_v5 = vld [vmem:[%s4061_s5 + $0x88] sm:$0xf]  ;;  %v472_v6 = vld [vmem:[%s4059_s3 + $0x8c] sm:$0xf]  ;;  %v1359_v7 = vmax.bf16 %v1278_v45, %v1197_v60 }
  0x74   :  { %v875_v8 = vmax.bf16 %v794_v52, %v713_v63  ;;  %v391_v9 = vmax.bf16 %v310_v59, %v229_v1  ;;  %v68_v10 = vld [vmem:[%s4056_s0 + $0x90] sm:$0xf]  ;;  %v1198_v13 = vmax.bf16 %v1117_v61, %v1036_v2  ;;  %v1118_v14 = vld [vmem:[%s4063_s7 + $0x84] sm:$0xf]  ;;  %v634_v17 = vld [vmem:[%s4060_s4 + $0x8c] sm:$0xf] }
  0x75   :  { %v149_v11 = vld [vmem:[%s4057_s1 + $0x90] sm:$0xf]  ;;  %v1280_v15 = vld [vmem:[%s4064_s8 + $0x84] sm:$0xf]  ;;  %v714_v16 = vmax.bf16 %v633_v0, %v552_v4  ;;  %1441 = vst.msk [vmem:[%s4065_s9 + $0x7c] sm:$0xf] %vm1409_vm0, %v1359_v7 }
  0x76   :  { %v311_v12 = vld [vmem:[%s4058_s2 + $0x90] sm:$0xf]  ;;  %v230_v18 = vmax.bf16 %v149_v11, %v68_v10  ;;  %v1037_v19 = vmax.bf16 %v956_v3, %v875_v8  ;;  %v957_v20 = vld [vmem:[%s4062_s6 + $0x88] sm:$0xf]  ;;  %v553_v21 = vmax.bf16 %v472_v6, %v391_v9  ;;  %v796_v22 = vld [vmem:[%s4061_s5 + $0x8c] sm:$0xf]  ;;  %v1360_v24 = vmax.bf16 %v1279_v62, %v1198_v13 }
  0x77   :  { %v473_v23 = vld [vmem:[%s4059_s3 + $0x90] sm:$0xf]  ;;  %v876_v25 = vmax.bf16 %v795_v5, %v714_v16  ;;  %v69_v27 = vld [vmem:[%s4056_s0 + $0x94] sm:$0xf]  ;;  %v1119_v31 = vld [vmem:[%s4063_s7 + $0x88] sm:$0xf] }
  0x78   :  { %v392_v26 = vmax.bf16 %v311_v12, %v230_v18  ;;  %v150_v28 = vld [vmem:[%s4057_s1 + $0x94] sm:$0xf]  ;;  %v1199_v30 = vmax.bf16 %v1118_v14, %v1037_v19  ;;  %v1281_v32 = vld [vmem:[%s4064_s8 + $0x88] sm:$0xf]  ;;  %v715_v33 = vmax.bf16 %v634_v17, %v553_v21  ;;  %v635_v34 = vld [vmem:[%s4060_s4 + $0x90] sm:$0xf] }
  0x79   :  { %v312_v29 = vld [vmem:[%s4058_s2 + $0x94] sm:$0xf]  ;;  %v231_v35 = vmax.bf16 %v150_v28, %v69_v27  ;;  %1442 = vst.msk [vmem:[%s4065_s9 + $0x80] sm:$0xf] %vm1409_vm0, %v1360_v24  ;;  %v1038_v36 = vmax.bf16 %v957_v20, %v876_v25  ;;  %v958_v37 = vld [vmem:[%s4062_s6 + $0x8c] sm:$0xf] }
  0x7a   :  { %v554_v38 = vmax.bf16 %v473_v23, %v392_v26  ;;  %v797_v39 = vld [vmem:[%s4061_s5 + $0x90] sm:$0xf]  ;;  %v474_v40 = vld [vmem:[%s4059_s3 + $0x94] sm:$0xf]  ;;  %v1361_v41 = vmax.bf16 %v1280_v15, %v1199_v30  ;;  %v877_v42 = vmax.bf16 %v796_v22, %v715_v33  ;;  %v70_v44 = vld [vmem:[%s4056_s0 + $0x98] sm:$0xf] }
  0x7b   :  { %v393_v43 = vmax.bf16 %v312_v29, %v231_v35  ;;  %v151_v45 = vld [vmem:[%s4057_s1 + $0x98] sm:$0xf]  ;;  %v1200_v47 = vmax.bf16 %v1119_v31, %v1038_v36  ;;  %v1120_v48 = vld [vmem:[%s4063_s7 + $0x8c] sm:$0xf]  ;;  %v636_v51 = vld [vmem:[%s4060_s4 + $0x94] sm:$0xf] }
  0x7c   :  { %v313_v46 = vld [vmem:[%s4058_s2 + $0x98] sm:$0xf]  ;;  %v1282_v49 = vld [vmem:[%s4064_s8 + $0x8c] sm:$0xf]  ;;  %v716_v50 = vmax.bf16 %v635_v34, %v554_v38  ;;  %v232_v52 = vmax.bf16 %v151_v45, %v70_v44  ;;  %1443 = vst.msk [vmem:[%s4065_s9 + $0x84] sm:$0xf] %vm1409_vm0, %v1361_v41  ;;  %v1039_v53 = vmax.bf16 %v958_v37, %v877_v42 }
  0x7d   :  { %v959_v54 = vld [vmem:[%s4062_s6 + $0x90] sm:$0xf]  ;;  %v555_v55 = vmax.bf16 %v474_v40, %v393_v43  ;;  %v798_v56 = vld [vmem:[%s4061_s5 + $0x94] sm:$0xf]  ;;  %v475_v57 = vld [vmem:[%s4059_s3 + $0x98] sm:$0xf]  ;;  %v1362_v58 = vmax.bf16 %v1281_v32, %v1200_v47 }
  0x7e   :  { %v878_v59 = vmax.bf16 %v797_v39, %v716_v50  ;;  %v394_v60 = vmax.bf16 %v313_v46, %v232_v52  ;;  %v71_v61 = vld [vmem:[%s4056_s0 + $0x9c] sm:$0xf]  ;;  %v1201_v0 = vmax.bf16 %v1120_v48, %v1039_v53  ;;  %v1121_v1 = vld [vmem:[%s4063_s7 + $0x90] sm:$0xf]  ;;  %v637_v4 = vld [vmem:[%s4060_s4 + $0x98] sm:$0xf] }
  0x7f   :  { %v152_v62 = vld [vmem:[%s4057_s1 + $0x9c] sm:$0xf]  ;;  %v1283_v2 = vld [vmem:[%s4064_s8 + $0x90] sm:$0xf]  ;;  %v717_v3 = vmax.bf16 %v636_v51, %v555_v55  ;;  %1444 = vst.msk [vmem:[%s4065_s9 + $0x88] sm:$0xf] %vm1409_vm0, %v1362_v58 }
  0x80   :  { %v314_v63 = vld [vmem:[%s4058_s2 + $0x9c] sm:$0xf]  ;;  %v233_v5 = vmax.bf16 %v152_v62, %v71_v61  ;;  %v1040_v6 = vmax.bf16 %v959_v54, %v878_v59  ;;  %v960_v7 = vld [vmem:[%s4062_s6 + $0x94] sm:$0xf]  ;;  %v556_v8 = vmax.bf16 %v475_v57, %v394_v60  ;;  %v799_v9 = vld [vmem:[%s4061_s5 + $0x98] sm:$0xf]  ;;  %v1363_v11 = vmax.bf16 %v1282_v49, %v1201_v0 }
  0x81   :  { %v476_v10 = vld [vmem:[%s4059_s3 + $0x9c] sm:$0xf]  ;;  %v879_v12 = vmax.bf16 %v798_v56, %v717_v3  ;;  %v72_v14 = vld [vmem:[%s4056_s0 + $0xa0] sm:$0xf]  ;;  %v1122_v18 = vld [vmem:[%s4063_s7 + $0x94] sm:$0xf] }
  0x82   :  { %v395_v13 = vmax.bf16 %v314_v63, %v233_v5  ;;  %v153_v15 = vld [vmem:[%s4057_s1 + $0xa0] sm:$0xf]  ;;  %v1202_v17 = vmax.bf16 %v1121_v1, %v1040_v6  ;;  %v1284_v19 = vld [vmem:[%s4064_s8 + $0x94] sm:$0xf]  ;;  %v718_v20 = vmax.bf16 %v637_v4, %v556_v8  ;;  %v638_v21 = vld [vmem:[%s4060_s4 + $0x9c] sm:$0xf] }
  0x83   :  { %v315_v16 = vld [vmem:[%s4058_s2 + $0xa0] sm:$0xf]  ;;  %v234_v22 = vmax.bf16 %v153_v15, %v72_v14  ;;  %1445 = vst.msk [vmem:[%s4065_s9 + $0x8c] sm:$0xf] %vm1409_vm0, %v1363_v11  ;;  %v1041_v23 = vmax.bf16 %v960_v7, %v879_v12  ;;  %v961_v24 = vld [vmem:[%s4062_s6 + $0x98] sm:$0xf] }
  0x84   :  { %v557_v25 = vmax.bf16 %v476_v10, %v395_v13  ;;  %v800_v26 = vld [vmem:[%s4061_s5 + $0x9c] sm:$0xf]  ;;  %v477_v27 = vld [vmem:[%s4059_s3 + $0xa0] sm:$0xf]  ;;  %v1364_v28 = vmax.bf16 %v1283_v2, %v1202_v17  ;;  %v880_v29 = vmax.bf16 %v799_v9, %v718_v20  ;;  %v73_v31 = vld [vmem:[%s4056_s0 + $0xa4] sm:$0xf] }
  0x85   :  { %v396_v30 = vmax.bf16 %v315_v16, %v234_v22  ;;  %v154_v32 = vld [vmem:[%s4057_s1 + $0xa4] sm:$0xf]  ;;  %v1203_v34 = vmax.bf16 %v1122_v18, %v1041_v23  ;;  %v1123_v35 = vld [vmem:[%s4063_s7 + $0x98] sm:$0xf]  ;;  %v639_v38 = vld [vmem:[%s4060_s4 + $0xa0] sm:$0xf] }
  0x86   :  { %v316_v33 = vld [vmem:[%s4058_s2 + $0xa4] sm:$0xf]  ;;  %v1285_v36 = vld [vmem:[%s4064_s8 + $0x98] sm:$0xf]  ;;  %v719_v37 = vmax.bf16 %v638_v21, %v557_v25  ;;  %v235_v39 = vmax.bf16 %v154_v32, %v73_v31  ;;  %1446 = vst.msk [vmem:[%s4065_s9 + $0x90] sm:$0xf] %vm1409_vm0, %v1364_v28  ;;  %v1042_v40 = vmax.bf16 %v961_v24, %v880_v29 }
  0x87   :  { %v962_v41 = vld [vmem:[%s4062_s6 + $0x9c] sm:$0xf]  ;;  %v558_v42 = vmax.bf16 %v477_v27, %v396_v30  ;;  %v801_v43 = vld [vmem:[%s4061_s5 + $0xa0] sm:$0xf]  ;;  %v478_v44 = vld [vmem:[%s4059_s3 + $0xa4] sm:$0xf]  ;;  %v1365_v45 = vmax.bf16 %v1284_v19, %v1203_v34 }
  0x88   :  { %v881_v46 = vmax.bf16 %v800_v26, %v719_v37  ;;  %v397_v47 = vmax.bf16 %v316_v33, %v235_v39  ;;  %v74_v48 = vld [vmem:[%s4056_s0 + $0xa8] sm:$0xf]  ;;  %v1204_v51 = vmax.bf16 %v1123_v35, %v1042_v40  ;;  %v1124_v52 = vld [vmem:[%s4063_s7 + $0x9c] sm:$0xf]  ;;  %v640_v55 = vld [vmem:[%s4060_s4 + $0xa4] sm:$0xf] }
  0x89   :  { %v155_v49 = vld [vmem:[%s4057_s1 + $0xa8] sm:$0xf]  ;;  %v1286_v53 = vld [vmem:[%s4064_s8 + $0x9c] sm:$0xf]  ;;  %v720_v54 = vmax.bf16 %v639_v38, %v558_v42  ;;  %1447 = vst.msk [vmem:[%s4065_s9 + $0x94] sm:$0xf] %vm1409_vm0, %v1365_v45 }
  0x8a   :  { %v317_v50 = vld [vmem:[%s4058_s2 + $0xa8] sm:$0xf]  ;;  %v236_v56 = vmax.bf16 %v155_v49, %v74_v48  ;;  %v1043_v57 = vmax.bf16 %v962_v41, %v881_v46  ;;  %v963_v58 = vld [vmem:[%s4062_s6 + $0xa0] sm:$0xf]  ;;  %v559_v59 = vmax.bf16 %v478_v44, %v397_v47  ;;  %v802_v60 = vld [vmem:[%s4061_s5 + $0xa4] sm:$0xf]  ;;  %v1366_v62 = vmax.bf16 %v1285_v36, %v1204_v51 }
  0x8b   :  { %v479_v61 = vld [vmem:[%s4059_s3 + $0xa8] sm:$0xf]  ;;  %v882_v63 = vmax.bf16 %v801_v43, %v720_v54  ;;  %v75_v1 = vld [vmem:[%s4056_s0 + $0xac] sm:$0xf]  ;;  %v1125_v5 = vld [vmem:[%s4063_s7 + $0xa0] sm:$0xf] }
  0x8c   :  { %v398_v0 = vmax.bf16 %v317_v50, %v236_v56  ;;  %v156_v2 = vld [vmem:[%s4057_s1 + $0xac] sm:$0xf]  ;;  %v1205_v4 = vmax.bf16 %v1124_v52, %v1043_v57  ;;  %v1287_v6 = vld [vmem:[%s4064_s8 + $0xa0] sm:$0xf]  ;;  %v721_v7 = vmax.bf16 %v640_v55, %v559_v59  ;;  %v641_v8 = vld [vmem:[%s4060_s4 + $0xa8] sm:$0xf] }
  0x8d   :  { %v318_v3 = vld [vmem:[%s4058_s2 + $0xac] sm:$0xf]  ;;  %v237_v9 = vmax.bf16 %v156_v2, %v75_v1  ;;  %1448 = vst.msk [vmem:[%s4065_s9 + $0x98] sm:$0xf] %vm1409_vm0, %v1366_v62  ;;  %v1044_v10 = vmax.bf16 %v963_v58, %v882_v63  ;;  %v964_v11 = vld [vmem:[%s4062_s6 + $0xa4] sm:$0xf] }
  0x8e   :  { %v560_v12 = vmax.bf16 %v479_v61, %v398_v0  ;;  %v803_v13 = vld [vmem:[%s4061_s5 + $0xa8] sm:$0xf]  ;;  %v480_v14 = vld [vmem:[%s4059_s3 + $0xac] sm:$0xf]  ;;  %v1367_v15 = vmax.bf16 %v1286_v53, %v1205_v4  ;;  %v883_v16 = vmax.bf16 %v802_v60, %v721_v7  ;;  %v76_v18 = vld [vmem:[%s4056_s0 + $0xb0] sm:$0xf] }
  0x8f   :  { %v399_v17 = vmax.bf16 %v318_v3, %v237_v9  ;;  %v157_v19 = vld [vmem:[%s4057_s1 + $0xb0] sm:$0xf]  ;;  %v1206_v21 = vmax.bf16 %v1125_v5, %v1044_v10  ;;  %v1126_v22 = vld [vmem:[%s4063_s7 + $0xa4] sm:$0xf]  ;;  %v642_v25 = vld [vmem:[%s4060_s4 + $0xac] sm:$0xf] }
  0x90   :  { %v319_v20 = vld [vmem:[%s4058_s2 + $0xb0] sm:$0xf]  ;;  %v1288_v23 = vld [vmem:[%s4064_s8 + $0xa4] sm:$0xf]  ;;  %v722_v24 = vmax.bf16 %v641_v8, %v560_v12  ;;  %v238_v26 = vmax.bf16 %v157_v19, %v76_v18  ;;  %1449 = vst.msk [vmem:[%s4065_s9 + $0x9c] sm:$0xf] %vm1409_vm0, %v1367_v15  ;;  %v1045_v27 = vmax.bf16 %v964_v11, %v883_v16 }
  0x91   :  { %v965_v28 = vld [vmem:[%s4062_s6 + $0xa8] sm:$0xf]  ;;  %v561_v29 = vmax.bf16 %v480_v14, %v399_v17  ;;  %v804_v30 = vld [vmem:[%s4061_s5 + $0xac] sm:$0xf]  ;;  %v481_v31 = vld [vmem:[%s4059_s3 + $0xb0] sm:$0xf]  ;;  %v1368_v32 = vmax.bf16 %v1287_v6, %v1206_v21 }
  0x92   :  { %v884_v33 = vmax.bf16 %v803_v13, %v722_v24  ;;  %v400_v34 = vmax.bf16 %v319_v20, %v238_v26  ;;  %v77_v35 = vld [vmem:[%s4056_s0 + $0xb4] sm:$0xf]  ;;  %v1207_v38 = vmax.bf16 %v1126_v22, %v1045_v27  ;;  %v1127_v39 = vld [vmem:[%s4063_s7 + $0xa8] sm:$0xf]  ;;  %v643_v42 = vld [vmem:[%s4060_s4 + $0xb0] sm:$0xf] }
  0x93   :  { %v158_v36 = vld [vmem:[%s4057_s1 + $0xb4] sm:$0xf]  ;;  %v1289_v40 = vld [vmem:[%s4064_s8 + $0xa8] sm:$0xf]  ;;  %v723_v41 = vmax.bf16 %v642_v25, %v561_v29  ;;  %1450 = vst.msk [vmem:[%s4065_s9 + $0xa0] sm:$0xf] %vm1409_vm0, %v1368_v32 }
  0x94   :  { %v320_v37 = vld [vmem:[%s4058_s2 + $0xb4] sm:$0xf]  ;;  %v239_v43 = vmax.bf16 %v158_v36, %v77_v35  ;;  %v1046_v44 = vmax.bf16 %v965_v28, %v884_v33  ;;  %v966_v45 = vld [vmem:[%s4062_s6 + $0xac] sm:$0xf]  ;;  %v562_v46 = vmax.bf16 %v481_v31, %v400_v34  ;;  %v805_v47 = vld [vmem:[%s4061_s5 + $0xb0] sm:$0xf]  ;;  %v1369_v49 = vmax.bf16 %v1288_v23, %v1207_v38 }
  0x95   :  { %v482_v48 = vld [vmem:[%s4059_s3 + $0xb4] sm:$0xf]  ;;  %v885_v50 = vmax.bf16 %v804_v30, %v723_v41  ;;  %v78_v52 = vld [vmem:[%s4056_s0 + $0xb8] sm:$0xf]  ;;  %v1128_v56 = vld [vmem:[%s4063_s7 + $0xac] sm:$0xf] }
  0x96   :  { %v401_v51 = vmax.bf16 %v320_v37, %v239_v43  ;;  %v159_v53 = vld [vmem:[%s4057_s1 + $0xb8] sm:$0xf]  ;;  %v1208_v55 = vmax.bf16 %v1127_v39, %v1046_v44  ;;  %v1290_v57 = vld [vmem:[%s4064_s8 + $0xac] sm:$0xf]  ;;  %v724_v58 = vmax.bf16 %v643_v42, %v562_v46  ;;  %v644_v59 = vld [vmem:[%s4060_s4 + $0xb4] sm:$0xf] }
  0x97   :  { %v321_v54 = vld [vmem:[%s4058_s2 + $0xb8] sm:$0xf]  ;;  %v240_v60 = vmax.bf16 %v159_v53, %v78_v52  ;;  %1451 = vst.msk [vmem:[%s4065_s9 + $0xa4] sm:$0xf] %vm1409_vm0, %v1369_v49  ;;  %v1047_v61 = vmax.bf16 %v966_v45, %v885_v50  ;;  %v967_v62 = vld [vmem:[%s4062_s6 + $0xb0] sm:$0xf] }
  0x98   :  { %v563_v63 = vmax.bf16 %v482_v48, %v401_v51  ;;  %v806_v0 = vld [vmem:[%s4061_s5 + $0xb4] sm:$0xf]  ;;  %v483_v1 = vld [vmem:[%s4059_s3 + $0xb8] sm:$0xf]  ;;  %v1370_v2 = vmax.bf16 %v1289_v40, %v1208_v55  ;;  %v886_v3 = vmax.bf16 %v805_v47, %v724_v58  ;;  %v79_v5 = vld [vmem:[%s4056_s0 + $0xbc] sm:$0xf] }
  0x99   :  { %v402_v4 = vmax.bf16 %v321_v54, %v240_v60  ;;  %v160_v6 = vld [vmem:[%s4057_s1 + $0xbc] sm:$0xf]  ;;  %v1209_v8 = vmax.bf16 %v1128_v56, %v1047_v61  ;;  %v1129_v9 = vld [vmem:[%s4063_s7 + $0xb0] sm:$0xf]  ;;  %v645_v12 = vld [vmem:[%s4060_s4 + $0xb8] sm:$0xf] }
  0x9a   :  { %v322_v7 = vld [vmem:[%s4058_s2 + $0xbc] sm:$0xf]  ;;  %v1291_v10 = vld [vmem:[%s4064_s8 + $0xb0] sm:$0xf]  ;;  %v725_v11 = vmax.bf16 %v644_v59, %v563_v63  ;;  %v241_v13 = vmax.bf16 %v160_v6, %v79_v5  ;;  %1452 = vst.msk [vmem:[%s4065_s9 + $0xa8] sm:$0xf] %vm1409_vm0, %v1370_v2  ;;  %v1048_v14 = vmax.bf16 %v967_v62, %v886_v3 }
  0x9b   :  { %v968_v15 = vld [vmem:[%s4062_s6 + $0xb4] sm:$0xf]  ;;  %v564_v16 = vmax.bf16 %v483_v1, %v402_v4  ;;  %v807_v17 = vld [vmem:[%s4061_s5 + $0xb8] sm:$0xf]  ;;  %v484_v18 = vld [vmem:[%s4059_s3 + $0xbc] sm:$0xf]  ;;  %v1371_v19 = vmax.bf16 %v1290_v57, %v1209_v8 }
  0x9c   :  { %v887_v20 = vmax.bf16 %v806_v0, %v725_v11  ;;  %v403_v21 = vmax.bf16 %v322_v7, %v241_v13  ;;  %v80_v22 = vld [vmem:[%s4056_s0 + $0xc0] sm:$0xf]  ;;  %v1210_v25 = vmax.bf16 %v1129_v9, %v1048_v14  ;;  %v1130_v26 = vld [vmem:[%s4063_s7 + $0xb4] sm:$0xf]  ;;  %v646_v29 = vld [vmem:[%s4060_s4 + $0xbc] sm:$0xf] }
  0x9d   :  { %v161_v23 = vld [vmem:[%s4057_s1 + $0xc0] sm:$0xf]  ;;  %v1292_v27 = vld [vmem:[%s4064_s8 + $0xb4] sm:$0xf]  ;;  %v726_v28 = vmax.bf16 %v645_v12, %v564_v16  ;;  %1453 = vst.msk [vmem:[%s4065_s9 + $0xac] sm:$0xf] %vm1409_vm0, %v1371_v19 }
  0x9e   :  { %v323_v24 = vld [vmem:[%s4058_s2 + $0xc0] sm:$0xf]  ;;  %v242_v30 = vmax.bf16 %v161_v23, %v80_v22  ;;  %v1049_v31 = vmax.bf16 %v968_v15, %v887_v20  ;;  %v969_v32 = vld [vmem:[%s4062_s6 + $0xb8] sm:$0xf]  ;;  %v565_v33 = vmax.bf16 %v484_v18, %v403_v21  ;;  %v808_v34 = vld [vmem:[%s4061_s5 + $0xbc] sm:$0xf]  ;;  %v1372_v36 = vmax.bf16 %v1291_v10, %v1210_v25 }
  0x9f   :  { %v485_v35 = vld [vmem:[%s4059_s3 + $0xc0] sm:$0xf]  ;;  %v888_v37 = vmax.bf16 %v807_v17, %v726_v28  ;;  %v81_v39 = vld [vmem:[%s4056_s0 + $0xc4] sm:$0xf]  ;;  %v1131_v43 = vld [vmem:[%s4063_s7 + $0xb8] sm:$0xf] }
  0xa0   :  { %v404_v38 = vmax.bf16 %v323_v24, %v242_v30  ;;  %v162_v40 = vld [vmem:[%s4057_s1 + $0xc4] sm:$0xf]  ;;  %v1211_v42 = vmax.bf16 %v1130_v26, %v1049_v31  ;;  %v1293_v44 = vld [vmem:[%s4064_s8 + $0xb8] sm:$0xf]  ;;  %v727_v45 = vmax.bf16 %v646_v29, %v565_v33  ;;  %v647_v46 = vld [vmem:[%s4060_s4 + $0xc0] sm:$0xf] }
  0xa1   :  { %v324_v41 = vld [vmem:[%s4058_s2 + $0xc4] sm:$0xf]  ;;  %v243_v47 = vmax.bf16 %v162_v40, %v81_v39  ;;  %1454 = vst.msk [vmem:[%s4065_s9 + $0xb0] sm:$0xf] %vm1409_vm0, %v1372_v36  ;;  %v1050_v48 = vmax.bf16 %v969_v32, %v888_v37  ;;  %v970_v49 = vld [vmem:[%s4062_s6 + $0xbc] sm:$0xf] }
  0xa2   :  { %v566_v50 = vmax.bf16 %v485_v35, %v404_v38  ;;  %v809_v51 = vld [vmem:[%s4061_s5 + $0xc0] sm:$0xf]  ;;  %v486_v52 = vld [vmem:[%s4059_s3 + $0xc4] sm:$0xf]  ;;  %v1373_v53 = vmax.bf16 %v1292_v27, %v1211_v42  ;;  %v889_v54 = vmax.bf16 %v808_v34, %v727_v45  ;;  %v82_v56 = vld [vmem:[%s4056_s0 + $0xc8] sm:$0xf] }
  0xa3   :  { %v405_v55 = vmax.bf16 %v324_v41, %v243_v47  ;;  %v163_v57 = vld [vmem:[%s4057_s1 + $0xc8] sm:$0xf]  ;;  %v1212_v59 = vmax.bf16 %v1131_v43, %v1050_v48  ;;  %v1132_v60 = vld [vmem:[%s4063_s7 + $0xbc] sm:$0xf]  ;;  %v648_v63 = vld [vmem:[%s4060_s4 + $0xc4] sm:$0xf] }
  0xa4   :  { %v325_v58 = vld [vmem:[%s4058_s2 + $0xc8] sm:$0xf]  ;;  %v1294_v61 = vld [vmem:[%s4064_s8 + $0xbc] sm:$0xf]  ;;  %v728_v62 = vmax.bf16 %v647_v46, %v566_v50  ;;  %v244_v0 = vmax.bf16 %v163_v57, %v82_v56  ;;  %1455 = vst.msk [vmem:[%s4065_s9 + $0xb4] sm:$0xf] %vm1409_vm0, %v1373_v53  ;;  %v1051_v1 = vmax.bf16 %v970_v49, %v889_v54 }
  0xa5   :  { %v971_v2 = vld [vmem:[%s4062_s6 + $0xc0] sm:$0xf]  ;;  %v567_v3 = vmax.bf16 %v486_v52, %v405_v55  ;;  %v810_v4 = vld [vmem:[%s4061_s5 + $0xc4] sm:$0xf]  ;;  %v487_v5 = vld [vmem:[%s4059_s3 + $0xc8] sm:$0xf]  ;;  %v1374_v6 = vmax.bf16 %v1293_v44, %v1212_v59 }
  0xa6   :  { %v890_v7 = vmax.bf16 %v809_v51, %v728_v62  ;;  %v406_v8 = vmax.bf16 %v325_v58, %v244_v0  ;;  %v83_v9 = vld [vmem:[%s4056_s0 + $0xcc] sm:$0xf]  ;;  %v1213_v12 = vmax.bf16 %v1132_v60, %v1051_v1  ;;  %v1133_v13 = vld [vmem:[%s4063_s7 + $0xc0] sm:$0xf]  ;;  %v649_v16 = vld [vmem:[%s4060_s4 + $0xc8] sm:$0xf] }
  0xa7   :  { %v164_v10 = vld [vmem:[%s4057_s1 + $0xcc] sm:$0xf]  ;;  %v1295_v14 = vld [vmem:[%s4064_s8 + $0xc0] sm:$0xf]  ;;  %v729_v15 = vmax.bf16 %v648_v63, %v567_v3  ;;  %1456 = vst.msk [vmem:[%s4065_s9 + $0xb8] sm:$0xf] %vm1409_vm0, %v1374_v6 }
  0xa8   :  { %v326_v11 = vld [vmem:[%s4058_s2 + $0xcc] sm:$0xf]  ;;  %v245_v17 = vmax.bf16 %v164_v10, %v83_v9  ;;  %v1052_v18 = vmax.bf16 %v971_v2, %v890_v7  ;;  %v972_v19 = vld [vmem:[%s4062_s6 + $0xc4] sm:$0xf]  ;;  %v568_v20 = vmax.bf16 %v487_v5, %v406_v8  ;;  %v811_v21 = vld [vmem:[%s4061_s5 + $0xc8] sm:$0xf]  ;;  %v1375_v23 = vmax.bf16 %v1294_v61, %v1213_v12 }
  0xa9   :  { %v488_v22 = vld [vmem:[%s4059_s3 + $0xcc] sm:$0xf]  ;;  %v891_v24 = vmax.bf16 %v810_v4, %v729_v15  ;;  %v84_v26 = vld [vmem:[%s4056_s0 + $0xd0] sm:$0xf]  ;;  %v1134_v30 = vld [vmem:[%s4063_s7 + $0xc4] sm:$0xf] }
  0xaa   :  { %v407_v25 = vmax.bf16 %v326_v11, %v245_v17  ;;  %v165_v27 = vld [vmem:[%s4057_s1 + $0xd0] sm:$0xf]  ;;  %v1214_v29 = vmax.bf16 %v1133_v13, %v1052_v18  ;;  %v1296_v31 = vld [vmem:[%s4064_s8 + $0xc4] sm:$0xf]  ;;  %v730_v32 = vmax.bf16 %v649_v16, %v568_v20  ;;  %v650_v33 = vld [vmem:[%s4060_s4 + $0xcc] sm:$0xf] }
  0xab   :  { %v327_v28 = vld [vmem:[%s4058_s2 + $0xd0] sm:$0xf]  ;;  %v246_v34 = vmax.bf16 %v165_v27, %v84_v26  ;;  %1457 = vst.msk [vmem:[%s4065_s9 + $0xbc] sm:$0xf] %vm1409_vm0, %v1375_v23  ;;  %v1053_v35 = vmax.bf16 %v972_v19, %v891_v24  ;;  %v973_v36 = vld [vmem:[%s4062_s6 + $0xc8] sm:$0xf] }
  0xac   :  { %v569_v37 = vmax.bf16 %v488_v22, %v407_v25  ;;  %v812_v38 = vld [vmem:[%s4061_s5 + $0xcc] sm:$0xf]  ;;  %v489_v39 = vld [vmem:[%s4059_s3 + $0xd0] sm:$0xf]  ;;  %v1376_v40 = vmax.bf16 %v1295_v14, %v1214_v29  ;;  %v892_v41 = vmax.bf16 %v811_v21, %v730_v32  ;;  %v85_v43 = vld [vmem:[%s4056_s0 + $0xd4] sm:$0xf] }
  0xad   :  { %v408_v42 = vmax.bf16 %v327_v28, %v246_v34  ;;  %v166_v44 = vld [vmem:[%s4057_s1 + $0xd4] sm:$0xf]  ;;  %v1215_v46 = vmax.bf16 %v1134_v30, %v1053_v35  ;;  %v1135_v47 = vld [vmem:[%s4063_s7 + $0xc8] sm:$0xf]  ;;  %v651_v50 = vld [vmem:[%s4060_s4 + $0xd0] sm:$0xf] }
  0xae   :  { %v328_v45 = vld [vmem:[%s4058_s2 + $0xd4] sm:$0xf]  ;;  %v1297_v48 = vld [vmem:[%s4064_s8 + $0xc8] sm:$0xf]  ;;  %v731_v49 = vmax.bf16 %v650_v33, %v569_v37  ;;  %v247_v51 = vmax.bf16 %v166_v44, %v85_v43  ;;  %1458 = vst.msk [vmem:[%s4065_s9 + $0xc0] sm:$0xf] %vm1409_vm0, %v1376_v40  ;;  %v1054_v52 = vmax.bf16 %v973_v36, %v892_v41 }
  0xaf   :  { %v974_v53 = vld [vmem:[%s4062_s6 + $0xcc] sm:$0xf]  ;;  %v570_v54 = vmax.bf16 %v489_v39, %v408_v42  ;;  %v813_v55 = vld [vmem:[%s4061_s5 + $0xd0] sm:$0xf]  ;;  %v490_v56 = vld [vmem:[%s4059_s3 + $0xd4] sm:$0xf]  ;;  %v1377_v57 = vmax.bf16 %v1296_v31, %v1215_v46 }
  0xb0   :  { %v893_v58 = vmax.bf16 %v812_v38, %v731_v49  ;;  %v409_v59 = vmax.bf16 %v328_v45, %v247_v51  ;;  %v86_v60 = vld [vmem:[%s4056_s0 + $0xd8] sm:$0xf]  ;;  %v1216_v63 = vmax.bf16 %v1135_v47, %v1054_v52  ;;  %v1136_v0 = vld [vmem:[%s4063_s7 + $0xcc] sm:$0xf]  ;;  %v652_v3 = vld [vmem:[%s4060_s4 + $0xd4] sm:$0xf] }
  0xb1   :  { %v167_v61 = vld [vmem:[%s4057_s1 + $0xd8] sm:$0xf]  ;;  %v1298_v1 = vld [vmem:[%s4064_s8 + $0xcc] sm:$0xf]  ;;  %v732_v2 = vmax.bf16 %v651_v50, %v570_v54  ;;  %1459 = vst.msk [vmem:[%s4065_s9 + $0xc4] sm:$0xf] %vm1409_vm0, %v1377_v57 }
  0xb2   :  { %v329_v62 = vld [vmem:[%s4058_s2 + $0xd8] sm:$0xf]  ;;  %v248_v4 = vmax.bf16 %v167_v61, %v86_v60  ;;  %v1055_v5 = vmax.bf16 %v974_v53, %v893_v58  ;;  %v975_v6 = vld [vmem:[%s4062_s6 + $0xd0] sm:$0xf]  ;;  %v571_v7 = vmax.bf16 %v490_v56, %v409_v59  ;;  %v814_v8 = vld [vmem:[%s4061_s5 + $0xd4] sm:$0xf]  ;;  %v1378_v10 = vmax.bf16 %v1297_v48, %v1216_v63 }
  0xb3   :  { %v491_v9 = vld [vmem:[%s4059_s3 + $0xd8] sm:$0xf]  ;;  %v894_v11 = vmax.bf16 %v813_v55, %v732_v2  ;;  %v87_v13 = vld [vmem:[%s4056_s0 + $0xdc] sm:$0xf]  ;;  %v1137_v17 = vld [vmem:[%s4063_s7 + $0xd0] sm:$0xf] }
  0xb4   :  { %v410_v12 = vmax.bf16 %v329_v62, %v248_v4  ;;  %v168_v14 = vld [vmem:[%s4057_s1 + $0xdc] sm:$0xf]  ;;  %v1217_v16 = vmax.bf16 %v1136_v0, %v1055_v5  ;;  %v1299_v18 = vld [vmem:[%s4064_s8 + $0xd0] sm:$0xf]  ;;  %v733_v19 = vmax.bf16 %v652_v3, %v571_v7  ;;  %v653_v20 = vld [vmem:[%s4060_s4 + $0xd8] sm:$0xf] }
  0xb5   :  { %v330_v15 = vld [vmem:[%s4058_s2 + $0xdc] sm:$0xf]  ;;  %v249_v21 = vmax.bf16 %v168_v14, %v87_v13  ;;  %1460 = vst.msk [vmem:[%s4065_s9 + $0xc8] sm:$0xf] %vm1409_vm0, %v1378_v10  ;;  %v1056_v22 = vmax.bf16 %v975_v6, %v894_v11  ;;  %v976_v23 = vld [vmem:[%s4062_s6 + $0xd4] sm:$0xf] }
  0xb6   :  { %v572_v24 = vmax.bf16 %v491_v9, %v410_v12  ;;  %v815_v25 = vld [vmem:[%s4061_s5 + $0xd8] sm:$0xf]  ;;  %v492_v26 = vld [vmem:[%s4059_s3 + $0xdc] sm:$0xf]  ;;  %v1379_v27 = vmax.bf16 %v1298_v1, %v1217_v16  ;;  %v895_v28 = vmax.bf16 %v814_v8, %v733_v19  ;;  %v88_v30 = vld [vmem:[%s4056_s0 + $0xe0] sm:$0xf] }
  0xb7   :  { %v411_v29 = vmax.bf16 %v330_v15, %v249_v21  ;;  %v169_v31 = vld [vmem:[%s4057_s1 + $0xe0] sm:$0xf]  ;;  %v1218_v33 = vmax.bf16 %v1137_v17, %v1056_v22  ;;  %v1138_v34 = vld [vmem:[%s4063_s7 + $0xd4] sm:$0xf]  ;;  %v654_v37 = vld [vmem:[%s4060_s4 + $0xdc] sm:$0xf] }
  0xb8   :  { %v331_v32 = vld [vmem:[%s4058_s2 + $0xe0] sm:$0xf]  ;;  %v1300_v35 = vld [vmem:[%s4064_s8 + $0xd4] sm:$0xf]  ;;  %v734_v36 = vmax.bf16 %v653_v20, %v572_v24  ;;  %v250_v38 = vmax.bf16 %v169_v31, %v88_v30  ;;  %1461 = vst.msk [vmem:[%s4065_s9 + $0xcc] sm:$0xf] %vm1409_vm0, %v1379_v27  ;;  %v1057_v39 = vmax.bf16 %v976_v23, %v895_v28 }
  0xb9   :  { %v977_v40 = vld [vmem:[%s4062_s6 + $0xd8] sm:$0xf]  ;;  %v573_v41 = vmax.bf16 %v492_v26, %v411_v29  ;;  %v816_v42 = vld [vmem:[%s4061_s5 + $0xdc] sm:$0xf]  ;;  %v493_v43 = vld [vmem:[%s4059_s3 + $0xe0] sm:$0xf]  ;;  %v1380_v44 = vmax.bf16 %v1299_v18, %v1218_v33 }
  0xba   :  { %v896_v45 = vmax.bf16 %v815_v25, %v734_v36  ;;  %v412_v46 = vmax.bf16 %v331_v32, %v250_v38  ;;  %v89_v47 = vld [vmem:[%s4056_s0 + $0xe4] sm:$0xf]  ;;  %v1219_v50 = vmax.bf16 %v1138_v34, %v1057_v39  ;;  %v1139_v51 = vld [vmem:[%s4063_s7 + $0xd8] sm:$0xf]  ;;  %v655_v54 = vld [vmem:[%s4060_s4 + $0xe0] sm:$0xf] }
  0xbb   :  { %v170_v48 = vld [vmem:[%s4057_s1 + $0xe4] sm:$0xf]  ;;  %v1301_v52 = vld [vmem:[%s4064_s8 + $0xd8] sm:$0xf]  ;;  %v735_v53 = vmax.bf16 %v654_v37, %v573_v41  ;;  %1462 = vst.msk [vmem:[%s4065_s9 + $0xd0] sm:$0xf] %vm1409_vm0, %v1380_v44 }
  0xbc   :  { %v332_v49 = vld [vmem:[%s4058_s2 + $0xe4] sm:$0xf]  ;;  %v251_v55 = vmax.bf16 %v170_v48, %v89_v47  ;;  %v1058_v56 = vmax.bf16 %v977_v40, %v896_v45  ;;  %v978_v57 = vld [vmem:[%s4062_s6 + $0xdc] sm:$0xf]  ;;  %v574_v58 = vmax.bf16 %v493_v43, %v412_v46  ;;  %v817_v59 = vld [vmem:[%s4061_s5 + $0xe0] sm:$0xf]  ;;  %v1381_v61 = vmax.bf16 %v1300_v35, %v1219_v50 }
  0xbd   :  { %v494_v60 = vld [vmem:[%s4059_s3 + $0xe4] sm:$0xf]  ;;  %v897_v62 = vmax.bf16 %v816_v42, %v735_v53  ;;  %v90_v0 = vld [vmem:[%s4056_s0 + $0xe8] sm:$0xf]  ;;  %v1140_v4 = vld [vmem:[%s4063_s7 + $0xdc] sm:$0xf] }
  0xbe   :  { %v413_v63 = vmax.bf16 %v332_v49, %v251_v55  ;;  %v171_v1 = vld [vmem:[%s4057_s1 + $0xe8] sm:$0xf]  ;;  %v1220_v3 = vmax.bf16 %v1139_v51, %v1058_v56  ;;  %v1302_v5 = vld [vmem:[%s4064_s8 + $0xdc] sm:$0xf]  ;;  %v736_v6 = vmax.bf16 %v655_v54, %v574_v58  ;;  %v656_v7 = vld [vmem:[%s4060_s4 + $0xe4] sm:$0xf] }
  0xbf   :  { %v333_v2 = vld [vmem:[%s4058_s2 + $0xe8] sm:$0xf]  ;;  %v252_v8 = vmax.bf16 %v171_v1, %v90_v0  ;;  %1463 = vst.msk [vmem:[%s4065_s9 + $0xd4] sm:$0xf] %vm1409_vm0, %v1381_v61  ;;  %v1059_v9 = vmax.bf16 %v978_v57, %v897_v62  ;;  %v979_v10 = vld [vmem:[%s4062_s6 + $0xe0] sm:$0xf] }
  0xc0   :  { %v575_v11 = vmax.bf16 %v494_v60, %v413_v63  ;;  %v818_v12 = vld [vmem:[%s4061_s5 + $0xe4] sm:$0xf]  ;;  %v495_v13 = vld [vmem:[%s4059_s3 + $0xe8] sm:$0xf]  ;;  %v1382_v14 = vmax.bf16 %v1301_v52, %v1220_v3  ;;  %v898_v15 = vmax.bf16 %v817_v59, %v736_v6  ;;  %v91_v17 = vld [vmem:[%s4056_s0 + $0xec] sm:$0xf] }
  0xc1   :  { %v414_v16 = vmax.bf16 %v333_v2, %v252_v8  ;;  %v172_v18 = vld [vmem:[%s4057_s1 + $0xec] sm:$0xf]  ;;  %v1221_v20 = vmax.bf16 %v1140_v4, %v1059_v9  ;;  %v1141_v21 = vld [vmem:[%s4063_s7 + $0xe0] sm:$0xf]  ;;  %v657_v24 = vld [vmem:[%s4060_s4 + $0xe8] sm:$0xf] }
  0xc2   :  { %v334_v19 = vld [vmem:[%s4058_s2 + $0xec] sm:$0xf]  ;;  %v1303_v22 = vld [vmem:[%s4064_s8 + $0xe0] sm:$0xf]  ;;  %v737_v23 = vmax.bf16 %v656_v7, %v575_v11  ;;  %v253_v25 = vmax.bf16 %v172_v18, %v91_v17  ;;  %1464 = vst.msk [vmem:[%s4065_s9 + $0xd8] sm:$0xf] %vm1409_vm0, %v1382_v14  ;;  %v1060_v26 = vmax.bf16 %v979_v10, %v898_v15 }
  0xc3   :  { %v980_v27 = vld [vmem:[%s4062_s6 + $0xe4] sm:$0xf]  ;;  %v576_v28 = vmax.bf16 %v495_v13, %v414_v16  ;;  %v819_v29 = vld [vmem:[%s4061_s5 + $0xe8] sm:$0xf]  ;;  %v496_v30 = vld [vmem:[%s4059_s3 + $0xec] sm:$0xf]  ;;  %v1383_v31 = vmax.bf16 %v1302_v5, %v1221_v20 }
  0xc4   :  { %v899_v32 = vmax.bf16 %v818_v12, %v737_v23  ;;  %v415_v33 = vmax.bf16 %v334_v19, %v253_v25  ;;  %v92_v34 = vld [vmem:[%s4056_s0 + $0xf0] sm:$0xf]  ;;  %v1222_v37 = vmax.bf16 %v1141_v21, %v1060_v26  ;;  %v1142_v38 = vld [vmem:[%s4063_s7 + $0xe4] sm:$0xf]  ;;  %v658_v41 = vld [vmem:[%s4060_s4 + $0xec] sm:$0xf] }
  0xc5   :  { %v173_v35 = vld [vmem:[%s4057_s1 + $0xf0] sm:$0xf]  ;;  %v1304_v39 = vld [vmem:[%s4064_s8 + $0xe4] sm:$0xf]  ;;  %v738_v40 = vmax.bf16 %v657_v24, %v576_v28  ;;  %1465 = vst.msk [vmem:[%s4065_s9 + $0xdc] sm:$0xf] %vm1409_vm0, %v1383_v31 }
  0xc6   :  { %v335_v36 = vld [vmem:[%s4058_s2 + $0xf0] sm:$0xf]  ;;  %v254_v42 = vmax.bf16 %v173_v35, %v92_v34  ;;  %v1061_v43 = vmax.bf16 %v980_v27, %v899_v32  ;;  %v981_v44 = vld [vmem:[%s4062_s6 + $0xe8] sm:$0xf]  ;;  %v577_v45 = vmax.bf16 %v496_v30, %v415_v33  ;;  %v820_v46 = vld [vmem:[%s4061_s5 + $0xec] sm:$0xf]  ;;  %v1384_v48 = vmax.bf16 %v1303_v22, %v1222_v37 }
  0xc7   :  { %v497_v47 = vld [vmem:[%s4059_s3 + $0xf0] sm:$0xf]  ;;  %v900_v49 = vmax.bf16 %v819_v29, %v738_v40  ;;  %v93_v51 = vld [vmem:[%s4056_s0 + $0xf4] sm:$0xf]  ;;  %v1143_v55 = vld [vmem:[%s4063_s7 + $0xe8] sm:$0xf] }
  0xc8   :  { %v416_v50 = vmax.bf16 %v335_v36, %v254_v42  ;;  %v174_v52 = vld [vmem:[%s4057_s1 + $0xf4] sm:$0xf]  ;;  %v1223_v54 = vmax.bf16 %v1142_v38, %v1061_v43  ;;  %v1305_v56 = vld [vmem:[%s4064_s8 + $0xe8] sm:$0xf]  ;;  %v739_v57 = vmax.bf16 %v658_v41, %v577_v45  ;;  %v659_v58 = vld [vmem:[%s4060_s4 + $0xf0] sm:$0xf] }
  0xc9   :  { %v336_v53 = vld [vmem:[%s4058_s2 + $0xf4] sm:$0xf]  ;;  %v255_v59 = vmax.bf16 %v174_v52, %v93_v51  ;;  %1466 = vst.msk [vmem:[%s4065_s9 + $0xe0] sm:$0xf] %vm1409_vm0, %v1384_v48  ;;  %v1062_v60 = vmax.bf16 %v981_v44, %v900_v49  ;;  %v982_v61 = vld [vmem:[%s4062_s6 + $0xec] sm:$0xf] }
  0xca   :  { %v578_v62 = vmax.bf16 %v497_v47, %v416_v50  ;;  %v821_v63 = vld [vmem:[%s4061_s5 + $0xf0] sm:$0xf]  ;;  %v498_v0 = vld [vmem:[%s4059_s3 + $0xf4] sm:$0xf]  ;;  %v1385_v1 = vmax.bf16 %v1304_v39, %v1223_v54  ;;  %v901_v2 = vmax.bf16 %v820_v46, %v739_v57  ;;  %v94_v4 = vld [vmem:[%s4056_s0 + $0xf8] sm:$0xf] }
  0xcb   :  { %v417_v3 = vmax.bf16 %v336_v53, %v255_v59  ;;  %v175_v5 = vld [vmem:[%s4057_s1 + $0xf8] sm:$0xf]  ;;  %v1224_v7 = vmax.bf16 %v1143_v55, %v1062_v60  ;;  %v1144_v8 = vld [vmem:[%s4063_s7 + $0xec] sm:$0xf]  ;;  %v660_v11 = vld [vmem:[%s4060_s4 + $0xf4] sm:$0xf] }
  0xcc   :  { %v337_v6 = vld [vmem:[%s4058_s2 + $0xf8] sm:$0xf]  ;;  %v1306_v9 = vld [vmem:[%s4064_s8 + $0xec] sm:$0xf]  ;;  %v740_v10 = vmax.bf16 %v659_v58, %v578_v62  ;;  %v256_v12 = vmax.bf16 %v175_v5, %v94_v4  ;;  %1467 = vst.msk [vmem:[%s4065_s9 + $0xe4] sm:$0xf] %vm1409_vm0, %v1385_v1  ;;  %v1063_v13 = vmax.bf16 %v982_v61, %v901_v2 }
  0xcd   :  { %v983_v14 = vld [vmem:[%s4062_s6 + $0xf0] sm:$0xf]  ;;  %v579_v15 = vmax.bf16 %v498_v0, %v417_v3  ;;  %v822_v16 = vld [vmem:[%s4061_s5 + $0xf4] sm:$0xf]  ;;  %v499_v17 = vld [vmem:[%s4059_s3 + $0xf8] sm:$0xf]  ;;  %v1386_v18 = vmax.bf16 %v1305_v56, %v1224_v7 }
  0xce   :  { %v902_v19 = vmax.bf16 %v821_v63, %v740_v10  ;;  %v418_v20 = vmax.bf16 %v337_v6, %v256_v12  ;;  %v95_v21 = vld [vmem:[%s4056_s0 + $0xfc] sm:$0xf]  ;;  %v1225_v24 = vmax.bf16 %v1144_v8, %v1063_v13  ;;  %v1145_v25 = vld [vmem:[%s4063_s7 + $0xf0] sm:$0xf]  ;;  %v661_v28 = vld [vmem:[%s4060_s4 + $0xf8] sm:$0xf] }
  0xcf   :  { %v176_v22 = vld [vmem:[%s4057_s1 + $0xfc] sm:$0xf]  ;;  %v1307_v26 = vld [vmem:[%s4064_s8 + $0xf0] sm:$0xf]  ;;  %v741_v27 = vmax.bf16 %v660_v11, %v579_v15  ;;  %1468 = vst.msk [vmem:[%s4065_s9 + $0xe8] sm:$0xf] %vm1409_vm0, %v1386_v18 }
  0xd0   :  { %v338_v23 = vld [vmem:[%s4058_s2 + $0xfc] sm:$0xf]  ;;  %v257_v29 = vmax.bf16 %v176_v22, %v95_v21  ;;  %v1064_v30 = vmax.bf16 %v983_v14, %v902_v19  ;;  %v984_v31 = vld [vmem:[%s4062_s6 + $0xf4] sm:$0xf]  ;;  %v580_v32 = vmax.bf16 %v499_v17, %v418_v20  ;;  %v823_v33 = vld [vmem:[%s4061_s5 + $0xf8] sm:$0xf]  ;;  %v1387_v35 = vmax.bf16 %v1306_v9, %v1225_v24 }
  0xd1   :  { %v500_v34 = vld [vmem:[%s4059_s3 + $0xfc] sm:$0xf]  ;;  %v903_v36 = vmax.bf16 %v822_v16, %v741_v27  ;;  %v96_v38 = vld [vmem:[%s4056_s0 + $0x100] sm:$0xf]  ;;  %v1146_v42 = vld [vmem:[%s4063_s7 + $0xf4] sm:$0xf] }
  0xd2   :  { %v419_v37 = vmax.bf16 %v338_v23, %v257_v29  ;;  %v177_v39 = vld [vmem:[%s4057_s1 + $0x100] sm:$0xf]  ;;  %v1226_v41 = vmax.bf16 %v1145_v25, %v1064_v30  ;;  %v1308_v43 = vld [vmem:[%s4064_s8 + $0xf4] sm:$0xf]  ;;  %v742_v44 = vmax.bf16 %v661_v28, %v580_v32  ;;  %v662_v45 = vld [vmem:[%s4060_s4 + $0xfc] sm:$0xf] }
  0xd3   :  { %v339_v40 = vld [vmem:[%s4058_s2 + $0x100] sm:$0xf]  ;;  %v258_v46 = vmax.bf16 %v177_v39, %v96_v38  ;;  %1469 = vst.msk [vmem:[%s4065_s9 + $0xec] sm:$0xf] %vm1409_vm0, %v1387_v35  ;;  %v1065_v47 = vmax.bf16 %v984_v31, %v903_v36  ;;  %v985_v48 = vld [vmem:[%s4062_s6 + $0xf8] sm:$0xf] }
  0xd4   :  { %v581_v49 = vmax.bf16 %v500_v34, %v419_v37  ;;  %v824_v50 = vld [vmem:[%s4061_s5 + $0xfc] sm:$0xf]  ;;  %v501_v51 = vld [vmem:[%s4059_s3 + $0x100] sm:$0xf]  ;;  %v1388_v52 = vmax.bf16 %v1307_v26, %v1226_v41  ;;  %v904_v53 = vmax.bf16 %v823_v33, %v742_v44  ;;  %v97_v55 = vld [vmem:[%s4056_s0 + $0x104] sm:$0xf] }
  0xd5   :  { %v420_v54 = vmax.bf16 %v339_v40, %v258_v46  ;;  %v178_v56 = vld [vmem:[%s4057_s1 + $0x104] sm:$0xf]  ;;  %v1227_v58 = vmax.bf16 %v1146_v42, %v1065_v47  ;;  %v1147_v59 = vld [vmem:[%s4063_s7 + $0xf8] sm:$0xf]  ;;  %v663_v62 = vld [vmem:[%s4060_s4 + $0x100] sm:$0xf] }
  0xd6   :  { %v340_v57 = vld [vmem:[%s4058_s2 + $0x104] sm:$0xf]  ;;  %v1309_v60 = vld [vmem:[%s4064_s8 + $0xf8] sm:$0xf]  ;;  %v743_v61 = vmax.bf16 %v662_v45, %v581_v49  ;;  %v259_v63 = vmax.bf16 %v178_v56, %v97_v55  ;;  %1470 = vst.msk [vmem:[%s4065_s9 + $0xf0] sm:$0xf] %vm1409_vm0, %v1388_v52  ;;  %v1066_v0 = vmax.bf16 %v985_v48, %v904_v53 }
  0xd7   :  { %v986_v1 = vld [vmem:[%s4062_s6 + $0xfc] sm:$0xf]  ;;  %v582_v2 = vmax.bf16 %v501_v51, %v420_v54  ;;  %v825_v3 = vld [vmem:[%s4061_s5 + $0x100] sm:$0xf]  ;;  %v502_v4 = vld [vmem:[%s4059_s3 + $0x104] sm:$0xf]  ;;  %v1389_v5 = vmax.bf16 %v1308_v43, %v1227_v58 }
  0xd8   :  { %v905_v6 = vmax.bf16 %v824_v50, %v743_v61  ;;  %v421_v7 = vmax.bf16 %v340_v57, %v259_v63  ;;  %v98_v8 = vld [vmem:[%s4056_s0 + $0x108] sm:$0xf]  ;;  %v1228_v11 = vmax.bf16 %v1147_v59, %v1066_v0  ;;  %v1148_v12 = vld [vmem:[%s4063_s7 + $0xfc] sm:$0xf]  ;;  %v664_v15 = vld [vmem:[%s4060_s4 + $0x104] sm:$0xf] }
  0xd9   :  { %v179_v9 = vld [vmem:[%s4057_s1 + $0x108] sm:$0xf]  ;;  %v1310_v13 = vld [vmem:[%s4064_s8 + $0xfc] sm:$0xf]  ;;  %v744_v14 = vmax.bf16 %v663_v62, %v582_v2  ;;  %1471 = vst.msk [vmem:[%s4065_s9 + $0xf4] sm:$0xf] %vm1409_vm0, %v1389_v5 }
  0xda   :  { %v341_v10 = vld [vmem:[%s4058_s2 + $0x108] sm:$0xf]  ;;  %v260_v16 = vmax.bf16 %v179_v9, %v98_v8  ;;  %v1067_v17 = vmax.bf16 %v986_v1, %v905_v6  ;;  %v987_v18 = vld [vmem:[%s4062_s6 + $0x100] sm:$0xf]  ;;  %v583_v19 = vmax.bf16 %v502_v4, %v421_v7  ;;  %v826_v20 = vld [vmem:[%s4061_s5 + $0x104] sm:$0xf]  ;;  %v1390_v22 = vmax.bf16 %v1309_v60, %v1228_v11 }
  0xdb   :  { %v503_v21 = vld [vmem:[%s4059_s3 + $0x108] sm:$0xf]  ;;  %v906_v23 = vmax.bf16 %v825_v3, %v744_v14  ;;  %v99_v25 = vld [vmem:[%s4056_s0 + $0x10c] sm:$0xf]  ;;  %v1149_v29 = vld [vmem:[%s4063_s7 + $0x100] sm:$0xf] }
  0xdc   :  { %v422_v24 = vmax.bf16 %v341_v10, %v260_v16  ;;  %v180_v26 = vld [vmem:[%s4057_s1 + $0x10c] sm:$0xf]  ;;  %v1229_v28 = vmax.bf16 %v1148_v12, %v1067_v17  ;;  %v1311_v30 = vld [vmem:[%s4064_s8 + $0x100] sm:$0xf]  ;;  %v745_v31 = vmax.bf16 %v664_v15, %v583_v19  ;;  %v665_v32 = vld [vmem:[%s4060_s4 + $0x108] sm:$0xf] }
  0xdd   :  { %v342_v27 = vld [vmem:[%s4058_s2 + $0x10c] sm:$0xf]  ;;  %v261_v33 = vmax.bf16 %v180_v26, %v99_v25  ;;  %1472 = vst.msk [vmem:[%s4065_s9 + $0xf8] sm:$0xf] %vm1409_vm0, %v1390_v22  ;;  %v1068_v34 = vmax.bf16 %v987_v18, %v906_v23  ;;  %v988_v35 = vld [vmem:[%s4062_s6 + $0x104] sm:$0xf] }
  0xde   :  { %v584_v36 = vmax.bf16 %v503_v21, %v422_v24  ;;  %v827_v37 = vld [vmem:[%s4061_s5 + $0x108] sm:$0xf]  ;;  %v504_v38 = vld [vmem:[%s4059_s3 + $0x10c] sm:$0xf]  ;;  %v1391_v39 = vmax.bf16 %v1310_v13, %v1229_v28  ;;  %v907_v40 = vmax.bf16 %v826_v20, %v745_v31  ;;  %v100_v42 = vld [vmem:[%s4056_s0 + $0x110] sm:$0xf] }
  0xdf   :  { %v423_v41 = vmax.bf16 %v342_v27, %v261_v33  ;;  %v181_v43 = vld [vmem:[%s4057_s1 + $0x110] sm:$0xf]  ;;  %v1230_v45 = vmax.bf16 %v1149_v29, %v1068_v34  ;;  %v1150_v46 = vld [vmem:[%s4063_s7 + $0x104] sm:$0xf]  ;;  %v666_v49 = vld [vmem:[%s4060_s4 + $0x10c] sm:$0xf] }
  0xe0   :  { %v343_v44 = vld [vmem:[%s4058_s2 + $0x110] sm:$0xf]  ;;  %v1312_v47 = vld [vmem:[%s4064_s8 + $0x104] sm:$0xf]  ;;  %v746_v48 = vmax.bf16 %v665_v32, %v584_v36  ;;  %v262_v50 = vmax.bf16 %v181_v43, %v100_v42  ;;  %1473 = vst.msk [vmem:[%s4065_s9 + $0xfc] sm:$0xf] %vm1409_vm0, %v1391_v39  ;;  %v1069_v51 = vmax.bf16 %v988_v35, %v907_v40 }
  0xe1   :  { %v989_v52 = vld [vmem:[%s4062_s6 + $0x108] sm:$0xf]  ;;  %v585_v53 = vmax.bf16 %v504_v38, %v423_v41  ;;  %v828_v54 = vld [vmem:[%s4061_s5 + $0x10c] sm:$0xf]  ;;  %v505_v55 = vld [vmem:[%s4059_s3 + $0x110] sm:$0xf]  ;;  %v1392_v56 = vmax.bf16 %v1311_v30, %v1230_v45 }
  0xe2   :  { %v908_v57 = vmax.bf16 %v827_v37, %v746_v48  ;;  %v424_v58 = vmax.bf16 %v343_v44, %v262_v50  ;;  %v101_v59 = vld [vmem:[%s4056_s0 + $0x114] sm:$0xf]  ;;  %v1231_v62 = vmax.bf16 %v1150_v46, %v1069_v51  ;;  %v1151_v63 = vld [vmem:[%s4063_s7 + $0x108] sm:$0xf]  ;;  %v667_v2 = vld [vmem:[%s4060_s4 + $0x110] sm:$0xf] }
  0xe3   :  { %v182_v60 = vld [vmem:[%s4057_s1 + $0x114] sm:$0xf]  ;;  %v1313_v0 = vld [vmem:[%s4064_s8 + $0x108] sm:$0xf]  ;;  %v747_v1 = vmax.bf16 %v666_v49, %v585_v53  ;;  %1474 = vst.msk [vmem:[%s4065_s9 + $0x100] sm:$0xf] %vm1409_vm0, %v1392_v56 }
  0xe4   :  { %v344_v61 = vld [vmem:[%s4058_s2 + $0x114] sm:$0xf]  ;;  %v263_v3 = vmax.bf16 %v182_v60, %v101_v59  ;;  %v1070_v4 = vmax.bf16 %v989_v52, %v908_v57  ;;  %v990_v5 = vld [vmem:[%s4062_s6 + $0x10c] sm:$0xf]  ;;  %v586_v6 = vmax.bf16 %v505_v55, %v424_v58  ;;  %v829_v7 = vld [vmem:[%s4061_s5 + $0x110] sm:$0xf]  ;;  %v1393_v9 = vmax.bf16 %v1312_v47, %v1231_v62 }
  0xe5   :  { %v506_v8 = vld [vmem:[%s4059_s3 + $0x114] sm:$0xf]  ;;  %v909_v10 = vmax.bf16 %v828_v54, %v747_v1  ;;  %v102_v12 = vld [vmem:[%s4056_s0 + $0x118] sm:$0xf]  ;;  %v1152_v16 = vld [vmem:[%s4063_s7 + $0x10c] sm:$0xf] }
  0xe6   :  { %v425_v11 = vmax.bf16 %v344_v61, %v263_v3  ;;  %v183_v13 = vld [vmem:[%s4057_s1 + $0x118] sm:$0xf]  ;;  %v1232_v15 = vmax.bf16 %v1151_v63, %v1070_v4  ;;  %v1314_v17 = vld [vmem:[%s4064_s8 + $0x10c] sm:$0xf]  ;;  %v748_v18 = vmax.bf16 %v667_v2, %v586_v6  ;;  %v668_v19 = vld [vmem:[%s4060_s4 + $0x114] sm:$0xf] }
  0xe7   :  { %v345_v14 = vld [vmem:[%s4058_s2 + $0x118] sm:$0xf]  ;;  %v264_v20 = vmax.bf16 %v183_v13, %v102_v12  ;;  %1475 = vst.msk [vmem:[%s4065_s9 + $0x104] sm:$0xf] %vm1409_vm0, %v1393_v9  ;;  %v1071_v21 = vmax.bf16 %v990_v5, %v909_v10  ;;  %v991_v22 = vld [vmem:[%s4062_s6 + $0x110] sm:$0xf] }
  0xe8   :  { %v587_v23 = vmax.bf16 %v506_v8, %v425_v11  ;;  %v830_v24 = vld [vmem:[%s4061_s5 + $0x114] sm:$0xf]  ;;  %v507_v25 = vld [vmem:[%s4059_s3 + $0x118] sm:$0xf]  ;;  %v1394_v26 = vmax.bf16 %v1313_v0, %v1232_v15  ;;  %v910_v27 = vmax.bf16 %v829_v7, %v748_v18  ;;  %v103_v29 = vld [vmem:[%s4056_s0 + $0x11c] sm:$0xf] }
  0xe9   :  { %v426_v28 = vmax.bf16 %v345_v14, %v264_v20  ;;  %v184_v30 = vld [vmem:[%s4057_s1 + $0x11c] sm:$0xf]  ;;  %v1233_v32 = vmax.bf16 %v1152_v16, %v1071_v21  ;;  %v1153_v33 = vld [vmem:[%s4063_s7 + $0x110] sm:$0xf]  ;;  %v669_v36 = vld [vmem:[%s4060_s4 + $0x118] sm:$0xf] }
  0xea   :  { %v346_v31 = vld [vmem:[%s4058_s2 + $0x11c] sm:$0xf]  ;;  %v1315_v34 = vld [vmem:[%s4064_s8 + $0x110] sm:$0xf]  ;;  %v749_v35 = vmax.bf16 %v668_v19, %v587_v23  ;;  %v265_v37 = vmax.bf16 %v184_v30, %v103_v29  ;;  %1476 = vst.msk [vmem:[%s4065_s9 + $0x108] sm:$0xf] %vm1409_vm0, %v1394_v26  ;;  %v1072_v38 = vmax.bf16 %v991_v22, %v910_v27 }
  0xeb   :  { %v992_v39 = vld [vmem:[%s4062_s6 + $0x114] sm:$0xf]  ;;  %v588_v40 = vmax.bf16 %v507_v25, %v426_v28  ;;  %v831_v41 = vld [vmem:[%s4061_s5 + $0x118] sm:$0xf]  ;;  %v508_v42 = vld [vmem:[%s4059_s3 + $0x11c] sm:$0xf]  ;;  %v1395_v43 = vmax.bf16 %v1314_v17, %v1233_v32 }
  0xec   :  { %v911_v44 = vmax.bf16 %v830_v24, %v749_v35  ;;  %v427_v45 = vmax.bf16 %v346_v31, %v265_v37  ;;  %v104_v46 = vld [vmem:[%s4056_s0 + $0x120] sm:$0xf]  ;;  %v1234_v49 = vmax.bf16 %v1153_v33, %v1072_v38  ;;  %v1154_v50 = vld [vmem:[%s4063_s7 + $0x114] sm:$0xf]  ;;  %v670_v53 = vld [vmem:[%s4060_s4 + $0x11c] sm:$0xf] }
  0xed   :  { %v185_v47 = vld [vmem:[%s4057_s1 + $0x120] sm:$0xf]  ;;  %v1316_v51 = vld [vmem:[%s4064_s8 + $0x114] sm:$0xf]  ;;  %v750_v52 = vmax.bf16 %v669_v36, %v588_v40  ;;  %1477 = vst.msk [vmem:[%s4065_s9 + $0x10c] sm:$0xf] %vm1409_vm0, %v1395_v43 }
  0xee   :  { %v347_v48 = vld [vmem:[%s4058_s2 + $0x120] sm:$0xf]  ;;  %v266_v54 = vmax.bf16 %v185_v47, %v104_v46  ;;  %v1073_v55 = vmax.bf16 %v992_v39, %v911_v44  ;;  %v993_v56 = vld [vmem:[%s4062_s6 + $0x118] sm:$0xf]  ;;  %v589_v57 = vmax.bf16 %v508_v42, %v427_v45  ;;  %v832_v58 = vld [vmem:[%s4061_s5 + $0x11c] sm:$0xf]  ;;  %v1396_v60 = vmax.bf16 %v1315_v34, %v1234_v49 }
  0xef   :  { %v509_v59 = vld [vmem:[%s4059_s3 + $0x120] sm:$0xf]  ;;  %v912_v61 = vmax.bf16 %v831_v41, %v750_v52  ;;  %v105_v63 = vld [vmem:[%s4056_s0 + $0x124] sm:$0xf]  ;;  %v1155_v3 = vld [vmem:[%s4063_s7 + $0x118] sm:$0xf] }
  0xf0   :  { %v428_v62 = vmax.bf16 %v347_v48, %v266_v54  ;;  %v186_v0 = vld [vmem:[%s4057_s1 + $0x124] sm:$0xf]  ;;  %v1235_v2 = vmax.bf16 %v1154_v50, %v1073_v55  ;;  %v1317_v4 = vld [vmem:[%s4064_s8 + $0x118] sm:$0xf]  ;;  %v751_v5 = vmax.bf16 %v670_v53, %v589_v57  ;;  %v671_v6 = vld [vmem:[%s4060_s4 + $0x120] sm:$0xf] }
  0xf1   :  { %v348_v1 = vld [vmem:[%s4058_s2 + $0x124] sm:$0xf]  ;;  %v267_v7 = vmax.bf16 %v186_v0, %v105_v63  ;;  %1478 = vst.msk [vmem:[%s4065_s9 + $0x110] sm:$0xf] %vm1409_vm0, %v1396_v60  ;;  %v1074_v8 = vmax.bf16 %v993_v56, %v912_v61  ;;  %v994_v9 = vld [vmem:[%s4062_s6 + $0x11c] sm:$0xf] }
  0xf2   :  { %v590_v10 = vmax.bf16 %v509_v59, %v428_v62  ;;  %v833_v11 = vld [vmem:[%s4061_s5 + $0x120] sm:$0xf]  ;;  %v510_v12 = vld [vmem:[%s4059_s3 + $0x124] sm:$0xf]  ;;  %v1397_v13 = vmax.bf16 %v1316_v51, %v1235_v2  ;;  %v913_v14 = vmax.bf16 %v832_v58, %v751_v5  ;;  %v106_v16 = vld [vmem:[%s4056_s0 + $0x128] sm:$0xf] }
  0xf3   :  { %v429_v15 = vmax.bf16 %v348_v1, %v267_v7  ;;  %v187_v17 = vld [vmem:[%s4057_s1 + $0x128] sm:$0xf]  ;;  %v1236_v19 = vmax.bf16 %v1155_v3, %v1074_v8  ;;  %v1156_v20 = vld [vmem:[%s4063_s7 + $0x11c] sm:$0xf]  ;;  %v672_v23 = vld [vmem:[%s4060_s4 + $0x124] sm:$0xf] }
  0xf4   :  { %v349_v18 = vld [vmem:[%s4058_s2 + $0x128] sm:$0xf]  ;;  %v1318_v21 = vld [vmem:[%s4064_s8 + $0x11c] sm:$0xf]  ;;  %v752_v22 = vmax.bf16 %v671_v6, %v590_v10  ;;  %v268_v24 = vmax.bf16 %v187_v17, %v106_v16  ;;  %1479 = vst.msk [vmem:[%s4065_s9 + $0x114] sm:$0xf] %vm1409_vm0, %v1397_v13  ;;  %v1075_v25 = vmax.bf16 %v994_v9, %v913_v14 }
  0xf5   :  { %v995_v26 = vld [vmem:[%s4062_s6 + $0x120] sm:$0xf]  ;;  %v591_v27 = vmax.bf16 %v510_v12, %v429_v15  ;;  %v834_v28 = vld [vmem:[%s4061_s5 + $0x124] sm:$0xf]  ;;  %v511_v29 = vld [vmem:[%s4059_s3 + $0x128] sm:$0xf]  ;;  %v1398_v30 = vmax.bf16 %v1317_v4, %v1236_v19 }
  0xf6   :  { %v914_v31 = vmax.bf16 %v833_v11, %v752_v22  ;;  %v430_v32 = vmax.bf16 %v349_v18, %v268_v24  ;;  %v107_v33 = vld [vmem:[%s4056_s0 + $0x12c] sm:$0xf]  ;;  %v1237_v36 = vmax.bf16 %v1156_v20, %v1075_v25  ;;  %v1157_v37 = vld [vmem:[%s4063_s7 + $0x120] sm:$0xf]  ;;  %v673_v40 = vld [vmem:[%s4060_s4 + $0x128] sm:$0xf] }
  0xf7   :  { %v188_v34 = vld [vmem:[%s4057_s1 + $0x12c] sm:$0xf]  ;;  %v1319_v38 = vld [vmem:[%s4064_s8 + $0x120] sm:$0xf]  ;;  %v753_v39 = vmax.bf16 %v672_v23, %v591_v27  ;;  %1480 = vst.msk [vmem:[%s4065_s9 + $0x118] sm:$0xf] %vm1409_vm0, %v1398_v30 }
  0xf8   :  { %v350_v35 = vld [vmem:[%s4058_s2 + $0x12c] sm:$0xf]  ;;  %v269_v41 = vmax.bf16 %v188_v34, %v107_v33  ;;  %v1076_v42 = vmax.bf16 %v995_v26, %v914_v31  ;;  %v996_v43 = vld [vmem:[%s4062_s6 + $0x124] sm:$0xf]  ;;  %v592_v44 = vmax.bf16 %v511_v29, %v430_v32  ;;  %v835_v45 = vld [vmem:[%s4061_s5 + $0x128] sm:$0xf]  ;;  %v1399_v47 = vmax.bf16 %v1318_v21, %v1237_v36 }
  0xf9   :  { %v512_v46 = vld [vmem:[%s4059_s3 + $0x12c] sm:$0xf]  ;;  %v915_v48 = vmax.bf16 %v834_v28, %v753_v39  ;;  %v108_v50 = vld [vmem:[%s4056_s0 + $0x130] sm:$0xf]  ;;  %v1158_v54 = vld [vmem:[%s4063_s7 + $0x124] sm:$0xf] }
  0xfa   :  { %v431_v49 = vmax.bf16 %v350_v35, %v269_v41  ;;  %v189_v51 = vld [vmem:[%s4057_s1 + $0x130] sm:$0xf]  ;;  %v1238_v53 = vmax.bf16 %v1157_v37, %v1076_v42  ;;  %v1320_v55 = vld [vmem:[%s4064_s8 + $0x124] sm:$0xf]  ;;  %v754_v56 = vmax.bf16 %v673_v40, %v592_v44  ;;  %v674_v57 = vld [vmem:[%s4060_s4 + $0x12c] sm:$0xf] }
  0xfb   :  { %v351_v52 = vld [vmem:[%s4058_s2 + $0x130] sm:$0xf]  ;;  %v270_v58 = vmax.bf16 %v189_v51, %v108_v50  ;;  %1481 = vst.msk [vmem:[%s4065_s9 + $0x11c] sm:$0xf] %vm1409_vm0, %v1399_v47  ;;  %v1077_v59 = vmax.bf16 %v996_v43, %v915_v48  ;;  %v997_v60 = vld [vmem:[%s4062_s6 + $0x128] sm:$0xf] }
  0xfc   :  { %v593_v61 = vmax.bf16 %v512_v46, %v431_v49  ;;  %v836_v62 = vld [vmem:[%s4061_s5 + $0x12c] sm:$0xf]  ;;  %v513_v63 = vld [vmem:[%s4059_s3 + $0x130] sm:$0xf]  ;;  %v1400_v0 = vmax.bf16 %v1319_v38, %v1238_v53  ;;  %v916_v1 = vmax.bf16 %v835_v45, %v754_v56  ;;  %v109_v3 = vld [vmem:[%s4056_s0 + $0x134] sm:$0xf] }
  0xfd   :  { %v432_v2 = vmax.bf16 %v351_v52, %v270_v58  ;;  %v190_v4 = vld [vmem:[%s4057_s1 + $0x134] sm:$0xf]  ;;  %v1239_v6 = vmax.bf16 %v1158_v54, %v1077_v59  ;;  %v1159_v7 = vld [vmem:[%s4063_s7 + $0x128] sm:$0xf]  ;;  %v675_v10 = vld [vmem:[%s4060_s4 + $0x130] sm:$0xf] }
  0xfe   :  { %v352_v5 = vld [vmem:[%s4058_s2 + $0x134] sm:$0xf]  ;;  %v1321_v8 = vld [vmem:[%s4064_s8 + $0x128] sm:$0xf]  ;;  %v755_v9 = vmax.bf16 %v674_v57, %v593_v61  ;;  %v271_v11 = vmax.bf16 %v190_v4, %v109_v3  ;;  %1482 = vst.msk [vmem:[%s4065_s9 + $0x120] sm:$0xf] %vm1409_vm0, %v1400_v0  ;;  %v1078_v12 = vmax.bf16 %v997_v60, %v916_v1 }
  0xff   :  { %v998_v13 = vld [vmem:[%s4062_s6 + $0x12c] sm:$0xf]  ;;  %v594_v14 = vmax.bf16 %v513_v63, %v432_v2  ;;  %v837_v15 = vld [vmem:[%s4061_s5 + $0x130] sm:$0xf]  ;;  %v514_v16 = vld [vmem:[%s4059_s3 + $0x134] sm:$0xf]  ;;  %v1401_v17 = vmax.bf16 %v1320_v55, %v1239_v6 }
 0x100   :  { %v917_v18 = vmax.bf16 %v836_v62, %v755_v9  ;;  %v433_v19 = vmax.bf16 %v352_v5, %v271_v11  ;;  %v110_v20 = vld [vmem:[%s4056_s0 + $0x138] sm:$0xf]  ;;  %v1240_v23 = vmax.bf16 %v1159_v7, %v1078_v12  ;;  %v1160_v24 = vld [vmem:[%s4063_s7 + $0x12c] sm:$0xf]  ;;  %v676_v27 = vld [vmem:[%s4060_s4 + $0x134] sm:$0xf] }
 0x101   :  { %v191_v21 = vld [vmem:[%s4057_s1 + $0x138] sm:$0xf]  ;;  %v1322_v25 = vld [vmem:[%s4064_s8 + $0x12c] sm:$0xf]  ;;  %v756_v26 = vmax.bf16 %v675_v10, %v594_v14  ;;  %1483 = vst.msk [vmem:[%s4065_s9 + $0x124] sm:$0xf] %vm1409_vm0, %v1401_v17 }
 0x102   :  { %v353_v22 = vld [vmem:[%s4058_s2 + $0x138] sm:$0xf]  ;;  %v272_v28 = vmax.bf16 %v191_v21, %v110_v20  ;;  %v1079_v29 = vmax.bf16 %v998_v13, %v917_v18  ;;  %v999_v30 = vld [vmem:[%s4062_s6 + $0x130] sm:$0xf]  ;;  %v595_v31 = vmax.bf16 %v514_v16, %v433_v19  ;;  %v838_v32 = vld [vmem:[%s4061_s5 + $0x134] sm:$0xf]  ;;  %v1402_v34 = vmax.bf16 %v1321_v8, %v1240_v23 }
 0x103   :  { %v515_v33 = vld [vmem:[%s4059_s3 + $0x138] sm:$0xf]  ;;  %v918_v35 = vmax.bf16 %v837_v15, %v756_v26  ;;  %v111_v37 = vld [vmem:[%s4056_s0 + $0x13c] sm:$0xf]  ;;  %v1161_v41 = vld [vmem:[%s4063_s7 + $0x130] sm:$0xf] }
 0x104   :  { %v434_v36 = vmax.bf16 %v353_v22, %v272_v28  ;;  %v192_v38 = vld [vmem:[%s4057_s1 + $0x13c] sm:$0xf]  ;;  %v1241_v40 = vmax.bf16 %v1160_v24, %v1079_v29  ;;  %v1323_v42 = vld [vmem:[%s4064_s8 + $0x130] sm:$0xf]  ;;  %v757_v43 = vmax.bf16 %v676_v27, %v595_v31  ;;  %v677_v44 = vld [vmem:[%s4060_s4 + $0x138] sm:$0xf] }
 0x105   :  { %v354_v39 = vld [vmem:[%s4058_s2 + $0x13c] sm:$0xf]  ;;  %v273_v45 = vmax.bf16 %v192_v38, %v111_v37  ;;  %1484 = vst.msk [vmem:[%s4065_s9 + $0x128] sm:$0xf] %vm1409_vm0, %v1402_v34  ;;  %v1080_v46 = vmax.bf16 %v999_v30, %v918_v35  ;;  %v1000_v47 = vld [vmem:[%s4062_s6 + $0x134] sm:$0xf] }
 0x106   :  { %v596_v48 = vmax.bf16 %v515_v33, %v434_v36  ;;  %v839_v49 = vld [vmem:[%s4061_s5 + $0x138] sm:$0xf]  ;;  %v516_v50 = vld [vmem:[%s4059_s3 + $0x13c] sm:$0xf]  ;;  %v1403_v51 = vmax.bf16 %v1322_v25, %v1241_v40  ;;  %v919_v52 = vmax.bf16 %v838_v32, %v757_v43  ;;  %v112_v54 = vld [vmem:[%s4056_s0 + $0x140] sm:$0xf] }
 0x107   :  { %v435_v53 = vmax.bf16 %v354_v39, %v273_v45  ;;  %v193_v55 = vld [vmem:[%s4057_s1 + $0x140] sm:$0xf]  ;;  %v1242_v57 = vmax.bf16 %v1161_v41, %v1080_v46  ;;  %v1162_v58 = vld [vmem:[%s4063_s7 + $0x134] sm:$0xf]  ;;  %v678_v60 = vld [vmem:[%s4060_s4 + $0x13c] sm:$0xf] }
 0x108   :  { %v355_v56 = vld [vmem:[%s4058_s2 + $0x140] sm:$0xf]  ;;  %v758_v59 = vmax.bf16 %v677_v44, %v596_v48  ;;  %v274_v61 = vmax.bf16 %v193_v55, %v112_v54  ;;  %1485 = vst.msk [vmem:[%s4065_s9 + $0x12c] sm:$0xf] %vm1409_vm0, %v1403_v51  ;;  %v1081_v62 = vmax.bf16 %v1000_v47, %v919_v52  ;;  %v1001_v63 = vld [vmem:[%s4062_s6 + $0x138] sm:$0xf] }
 0x109   :  { %v597_v0 = vmax.bf16 %v516_v50, %v435_v53  ;;  %v517_v1 = vld [vmem:[%s4059_s3 + $0x140] sm:$0xf]  ;;  %v1404_v2 = vmax.bf16 %v1323_v42, %v1242_v57  ;;  %v1324_v3 = vld [vmem:[%s4064_s8 + $0x134] sm:$0xf]  ;;  %v840_v5 = vld [vmem:[%s4061_s5 + $0x13c] sm:$0xf] }
 0x10a   :  { %v920_v4 = vmax.bf16 %v839_v49, %v758_v59  ;;  %v436_v6 = vmax.bf16 %v355_v56, %v274_v61  ;;  %v1243_v7 = vmax.bf16 %v1162_v58, %v1081_v62  ;;  %v1163_v8 = vld [vmem:[%s4063_s7 + $0x138] sm:$0xf]  ;;  %v679_v10 = vld [vmem:[%s4060_s4 + $0x140] sm:$0xf]  ;;  %v1002_v12 = vld [vmem:[%s4062_s6 + $0x13c] sm:$0xf] }
 0x10b   :  { %v759_v9 = vmax.bf16 %v678_v60, %v597_v0  ;;  %1486 = vst.msk [vmem:[%s4065_s9 + $0x130] sm:$0xf] %vm1409_vm0, %v1404_v2  ;;  %v1325_v15 = vld [vmem:[%s4064_s8 + $0x138] sm:$0xf]  ;;  %v841_v17 = vld [vmem:[%s4061_s5 + $0x140] sm:$0xf] }
 0x10c   :  { %v1082_v11 = vmax.bf16 %v1001_v63, %v920_v4  ;;  %v598_v13 = vmax.bf16 %v517_v1, %v436_v6  ;;  %v1405_v14 = vmax.bf16 %v1324_v3, %v1243_v7  ;;  %v1164_v19 = vld [vmem:[%s4063_s7 + $0x13c] sm:$0xf]  ;;  %v1003_v22 = vld [vmem:[%s4062_s6 + $0x140] sm:$0xf] }
 0x10d   :  { %v921_v16 = vmax.bf16 %v840_v5, %v759_v9  ;;  %v1326_v24 = vld [vmem:[%s4064_s8 + $0x13c] sm:$0xf]  ;;  %v1165_v27 = vld [vmem:[%s4063_s7 + $0x140] sm:$0xf] }
 0x10e   :  { %v1244_v18 = vmax.bf16 %v1163_v8, %v1082_v11  ;;  %v760_v20 = vmax.bf16 %v679_v10, %v598_v13  ;;  %1487 = vst.msk [vmem:[%s4065_s9 + $0x134] sm:$0xf] %vm1409_vm0, %v1405_v14  ;;  %v1327_v30 = vld [vmem:[%s4064_s8 + $0x140] sm:$0xf] }
 0x10f   :  { %v1083_v21 = vmax.bf16 %v1002_v12, %v921_v16 }
 0x110   :  { %v1406_v23 = vmax.bf16 %v1325_v15, %v1244_v18  ;;  %v922_v25 = vmax.bf16 %v841_v17, %v760_v20 }
 0x111   :  { %v1245_v26 = vmax.bf16 %v1164_v19, %v1083_v21 }
 0x112   :  { %1488 = vst.msk [vmem:[%s4065_s9 + $0x138] sm:$0xf] %vm1409_vm0, %v1406_v23  ;;  %v1084_v28 = vmax.bf16 %v1003_v22, %v922_v25 }
 0x113   :  { %v1407_v29 = vmax.bf16 %v1326_v24, %v1245_v26 }
 0x114   :  { %v1246_v31 = vmax.bf16 %v1165_v27, %v1084_v28 }
 0x115   :  { %1489 = vst.msk [vmem:[%s4065_s9 + $0x13c] sm:$0xf] %vm1409_vm0, %v1407_v29 }
 0x116   :  { %v1408_v32 = vmax.bf16 %v1327_v30, %v1246_v31 }
 0x118   :  { %1490 = vst.msk [vmem:[%s4065_s9 + $0x140] sm:$0xf] %vm1409_vm0, %v1408_v32 }

</bundles_post_ra>
